<compile_context>
chip_gen: v7x
topology: tpu7x:2x2x1
jax: 0.10.0
libtpu: 0.0.40
codegen_flags: <defaults>
</compile_context>

<pallas_src>
import functools

import jax
import jax.numpy as jnp
from jax.experimental import pallas as pl
from jax.experimental.pallas import tpu as pltpu

HP = 256   # padded hidden size (220 -> 256): lane-aligned per-gate blocks
AP = 128   # padded action dim (4 -> 128): lane-dense output store


# ----------------------------- Pallas kernel ------------------------------ #
def _actor_lstm_kernel(
    x_ref,            # (T*BP, IN)   bf16  all timesteps, batch-padded, flattened
    wih_ref,          # (IN, 4*HP)   bf16  fused input->gate weights  [i|f|g|o]
    whh_ref,          # (HP, 4*HP)   bf16  fused hidden->gate weights [i|f|g|o]
    b_ref,            # (1, 4*HP)    f32   fused gate bias (b_ih + b_hh)
    wl1_ref,          # (HP, AP)     bf16  output projection
    bl1_ref,          # (1, AP)      f32
    h0_ref, c0_ref,   # (BP, HP)     f32   initial state (zero-padded)
    y_ref,            # (T*BP, AP)   f32   tanh(linear(h_t)) for every timestep
    hout_ref,         # (BP, HP)     f32   final hidden state
    cout_ref,         # (BP, HP)     f32   final cell state
    hall_scr,         # VMEM (T*BP, HP) bf16  all hidden states (batched l1)
    *, T, BP, HPAD,
):
    H = HPAD
    bias = b_ref[...]                     # (1, 4*HP) f32

    def xgate(t):
        # Tiny (BP, IN) x (IN, 4*HP) input->gate projection for timestep t.
        return (
            jnp.dot(x_ref[t * BP:(t + 1) * BP, :], wih_ref[...],
                    preferred_element_type=jnp.float32)
            + bias
        )

    h = h0_ref[...]                       # (BP, HP) f32
    c = c0_ref[...]                       # (BP, HP) f32
    xg = xgate(0)                         # only step-0 slice before the loop

    # Serial recurrence, statically unrolled (T small).  Per step: four
    # (BP,HP)x(HP,HP) bf16 gate matmuls ordered i, g, f, o; nonlinearities and
    # the cell update are interleaved so they overlap the later gate matmuls.
    # NOTE: whh stays in VMEM across steps; Mosaic is expected to keep the RHS
    # staged in the MXU across the unrolled iterations (bf16 tiles fit).
    for t in range(T):
        # Issue next step's (independent) input projection so it overlaps the
        # recurrence matmuls below.
        xg_next = xgate(t + 1) if t + 1 < T else None

        h_bf = h.astype(jnp.bfloat16)

        zi = xg[:, 0 * H:1 * H] + jnp.dot(
            h_bf, whh_ref[:, 0 * H:1 * H], preferred_element_type=jnp.float32)
        zg = xg[:, 2 * H:3 * H] + jnp.dot(
            h_bf, whh_ref[:, 2 * H:3 * H], preferred_element_type=jnp.float32)
        i = jax.nn.sigmoid(zi)
        g = jnp.tanh(zg)

        zf = xg[:, 1 * H:2 * H] + jnp.dot(
            h_bf, whh_ref[:, 1 * H:2 * H], preferred_element_type=jnp.float32)
        f = jax.nn.sigmoid(zf)
        c = f * c + i * g                 # overlaps with the o-gate matmul

        zo = xg[:, 3 * H:4 * H] + jnp.dot(
            h_bf, whh_ref[:, 3 * H:4 * H], preferred_element_type=jnp.float32)
        o = jax.nn.sigmoid(zo)
        h = o * jnp.tanh(c)

        hall_scr[t * BP:(t + 1) * BP, :] = h.astype(jnp.bfloat16)
        xg = xg_next

    hout_ref[...] = h
    cout_ref[...] = c

    # Batched output projection + tanh, single lane-dense (AP=128) store.
    y_ref[...] = jnp.tanh(
        jnp.dot(hall_scr[...], wl1_ref[...], preferred_element_type=jnp.float32)
        + bl1_ref[...]
    )


# ------------------------------ JAX wrapper -------------------------------- #
@functools.partial(jax.jit,
                   static_argnames=("hidden_dim", "action_dim", "return_hidden"))
def actor_forward(x, hidden_in, packed, *, hidden_dim, action_dim,
                  return_hidden=True):
    """x: (T, B, IN) f32.  hidden_in: (h0, c0) each (1, B, H) or None."""
    T, B, IN = x.shape
    hp = packed["whh"].shape[0]
    G = packed["whh"].shape[1]
    ap = packed["wl1"].shape[1]
    BP = max(8, ((B + 7) // 8) * 8)          # pad batch to >=8 sublanes

    if hidden_in is None:
        h0 = jnp.zeros((1, B, hidden_dim), jnp.float32)
        c0 = jnp.zeros((1, B, hidden_dim), jnp.float32)
    else:
        h0, c0 = hidden_in

    # Zero-pad batch / hidden so every tile is (8,128)-friendly.  This is done
    # under jit, so it fuses with the pallas_call instead of being standalone
    # XLA launches.
    x_p = (jnp.zeros((T, BP, IN), jnp.bfloat16)
           .at[:, :B, :].set(x.astype(jnp.bfloat16))
           .reshape(T * BP, IN))
    h0_p = jnp.zeros((BP, hp), jnp.float32).at[:B, :hidden_dim].set(h0[0])
    c0_p = jnp.zeros((BP, hp), jnp.float32).at[:B, :hidden_dim].set(c0[0])

    def full(shape):
        return pl.BlockSpec(shape, lambda i: (0,) * len(shape))

    kernel = functools.partial(_actor_lstm_kernel, T=T, BP=BP, HPAD=hp)

    y_p, h_p, c_p = pl.pallas_call(
        kernel,
        out_shape=(
            jax.ShapeDtypeStruct((T * BP, ap), jnp.float32),
            jax.ShapeDtypeStruct((BP, hp), jnp.float32),
            jax.ShapeDtypeStruct((BP, hp), jnp.float32),
        ),
        grid_spec=pltpu.PrefetchScalarGridSpec(
            num_scalar_prefetch=0,
            grid=(1,),
            in_specs=[
                full((T * BP, IN)),
                full((IN, G)), full((hp, G)), full((1, G)),
                full((hp, ap)), full((1, ap)),
                full((BP, hp)), full((BP, hp)),
            ],
            out_specs=[
                full((T * BP, ap)),
                full((BP, hp)),
                full((BP, hp)),
            ],
            scratch_shapes=[
                pltpu.VMEM((T * BP, hp), jnp.bfloat16),   # all hidden states
            ],
        ),
        compiler_params=pltpu.CompilerParams(
            dimension_semantics=("arbitrary",),
        ),
    )(
        x_p,
        packed["wih"], packed["whh"], packed["b"],
        packed["wl1"], packed["bl1"],
        h0_p, c0_p,
    )

    y = y_p.reshape(T, BP, ap)[:, :B, :action_dim]
    h_out = h_p[None, :B, :hidden_dim]
    c_out = c_p[None, :B, :hidden_dim]
    if return_hidden:
        return y, (h_out, c_out)
    return y


# ------------------------- deterministic param init ------------------------ #
def make_params(key, in_dim, hidden, action_dim):
    """Mirrors Actor.__init__ / init_weights (PyTorch layout):
       LSTM weights: xavier_uniform, LSTM biases: 0
       Linear weight: normal(0, 0.1), Linear bias: 0."""
    ks = jax.random.split(key, 3)

    def xavier(k, shape):                       # shape = (fan_out_rows, fan_in_cols)
        fan_out, fan_in = shape
        bound = (6.0 / (fan_in + fan_out)) ** 0.5
        return jax.random.uniform(k, shape, jnp.float32, -bound, bound)

    return dict(
        w_ih=xavier(ks[0], (4 * hidden, in_dim)),     # gate order i,f,g,o
        w_hh=xavier(ks[1], (4 * hidden, hidden)),
        b_ih=jnp.zeros((4 * hidden,), jnp.float32),
        b_hh=jnp.zeros((4 * hidden,), jnp.float32),
        w_l1=0.1 * jax.random.normal(ks[2], (action_dim, hidden), jnp.float32),
        b_l1=jnp.zeros((action_dim,), jnp.float32),
    )


def pack_params(p, hp=HP, ap=AP):
    """Fuse/transpose/zero-pad the logical PyTorch params into the kernel layout.
    Matmul weights are stored in bf16 (f32 accumulation happens in-kernel)."""
    w_ih, w_hh = p["w_ih"], p["w_hh"]           # (4H, IN), (4H, H)
    b = p["b_ih"] + p["b_hh"]                   # (4H,)
    H = w_hh.shape[1]
    A = p["w_l1"].shape[0]

    def gate_cols(w, g):                        # -> (rows, hp), zero-padded cols
        blk = w[g * H:(g + 1) * H, :].T
        return jnp.pad(blk, ((0, 0), (0, hp - H)))

    wih_all = jnp.concatenate([gate_cols(w_ih, g) for g in range(4)], axis=1)
    whh_all = jnp.concatenate([gate_cols(w_hh, g) for g in range(4)], axis=1)
    whh_all = jnp.pad(whh_all, ((0, hp - H), (0, 0)))          # (hp, 4*hp)
    b_all = jnp.concatenate(
        [jnp.pad(b[g * H:(g + 1) * H], (0, hp - H)) for g in range(4)]
    )[None, :]                                                 # (1, 4*hp)
    wl1 = jnp.pad(p["w_l1"].T, ((0, hp - H), (0, ap - A)))     # (hp, ap)
    bl1 = jnp.pad(p["b_l1"], (0, ap - A))[None, :]             # (1, ap)
    return dict(
        wih=wih_all.astype(jnp.bfloat16),
        whh=whh_all.astype(jnp.bfloat16),
        b=b_all,
        wl1=wl1.astype(jnp.bfloat16),
        bl1=bl1,
    )


# -------------------------- pure-JAX references ----------------------------- #
def actor_reference(x, hidden_in, p, *, mimic_bf16=False):
    """Standard (unpadded, PyTorch-layout) LSTM + tanh(linear).
    With mimic_bf16=True, the weight / matmul-LHS rounding of the kernel is
    reproduced (bf16 weights & LHS, f32 accumulation, f32 elementwise)."""
    H = p["w_hh"].shape[1]
    h0, c0 = hidden_in
    W_ih, W_hh, W_l1 = p["w_ih"], p["w_hh"], p["w_l1"]
    b = p["b_ih"] + p["b_hh"]

    def rnd(a):
        return a.astype(jnp.bfloat16).astype(jnp.float32) if mimic_bf16 else a

    W_ih, W_hh, W_l1 = rnd(W_ih), rnd(W_hh), rnd(W_l1)

    def step(carry, x_t):
        h, c = carry
        z = rnd(x_t) @ W_ih.T + rnd(h) @ W_hh.T + b
        i = jax.nn.sigmoid(z[:, 0 * H:1 * H])
        f = jax.nn.sigmoid(z[:, 1 * H:2 * H])
        g = jnp.tanh(z[:, 2 * H:3 * H])
        o = jax.nn.sigmoid(z[:, 3 * H:4 * H])
        c_new = f * c + i * g
        h_new = o * jnp.tanh(c_new)
        y = jnp.tanh(rnd(h_new) @ W_l1.T + p["b_l1"])
        return (h_new, c_new), y

    (h_T, c_T), ys = jax.lax.scan(step, (h0[0], c0[0]), x)
    return ys, (h_T[None], c_T[None])


# ---------------------------------- main ----------------------------------- #
if __name__ == "__main__":
    OBS_DIM, ACTION_DIM, TARGET_DIM = 8, 4, 4
    RNN_SIZE = 220                      # hard-coded in Actor.__init__
    IN_DIM = OBS_DIM + ACTION_DIM + TARGET_DIM
    T, B = 8, 2

    key = jax.random.PRNGKey(0)
    k_p, k_x, k_h, k_c = jax.random.split(key, 4)

    params = make_params(k_p, IN_DIM, RNN_SIZE, ACTION_DIM)
    packed = pack_params(params)

    x = jax.random.normal(k_x, (T, B, IN_DIM), jnp.float32)
    h0 = jax.random.normal(k_h, (1, B, RNN_SIZE), jnp.float32) * 0.1
    c0 = jax.random.normal(k_c, (1, B, RNN_SIZE), jnp.float32) * 0.1

    y, (h_out, c_out) = actor_forward(
        x, (h0, c0), packed,
        hidden_dim=RNN_SIZE, action_dim=ACTION_DIM, return_hidden=True,
    )
    jax.block_until_ready((y, h_out, c_out))

    # Exact-math check against a reference that reproduces the kernel's bf16
    # weight / LHS rounding (tight tolerance).
    y_m, (h_m, c_m) = actor_reference(x, (h0, c0), params, mimic_bf16=True)
    assert jnp.allclose(y, y_m, atol=2e-3, rtol=2e-3), float(
        jnp.max(jnp.abs(y - y_m)))
    assert jnp.allclose(h_out, h_m, atol=2e-3, rtol=2e-3), float(
        jnp.max(jnp.abs(h_out - h_m)))
    assert jnp.allclose(c_out, c_m, atol=2e-3, rtol=2e-3), float(
        jnp.max(jnp.abs(c_out - c_m)))

    # Fidelity check against the full-f32 PyTorch-equivalent math (tolerance
    # loosened per review, since the kernel stores weights in bf16).
    y_ref, (h_ref, c_ref) = actor_reference(x, (h0, c0), params)
    assert jnp.allclose(y, y_ref, atol=2e-2, rtol=2e-2), float(
        jnp.max(jnp.abs(y - y_ref)))
    assert jnp.allclose(h_out, h_ref, atol=2e-2, rtol=2e-2), float(
        jnp.max(jnp.abs(h_out - h_ref)))
    assert jnp.allclose(c_out, c_ref, atol=2e-2, rtol=2e-2), float(
        jnp.max(jnp.abs(c_out - c_ref)))

    print("KERNEL_OK")
</pallas_src>

<mosaic_0001>
module attributes {stable_mosaic.version = 11 : i64} {
  func.func @_actor_lstm_kernel(%arg0: i32, %arg1: memref<64x16xbf16, #tpu.memory_space<vmem>>, %arg2: memref<16x1024xbf16, #tpu.memory_space<vmem>>, %arg3: memref<256x1024xbf16, #tpu.memory_space<vmem>>, %arg4: memref<1x1024xf32, #tpu.memory_space<vmem>>, %arg5: memref<256x128xbf16, #tpu.memory_space<vmem>>, %arg6: memref<1x128xf32, #tpu.memory_space<vmem>>, %arg7: memref<8x256xf32, #tpu.memory_space<vmem>>, %arg8: memref<8x256xf32, #tpu.memory_space<vmem>>, %arg9: memref<64x128xf32, #tpu.memory_space<vmem>>, %arg10: memref<8x256xf32, #tpu.memory_space<vmem>>, %arg11: memref<8x256xf32, #tpu.memory_space<vmem>>, %arg12: memref<64x256xbf16, #tpu.memory_space<vmem>>) attributes {dimension_semantics = [#tpu.dimension_semantics<arbitrary>], iteration_bounds = array<i64: 1>, scalar_prefetch = 0 : i64, scratch_operands = 1 : i64, tpu.core_type = #tpu.core_type<tc>, window_params = [{pipeline_mode = #tpu.pipeline_mode<synchronous>, transform_indices = @transform_0, window_bounds = array<i64: 64, 16>}, {pipeline_mode = #tpu.pipeline_mode<synchronous>, transform_indices = @transform_1, window_bounds = array<i64: 16, 1024>}, {pipeline_mode = #tpu.pipeline_mode<synchronous>, transform_indices = @transform_2, window_bounds = array<i64: 256, 1024>}, {pipeline_mode = #tpu.pipeline_mode<synchronous>, transform_indices = @transform_3, window_bounds = array<i64: 1, 1024>}, {pipeline_mode = #tpu.pipeline_mode<synchronous>, transform_indices = @transform_4, window_bounds = array<i64: 256, 128>}, {pipeline_mode = #tpu.pipeline_mode<synchronous>, transform_indices = @transform_5, window_bounds = array<i64: 1, 128>}, {pipeline_mode = #tpu.pipeline_mode<synchronous>, transform_indices = @transform_6, window_bounds = array<i64: 8, 256>}, {pipeline_mode = #tpu.pipeline_mode<synchronous>, transform_indices = @transform_7, window_bounds = array<i64: 8, 256>}, {pipeline_mode = #tpu.pipeline_mode<synchronous>, transform_indices = @transform_8, window_bounds = array<i64: 64, 128>}, {pipeline_mode = #tpu.pipeline_mode<synchronous>, transform_indices = @transform_9, window_bounds = array<i64: 8, 256>}, {pipeline_mode = #tpu.pipeline_mode<synchronous>, transform_indices = @transform_10, window_bounds = array<i64: 8, 256>}]} {
    %c0 = arith.constant 0 : index
    %c0_0 = arith.constant 0 : index
    %0 = vector.load %arg4[%c0, %c0_0] : memref<1x1024xf32, #tpu.memory_space<vmem>>, vector<1x1024xf32>
    %c0_1 = arith.constant 0 : index
    %c0_2 = arith.constant 0 : index
    %1 = vector.load %arg7[%c0_1, %c0_2] : memref<8x256xf32, #tpu.memory_space<vmem>>, vector<8x256xf32>
    %c0_3 = arith.constant 0 : index
    %c0_4 = arith.constant 0 : index
    %2 = vector.load %arg8[%c0_3, %c0_4] : memref<8x256xf32, #tpu.memory_space<vmem>>, vector<8x256xf32>
    %c0_5 = arith.constant 0 : index
    %c0_6 = arith.constant 0 : index
    %3 = vector.load %arg1[%c0_5, %c0_6] : memref<64x16xbf16, #tpu.memory_space<vmem>>, vector<8x16xbf16>
    %c0_7 = arith.constant 0 : index
    %c0_8 = arith.constant 0 : index
    %4 = vector.load %arg2[%c0_7, %c0_8] : memref<16x1024xbf16, #tpu.memory_space<vmem>>, vector<16x1024xbf16>
    %cst = arith.constant dense<0.000000e+00> : vector<8x1024xf32>
    %5 = tpu.matmul %3, %4, %cst {dimension_numbers = #tpu.dot_dimension_numbers<[1], [0], [0], [1], [0, 0, 1, 1], [], []>} : vector<8x16xbf16>, vector<16x1024xbf16>, vector<8x1024xf32> -> vector<8x1024xf32>
    %6 = vector.broadcast %0 : vector<1x1024xf32> to vector<8x1024xf32>
    %7 = arith.addf %5, %6 : vector<8x1024xf32>
    %c8 = arith.constant 8 : index
    %c0_9 = arith.constant 0 : index
    %8 = vector.load %arg1[%c8, %c0_9] : memref<64x16xbf16, #tpu.memory_space<vmem>>, vector<8x16xbf16>
    %c0_10 = arith.constant 0 : index
    %c0_11 = arith.constant 0 : index
    %9 = vector.load %arg2[%c0_10, %c0_11] : memref<16x1024xbf16, #tpu.memory_space<vmem>>, vector<16x1024xbf16>
    %cst_12 = arith.constant dense<0.000000e+00> : vector<8x1024xf32>
    %10 = tpu.matmul %8, %9, %cst_12 {dimension_numbers = #tpu.dot_dimension_numbers<[1], [0], [0], [1], [0, 0, 1, 1], [], []>} : vector<8x16xbf16>, vector<16x1024xbf16>, vector<8x1024xf32> -> vector<8x1024xf32>
    %11 = vector.broadcast %0 : vector<1x1024xf32> to vector<8x1024xf32>
    %12 = arith.addf %10, %11 : vector<8x1024xf32>
    %13 = arith.truncf %1 : vector<8x256xf32> to vector<8x256xbf16>
    %14 = vector.extract_strided_slice %7 {offsets = [0, 0], sizes = [8, 256], strides = [1, 1]} : vector<8x1024xf32> to vector<8x256xf32>
    %c0_13 = arith.constant 0 : index
    %c0_14 = arith.constant 0 : index
    %15 = vector.load %arg3[%c0_13, %c0_14] : memref<256x1024xbf16, #tpu.memory_space<vmem>>, vector<256x256xbf16>
    %cst_15 = arith.constant dense<0.000000e+00> : vector<8x256xf32>
    %16 = tpu.matmul %13, %15, %cst_15 {dimension_numbers = #tpu.dot_dimension_numbers<[1], [0], [0], [1], [0, 0, 1, 1], [], []>} : vector<8x256xbf16>, vector<256x256xbf16>, vector<8x256xf32> -> vector<8x256xf32>
    %17 = arith.addf %14, %16 : vector<8x256xf32>
    %18 = vector.extract_strided_slice %7 {offsets = [0, 512], sizes = [8, 256], strides = [1, 1]} : vector<8x1024xf32> to vector<8x256xf32>
    %c0_16 = arith.constant 0 : index
    %c512 = arith.constant 512 : index
    %19 = vector.load %arg3[%c0_16, %c512] : memref<256x1024xbf16, #tpu.memory_space<vmem>>, vector<256x256xbf16>
    %cst_17 = arith.constant dense<0.000000e+00> : vector<8x256xf32>
    %20 = tpu.matmul %13, %19, %cst_17 {dimension_numbers = #tpu.dot_dimension_numbers<[1], [0], [0], [1], [0, 0, 1, 1], [], []>} : vector<8x256xbf16>, vector<256x256xbf16>, vector<8x256xf32> -> vector<8x256xf32>
    %21 = arith.addf %18, %20 : vector<8x256xf32>
    %22 = arith.negf %17 : vector<8x256xf32>
    %23 = math.exp %22 : vector<8x256xf32>
    %cst_18 = arith.constant 1.000000e+00 : f32
    %24 = vector.broadcast %cst_18 : f32 to vector<8x256xf32>
    %25 = arith.addf %24, %23 : vector<8x256xf32>
    %26 = arith.divf %24, %25 : vector<8x256xf32>
    %27 = math.tanh %21 : vector<8x256xf32>
    %28 = vector.extract_strided_slice %7 {offsets = [0, 256], sizes = [8, 256], strides = [1, 1]} : vector<8x1024xf32> to vector<8x256xf32>
    %c0_19 = arith.constant 0 : index
    %c256 = arith.constant 256 : index
    %29 = vector.load %arg3[%c0_19, %c256] : memref<256x1024xbf16, #tpu.memory_space<vmem>>, vector<256x256xbf16>
    %cst_20 = arith.constant dense<0.000000e+00> : vector<8x256xf32>
    %30 = tpu.matmul %13, %29, %cst_20 {dimension_numbers = #tpu.dot_dimension_numbers<[1], [0], [0], [1], [0, 0, 1, 1], [], []>} : vector<8x256xbf16>, vector<256x256xbf16>, vector<8x256xf32> -> vector<8x256xf32>
    %31 = arith.addf %28, %30 : vector<8x256xf32>
    %32 = arith.negf %31 : vector<8x256xf32>
    %33 = math.exp %32 : vector<8x256xf32>
    %cst_21 = arith.constant 1.000000e+00 : f32
    %34 = vector.broadcast %cst_21 : f32 to vector<8x256xf32>
    %35 = arith.addf %34, %33 : vector<8x256xf32>
    %36 = arith.divf %34, %35 : vector<8x256xf32>
    %37 = arith.mulf %36, %2 : vector<8x256xf32>
    %38 = arith.mulf %26, %27 : vector<8x256xf32>
    %39 = arith.addf %37, %38 : vector<8x256xf32>
    %40 = vector.extract_strided_slice %7 {offsets = [0, 768], sizes = [8, 256], strides = [1, 1]} : vector<8x1024xf32> to vector<8x256xf32>
    %c0_22 = arith.constant 0 : index
    %c768 = arith.constant 768 : index
    %41 = vector.load %arg3[%c0_22, %c768] : memref<256x1024xbf16, #tpu.memory_space<vmem>>, vector<256x256xbf16>
    %cst_23 = arith.constant dense<0.000000e+00> : vector<8x256xf32>
    %42 = tpu.matmul %13, %41, %cst_23 {dimension_numbers = #tpu.dot_dimension_numbers<[1], [0], [0], [1], [0, 0, 1, 1], [], []>} : vector<8x256xbf16>, vector<256x256xbf16>, vector<8x256xf32> -> vector<8x256xf32>
    %43 = arith.addf %40, %42 : vector<8x256xf32>
    %44 = arith.negf %43 : vector<8x256xf32>
    %45 = math.exp %44 : vector<8x256xf32>
    %cst_24 = arith.constant 1.000000e+00 : f32
    %46 = vector.broadcast %cst_24 : f32 to vector<8x256xf32>
    %47 = arith.addf %46, %45 : vector<8x256xf32>
    %48 = arith.divf %46, %47 : vector<8x256xf32>
    %49 = math.tanh %39 : vector<8x256xf32>
    %50 = arith.mulf %48, %49 : vector<8x256xf32>
    %51 = arith.truncf %50 : vector<8x256xf32> to vector<8x256xbf16>
    %c0_25 = arith.constant 0 : index
    %c0_26 = arith.constant 0 : index
    %52 = vector.load %arg12[%c0_25, %c0_26] : memref<64x256xbf16, #tpu.memory_space<vmem>>, vector<8x256xbf16>
    tpu.vector_store %arg12[%c0_25, %c0_26], %51 {strides = array<i32>} : memref<64x256xbf16, #tpu.memory_space<vmem>>, vector<8x256xbf16>,
    %c16 = arith.constant 16 : index
    %c0_27 = arith.constant 0 : index
    %53 = vector.load %arg1[%c16, %c0_27] : memref<64x16xbf16, #tpu.memory_space<vmem>>, vector<8x16xbf16>
    %c0_28 = arith.constant 0 : index
    %c0_29 = arith.constant 0 : index
    %54 = vector.load %arg2[%c0_28, %c0_29] : memref<16x1024xbf16, #tpu.memory_space<vmem>>, vector<16x1024xbf16>
    %cst_30 = arith.constant dense<0.000000e+00> : vector<8x1024xf32>
    %55 = tpu.matmul %53, %54, %cst_30 {dimension_numbers = #tpu.dot_dimension_numbers<[1], [0], [0], [1], [0, 0, 1, 1], [], []>} : vector<8x16xbf16>, vector<16x1024xbf16>, vector<8x1024xf32> -> vector<8x1024xf32>
    %56 = vector.broadcast %0 : vector<1x1024xf32> to vector<8x1024xf32>
    %57 = arith.addf %55, %56 : vector<8x1024xf32>
    %58 = arith.truncf %50 : vector<8x256xf32> to vector<8x256xbf16>
    %59 = vector.extract_strided_slice %12 {offsets = [0, 0], sizes = [8, 256], strides = [1, 1]} : vector<8x1024xf32> to vector<8x256xf32>
    %c0_31 = arith.constant 0 : index
    %c0_32 = arith.constant 0 : index
    %60 = vector.load %arg3[%c0_31, %c0_32] : memref<256x1024xbf16, #tpu.memory_space<vmem>>, vector<256x256xbf16>
    %cst_33 = arith.constant dense<0.000000e+00> : vector<8x256xf32>
    %61 = tpu.matmul %58, %60, %cst_33 {dimension_numbers = #tpu.dot_dimension_numbers<[1], [0], [0], [1], [0, 0, 1, 1], [], []>} : vector<8x256xbf16>, vector<256x256xbf16>, vector<8x256xf32> -> vector<8x256xf32>
    %62 = arith.addf %59, %61 : vector<8x256xf32>
    %63 = vector.extract_strided_slice %12 {offsets = [0, 512], sizes = [8, 256], strides = [1, 1]} : vector<8x1024xf32> to vector<8x256xf32>
    %c0_34 = arith.constant 0 : index
    %c512_35 = arith.constant 512 : index
    %64 = vector.load %arg3[%c0_34, %c512_35] : memref<256x1024xbf16, #tpu.memory_space<vmem>>, vector<256x256xbf16>
    %cst_36 = arith.constant dense<0.000000e+00> : vector<8x256xf32>
    %65 = tpu.matmul %58, %64, %cst_36 {dimension_numbers = #tpu.dot_dimension_numbers<[1], [0], [0], [1], [0, 0, 1, 1], [], []>} : vector<8x256xbf16>, vector<256x256xbf16>, vector<8x256xf32> -> vector<8x256xf32>
    %66 = arith.addf %63, %65 : vector<8x256xf32>
    %67 = arith.negf %62 : vector<8x256xf32>
    %68 = math.exp %67 : vector<8x256xf32>
    %cst_37 = arith.constant 1.000000e+00 : f32
    %69 = vector.broadcast %cst_37 : f32 to vector<8x256xf32>
    %70 = arith.addf %69, %68 : vector<8x256xf32>
    %71 = arith.divf %69, %70 : vector<8x256xf32>
    %72 = math.tanh %66 : vector<8x256xf32>
    %73 = vector.extract_strided_slice %12 {offsets = [0, 256], sizes = [8, 256], strides = [1, 1]} : vector<8x1024xf32> to vector<8x256xf32>
    %c0_38 = arith.constant 0 : index
    %c256_39 = arith.constant 256 : index
    %74 = vector.load %arg3[%c0_38, %c256_39] : memref<256x1024xbf16, #tpu.memory_space<vmem>>, vector<256x256xbf16>
    %cst_40 = arith.constant dense<0.000000e+00> : vector<8x256xf32>
    %75 = tpu.matmul %58, %74, %cst_40 {dimension_numbers = #tpu.dot_dimension_numbers<[1], [0], [0], [1], [0, 0, 1, 1], [], []>} : vector<8x256xbf16>, vector<256x256xbf16>, vector<8x256xf32> -> vector<8x256xf32>
    %76 = arith.addf %73, %75 : vector<8x256xf32>
    %77 = arith.negf %76 : vector<8x256xf32>
    %78 = math.exp %77 : vector<8x256xf32>
    %cst_41 = arith.constant 1.000000e+00 : f32
    %79 = vector.broadcast %cst_41 : f32 to vector<8x256xf32>
    %80 = arith.addf %79, %78 : vector<8x256xf32>
    %81 = arith.divf %79, %80 : vector<8x256xf32>
    %82 = arith.mulf %81, %39 : vector<8x256xf32>
    %83 = arith.mulf %71, %72 : vector<8x256xf32>
    %84 = arith.addf %82, %83 : vector<8x256xf32>
    %85 = vector.extract_strided_slice %12 {offsets = [0, 768], sizes = [8, 256], strides = [1, 1]} : vector<8x1024xf32> to vector<8x256xf32>
    %c0_42 = arith.constant 0 : index
    %c768_43 = arith.constant 768 : index
    %86 = vector.load %arg3[%c0_42, %c768_43] : memref<256x1024xbf16, #tpu.memory_space<vmem>>, vector<256x256xbf16>
    %cst_44 = arith.constant dense<0.000000e+00> : vector<8x256xf32>
    %87 = tpu.matmul %58, %86, %cst_44 {dimension_numbers = #tpu.dot_dimension_numbers<[1], [0], [0], [1], [0, 0, 1, 1], [], []>} : vector<8x256xbf16>, vector<256x256xbf16>, vector<8x256xf32> -> vector<8x256xf32>
    %88 = arith.addf %85, %87 : vector<8x256xf32>
    %89 = arith.negf %88 : vector<8x256xf32>
    %90 = math.exp %89 : vector<8x256xf32>
    %cst_45 = arith.constant 1.000000e+00 : f32
    %91 = vector.broadcast %cst_45 : f32 to vector<8x256xf32>
    %92 = arith.addf %91, %90 : vector<8x256xf32>
    %93 = arith.divf %91, %92 : vector<8x256xf32>
    %94 = math.tanh %84 : vector<8x256xf32>
    %95 = arith.mulf %93, %94 : vector<8x256xf32>
    %96 = arith.truncf %95 : vector<8x256xf32> to vector<8x256xbf16>
    %c8_46 = arith.constant 8 : index
    %c0_47 = arith.constant 0 : index
    %97 = vector.load %arg12[%c8_46, %c0_47] : memref<64x256xbf16, #tpu.memory_space<vmem>>, vector<8x256xbf16>
    tpu.vector_store %arg12[%c8_46, %c0_47], %96 {strides = array<i32>} : memref<64x256xbf16, #tpu.memory_space<vmem>>, vector<8x256xbf16>,
    %c24 = arith.constant 24 : index
    %c0_48 = arith.constant 0 : index
    %98 = vector.load %arg1[%c24, %c0_48] : memref<64x16xbf16, #tpu.memory_space<vmem>>, vector<8x16xbf16>
    %c0_49 = arith.constant 0 : index
    %c0_50 = arith.constant 0 : index
    %99 = vector.load %arg2[%c0_49, %c0_50] : memref<16x1024xbf16, #tpu.memory_space<vmem>>, vector<16x1024xbf16>
    %cst_51 = arith.constant dense<0.000000e+00> : vector<8x1024xf32>
    %100 = tpu.matmul %98, %99, %cst_51 {dimension_numbers = #tpu.dot_dimension_numbers<[1], [0], [0], [1], [0, 0, 1, 1], [], []>} : vector<8x16xbf16>, vector<16x1024xbf16>, vector<8x1024xf32> -> vector<8x1024xf32>
    %101 = vector.broadcast %0 : vector<1x1024xf32> to vector<8x1024xf32>
    %102 = arith.addf %100, %101 : vector<8x1024xf32>
    %103 = arith.truncf %95 : vector<8x256xf32> to vector<8x256xbf16>
    %104 = vector.extract_strided_slice %57 {offsets = [0, 0], sizes = [8, 256], strides = [1, 1]} : vector<8x1024xf32> to vector<8x256xf32>
    %c0_52 = arith.constant 0 : index
    %c0_53 = arith.constant 0 : index
    %105 = vector.load %arg3[%c0_52, %c0_53] : memref<256x1024xbf16, #tpu.memory_space<vmem>>, vector<256x256xbf16>
    %cst_54 = arith.constant dense<0.000000e+00> : vector<8x256xf32>
    %106 = tpu.matmul %103, %105, %cst_54 {dimension_numbers = #tpu.dot_dimension_numbers<[1], [0], [0], [1], [0, 0, 1, 1], [], []>} : vector<8x256xbf16>, vector<256x256xbf16>, vector<8x256xf32> -> vector<8x256xf32>
    %107 = arith.addf %104, %106 : vector<8x256xf32>
    %108 = vector.extract_strided_slice %57 {offsets = [0, 512], sizes = [8, 256], strides = [1, 1]} : vector<8x1024xf32> to vector<8x256xf32>
    %c0_55 = arith.constant 0 : index
    %c512_56 = arith.constant 512 : index
    %109 = vector.load %arg3[%c0_55, %c512_56] : memref<256x1024xbf16, #tpu.memory_space<vmem>>, vector<256x256xbf16>
    %cst_57 = arith.constant dense<0.000000e+00> : vector<8x256xf32>
    %110 = tpu.matmul %103, %109, %cst_57 {dimension_numbers = #tpu.dot_dimension_numbers<[1], [0], [0], [1], [0, 0, 1, 1], [], []>} : vector<8x256xbf16>, vector<256x256xbf16>, vector<8x256xf32> -> vector<8x256xf32>
    %111 = arith.addf %108, %110 : vector<8x256xf32>
    %112 = arith.negf %107 : vector<8x256xf32>
    %113 = math.exp %112 : vector<8x256xf32>
    %cst_58 = arith.constant 1.000000e+00 : f32
    %114 = vector.broadcast %cst_58 : f32 to vector<8x256xf32>
    %115 = arith.addf %114, %113 : vector<8x256xf32>
    %116 = arith.divf %114, %115 : vector<8x256xf32>
    %117 = math.tanh %111 : vector<8x256xf32>
    %118 = vector.extract_strided_slice %57 {offsets = [0, 256], sizes = [8, 256], strides = [1, 1]} : vector<8x1024xf32> to vector<8x256xf32>
    %c0_59 = arith.constant 0 : index
    %c256_60 = arith.constant 256 : index
    %119 = vector.load %arg3[%c0_59, %c256_60] : memref<256x1024xbf16, #tpu.memory_space<vmem>>, vector<256x256xbf16>
    %cst_61 = arith.constant dense<0.000000e+00> : vector<8x256xf32>
    %120 = tpu.matmul %103, %119, %cst_61 {dimension_numbers = #tpu.dot_dimension_numbers<[1], [0], [0], [1], [0, 0, 1, 1], [], []>} : vector<8x256xbf16>, vector<256x256xbf16>, vector<8x256xf32> -> vector<8x256xf32>
    %121 = arith.addf %118, %120 : vector<8x256xf32>
    %122 = arith.negf %121 : vector<8x256xf32>
    %123 = math.exp %122 : vector<8x256xf32>
    %cst_62 = arith.constant 1.000000e+00 : f32
    %124 = vector.broadcast %cst_62 : f32 to vector<8x256xf32>
    %125 = arith.addf %124, %123 : vector<8x256xf32>
    %126 = arith.divf %124, %125 : vector<8x256xf32>
    %127 = arith.mulf %126, %84 : vector<8x256xf32>
    %128 = arith.mulf %116, %117 : vector<8x256xf32>
    %129 = arith.addf %127, %128 : vector<8x256xf32>
    %130 = vector.extract_strided_slice %57 {offsets = [0, 768], sizes = [8, 256], strides = [1, 1]} : vector<8x1024xf32> to vector<8x256xf32>
    %c0_63 = arith.constant 0 : index
    %c768_64 = arith.constant 768 : index
    %131 = vector.load %arg3[%c0_63, %c768_64] : memref<256x1024xbf16, #tpu.memory_space<vmem>>, vector<256x256xbf16>
    %cst_65 = arith.constant dense<0.000000e+00> : vector<8x256xf32>
    %132 = tpu.matmul %103, %131, %cst_65 {dimension_numbers = #tpu.dot_dimension_numbers<[1], [0], [0], [1], [0, 0, 1, 1], [], []>} : vector<8x256xbf16>, vector<256x256xbf16>, vector<8x256xf32> -> vector<8x256xf32>
    %133 = arith.addf %130, %132 : vector<8x256xf32>
    %134 = arith.negf %133 : vector<8x256xf32>
    %135 = math.exp %134 : vector<8x256xf32>
    %cst_66 = arith.constant 1.000000e+00 : f32
    %136 = vector.broadcast %cst_66 : f32 to vector<8x256xf32>
    %137 = arith.addf %136, %135 : vector<8x256xf32>
    %138 = arith.divf %136, %137 : vector<8x256xf32>
    %139 = math.tanh %129 : vector<8x256xf32>
    %140 = arith.mulf %138, %139 : vector<8x256xf32>
    %141 = arith.truncf %140 : vector<8x256xf32> to vector<8x256xbf16>
    %c16_67 = arith.constant 16 : index
    %c0_68 = arith.constant 0 : index
    %142 = vector.load %arg12[%c16_67, %c0_68] : memref<64x256xbf16, #tpu.memory_space<vmem>>, vector<8x256xbf16>
    tpu.vector_store %arg12[%c16_67, %c0_68], %141 {strides = array<i32>} : memref<64x256xbf16, #tpu.memory_space<vmem>>, vector<8x256xbf16>,
    %c32 = arith.constant 32 : index
    %c0_69 = arith.constant 0 : index
    %143 = vector.load %arg1[%c32, %c0_69] : memref<64x16xbf16, #tpu.memory_space<vmem>>, vector<8x16xbf16>
    %c0_70 = arith.constant 0 : index
    %c0_71 = arith.constant 0 : index
    %144 = vector.load %arg2[%c0_70, %c0_71] : memref<16x1024xbf16, #tpu.memory_space<vmem>>, vector<16x1024xbf16>
    %cst_72 = arith.constant dense<0.000000e+00> : vector<8x1024xf32>
    %145 = tpu.matmul %143, %144, %cst_72 {dimension_numbers = #tpu.dot_dimension_numbers<[1], [0], [0], [1], [0, 0, 1, 1], [], []>} : vector<8x16xbf16>, vector<16x1024xbf16>, vector<8x1024xf32> -> vector<8x1024xf32>
    %146 = vector.broadcast %0 : vector<1x1024xf32> to vector<8x1024xf32>
    %147 = arith.addf %145, %146 : vector<8x1024xf32>
    %148 = arith.truncf %140 : vector<8x256xf32> to vector<8x256xbf16>
    %149 = vector.extract_strided_slice %102 {offsets = [0, 0], sizes = [8, 256], strides = [1, 1]} : vector<8x1024xf32> to vector<8x256xf32>
    %c0_73 = arith.constant 0 : index
    %c0_74 = arith.constant 0 : index
    %150 = vector.load %arg3[%c0_73, %c0_74] : memref<256x1024xbf16, #tpu.memory_space<vmem>>, vector<256x256xbf16>
    %cst_75 = arith.constant dense<0.000000e+00> : vector<8x256xf32>
    %151 = tpu.matmul %148, %150, %cst_75 {dimension_numbers = #tpu.dot_dimension_numbers<[1], [0], [0], [1], [0, 0, 1, 1], [], []>} : vector<8x256xbf16>, vector<256x256xbf16>, vector<8x256xf32> -> vector<8x256xf32>
    %152 = arith.addf %149, %151 : vector<8x256xf32>
    %153 = vector.extract_strided_slice %102 {offsets = [0, 512], sizes = [8, 256], strides = [1, 1]} : vector<8x1024xf32> to vector<8x256xf32>
    %c0_76 = arith.constant 0 : index
    %c512_77 = arith.constant 512 : index
    %154 = vector.load %arg3[%c0_76, %c512_77] : memref<256x1024xbf16, #tpu.memory_space<vmem>>, vector<256x256xbf16>
    %cst_78 = arith.constant dense<0.000000e+00> : vector<8x256xf32>
    %155 = tpu.matmul %148, %154, %cst_78 {dimension_numbers = #tpu.dot_dimension_numbers<[1], [0], [0], [1], [0, 0, 1, 1], [], []>} : vector<8x256xbf16>, vector<256x256xbf16>, vector<8x256xf32> -> vector<8x256xf32>
    %156 = arith.addf %153, %155 : vector<8x256xf32>
    %157 = arith.negf %152 : vector<8x256xf32>
    %158 = math.exp %157 : vector<8x256xf32>
    %cst_79 = arith.constant 1.000000e+00 : f32
    %159 = vector.broadcast %cst_79 : f32 to vector<8x256xf32>
    %160 = arith.addf %159, %158 : vector<8x256xf32>
    %161 = arith.divf %159, %160 : vector<8x256xf32>
    %162 = math.tanh %156 : vector<8x256xf32>
    %163 = vector.extract_strided_slice %102 {offsets = [0, 256], sizes = [8, 256], strides = [1, 1]} : vector<8x1024xf32> to vector<8x256xf32>
    %c0_80 = arith.constant 0 : index
    %c256_81 = arith.constant 256 : index
    %164 = vector.load %arg3[%c0_80, %c256_81] : memref<256x1024xbf16, #tpu.memory_space<vmem>>, vector<256x256xbf16>
    %cst_82 = arith.constant dense<0.000000e+00> : vector<8x256xf32>
    %165 = tpu.matmul %148, %164, %cst_82 {dimension_numbers = #tpu.dot_dimension_numbers<[1], [0], [0], [1], [0, 0, 1, 1], [], []>} : vector<8x256xbf16>, vector<256x256xbf16>, vector<8x256xf32> -> vector<8x256xf32>
    %166 = arith.addf %163, %165 : vector<8x256xf32>
    %167 = arith.negf %166 : vector<8x256xf32>
    %168 = math.exp %167 : vector<8x256xf32>
    %cst_83 = arith.constant 1.000000e+00 : f32
    %169 = vector.broadcast %cst_83 : f32 to vector<8x256xf32>
    %170 = arith.addf %169, %168 : vector<8x256xf32>
    %171 = arith.divf %169, %170 : vector<8x256xf32>
    %172 = arith.mulf %171, %129 : vector<8x256xf32>
    %173 = arith.mulf %161, %162 : vector<8x256xf32>
    %174 = arith.addf %172, %173 : vector<8x256xf32>
    %175 = vector.extract_strided_slice %102 {offsets = [0, 768], sizes = [8, 256], strides = [1, 1]} : vector<8x1024xf32> to vector<8x256xf32>
    %c0_84 = arith.constant 0 : index
    %c768_85 = arith.constant 768 : index
    %176 = vector.load %arg3[%c0_84, %c768_85] : memref<256x1024xbf16, #tpu.memory_space<vmem>>, vector<256x256xbf16>
    %cst_86 = arith.constant dense<0.000000e+00> : vector<8x256xf32>
    %177 = tpu.matmul %148, %176, %cst_86 {dimension_numbers = #tpu.dot_dimension_numbers<[1], [0], [0], [1], [0, 0, 1, 1], [], []>} : vector<8x256xbf16>, vector<256x256xbf16>, vector<8x256xf32> -> vector<8x256xf32>
    %178 = arith.addf %175, %177 : vector<8x256xf32>
    %179 = arith.negf %178 : vector<8x256xf32>
    %180 = math.exp %179 : vector<8x256xf32>
    %cst_87 = arith.constant 1.000000e+00 : f32
    %181 = vector.broadcast %cst_87 : f32 to vector<8x256xf32>
    %182 = arith.addf %181, %180 : vector<8x256xf32>
    %183 = arith.divf %181, %182 : vector<8x256xf32>
    %184 = math.tanh %174 : vector<8x256xf32>
    %185 = arith.mulf %183, %184 : vector<8x256xf32>
    %186 = arith.truncf %185 : vector<8x256xf32> to vector<8x256xbf16>
    %c24_88 = arith.constant 24 : index
    %c0_89 = arith.constant 0 : index
    %187 = vector.load %arg12[%c24_88, %c0_89] : memref<64x256xbf16, #tpu.memory_space<vmem>>, vector<8x256xbf16>
    tpu.vector_store %arg12[%c24_88, %c0_89], %186 {strides = array<i32>} : memref<64x256xbf16, #tpu.memory_space<vmem>>, vector<8x256xbf16>,
    %c40 = arith.constant 40 : index
    %c0_90 = arith.constant 0 : index
    %188 = vector.load %arg1[%c40, %c0_90] : memref<64x16xbf16, #tpu.memory_space<vmem>>, vector<8x16xbf16>
    %c0_91 = arith.constant 0 : index
    %c0_92 = arith.constant 0 : index
    %189 = vector.load %arg2[%c0_91, %c0_92] : memref<16x1024xbf16, #tpu.memory_space<vmem>>, vector<16x1024xbf16>
    %cst_93 = arith.constant dense<0.000000e+00> : vector<8x1024xf32>
    %190 = tpu.matmul %188, %189, %cst_93 {dimension_numbers = #tpu.dot_dimension_numbers<[1], [0], [0], [1], [0, 0, 1, 1], [], []>} : vector<8x16xbf16>, vector<16x1024xbf16>, vector<8x1024xf32> -> vector<8x1024xf32>
    %191 = vector.broadcast %0 : vector<1x1024xf32> to vector<8x1024xf32>
    %192 = arith.addf %190, %191 : vector<8x1024xf32>
    %193 = arith.truncf %185 : vector<8x256xf32> to vector<8x256xbf16>
    %194 = vector.extract_strided_slice %147 {offsets = [0, 0], sizes = [8, 256], strides = [1, 1]} : vector<8x1024xf32> to vector<8x256xf32>
    %c0_94 = arith.constant 0 : index
    %c0_95 = arith.constant 0 : index
    %195 = vector.load %arg3[%c0_94, %c0_95] : memref<256x1024xbf16, #tpu.memory_space<vmem>>, vector<256x256xbf16>
    %cst_96 = arith.constant dense<0.000000e+00> : vector<8x256xf32>
    %196 = tpu.matmul %193, %195, %cst_96 {dimension_numbers = #tpu.dot_dimension_numbers<[1], [0], [0], [1], [0, 0, 1, 1], [], []>} : vector<8x256xbf16>, vector<256x256xbf16>, vector<8x256xf32> -> vector<8x256xf32>
    %197 = arith.addf %194, %196 : vector<8x256xf32>
    %198 = vector.extract_strided_slice %147 {offsets = [0, 512], sizes = [8, 256], strides = [1, 1]} : vector<8x1024xf32> to vector<8x256xf32>
    %c0_97 = arith.constant 0 : index
    %c512_98 = arith.constant 512 : index
    %199 = vector.load %arg3[%c0_97, %c512_98] : memref<256x1024xbf16, #tpu.memory_space<vmem>>, vector<256x256xbf16>
    %cst_99 = arith.constant dense<0.000000e+00> : vector<8x256xf32>
    %200 = tpu.matmul %193, %199, %cst_99 {dimension_numbers = #tpu.dot_dimension_numbers<[1], [0], [0], [1], [0, 0, 1, 1], [], []>} : vector<8x256xbf16>, vector<256x256xbf16>, vector<8x256xf32> -> vector<8x256xf32>
    %201 = arith.addf %198, %200 : vector<8x256xf32>
    %202 = arith.negf %197 : vector<8x256xf32>
    %203 = math.exp %202 : vector<8x256xf32>
    %cst_100 = arith.constant 1.000000e+00 : f32
    %204 = vector.broadcast %cst_100 : f32 to vector<8x256xf32>
    %205 = arith.addf %204, %203 : vector<8x256xf32>
    %206 = arith.divf %204, %205 : vector<8x256xf32>
    %207 = math.tanh %201 : vector<8x256xf32>
    %208 = vector.extract_strided_slice %147 {offsets = [0, 256], sizes = [8, 256], strides = [1, 1]} : vector<8x1024xf32> to vector<8x256xf32>
    %c0_101 = arith.constant 0 : index
    %c256_102 = arith.constant 256 : index
    %209 = vector.load %arg3[%c0_101, %c256_102] : memref<256x1024xbf16, #tpu.memory_space<vmem>>, vector<256x256xbf16>
    %cst_103 = arith.constant dense<0.000000e+00> : vector<8x256xf32>
    %210 = tpu.matmul %193, %209, %cst_103 {dimension_numbers = #tpu.dot_dimension_numbers<[1], [0], [0], [1], [0, 0, 1, 1], [], []>} : vector<8x256xbf16>, vector<256x256xbf16>, vector<8x256xf32> -> vector<8x256xf32>
    %211 = arith.addf %208, %210 : vector<8x256xf32>
    %212 = arith.negf %211 : vector<8x256xf32>
    %213 = math.exp %212 : vector<8x256xf32>
    %cst_104 = arith.constant 1.000000e+00 : f32
    %214 = vector.broadcast %cst_104 : f32 to vector<8x256xf32>
    %215 = arith.addf %214, %213 : vector<8x256xf32>
    %216 = arith.divf %214, %215 : vector<8x256xf32>
    %217 = arith.mulf %216, %174 : vector<8x256xf32>
    %218 = arith.mulf %206, %207 : vector<8x256xf32>
    %219 = arith.addf %217, %218 : vector<8x256xf32>
    %220 = vector.extract_strided_slice %147 {offsets = [0, 768], sizes = [8, 256], strides = [1, 1]} : vector<8x1024xf32> to vector<8x256xf32>
    %c0_105 = arith.constant 0 : index
    %c768_106 = arith.constant 768 : index
    %221 = vector.load %arg3[%c0_105, %c768_106] : memref<256x1024xbf16, #tpu.memory_space<vmem>>, vector<256x256xbf16>
    %cst_107 = arith.constant dense<0.000000e+00> : vector<8x256xf32>
    %222 = tpu.matmul %193, %221, %cst_107 {dimension_numbers = #tpu.dot_dimension_numbers<[1], [0], [0], [1], [0, 0, 1, 1], [], []>} : vector<8x256xbf16>, vector<256x256xbf16>, vector<8x256xf32> -> vector<8x256xf32>
    %223 = arith.addf %220, %222 : vector<8x256xf32>
    %224 = arith.negf %223 : vector<8x256xf32>
    %225 = math.exp %224 : vector<8x256xf32>
    %cst_108 = arith.constant 1.000000e+00 : f32
    %226 = vector.broadcast %cst_108 : f32 to vector<8x256xf32>
    %227 = arith.addf %226, %225 : vector<8x256xf32>
    %228 = arith.divf %226, %227 : vector<8x256xf32>
    %229 = math.tanh %219 : vector<8x256xf32>
    %230 = arith.mulf %228, %229 : vector<8x256xf32>
    %231 = arith.truncf %230 : vector<8x256xf32> to vector<8x256xbf16>
    %c32_109 = arith.constant 32 : index
    %c0_110 = arith.constant 0 : index
    %232 = vector.load %arg12[%c32_109, %c0_110] : memref<64x256xbf16, #tpu.memory_space<vmem>>, vector<8x256xbf16>
    tpu.vector_store %arg12[%c32_109, %c0_110], %231 {strides = array<i32>} : memref<64x256xbf16, #tpu.memory_space<vmem>>, vector<8x256xbf16>,
    %c48 = arith.constant 48 : index
    %c0_111 = arith.constant 0 : index
    %233 = vector.load %arg1[%c48, %c0_111] : memref<64x16xbf16, #tpu.memory_space<vmem>>, vector<8x16xbf16>
    %c0_112 = arith.constant 0 : index
    %c0_113 = arith.constant 0 : index
    %234 = vector.load %arg2[%c0_112, %c0_113] : memref<16x1024xbf16, #tpu.memory_space<vmem>>, vector<16x1024xbf16>
    %cst_114 = arith.constant dense<0.000000e+00> : vector<8x1024xf32>
    %235 = tpu.matmul %233, %234, %cst_114 {dimension_numbers = #tpu.dot_dimension_numbers<[1], [0], [0], [1], [0, 0, 1, 1], [], []>} : vector<8x16xbf16>, vector<16x1024xbf16>, vector<8x1024xf32> -> vector<8x1024xf32>
    %236 = vector.broadcast %0 : vector<1x1024xf32> to vector<8x1024xf32>
    %237 = arith.addf %235, %236 : vector<8x1024xf32>
    %238 = arith.truncf %230 : vector<8x256xf32> to vector<8x256xbf16>
    %239 = vector.extract_strided_slice %192 {offsets = [0, 0], sizes = [8, 256], strides = [1, 1]} : vector<8x1024xf32> to vector<8x256xf32>
    %c0_115 = arith.constant 0 : index
    %c0_116 = arith.constant 0 : index
    %240 = vector.load %arg3[%c0_115, %c0_116] : memref<256x1024xbf16, #tpu.memory_space<vmem>>, vector<256x256xbf16>
    %cst_117 = arith.constant dense<0.000000e+00> : vector<8x256xf32>
    %241 = tpu.matmul %238, %240, %cst_117 {dimension_numbers = #tpu.dot_dimension_numbers<[1], [0], [0], [1], [0, 0, 1, 1], [], []>} : vector<8x256xbf16>, vector<256x256xbf16>, vector<8x256xf32> -> vector<8x256xf32>
    %242 = arith.addf %239, %241 : vector<8x256xf32>
    %243 = vector.extract_strided_slice %192 {offsets = [0, 512], sizes = [8, 256], strides = [1, 1]} : vector<8x1024xf32> to vector<8x256xf32>
    %c0_118 = arith.constant 0 : index
    %c512_119 = arith.constant 512 : index
    %244 = vector.load %arg3[%c0_118, %c512_119] : memref<256x1024xbf16, #tpu.memory_space<vmem>>, vector<256x256xbf16>
    %cst_120 = arith.constant dense<0.000000e+00> : vector<8x256xf32>
    %245 = tpu.matmul %238, %244, %cst_120 {dimension_numbers = #tpu.dot_dimension_numbers<[1], [0], [0], [1], [0, 0, 1, 1], [], []>} : vector<8x256xbf16>, vector<256x256xbf16>, vector<8x256xf32> -> vector<8x256xf32>
    %246 = arith.addf %243, %245 : vector<8x256xf32>
    %247 = arith.negf %242 : vector<8x256xf32>
    %248 = math.exp %247 : vector<8x256xf32>
    %cst_121 = arith.constant 1.000000e+00 : f32
    %249 = vector.broadcast %cst_121 : f32 to vector<8x256xf32>
    %250 = arith.addf %249, %248 : vector<8x256xf32>
    %251 = arith.divf %249, %250 : vector<8x256xf32>
    %252 = math.tanh %246 : vector<8x256xf32>
    %253 = vector.extract_strided_slice %192 {offsets = [0, 256], sizes = [8, 256], strides = [1, 1]} : vector<8x1024xf32> to vector<8x256xf32>
    %c0_122 = arith.constant 0 : index
    %c256_123 = arith.constant 256 : index
    %254 = vector.load %arg3[%c0_122, %c256_123] : memref<256x1024xbf16, #tpu.memory_space<vmem>>, vector<256x256xbf16>
    %cst_124 = arith.constant dense<0.000000e+00> : vector<8x256xf32>
    %255 = tpu.matmul %238, %254, %cst_124 {dimension_numbers = #tpu.dot_dimension_numbers<[1], [0], [0], [1], [0, 0, 1, 1], [], []>} : vector<8x256xbf16>, vector<256x256xbf16>, vector<8x256xf32> -> vector<8x256xf32>
    %256 = arith.addf %253, %255 : vector<8x256xf32>
    %257 = arith.negf %256 : vector<8x256xf32>
    %258 = math.exp %257 : vector<8x256xf32>
    %cst_125 = arith.constant 1.000000e+00 : f32
    %259 = vector.broadcast %cst_125 : f32 to vector<8x256xf32>
    %260 = arith.addf %259, %258 : vector<8x256xf32>
    %261 = arith.divf %259, %260 : vector<8x256xf32>
    %262 = arith.mulf %261, %219 : vector<8x256xf32>
    %263 = arith.mulf %251, %252 : vector<8x256xf32>
    %264 = arith.addf %262, %263 : vector<8x256xf32>
    %265 = vector.extract_strided_slice %192 {offsets = [0, 768], sizes = [8, 256], strides = [1, 1]} : vector<8x1024xf32> to vector<8x256xf32>
    %c0_126 = arith.constant 0 : index
    %c768_127 = arith.constant 768 : index
    %266 = vector.load %arg3[%c0_126, %c768_127] : memref<256x1024xbf16, #tpu.memory_space<vmem>>, vector<256x256xbf16>
    %cst_128 = arith.constant dense<0.000000e+00> : vector<8x256xf32>
    %267 = tpu.matmul %238, %266, %cst_128 {dimension_numbers = #tpu.dot_dimension_numbers<[1], [0], [0], [1], [0, 0, 1, 1], [], []>} : vector<8x256xbf16>, vector<256x256xbf16>, vector<8x256xf32> -> vector<8x256xf32>
    %268 = arith.addf %265, %267 : vector<8x256xf32>
    %269 = arith.negf %268 : vector<8x256xf32>
    %270 = math.exp %269 : vector<8x256xf32>
    %cst_129 = arith.constant 1.000000e+00 : f32
    %271 = vector.broadcast %cst_129 : f32 to vector<8x256xf32>
    %272 = arith.addf %271, %270 : vector<8x256xf32>
    %273 = arith.divf %271, %272 : vector<8x256xf32>
    %274 = math.tanh %264 : vector<8x256xf32>
    %275 = arith.mulf %273, %274 : vector<8x256xf32>
    %276 = arith.truncf %275 : vector<8x256xf32> to vector<8x256xbf16>
    %c40_130 = arith.constant 40 : index
    %c0_131 = arith.constant 0 : index
    %277 = vector.load %arg12[%c40_130, %c0_131] : memref<64x256xbf16, #tpu.memory_space<vmem>>, vector<8x256xbf16>
    tpu.vector_store %arg12[%c40_130, %c0_131], %276 {strides = array<i32>} : memref<64x256xbf16, #tpu.memory_space<vmem>>, vector<8x256xbf16>,
    %c56 = arith.constant 56 : index
    %c0_132 = arith.constant 0 : index
    %278 = vector.load %arg1[%c56, %c0_132] : memref<64x16xbf16, #tpu.memory_space<vmem>>, vector<8x16xbf16>
    %c0_133 = arith.constant 0 : index
    %c0_134 = arith.constant 0 : index
    %279 = vector.load %arg2[%c0_133, %c0_134] : memref<16x1024xbf16, #tpu.memory_space<vmem>>, vector<16x1024xbf16>
    %cst_135 = arith.constant dense<0.000000e+00> : vector<8x1024xf32>
    %280 = tpu.matmul %278, %279, %cst_135 {dimension_numbers = #tpu.dot_dimension_numbers<[1], [0], [0], [1], [0, 0, 1, 1], [], []>} : vector<8x16xbf16>, vector<16x1024xbf16>, vector<8x1024xf32> -> vector<8x1024xf32>
    %281 = vector.broadcast %0 : vector<1x1024xf32> to vector<8x1024xf32>
    %282 = arith.addf %280, %281 : vector<8x1024xf32>
    %283 = arith.truncf %275 : vector<8x256xf32> to vector<8x256xbf16>
    %284 = vector.extract_strided_slice %237 {offsets = [0, 0], sizes = [8, 256], strides = [1, 1]} : vector<8x1024xf32> to vector<8x256xf32>
    %c0_136 = arith.constant 0 : index
    %c0_137 = arith.constant 0 : index
    %285 = vector.load %arg3[%c0_136, %c0_137] : memref<256x1024xbf16, #tpu.memory_space<vmem>>, vector<256x256xbf16>
    %cst_138 = arith.constant dense<0.000000e+00> : vector<8x256xf32>
    %286 = tpu.matmul %283, %285, %cst_138 {dimension_numbers = #tpu.dot_dimension_numbers<[1], [0], [0], [1], [0, 0, 1, 1], [], []>} : vector<8x256xbf16>, vector<256x256xbf16>, vector<8x256xf32> -> vector<8x256xf32>
    %287 = arith.addf %284, %286 : vector<8x256xf32>
    %288 = vector.extract_strided_slice %237 {offsets = [0, 512], sizes = [8, 256], strides = [1, 1]} : vector<8x1024xf32> to vector<8x256xf32>
    %c0_139 = arith.constant 0 : index
    %c512_140 = arith.constant 512 : index
    %289 = vector.load %arg3[%c0_139, %c512_140] : memref<256x1024xbf16, #tpu.memory_space<vmem>>, vector<256x256xbf16>
    %cst_141 = arith.constant dense<0.000000e+00> : vector<8x256xf32>
    %290 = tpu.matmul %283, %289, %cst_141 {dimension_numbers = #tpu.dot_dimension_numbers<[1], [0], [0], [1], [0, 0, 1, 1], [], []>} : vector<8x256xbf16>, vector<256x256xbf16>, vector<8x256xf32> -> vector<8x256xf32>
    %291 = arith.addf %288, %290 : vector<8x256xf32>
    %292 = arith.negf %287 : vector<8x256xf32>
    %293 = math.exp %292 : vector<8x256xf32>
    %cst_142 = arith.constant 1.000000e+00 : f32
    %294 = vector.broadcast %cst_142 : f32 to vector<8x256xf32>
    %295 = arith.addf %294, %293 : vector<8x256xf32>
    %296 = arith.divf %294, %295 : vector<8x256xf32>
    %297 = math.tanh %291 : vector<8x256xf32>
    %298 = vector.extract_strided_slice %237 {offsets = [0, 256], sizes = [8, 256], strides = [1, 1]} : vector<8x1024xf32> to vector<8x256xf32>
    %c0_143 = arith.constant 0 : index
    %c256_144 = arith.constant 256 : index
    %299 = vector.load %arg3[%c0_143, %c256_144] : memref<256x1024xbf16, #tpu.memory_space<vmem>>, vector<256x256xbf16>
    %cst_145 = arith.constant dense<0.000000e+00> : vector<8x256xf32>
    %300 = tpu.matmul %283, %299, %cst_145 {dimension_numbers = #tpu.dot_dimension_numbers<[1], [0], [0], [1], [0, 0, 1, 1], [], []>} : vector<8x256xbf16>, vector<256x256xbf16>, vector<8x256xf32> -> vector<8x256xf32>
    %301 = arith.addf %298, %300 : vector<8x256xf32>
    %302 = arith.negf %301 : vector<8x256xf32>
    %303 = math.exp %302 : vector<8x256xf32>
    %cst_146 = arith.constant 1.000000e+00 : f32
    %304 = vector.broadcast %cst_146 : f32 to vector<8x256xf32>
    %305 = arith.addf %304, %303 : vector<8x256xf32>
    %306 = arith.divf %304, %305 : vector<8x256xf32>
    %307 = arith.mulf %306, %264 : vector<8x256xf32>
    %308 = arith.mulf %296, %297 : vector<8x256xf32>
    %309 = arith.addf %307, %308 : vector<8x256xf32>
    %310 = vector.extract_strided_slice %237 {offsets = [0, 768], sizes = [8, 256], strides = [1, 1]} : vector<8x1024xf32> to vector<8x256xf32>
    %c0_147 = arith.constant 0 : index
    %c768_148 = arith.constant 768 : index
    %311 = vector.load %arg3[%c0_147, %c768_148] : memref<256x1024xbf16, #tpu.memory_space<vmem>>, vector<256x256xbf16>
    %cst_149 = arith.constant dense<0.000000e+00> : vector<8x256xf32>
    %312 = tpu.matmul %283, %311, %cst_149 {dimension_numbers = #tpu.dot_dimension_numbers<[1], [0], [0], [1], [0, 0, 1, 1], [], []>} : vector<8x256xbf16>, vector<256x256xbf16>, vector<8x256xf32> -> vector<8x256xf32>
    %313 = arith.addf %310, %312 : vector<8x256xf32>
    %314 = arith.negf %313 : vector<8x256xf32>
    %315 = math.exp %314 : vector<8x256xf32>
    %cst_150 = arith.constant 1.000000e+00 : f32
    %316 = vector.broadcast %cst_150 : f32 to vector<8x256xf32>
    %317 = arith.addf %316, %315 : vector<8x256xf32>
    %318 = arith.divf %316, %317 : vector<8x256xf32>
    %319 = math.tanh %309 : vector<8x256xf32>
    %320 = arith.mulf %318, %319 : vector<8x256xf32>
    %321 = arith.truncf %320 : vector<8x256xf32> to vector<8x256xbf16>
    %c48_151 = arith.constant 48 : index
    %c0_152 = arith.constant 0 : index
    %322 = vector.load %arg12[%c48_151, %c0_152] : memref<64x256xbf16, #tpu.memory_space<vmem>>, vector<8x256xbf16>
    tpu.vector_store %arg12[%c48_151, %c0_152], %321 {strides = array<i32>} : memref<64x256xbf16, #tpu.memory_space<vmem>>, vector<8x256xbf16>,
    %323 = arith.truncf %320 : vector<8x256xf32> to vector<8x256xbf16>
    %324 = vector.extract_strided_slice %282 {offsets = [0, 0], sizes = [8, 256], strides = [1, 1]} : vector<8x1024xf32> to vector<8x256xf32>
    %c0_153 = arith.constant 0 : index
    %c0_154 = arith.constant 0 : index
    %325 = vector.load %arg3[%c0_153, %c0_154] : memref<256x1024xbf16, #tpu.memory_space<vmem>>, vector<256x256xbf16>
    %cst_155 = arith.constant dense<0.000000e+00> : vector<8x256xf32>
    %326 = tpu.matmul %323, %325, %cst_155 {dimension_numbers = #tpu.dot_dimension_numbers<[1], [0], [0], [1], [0, 0, 1, 1], [], []>} : vector<8x256xbf16>, vector<256x256xbf16>, vector<8x256xf32> -> vector<8x256xf32>
    %327 = arith.addf %324, %326 : vector<8x256xf32>
    %328 = vector.extract_strided_slice %282 {offsets = [0, 512], sizes = [8, 256], strides = [1, 1]} : vector<8x1024xf32> to vector<8x256xf32>
    %c0_156 = arith.constant 0 : index
    %c512_157 = arith.constant 512 : index
    %329 = vector.load %arg3[%c0_156, %c512_157] : memref<256x1024xbf16, #tpu.memory_space<vmem>>, vector<256x256xbf16>
    %cst_158 = arith.constant dense<0.000000e+00> : vector<8x256xf32>
    %330 = tpu.matmul %323, %329, %cst_158 {dimension_numbers = #tpu.dot_dimension_numbers<[1], [0], [0], [1], [0, 0, 1, 1], [], []>} : vector<8x256xbf16>, vector<256x256xbf16>, vector<8x256xf32> -> vector<8x256xf32>
    %331 = arith.addf %328, %330 : vector<8x256xf32>
    %332 = arith.negf %327 : vector<8x256xf32>
    %333 = math.exp %332 : vector<8x256xf32>
    %cst_159 = arith.constant 1.000000e+00 : f32
    %334 = vector.broadcast %cst_159 : f32 to vector<8x256xf32>
    %335 = arith.addf %334, %333 : vector<8x256xf32>
    %336 = arith.divf %334, %335 : vector<8x256xf32>
    %337 = math.tanh %331 : vector<8x256xf32>
    %338 = vector.extract_strided_slice %282 {offsets = [0, 256], sizes = [8, 256], strides = [1, 1]} : vector<8x1024xf32> to vector<8x256xf32>
    %c0_160 = arith.constant 0 : index
    %c256_161 = arith.constant 256 : index
    %339 = vector.load %arg3[%c0_160, %c256_161] : memref<256x1024xbf16, #tpu.memory_space<vmem>>, vector<256x256xbf16>
    %cst_162 = arith.constant dense<0.000000e+00> : vector<8x256xf32>
    %340 = tpu.matmul %323, %339, %cst_162 {dimension_numbers = #tpu.dot_dimension_numbers<[1], [0], [0], [1], [0, 0, 1, 1], [], []>} : vector<8x256xbf16>, vector<256x256xbf16>, vector<8x256xf32> -> vector<8x256xf32>
    %341 = arith.addf %338, %340 : vector<8x256xf32>
    %342 = arith.negf %341 : vector<8x256xf32>
    %343 = math.exp %342 : vector<8x256xf32>
    %cst_163 = arith.constant 1.000000e+00 : f32
    %344 = vector.broadcast %cst_163 : f32 to vector<8x256xf32>
    %345 = arith.addf %344, %343 : vector<8x256xf32>
    %346 = arith.divf %344, %345 : vector<8x256xf32>
    %347 = arith.mulf %346, %309 : vector<8x256xf32>
    %348 = arith.mulf %336, %337 : vector<8x256xf32>
    %349 = arith.addf %347, %348 : vector<8x256xf32>
    %350 = vector.extract_strided_slice %282 {offsets = [0, 768], sizes = [8, 256], strides = [1, 1]} : vector<8x1024xf32> to vector<8x256xf32>
    %c0_164 = arith.constant 0 : index
    %c768_165 = arith.constant 768 : index
    %351 = vector.load %arg3[%c0_164, %c768_165] : memref<256x1024xbf16, #tpu.memory_space<vmem>>, vector<256x256xbf16>
    %cst_166 = arith.constant dense<0.000000e+00> : vector<8x256xf32>
    %352 = tpu.matmul %323, %351, %cst_166 {dimension_numbers = #tpu.dot_dimension_numbers<[1], [0], [0], [1], [0, 0, 1, 1], [], []>} : vector<8x256xbf16>, vector<256x256xbf16>, vector<8x256xf32> -> vector<8x256xf32>
    %353 = arith.addf %350, %352 : vector<8x256xf32>
    %354 = arith.negf %353 : vector<8x256xf32>
    %355 = math.exp %354 : vector<8x256xf32>
    %cst_167 = arith.constant 1.000000e+00 : f32
    %356 = vector.broadcast %cst_167 : f32 to vector<8x256xf32>
    %357 = arith.addf %356, %355 : vector<8x256xf32>
    %358 = arith.divf %356, %357 : vector<8x256xf32>
    %359 = math.tanh %349 : vector<8x256xf32>
    %360 = arith.mulf %358, %359 : vector<8x256xf32>
    %361 = arith.truncf %360 : vector<8x256xf32> to vector<8x256xbf16>
    %c56_168 = arith.constant 56 : index
    %c0_169 = arith.constant 0 : index
    %362 = vector.load %arg12[%c56_168, %c0_169] : memref<64x256xbf16, #tpu.memory_space<vmem>>, vector<8x256xbf16>
    tpu.vector_store %arg12[%c56_168, %c0_169], %361 {strides = array<i32>} : memref<64x256xbf16, #tpu.memory_space<vmem>>, vector<8x256xbf16>,
    %c0_170 = arith.constant 0 : index
    %c0_171 = arith.constant 0 : index
    %363 = vector.load %arg10[%c0_170, %c0_171] : memref<8x256xf32, #tpu.memory_space<vmem>>, vector<8x256xf32>
    tpu.vector_store %arg10[%c0_170, %c0_171], %360 {strides = array<i32>} : memref<8x256xf32, #tpu.memory_space<vmem>>, vector<8x256xf32>,
    %c0_172 = arith.constant 0 : index
    %c0_173 = arith.constant 0 : index
    %364 = vector.load %arg11[%c0_172, %c0_173] : memref<8x256xf32, #tpu.memory_space<vmem>>, vector<8x256xf32>
    tpu.vector_store %arg11[%c0_172, %c0_173], %349 {strides = array<i32>} : memref<8x256xf32, #tpu.memory_space<vmem>>, vector<8x256xf32>,
    %c0_174 = arith.constant 0 : index
    %c0_175 = arith.constant 0 : index
    %365 = vector.load %arg12[%c0_174, %c0_175] : memref<64x256xbf16, #tpu.memory_space<vmem>>, vector<64x256xbf16>
    %c0_176 = arith.constant 0 : index
    %c0_177 = arith.constant 0 : index
    %366 = vector.load %arg5[%c0_176, %c0_177] : memref<256x128xbf16, #tpu.memory_space<vmem>>, vector<256x128xbf16>
    %cst_178 = arith.constant dense<0.000000e+00> : vector<64x128xf32>
    %367 = tpu.matmul %365, %366, %cst_178 {dimension_numbers = #tpu.dot_dimension_numbers<[1], [0], [0], [1], [0, 0, 1, 1], [], []>} : vector<64x256xbf16>, vector<256x128xbf16>, vector<64x128xf32> -> vector<64x128xf32>
    %c0_179 = arith.constant 0 : index
    %c0_180 = arith.constant 0 : index
    %368 = vector.load %arg6[%c0_179, %c0_180] : memref<1x128xf32, #tpu.memory_space<vmem>>, vector<1x128xf32>
    %369 = vector.broadcast %368 : vector<1x128xf32> to vector<64x128xf32>
    %370 = arith.addf %367, %369 : vector<64x128xf32>
    %371 = math.tanh %370 : vector<64x128xf32>
    %c0_181 = arith.constant 0 : index
    %c0_182 = arith.constant 0 : index
    %372 = vector.load %arg9[%c0_181, %c0_182] : memref<64x128xf32, #tpu.memory_space<vmem>>, vector<64x128xf32>
    tpu.vector_store %arg9[%c0_181, %c0_182], %371 {strides = array<i32>} : memref<64x128xf32, #tpu.memory_space<vmem>>, vector<64x128xf32>,
    return
  }
  func.func @transform_0(%arg0: i32) -> (i32, i32) {
    %c0_i32 = arith.constant 0 : i32
    %c0_i32_0 = arith.constant 0 : i32
    %c0_i32_1 = arith.constant 0 : i32
    return %c0_i32, %c0_i32_0 : i32, i32
  }
  func.func @transform_1(%arg0: i32) -> (i32, i32) {
    %c0_i32 = arith.constant 0 : i32
    %c0_i32_0 = arith.constant 0 : i32
    %c0_i32_1 = arith.constant 0 : i32
    return %c0_i32, %c0_i32_0 : i32, i32
  }
  func.func @transform_2(%arg0: i32) -> (i32, i32) {
    %c0_i32 = arith.constant 0 : i32
    %c0_i32_0 = arith.constant 0 : i32
    %c0_i32_1 = arith.constant 0 : i32
    return %c0_i32, %c0_i32_0 : i32, i32
  }
  func.func @transform_3(%arg0: i32) -> (i32, i32) {
    %c0_i32 = arith.constant 0 : i32
    %c0_i32_0 = arith.constant 0 : i32
    %c0_i32_1 = arith.constant 0 : i32
    return %c0_i32, %c0_i32_0 : i32, i32
  }
  func.func @transform_4(%arg0: i32) -> (i32, i32) {
    %c0_i32 = arith.constant 0 : i32
    %c0_i32_0 = arith.constant 0 : i32
    %c0_i32_1 = arith.constant 0 : i32
    return %c0_i32, %c0_i32_0 : i32, i32
  }
  func.func @transform_5(%arg0: i32) -> (i32, i32) {
    %c0_i32 = arith.constant 0 : i32
    %c0_i32_0 = arith.constant 0 : i32
    %c0_i32_1 = arith.constant 0 : i32
    return %c0_i32, %c0_i32_0 : i32, i32
  }
  func.func @transform_6(%arg0: i32) -> (i32, i32) {
    %c0_i32 = arith.constant 0 : i32
    %c0_i32_0 = arith.constant 0 : i32
    %c0_i32_1 = arith.constant 0 : i32
    return %c0_i32, %c0_i32_0 : i32, i32
  }
  func.func @transform_7(%arg0: i32) -> (i32, i32) {
    %c0_i32 = arith.constant 0 : i32
    %c0_i32_0 = arith.constant 0 : i32
    %c0_i32_1 = arith.constant 0 : i32
    return %c0_i32, %c0_i32_0 : i32, i32
  }
  func.func @transform_8(%arg0: i32) -> (i32, i32) {
    %c0_i32 = arith.constant 0 : i32
    %c0_i32_0 = arith.constant 0 : i32
    %c0_i32_1 = arith.constant 0 : i32
    return %c0_i32, %c0_i32_0 : i32, i32
  }
  func.func @transform_9(%arg0: i32) -> (i32, i32) {
    %c0_i32 = arith.constant 0 : i32
    %c0_i32_0 = arith.constant 0 : i32
    %c0_i32_1 = arith.constant 0 : i32
    return %c0_i32, %c0_i32_0 : i32, i32
  }
  func.func @transform_10(%arg0: i32) -> (i32, i32) {
    %c0_i32 = arith.constant 0 : i32
    %c0_i32_0 = arith.constant 0 : i32
    %c0_i32_1 = arith.constant 0 : i32
    return %c0_i32, %c0_i32_0 : i32, i32
  }
}

</mosaic_0001>

<bundles_post_ra>
// kernel: actor_forward.1
= control target key start
LH: loop header
LB: loop body
LE: loop exit
PB: predicated region body
PF: predicated region fallthrough
CT: control target
= control target key end

     0   :  { %16 = vsyncpa [#allocation4], 0  ;;  %s14381_s0 = inlined_call_operand.vmem [shape: bf16[64,16], index: 0, kind: input, shape index: {}]   ;;  %s14382_s1 = inlined_call_operand.hbm [shape: bf16[16,1024], index: 1, kind: input, shape index: {}]   ;;  %s14383_s2 = inlined_call_operand.hbm [shape: bf16[256,1024], index: 2, kind: input, shape index: {}]   ;;  %s14384_s3 = inlined_call_operand.vmem [shape: f32[1,1024], index: 3, kind: input, shape index: {}]   ;;  %s14385_s4 = inlined_call_operand.vmem [shape: bf16[256,128], index: 4, kind: input, shape index: {}]   ;;  %s14386_s5 = inlined_call_operand.vmem [shape: f32[1,128], index: 5, kind: input, shape index: {}]   ;;  %s14387_s6 = inlined_call_operand.vmem [shape: f32[8,256], index: 6, kind: input, shape index: {}]   ;;  %s14388_s7 = inlined_call_operand.vmem [shape: f32[8,256], index: 7, kind: input, shape index: {}]   ;;  %s14389_s8 = inlined_call_operand.vmem [shape: f32[64,128], index: 8, kind: output, shape index: {0}]   ;;  %s14390_s9 = inlined_call_operand.vmem [shape: f32[8,256], index: 9, kind: output, shape index: {1}]   ;;  %s14391_s10 = inlined_call_operand.vmem [shape: f32[8,256], index: 10, kind: output, shape index: {2}]  }
   0x1   :  { %17 = vsyncpa [#allocation6], 0  ;;  %s11758_s13 = smov [#allocation3]   ;;  %s11710_s17 = scalar_lea.hbm %s14382_s1, 1024 }
   0x2   :  { %s25_s14 = sshll.u32 %s11758_s13, 4  ;;  %p11711_p0 = scmp.ne.s32.totalorder %s14382_s1, %s11710_s17  ;;  %s26_s14 = int_to_ptr.vmem [resolvable:$true] %s25_s14 }
   0x3   :  { %p11714_p1 = scmp.lt.u32.totalorder %s11710_s17, %s14382_s1 }
   0x5   :  { %p11716_p2 = pnand %p11714_p1, %p11711_p0 }
   0x7   :  { %11719 = shalt.err (!%p11716_p2)
}
   0x8   :  { %s11720_s22 = scalar_lea.vmem %s26_s14, 1024  ;;  %p11725_p4 = scmp.lt.s32.totalorder %s26_s14, %s26_s14 }
   0x9   :  { %p11721_p3 = scmp.ne.s32.totalorder %s26_s14, %s11720_s22  ;;  %p11726_p5 = scmp.lt.s32.totalorder %s11720_s22, %s11720_s22 }
   0xb   :  { %p11727_p6 = por %p11726_p5, %p11725_p4 }
   0xd   :  { %p11728_p7 = pnand %p11727_p6, %p11721_p3 }
   0xf   :  { %11731 = shalt.err (!%p11728_p7)
}
  0x10   :  { %s11759_s23 = smov 512   ;;  %s11760_s24 = smov 32  }
  0x11   :  { %31 = dma.hbm_to_vmem [thread:$0]  %s14382_s1, 1024, %s26_s14, [#allocation4], %s11759_s23, %s11759_s23, %s11760_s24  }
  0x12   :  { %s11761_s27 = smov [#allocation5]   ;;  %s11732_s11 = scalar_lea.hbm %s14383_s2, 16384 }
  0x13   :  { %s37_s28 = sshll.u32 %s11761_s27, 4  ;;  %p11733_p8 = scmp.ne.s32.totalorder %s14383_s2, %s11732_s11  ;;  %s38_s28 = int_to_ptr.vmem [resolvable:$true] %s37_s28 }
  0x14   :  { %p11736_p9 = scmp.lt.u32.totalorder %s11732_s11, %s14383_s2 }
  0x16   :  { %p11738_p10 = pnand %p11736_p9, %p11733_p8 }
  0x18   :  { %11741 = shalt.err (!%p11738_p10)
}
  0x19   :  { %s11742_s17 = scalar_lea.vmem %s38_s28, 16384  ;;  %p11747_p12 = scmp.lt.s32.totalorder %s38_s28, %s38_s28 }
  0x1a   :  { %p11743_p11 = scmp.ne.s32.totalorder %s38_s28, %s11742_s17  ;;  %p11748_p13 = scmp.lt.s32.totalorder %s11742_s17, %s11742_s17 }
  0x1c   :  { %p11749_p0 = por %p11748_p13, %p11747_p12 }
  0x1e   :  { %p11750_p1 = pnand %p11749_p0, %p11743_p11 }
  0x20   :  { %11753 = shalt.err (!%p11750_p1)
}
  0x21   :  { %43 = dma.hbm_to_vmem [thread:$0]  %s14383_s2, 16384, %s38_s28, [#allocation6], %s11759_s23, %s11759_s23, %s11760_s24  }
  0x22   :  { %11754 = dma.done.wait [#allocation4], 1024  }
  0x23   :  { %11755 = vsyncadd [#allocation4], 4294966272 }
  0x24   :  { %11756 = dma.done.wait [#allocation6], 16384  }
  0x25   :  { %11757 = vsyncadd [#allocation6], 4294950912  ;;  %v14392_v0 = vmov 0   ;;  %v67_v1 = vld [vmem:[#allocation3] sm:$0xff]  ;;  %v68_v3 = vld [vmem:[#allocation3 + $0x8] sm:$0xff]  ;;  %vm156_vm0 = vcmask 130048  }
  0x26   :  { %192 = vmatprep.mubr.bf16.mxu0 %v14392_v0  ;;  %233 = vmatprep.mubr.bf16.mxu1 %v14392_v0  ;;  %v71_v2 = vld [vmem:[#allocation3 + $0x20] sm:$0xff]  ;;  %v72_v5 = vld [vmem:[#allocation3 + $0x28] sm:$0xff]  ;;  %v69_v7 = vld [vmem:[#allocation3 + $0x10] sm:$0xff] }
  0x27   :  { %v11844_v4 = vcombine.high %v67_v1, %v71_v2  ;;  %v11846_v6 = vcombine.low %v67_v1, %v71_v2  ;;  %v11848_v8 = vcombine.high %v68_v3, %v72_v5  ;;  %v11850_v9 = vcombine.low %v68_v3, %v72_v5  ;;  %v73_v10 = vld [vmem:[#allocation3 + $0x30] sm:$0xff]  ;;  %v70_v11 = vld [vmem:[#allocation3 + $0x18] sm:$0xff]  ;;  %v66_v15 = vld [vmem:[%s14381_s0] sm:$0xf] }
  0x28   :  { %v74_v12 = vld [vmem:[#allocation3 + $0x38] sm:$0xff]  ;;  %v11853_v13 = vcombine.high %v69_v7, %v73_v10  ;;  %v11862_v16 = vcombine.low %v69_v7, %v73_v10  ;;  %v494_v18 = vld [vmem:[#allocation5] sm:$0xff]  ;;  %v978_v21 = vld [vmem:[#allocation5 + $0x8] sm:$0xff] }
  0x29   :  { %160 = vmatprep.subr.bf16.mxu0 %v11844_v4  ;;  %v11855_v14 = vcombine.high %v70_v11, %v74_v12  ;;  %201 = vmatprep.subr.bf16.mxu1 %v11848_v8  ;;  %v11866_v17 = vcombine.low %v70_v11, %v74_v12  ;;  %v495_v19 = vld [vmem:[#allocation5 + $0x20] sm:$0xff]  ;;  %v979_v22 = vld [vmem:[#allocation5 + $0x28] sm:$0xff] }
  0x2a   :  { %161 = vmatpush1.bf16.msra.mxu0 %v11846_v6  ;;  %202 = vmatpush1.bf16.msra.mxu1 %v11850_v9  ;;  %v324_v20 = vld [vmem:[%s14381_s0 + $0x4] sm:$0xf]  ;;  %v11888_v23 = vcombine.high %v494_v18, %v495_v19  ;;  %v11891_v24 = vcombine.high %v978_v21, %v979_v22  ;;  %v980_v27 = vld [vmem:[#allocation5 + $0x48] sm:$0xff]  ;;  %v11903_v30 = vcombine.low %v494_v18, %v495_v19 }
  0x2b   :  { %242 = vmatprep.subr.bf16.mxu0 %v11853_v13  ;;  %283 = vmatprep.subr.bf16.mxu1 %v11855_v14  ;;  %v496_v25 = vld [vmem:[#allocation5 + $0x40] sm:$0xff]  ;;  %v981_v28 = vld [vmem:[#allocation5 + $0x68] sm:$0xff]  ;;  %v11905_v31 = vcombine.low %v978_v21, %v979_v22 }
  0x2c   :  { %v497_v26 = vld [vmem:[#allocation5 + $0x60] sm:$0xff]  ;;  %v63_v29 = vld [vmem:[%s14387_s6 + $0x8] sm:$0xff]  ;;  %v11909_v33 = vcombine.high %v980_v27, %v981_v28  ;;  %v11920_v40 = vcombine.low %v980_v27, %v981_v28 }
  0x2d   :  { %10000 = vmatmul.mubr.msk.bf16.vlgmr.msra.gmra.mrb[0].mxu0 %vm156_vm0, %v66_v15  ;;  %10001 = vmatmul.mubr.msk.bf16.vlgmr.msra.gmra.mrb[0].mxu1 %vm156_vm0, %v66_v15  ;;  %v11907_v32 = vcombine.high %v496_v25, %v497_v26  ;;  %v498_v34 = vld [vmem:[#allocation5 + $0x80] sm:$0xff]  ;;  %v11911_v36 = vpack.c.bf16 %v63_v29, %v63_v29  ;;  %v982_v37 = vld [vmem:[#allocation5 + $0x88] sm:$0xff]  ;;  %v11916_v39 = vcombine.low %v496_v25, %v497_v26 }
  0x2e   :  { %243 = vmatpush1.bf16.msra.mxu0 %v11862_v16  ;;  %284 = vmatpush1.bf16.msra.mxu1 %v11866_v17  ;;  %v499_v35 = vld [vmem:[#allocation5 + $0xa0] sm:$0xff]  ;;  %v983_v38 = vld [vmem:[#allocation5 + $0xa8] sm:$0xff] }
  0x2f   :  { %274 = vmatprep.mubr.bf16.mxu0 %v14392_v0  ;;  %315 = vmatprep.mubr.bf16.mxu1 %v14392_v0  ;;  %v11922_v41 = vcombine.high %v498_v34, %v499_v35  ;;  %v11925_v42 = vcombine.high %v982_v37, %v983_v38  ;;  %v500_v43 = vld [vmem:[#allocation5 + $0xc0] sm:$0xff]  ;;  %v984_v45 = vld [vmem:[#allocation5 + $0xc8] sm:$0xff]  ;;  %v11930_v47 = vcombine.low %v498_v34, %v499_v35 }
  0x30   :  { %328 = vmatprep.subr.bf16.mxu0 %v11844_v4  ;;  %369 = vmatprep.subr.bf16.mxu1 %v11848_v8  ;;  %v501_v44 = vld [vmem:[#allocation5 + $0xe0] sm:$0xff]  ;;  %v985_v46 = vld [vmem:[#allocation5 + $0xe8] sm:$0xff]  ;;  %v11934_v48 = vcombine.low %v982_v37, %v983_v38 }
  0x31   :  { %v11936_v49 = vcombine.high %v500_v43, %v501_v44  ;;  %v11939_v50 = vcombine.high %v984_v45, %v985_v46  ;;  %v502_v51 = vld [vmem:[#allocation5 + $0x100] sm:$0xff]  ;;  %v986_v53 = vld [vmem:[#allocation5 + $0x108] sm:$0xff]  ;;  %v11942_v55 = vcombine.low %v500_v43, %v501_v44  ;;  %v11946_v56 = vcombine.low %v984_v45, %v985_v46 }
  0x32   :  { %v503_v52 = vld [vmem:[#allocation5 + $0x120] sm:$0xff]  ;;  %v987_v54 = vld [vmem:[#allocation5 + $0x128] sm:$0xff] }
  0x33   :  { %v11948_v57 = vcombine.high %v502_v51, %v503_v52  ;;  %v11951_v58 = vcombine.high %v986_v53, %v987_v54  ;;  %v504_v59 = vld [vmem:[#allocation5 + $0x140] sm:$0xff]  ;;  %v988_v61 = vld [vmem:[#allocation5 + $0x148] sm:$0xff]  ;;  %v11954_v63 = vcombine.low %v502_v51, %v503_v52  ;;  %v11958_v1 = vcombine.low %v986_v53, %v987_v54 }
  0x34   :  { %v505_v60 = vld [vmem:[#allocation5 + $0x160] sm:$0xff]  ;;  %v989_v62 = vld [vmem:[#allocation5 + $0x168] sm:$0xff] }
  0x35   :  { %10002 = vmatmul.mubr.msk.bf16.vlgmr.msra.gmra.mrb[4].mxu0 %vm156_vm0, %v66_v15  ;;  %10003 = vmatmul.mubr.msk.bf16.vlgmr.msra.gmra.mrb[4].mxu1 %vm156_vm0, %v66_v15  ;;  %v11960_v2 = vcombine.high %v504_v59, %v505_v60  ;;  %v506_v3 = vld [vmem:[#allocation5 + $0x180] sm:$0xff]  ;;  %v11963_v5 = vcombine.high %v988_v61, %v989_v62  ;;  %v990_v10 = vld [vmem:[#allocation5 + $0x188] sm:$0xff]  ;;  %v11966_v12 = vcombine.low %v504_v59, %v505_v60 }
  0x36   :  { %329 = vmatpush1.bf16.msra.mxu0 %v11846_v6  ;;  %370 = vmatpush1.bf16.msra.mxu1 %v11850_v9  ;;  %v507_v7 = vld [vmem:[#allocation5 + $0x1a0] sm:$0xff]  ;;  %v991_v11 = vld [vmem:[#allocation5 + $0x1a8] sm:$0xff]  ;;  %v11970_v19 = vcombine.low %v988_v61, %v989_v62 }
  0x37   :  { %360 = vmatprep.mubr.bf16.mxu0 %v14392_v0  ;;  %401 = vmatprep.mubr.bf16.mxu1 %v14392_v0  ;;  %v508_v15 = vld [vmem:[#allocation5 + $0x1c0] sm:$0xff]  ;;  %v992_v21 = vld [vmem:[#allocation5 + $0x1c8] sm:$0xff]  ;;  %v11975_v25 = vcombine.high %v990_v10, %v991_v11  ;;  %v11978_v26 = vcombine.low %v506_v3, %v507_v7  ;;  %v11982_v29 = vcombine.low %v990_v10, %v991_v11 }
  0x38   :  { %410 = vmatprep.subr.bf16.mxu0 %v11853_v13  ;;  %451 = vmatprep.subr.bf16.mxu1 %v11855_v14  ;;  %v509_v18 = vld [vmem:[#allocation5 + $0x1e0] sm:$0xff]  ;;  %v993_v22 = vld [vmem:[#allocation5 + $0x1e8] sm:$0xff] }
  0x39   :  { %v510_v27 = vld [vmem:[#allocation5 + $0x200] sm:$0xff]  ;;  %v11984_v34 = vcombine.high %v508_v15, %v509_v18  ;;  %v994_v35 = vld [vmem:[#allocation5 + $0x208] sm:$0xff]  ;;  %v11987_v38 = vcombine.high %v992_v21, %v993_v22  ;;  %v11990_v43 = vcombine.low %v508_v15, %v509_v18  ;;  %v11994_v44 = vcombine.low %v992_v21, %v993_v22 }
  0x3a   :  { %v511_v28 = vld [vmem:[#allocation5 + $0x220] sm:$0xff]  ;;  %v995_v37 = vld [vmem:[#allocation5 + $0x228] sm:$0xff] }
  0x3b   :  { %v11996_v45 = vcombine.high %v510_v27, %v511_v28  ;;  %v11999_v46 = vcombine.high %v994_v35, %v995_v37  ;;  %v512_v51 = vld [vmem:[#allocation5 + $0x240] sm:$0xff]  ;;  %v996_v53 = vld [vmem:[#allocation5 + $0x248] sm:$0xff]  ;;  %v12002_v59 = vcombine.low %v510_v27, %v511_v28  ;;  %v12006_v60 = vcombine.low %v994_v35, %v995_v37 }
  0x3c   :  { %v513_v52 = vld [vmem:[#allocation5 + $0x260] sm:$0xff]  ;;  %v997_v54 = vld [vmem:[#allocation5 + $0x268] sm:$0xff] }
  0x3d   :  { %10004 = vmatmul.mubr.msk.bf16.vlgmr.msra.gmra.mrb[8].mxu0 %vm156_vm0, %v324_v20  ;;  %10005 = vmatmul.mubr.msk.bf16.vlgmr.msra.gmra.mrb[8].mxu1 %vm156_vm0, %v324_v20  ;;  %14743 = vst [vmem:[#allocation9_spill] sm:$0xff] %v12006_v60  ;;  %v12008_v61 = vcombine.high %v512_v51, %v513_v52  ;;  %v12011_v62 = vcombine.high %v996_v53, %v997_v54  ;;  %v998_v10 = vld [vmem:[#allocation5 + $0x288] sm:$0xff]  ;;  %v516_v27 = vld [vmem:[#allocation5 + $0x2c0] sm:$0xff] }
  0x3e   :  { %411 = vmatpush1.bf16.msra.mxu0 %v11862_v16  ;;  %452 = vmatpush1.bf16.msra.mxu1 %v11866_v17  ;;  %v999_v11 = vld [vmem:[#allocation5 + $0x2a8] sm:$0xff]  ;;  %v12014_v15 = vcombine.low %v512_v51, %v513_v52  ;;  %v12018_v18 = vcombine.low %v996_v53, %v997_v54  ;;  %v517_v28 = vld [vmem:[#allocation5 + $0x2e0] sm:$0xff] }
  0x3f   :  { %442 = vmatprep.mubr.bf16.mxu0 %v14392_v0  ;;  %483 = vmatprep.mubr.bf16.mxu1 %v14392_v0  ;;  %14744 = vst [vmem:[#allocation10_spill] sm:$0xff] %v12008_v61  ;;  %14745 = vst [vmem:[#allocation11_spill] sm:$0xff] %v12011_v62  ;;  %v12023_v22 = vcombine.high %v998_v10, %v999_v11  ;;  %v1000_v35 = vld [vmem:[#allocation5 + $0x2c8] sm:$0xff]  ;;  %v12030_v52 = vcombine.low %v998_v10, %v999_v11  ;;  %v518_v0 = vld [vmem:[#allocation5 + $0x300] sm:$0xff] }
  0x40   :  { %686 = vmatprep.subr.bf16.mxu0 %v11888_v23  ;;  %1170 = vmatprep.subr.bf16.mxu1 %v11891_v24  ;;  %14746 = vst [vmem:[#allocation12_spill] sm:$0xff] %v12014_v15  ;;  %14747 = vst [vmem:[#allocation13_spill] sm:$0xff] %v12018_v18  ;;  %v1001_v37 = vld [vmem:[#allocation5 + $0x2e8] sm:$0xff]  ;;  %v12032_v53 = vcombine.high %v516_v27, %v517_v28 }
  0x41   :  { %14749 = vst [vmem:[#allocation15_spill] sm:$0xff] %v12023_v22  ;;  %14751 = vst [vmem:[#allocation17_spill] sm:$0xff] %v12030_v52  ;;  %v12035_v54 = vcombine.high %v1000_v35, %v1001_v37 }
  0x42   :  { %14752 = vst [vmem:[#allocation18_spill] sm:$0xff] %v12032_v53 }
  0x43   :  { %14753 = vst [vmem:[#allocation19_spill] sm:$0xff] %v12035_v54 }
  0x45   :  { %10006 = vmatmul.mubr.msk.bf16.vlgmr.msra.gmra.mrb[12].mxu0 %vm156_vm0, %v324_v20  ;;  %10007 = vmatmul.mubr.msk.bf16.vlgmr.msra.gmra.mrb[12].mxu1 %vm156_vm0, %v324_v20  ;;  %v11972_v20 = vcombine.high %v506_v3, %v507_v7  ;;  %v514_v3 = vld [vmem:[#allocation5 + $0x280] sm:$0xff] }
  0x46   :  { %687 = vmatpush1.bf16.msra.mxu0 %v11903_v30  ;;  %1171 = vmatpush1.bf16.msra.mxu1 %v11905_v31  ;;  %v515_v7 = vld [vmem:[#allocation5 + $0x2a0] sm:$0xff] }
  0x47   :  { %688 = vmatprep.subr.bf16.mxu0 %v11907_v32  ;;  %1172 = vmatprep.subr.bf16.mxu1 %v11909_v33  ;;  %v12020_v21 = vcombine.high %v514_v3, %v515_v7  ;;  %v12026_v51 = vcombine.low %v514_v3, %v515_v7  ;;  %v12038_v3 = vcombine.low %v516_v27, %v517_v28 }
  0x48   :  { %718 = vmatprep.mubr.bf16.mxu0 %v11911_v36  ;;  %1202 = vmatprep.mubr.bf16.mxu1 %v11911_v36  ;;  %v12042_v7 = vcombine.low %v1000_v35, %v1001_v37 }
  0x49   :  { %14748 = vst [vmem:[#allocation14_spill] sm:$0xff] %v12020_v21  ;;  %14750 = vst [vmem:[#allocation16_spill] sm:$0xff] %v12026_v51 }
  0x4a   :  { %689 = vmatpush1.bf16.msra.mxu0 %v11916_v39  ;;  %1173 = vmatpush1.bf16.msra.mxu1 %v11920_v40  ;;  %14754 = vst [vmem:[#allocation20_spill] sm:$0xff] %v12038_v3  ;;  %14755 = vst [vmem:[#allocation21_spill] sm:$0xff] %v12042_v7 }
  0x4b   :  { %690 = vmatprep.subr.bf16.mxu0 %v11922_v41  ;;  %1174 = vmatprep.subr.bf16.mxu1 %v11925_v42 }
  0x4e   :  { %691 = vmatpush1.bf16.msra.mxu0 %v11930_v47  ;;  %1175 = vmatpush1.bf16.msra.mxu1 %v11934_v48 }
  0x4f   :  { %692 = vmatprep.subr.bf16.mxu0 %v11936_v49  ;;  %1176 = vmatprep.subr.bf16.mxu1 %v11939_v50 }
  0x52   :  { %693 = vmatpush1.bf16.msra.mxu0 %v11942_v55  ;;  %1177 = vmatpush1.bf16.msra.mxu1 %v11946_v56 }
  0x53   :  { %694 = vmatprep.subr.bf16.mxu0 %v11948_v57  ;;  %1178 = vmatprep.subr.bf16.mxu1 %v11951_v58 }
  0x56   :  { %695 = vmatpush1.bf16.msra.mxu0 %v11954_v63  ;;  %1179 = vmatpush1.bf16.msra.mxu1 %v11958_v1 }
  0x57   :  { %696 = vmatprep.subr.bf16.mxu0 %v11960_v2  ;;  %1180 = vmatprep.subr.bf16.mxu1 %v11963_v5 }
  0x5a   :  { %697 = vmatpush1.bf16.msra.mxu0 %v11966_v12  ;;  %1181 = vmatpush1.bf16.msra.mxu1 %v11970_v19 }
  0x5b   :  { %698 = vmatprep.subr.bf16.mxu0 %v11972_v20  ;;  %1182 = vmatprep.subr.bf16.mxu1 %v11975_v25 }
  0x5e   :  { %699 = vmatpush1.bf16.msra.mxu0 %v11978_v26  ;;  %1183 = vmatpush1.bf16.msra.mxu1 %v11982_v29 }
  0x5f   :  { %700 = vmatprep.subr.bf16.mxu0 %v11984_v34  ;;  %1184 = vmatprep.subr.bf16.mxu1 %v11987_v38 }
  0x62   :  { %701 = vmatpush1.bf16.msra.mxu0 %v11990_v43  ;;  %1185 = vmatpush1.bf16.msra.mxu1 %v11994_v44 }
  0x63   :  { %702 = vmatprep.subr.bf16.mxu0 %v11996_v45  ;;  %1186 = vmatprep.subr.bf16.mxu1 %v11999_v46 }
  0x66   :  { %703 = vmatpush1.bf16.msra.mxu0 %v12002_v59  ;;  %1187 = vmatpush1.bf16.msra.mxu1 %v12006_v60  ;;  %v1003_v60 = vld [vmem:[#allocation5 + $0x328] sm:$0xff] }
  0x67   :  { %704 = vmatprep.subr.bf16.mxu0 %v12008_v61  ;;  %1188 = vmatprep.subr.bf16.mxu1 %v12011_v62  ;;  %v519_v62 = vld [vmem:[#allocation5 + $0x320] sm:$0xff]  ;;  %v1002_v61 = vld [vmem:[#allocation5 + $0x308] sm:$0xff] }
  0x68   :  { %v12044_v10 = vcombine.high %v518_v0, %v519_v62  ;;  %v12047_v11 = vcombine.high %v1002_v61, %v1003_v60  ;;  %v12050_v27 = vcombine.low %v518_v0, %v519_v62  ;;  %v12054_v28 = vcombine.low %v1002_v61, %v1003_v60 }
  0x6a   :  { %705 = vmatpush1.bf16.msra.mxu0 %v12014_v15  ;;  %1189 = vmatpush1.bf16.msra.mxu1 %v12018_v18  ;;  %14756 = vst [vmem:[#allocation22_spill] sm:$0xff] %v12044_v10  ;;  %14757 = vst [vmem:[#allocation23_spill] sm:$0xff] %v12047_v11  ;;  %v1004_v18 = vld [vmem:[#allocation5 + $0x348] sm:$0xff] }
  0x6b   :  { %706 = vmatprep.subr.bf16.mxu0 %v12020_v21  ;;  %1190 = vmatprep.subr.bf16.mxu1 %v12023_v22  ;;  %v520_v22 = vld [vmem:[#allocation5 + $0x340] sm:$0xff]  ;;  %v1005_v15 = vld [vmem:[#allocation5 + $0x368] sm:$0xff]  ;;  %14758 = vst [vmem:[#allocation24_spill] sm:$0xff] %v12050_v27  ;;  %14759 = vst [vmem:[#allocation25_spill] sm:$0xff] %v12054_v28 }
  0x6c   :  { %v521_v21 = vld [vmem:[#allocation5 + $0x360] sm:$0xff]  ;;  %v12059_v37 = vcombine.high %v1004_v18, %v1005_v15  ;;  %v12066_v60 = vcombine.low %v1004_v18, %v1005_v15 }
  0x6d   :  { %v12056_v35 = vcombine.high %v520_v22, %v521_v21  ;;  %v12062_v0 = vcombine.low %v520_v22, %v521_v21 }
  0x6e   :  { %707 = vmatpush1.bf16.msra.mxu0 %v12026_v51  ;;  %1191 = vmatpush1.bf16.msra.mxu1 %v12030_v52  ;;  %14761 = vst [vmem:[#allocation27_spill] sm:$0xff] %v12059_v37  ;;  %v1006_v52 = vld [vmem:[#allocation5 + $0x388] sm:$0xff]  ;;  %14763 = vst [vmem:[#allocation29_spill] sm:$0xff] %v12066_v60 }
  0x6f   :  { %708 = vmatprep.subr.bf16.mxu0 %v12032_v53  ;;  %1192 = vmatprep.subr.bf16.mxu1 %v12035_v54  ;;  %14760 = vst [vmem:[#allocation26_spill] sm:$0xff] %v12056_v35  ;;  %v522_v54 = vld [vmem:[#allocation5 + $0x380] sm:$0xff]  ;;  %v1007_v51 = vld [vmem:[#allocation5 + $0x3a8] sm:$0xff]  ;;  %14762 = vst [vmem:[#allocation28_spill] sm:$0xff] %v12062_v0 }
  0x70   :  { %v523_v53 = vld [vmem:[#allocation5 + $0x3a0] sm:$0xff]  ;;  %v12071_v62 = vcombine.high %v1006_v52, %v1007_v51  ;;  %v12078_v15 = vcombine.low %v1006_v52, %v1007_v51 }
  0x71   :  { %v12068_v61 = vcombine.high %v522_v54, %v523_v53  ;;  %v12074_v21 = vcombine.low %v522_v54, %v523_v53  ;;  %v62_v54 = vld [vmem:[%s14387_s6] sm:$0xff] }
  0x72   :  { %709 = vmatpush1.bf16.msra.mxu0 %v12038_v3  ;;  %1193 = vmatpush1.bf16.msra.mxu1 %v12042_v7  ;;  %14765 = vst [vmem:[#allocation31_spill] sm:$0xff] %v12071_v62  ;;  %v1008_v7 = vld [vmem:[#allocation5 + $0x3c8] sm:$0xff]  ;;  %14767 = vst [vmem:[#allocation33_spill] sm:$0xff] %v12078_v15 }
  0x73   :  { %710 = vmatprep.subr.bf16.mxu0 %v12044_v10  ;;  %1194 = vmatprep.subr.bf16.mxu1 %v12047_v11  ;;  %14764 = vst [vmem:[#allocation30_spill] sm:$0xff] %v12068_v61  ;;  %v524_v11 = vld [vmem:[#allocation5 + $0x3c0] sm:$0xff]  ;;  %v1009_v3 = vld [vmem:[#allocation5 + $0x3e8] sm:$0xff]  ;;  %14766 = vst [vmem:[#allocation32_spill] sm:$0xff] %v12074_v21 }
  0x74   :  { %v525_v10 = vld [vmem:[#allocation5 + $0x3e0] sm:$0xff]  ;;  %v12083_v22 = vcombine.high %v1008_v7, %v1009_v3  ;;  %v12093_v51 = vcombine.low %v1008_v7, %v1009_v3 }
  0x75   :  { %v12080_v18 = vcombine.high %v524_v11, %v525_v10  ;;  %v12086_v53 = vcombine.low %v524_v11, %v525_v10  ;;  %v12100_v10 = vpack.c.bf16 %v62_v54, %v62_v54  ;;  %v1233_v11 = vld [vmem:[#allocation5 + $0x58] sm:$0xff]  ;;  %v733_v54 = vld [vmem:[#allocation5 + $0x90] sm:$0xff] }
  0x76   :  { %711 = vmatpush1.bf16.msra.mxu0 %v12050_v27  ;;  %1195 = vmatpush1.bf16.msra.mxu1 %v12054_v28  ;;  %14769 = vst [vmem:[#allocation35_spill] sm:$0xff] %v12083_v22  ;;  %v1231_v28 = vld [vmem:[#allocation5 + $0x18] sm:$0xff]  ;;  %14771 = vst [vmem:[#allocation37_spill] sm:$0xff] %v12093_v51 }
  0x77   :  { %712 = vmatprep.subr.bf16.mxu0 %v12056_v35  ;;  %1196 = vmatprep.subr.bf16.mxu1 %v12059_v37  ;;  %14768 = vst [vmem:[#allocation34_spill] sm:$0xff] %v12080_v18  ;;  %v729_v37 = vld [vmem:[#allocation5 + $0x10] sm:$0xff]  ;;  %v1232_v27 = vld [vmem:[#allocation5 + $0x38] sm:$0xff]  ;;  %14770 = vst [vmem:[#allocation36_spill] sm:$0xff] %v12086_v53 }
  0x78   :  { %v730_v35 = vld [vmem:[#allocation5 + $0x30] sm:$0xff]  ;;  %v12107_v3 = vcombine.low %v1231_v28, %v1232_v27 }
  0x79   :  { %v12095_v52 = vcombine.high %v729_v37, %v730_v35 }
  0x7a   :  { %713 = vmatpush1.bf16.msra.mxu0 %v12062_v0  ;;  %1197 = vmatpush1.bf16.msra.mxu1 %v12066_v60  ;;  %v1234_v60 = vld [vmem:[#allocation5 + $0x78] sm:$0xff]  ;;  %v12103_v0 = vcombine.low %v729_v37, %v730_v35  ;;  %14775 = vst [vmem:[#allocation41_spill] sm:$0xff] %v12107_v3 }
  0x7b   :  { %714 = vmatprep.subr.bf16.mxu0 %v12068_v61  ;;  %1198 = vmatprep.subr.bf16.mxu1 %v12071_v62  ;;  %14772 = vst [vmem:[#allocation38_spill] sm:$0xff] %v12095_v52  ;;  %v12098_v62 = vcombine.high %v1231_v28, %v1232_v27  ;;  %v731_v61 = vld [vmem:[#allocation5 + $0x50] sm:$0xff]  ;;  %v12121_v27 = vcombine.low %v1233_v11, %v1234_v60 }
  0x7c   :  { %14774 = vst [vmem:[#allocation40_spill] sm:$0xff] %v12103_v0 }
  0x7d   :  { %14773 = vst [vmem:[#allocation39_spill] sm:$0xff] %v12098_v62  ;;  %14779 = vst [vmem:[#allocation45_spill] sm:$0xff] %v12121_v27 }
  0x7e   :  { %715 = vmatpush1.bf16.msra.mxu0 %v12074_v21  ;;  %1199 = vmatpush1.bf16.msra.mxu1 %v12078_v15  ;;  %v732_v21 = vld [vmem:[#allocation5 + $0x70] sm:$0xff]  ;;  %v1235_v15 = vld [vmem:[#allocation5 + $0x98] sm:$0xff] }
  0x7f   :  { %716 = vmatprep.subr.bf16.mxu0 %v12080_v18  ;;  %1200 = vmatprep.subr.bf16.mxu1 %v12083_v22  ;;  %v12109_v7 = vcombine.high %v731_v61, %v732_v21  ;;  %v12112_v22 = vcombine.high %v1233_v11, %v1234_v60  ;;  %v734_v18 = vld [vmem:[#allocation5 + $0xb0] sm:$0xff]  ;;  %v12117_v35 = vcombine.low %v731_v61, %v732_v21 }
  0x80   :  { %v12123_v28 = vcombine.high %v733_v54, %v734_v18  ;;  %v12131_v61 = vcombine.low %v733_v54, %v734_v18 }
  0x81   :  { %14776 = vst [vmem:[#allocation42_spill] sm:$0xff] %v12109_v7  ;;  %14777 = vst [vmem:[#allocation43_spill] sm:$0xff] %v12112_v22 }
  0x82   :  { %717 = vmatpush1.bf16.msra.mxu0 %v12086_v53  ;;  %1201 = vmatpush1.bf16.msra.mxu1 %v12093_v51  ;;  %v1236_v53 = vld [vmem:[#allocation5 + $0xb8] sm:$0xff]  ;;  %14778 = vst [vmem:[#allocation44_spill] sm:$0xff] %v12117_v35  ;;  %14780 = vst [vmem:[#allocation46_spill] sm:$0xff] %v12123_v28 }
  0x83   :  { %921 = vmatprep.subr.bf16.mxu0 %v12095_v52  ;;  %1423 = vmatprep.subr.bf16.mxu1 %v12098_v62  ;;  %v12126_v37 = vcombine.high %v1235_v15, %v1236_v53  ;;  %v735_v62 = vld [vmem:[#allocation5 + $0xd0] sm:$0xff]  ;;  %v1237_v51 = vld [vmem:[#allocation5 + $0xd8] sm:$0xff]  ;;  %14782 = vst [vmem:[#allocation48_spill] sm:$0xff] %v12131_v61  ;;  %v12135_v60 = vcombine.low %v1235_v15, %v1236_v53 }
  0x84   :  { %v736_v52 = vld [vmem:[#allocation5 + $0xf0] sm:$0xff] }
  0x85   :  { %719 = vmatmul.mubr.bf16.vlgmr.msra.gmra.mrb[0].mxu0 %v12100_v10  ;;  %1203 = vmatmul.mubr.bf16.vlgmr.msra.gmra.mrb[0].mxu1 %v12100_v10  ;;  %14781 = vst [vmem:[#allocation47_spill] sm:$0xff] %v12126_v37  ;;  %14783 = vst [vmem:[#allocation49_spill] sm:$0xff] %v12135_v60  ;;  %v12137_v21 = vcombine.high %v735_v62, %v736_v52  ;;  %v12143_v18 = vcombine.low %v735_v62, %v736_v52 }
  0x86   :  { %922 = vmatpush1.bf16.msra.mxu0 %v12103_v0  ;;  %1424 = vmatpush1.bf16.msra.mxu1 %v12107_v3  ;;  %v1238_v0 = vld [vmem:[#allocation5 + $0xf8] sm:$0xff] }
  0x87   :  { %923 = vmatprep.subr.bf16.mxu0 %v12109_v7  ;;  %1425 = vmatprep.subr.bf16.mxu1 %v12112_v22  ;;  %14784 = vst [vmem:[#allocation50_spill] sm:$0xff] %v12137_v21  ;;  %v12140_v11 = vcombine.high %v1237_v51, %v1238_v0  ;;  %v737_v22 = vld [vmem:[#allocation5 + $0x110] sm:$0xff]  ;;  %v1239_v3 = vld [vmem:[#allocation5 + $0x118] sm:$0xff]  ;;  %14786 = vst [vmem:[#allocation52_spill] sm:$0xff] %v12143_v18  ;;  %v12147_v15 = vcombine.low %v1237_v51, %v1238_v0 }
  0x88   :  { %953 = vmatprep.mubr.bf16.mxu0 %v11911_v36  ;;  %1455 = vmatprep.mubr.bf16.mxu1 %v11911_v36  ;;  %v738_v7 = vld [vmem:[#allocation5 + $0x130] sm:$0xff]  ;;  %v1240_v36 = vld [vmem:[#allocation5 + $0x138] sm:$0xff] }
  0x89   :  { %14785 = vst [vmem:[#allocation51_spill] sm:$0xff] %v12140_v11  ;;  %14787 = vst [vmem:[#allocation53_spill] sm:$0xff] %v12147_v15  ;;  %v12149_v53 = vcombine.high %v737_v22, %v738_v7  ;;  %v12152_v54 = vcombine.high %v1239_v3, %v1240_v36  ;;  %v12155_v62 = vcombine.low %v737_v22, %v738_v7 }
  0x8a   :  { %924 = vmatpush1.bf16.msra.mxu0 %v12117_v35  ;;  %1426 = vmatpush1.bf16.msra.mxu1 %v12121_v27  ;;  %v1241_v27 = vld [vmem:[#allocation5 + $0x158] sm:$0xff]  ;;  %v12159_v0 = vcombine.low %v1239_v3, %v1240_v36 }
  0x8b   :  { %925 = vmatprep.subr.bf16.mxu0 %v12123_v28  ;;  %1427 = vmatprep.subr.bf16.mxu1 %v12126_v37  ;;  %14788 = vst [vmem:[#allocation54_spill] sm:$0xff] %v12149_v53  ;;  %14789 = vst [vmem:[#allocation55_spill] sm:$0xff] %v12152_v54  ;;  %v739_v37 = vld [vmem:[#allocation5 + $0x150] sm:$0xff]  ;;  %v1242_v35 = vld [vmem:[#allocation5 + $0x178] sm:$0xff] }
  0x8c   :  { %v740_v28 = vld [vmem:[#allocation5 + $0x170] sm:$0xff]  ;;  %14790 = vst [vmem:[#allocation56_spill] sm:$0xff] %v12155_v62  ;;  %14791 = vst [vmem:[#allocation57_spill] sm:$0xff] %v12159_v0  ;;  %v12164_v52 = vcombine.high %v1241_v27, %v1242_v35  ;;  %v12171_v3 = vcombine.low %v1241_v27, %v1242_v35 }
  0x8d   :  { %v12161_v51 = vcombine.high %v739_v37, %v740_v28  ;;  %v12167_v22 = vcombine.low %v739_v37, %v740_v28 }
  0x8e   :  { %926 = vmatpush1.bf16.msra.mxu0 %v12131_v61  ;;  %1428 = vmatpush1.bf16.msra.mxu1 %v12135_v60  ;;  %14793 = vst [vmem:[#allocation59_spill] sm:$0xff] %v12164_v52  ;;  %v1243_v60 = vld [vmem:[#allocation5 + $0x198] sm:$0xff]  ;;  %14795 = vst [vmem:[#allocation61_spill] sm:$0xff] %v12171_v3 }
  0x8f   :  { %927 = vmatprep.subr.bf16.mxu0 %v12137_v21  ;;  %1429 = vmatprep.subr.bf16.mxu1 %v12140_v11  ;;  %14792 = vst [vmem:[#allocation58_spill] sm:$0xff] %v12161_v51  ;;  %v741_v11 = vld [vmem:[#allocation5 + $0x190] sm:$0xff]  ;;  %v1244_v61 = vld [vmem:[#allocation5 + $0x1b8] sm:$0xff]  ;;  %14794 = vst [vmem:[#allocation60_spill] sm:$0xff] %v12167_v22 }
  0x90   :  { %v742_v21 = vld [vmem:[#allocation5 + $0x1b0] sm:$0xff]  ;;  %v12176_v36 = vcombine.high %v1243_v60, %v1244_v61  ;;  %v12183_v35 = vcombine.low %v1243_v60, %v1244_v61 }
  0x91   :  { %v12173_v7 = vcombine.high %v741_v11, %v742_v21  ;;  %v12179_v28 = vcombine.low %v741_v11, %v742_v21 }
  0x92   :  { %928 = vmatpush1.bf16.msra.mxu0 %v12143_v18  ;;  %1430 = vmatpush1.bf16.msra.mxu1 %v12147_v15  ;;  %14797 = vst [vmem:[#allocation63_spill] sm:$0xff] %v12176_v36  ;;  %v1245_v15 = vld [vmem:[#allocation5 + $0x1d8] sm:$0xff]  ;;  %14799 = vst [vmem:[#allocation65_spill] sm:$0xff] %v12183_v35 }
  0x93   :  { %929 = vmatprep.subr.bf16.mxu0 %v12149_v53  ;;  %1431 = vmatprep.subr.bf16.mxu1 %v12152_v54  ;;  %14796 = vst [vmem:[#allocation62_spill] sm:$0xff] %v12173_v7  ;;  %v743_v54 = vld [vmem:[#allocation5 + $0x1d0] sm:$0xff]  ;;  %v1246_v18 = vld [vmem:[#allocation5 + $0x1f8] sm:$0xff]  ;;  %14798 = vst [vmem:[#allocation64_spill] sm:$0xff] %v12179_v28 }
  0x94   :  { %v744_v53 = vld [vmem:[#allocation5 + $0x1f0] sm:$0xff]  ;;  %v12188_v37 = vcombine.high %v1245_v15, %v1246_v18  ;;  %v12195_v61 = vcombine.low %v1245_v15, %v1246_v18 }
  0x95   :  { %v12185_v27 = vcombine.high %v743_v54, %v744_v53  ;;  %v12191_v21 = vcombine.low %v743_v54, %v744_v53 }
  0x96   :  { %930 = vmatpush1.bf16.msra.mxu0 %v12155_v62  ;;  %1432 = vmatpush1.bf16.msra.mxu1 %v12159_v0  ;;  %14801 = vst [vmem:[#allocation67_spill] sm:$0xff] %v12188_v37  ;;  %v1247_v0 = vld [vmem:[#allocation5 + $0x218] sm:$0xff]  ;;  %14803 = vst [vmem:[#allocation69_spill] sm:$0xff] %v12195_v61 }
  0x97   :  { %931 = vmatprep.subr.bf16.mxu0 %v12161_v51  ;;  %1433 = vmatprep.subr.bf16.mxu1 %v12164_v52  ;;  %14800 = vst [vmem:[#allocation66_spill] sm:$0xff] %v12185_v27  ;;  %v745_v52 = vld [vmem:[#allocation5 + $0x210] sm:$0xff]  ;;  %v1248_v62 = vld [vmem:[#allocation5 + $0x238] sm:$0xff]  ;;  %14802 = vst [vmem:[#allocation68_spill] sm:$0xff] %v12191_v21 }
  0x98   :  { %v746_v51 = vld [vmem:[#allocation5 + $0x230] sm:$0xff]  ;;  %v12200_v11 = vcombine.high %v1247_v0, %v1248_v62  ;;  %v12207_v18 = vcombine.low %v1247_v0, %v1248_v62 }
  0x99   :  { %v12197_v60 = vcombine.high %v745_v52, %v746_v51  ;;  %v12203_v53 = vcombine.low %v745_v52, %v746_v51 }
  0x9a   :  { %932 = vmatpush1.bf16.msra.mxu0 %v12167_v22  ;;  %1434 = vmatpush1.bf16.msra.mxu1 %v12171_v3  ;;  %14805 = vst [vmem:[#allocation71_spill] sm:$0xff] %v12200_v11  ;;  %v1249_v3 = vld [vmem:[#allocation5 + $0x258] sm:$0xff]  ;;  %14807 = vst [vmem:[#allocation73_spill] sm:$0xff] %v12207_v18 }
  0x9b   :  { %933 = vmatprep.subr.bf16.mxu0 %v12173_v7  ;;  %1435 = vmatprep.subr.bf16.mxu1 %v12176_v36  ;;  %14804 = vst [vmem:[#allocation70_spill] sm:$0xff] %v12197_v60  ;;  %v747_v36 = vld [vmem:[#allocation5 + $0x250] sm:$0xff]  ;;  %v1250_v22 = vld [vmem:[#allocation5 + $0x278] sm:$0xff]  ;;  %14806 = vst [vmem:[#allocation72_spill] sm:$0xff] %v12203_v53 }
  0x9c   :  { %v748_v7 = vld [vmem:[#allocation5 + $0x270] sm:$0xff]  ;;  %v12212_v54 = vcombine.high %v1249_v3, %v1250_v22  ;;  %v12219_v62 = vcombine.low %v1249_v3, %v1250_v22 }
  0x9d   :  { %v12209_v15 = vcombine.high %v747_v36, %v748_v7  ;;  %v12215_v51 = vcombine.low %v747_v36, %v748_v7 }
  0x9e   :  { %934 = vmatpush1.bf16.msra.mxu0 %v12179_v28  ;;  %1436 = vmatpush1.bf16.msra.mxu1 %v12183_v35  ;;  %14809 = vst [vmem:[#allocation75_spill] sm:$0xff] %v12212_v54  ;;  %v1251_v35 = vld [vmem:[#allocation5 + $0x298] sm:$0xff]  ;;  %14811 = vst [vmem:[#allocation77_spill] sm:$0xff] %v12219_v62 }
  0x9f   :  { %935 = vmatprep.subr.bf16.mxu0 %v12185_v27  ;;  %1437 = vmatprep.subr.bf16.mxu1 %v12188_v37  ;;  %14808 = vst [vmem:[#allocation74_spill] sm:$0xff] %v12209_v15  ;;  %v749_v37 = vld [vmem:[#allocation5 + $0x290] sm:$0xff]  ;;  %v1252_v28 = vld [vmem:[#allocation5 + $0x2b8] sm:$0xff]  ;;  %14810 = vst [vmem:[#allocation76_spill] sm:$0xff] %v12215_v51 }
  0xa0   :  { %v750_v27 = vld [vmem:[#allocation5 + $0x2b0] sm:$0xff]  ;;  %v12224_v52 = vcombine.high %v1251_v35, %v1252_v28  ;;  %v12231_v22 = vcombine.low %v1251_v35, %v1252_v28 }
  0xa1   :  { %v12221_v0 = vcombine.high %v749_v37, %v750_v27  ;;  %v12227_v7 = vcombine.low %v749_v37, %v750_v27 }
  0xa2   :  { %936 = vmatpush1.bf16.msra.mxu0 %v12191_v21  ;;  %1438 = vmatpush1.bf16.msra.mxu1 %v12195_v61  ;;  %14813 = vst [vmem:[#allocation79_spill] sm:$0xff] %v12224_v52  ;;  %v1253_v61 = vld [vmem:[#allocation5 + $0x2d8] sm:$0xff]  ;;  %14815 = vst [vmem:[#allocation81_spill] sm:$0xff] %v12231_v22 }
  0xa3   :  { %937 = vmatprep.subr.bf16.mxu0 %v12197_v60  ;;  %1439 = vmatprep.subr.bf16.mxu1 %v12200_v11  ;;  %14812 = vst [vmem:[#allocation78_spill] sm:$0xff] %v12221_v0  ;;  %v751_v11 = vld [vmem:[#allocation5 + $0x2d0] sm:$0xff]  ;;  %v1254_v21 = vld [vmem:[#allocation5 + $0x2f8] sm:$0xff]  ;;  %14814 = vst [vmem:[#allocation80_spill] sm:$0xff] %v12227_v7 }
  0xa4   :  { %v752_v60 = vld [vmem:[#allocation5 + $0x2f0] sm:$0xff]  ;;  %v12236_v36 = vcombine.high %v1253_v61, %v1254_v21  ;;  %v12243_v28 = vcombine.low %v1253_v61, %v1254_v21 }
  0xa5   :  { %v12233_v3 = vcombine.high %v751_v11, %v752_v60  ;;  %v12239_v27 = vcombine.low %v751_v11, %v752_v60 }
  0xa6   :  { %938 = vmatpush1.bf16.msra.mxu0 %v12203_v53  ;;  %1440 = vmatpush1.bf16.msra.mxu1 %v12207_v18  ;;  %14817 = vst [vmem:[#allocation83_spill] sm:$0xff] %v12236_v36  ;;  %v1255_v18 = vld [vmem:[#allocation5 + $0x318] sm:$0xff]  ;;  %14819 = vst [vmem:[#allocation85_spill] sm:$0xff] %v12243_v28 }
  0xa7   :  { %939 = vmatprep.subr.bf16.mxu0 %v12209_v15  ;;  %1441 = vmatprep.subr.bf16.mxu1 %v12212_v54  ;;  %14816 = vst [vmem:[#allocation82_spill] sm:$0xff] %v12233_v3  ;;  %v753_v54 = vld [vmem:[#allocation5 + $0x310] sm:$0xff]  ;;  %v1256_v53 = vld [vmem:[#allocation5 + $0x338] sm:$0xff]  ;;  %14818 = vst [vmem:[#allocation84_spill] sm:$0xff] %v12239_v27 }
  0xa8   :  { %v754_v15 = vld [vmem:[#allocation5 + $0x330] sm:$0xff]  ;;  %v12248_v37 = vcombine.high %v1255_v18, %v1256_v53  ;;  %v12255_v21 = vcombine.low %v1255_v18, %v1256_v53 }
  0xa9   :  { %v12245_v35 = vcombine.high %v753_v54, %v754_v15  ;;  %v12251_v60 = vcombine.low %v753_v54, %v754_v15 }
  0xaa   :  { %940 = vmatpush1.bf16.msra.mxu0 %v12215_v51  ;;  %1442 = vmatpush1.bf16.msra.mxu1 %v12219_v62  ;;  %14821 = vst [vmem:[#allocation87_spill] sm:$0xff] %v12248_v37  ;;  %v1257_v62 = vld [vmem:[#allocation5 + $0x358] sm:$0xff] }
  0xab   :  { %941 = vmatprep.subr.bf16.mxu0 %v12221_v0  ;;  %1443 = vmatprep.subr.bf16.mxu1 %v12224_v52  ;;  %14820 = vst [vmem:[#allocation86_spill] sm:$0xff] %v12245_v35  ;;  %v755_v52 = vld [vmem:[#allocation5 + $0x350] sm:$0xff]  ;;  %v1258_v51 = vld [vmem:[#allocation5 + $0x378] sm:$0xff] }
  0xac   :  { %v756_v0 = vld [vmem:[#allocation5 + $0x370] sm:$0xff]  ;;  %v12260_v11 = vcombine.high %v1257_v62, %v1258_v51  ;;  %v12267_v53 = vcombine.low %v1257_v62, %v1258_v51 }
  0xad   :  { %v12257_v61 = vcombine.high %v755_v52, %v756_v0  ;;  %v12263_v15 = vcombine.low %v755_v52, %v756_v0 }
  0xae   :  { %942 = vmatpush1.bf16.msra.mxu0 %v12227_v7  ;;  %1444 = vmatpush1.bf16.msra.mxu1 %v12231_v22  ;;  %14822 = vst [vmem:[#allocation88_spill] sm:$0xff] %v12260_v11  ;;  %v1259_v22 = vld [vmem:[#allocation5 + $0x398] sm:$0xff] }
  0xaf   :  { %943 = vmatprep.subr.bf16.mxu0 %v12233_v3  ;;  %1445 = vmatprep.subr.bf16.mxu1 %v12236_v36  ;;  %v757_v36 = vld [vmem:[#allocation5 + $0x390] sm:$0xff]  ;;  %v1260_v7 = vld [vmem:[#allocation5 + $0x3b8] sm:$0xff] }
  0xb0   :  { %v758_v3 = vld [vmem:[#allocation5 + $0x3b0] sm:$0xff]  ;;  %v12272_v54 = vcombine.high %v1259_v22, %v1260_v7  ;;  %v12279_v51 = vcombine.low %v1259_v22, %v1260_v7  ;;  %v14823_v7 = vmov 0  }
  0xb1   :  { %v12269_v18 = vcombine.high %v757_v36, %v758_v3  ;;  %v12275_v0 = vcombine.low %v757_v36, %v758_v3 }
  0xb2   :  { %944 = vmatpush1.bf16.msra.mxu0 %v12239_v27  ;;  %1446 = vmatpush1.bf16.msra.mxu1 %v12243_v28  ;;  %v1261_v28 = vld [vmem:[#allocation5 + $0x3d8] sm:$0xff] }
  0xb3   :  { %945 = vmatprep.subr.bf16.mxu0 %v12245_v35  ;;  %1447 = vmatprep.subr.bf16.mxu1 %v12248_v37  ;;  %v759_v37 = vld [vmem:[#allocation5 + $0x3d0] sm:$0xff]  ;;  %v1262_v27 = vld [vmem:[#allocation5 + $0x3f8] sm:$0xff] }
  0xb4   :  { %v760_v35 = vld [vmem:[#allocation5 + $0x3f0] sm:$0xff]  ;;  %v12284_v52 = vcombine.high %v1261_v28, %v1262_v27  ;;  %v12291_v3 = vcombine.low %v1261_v28, %v1262_v27 }
  0xb5   :  { %v12281_v62 = vcombine.high %v759_v37, %v760_v35 }
  0xb6   :  { %946 = vmatpush1.bf16.msra.mxu0 %v12251_v60  ;;  %1448 = vmatpush1.bf16.msra.mxu1 %v12255_v21 }
  0xb7   :  { %947 = vmatprep.subr.bf16.mxu0 %v12257_v61  ;;  %1449 = vmatprep.subr.bf16.mxu1 %v12260_v11  ;;  %v12287_v11 = vcombine.low %v759_v37, %v760_v35 }
  0xba   :  { %948 = vmatpush1.bf16.msra.mxu0 %v12263_v15  ;;  %1450 = vmatpush1.bf16.msra.mxu1 %v12267_v53 }
  0xbb   :  { %949 = vmatprep.subr.bf16.mxu0 %v12269_v18  ;;  %1451 = vmatprep.subr.bf16.mxu1 %v12272_v54 }
  0xbe   :  { %950 = vmatpush1.bf16.msra.mxu0 %v12275_v0  ;;  %1452 = vmatpush1.bf16.msra.mxu1 %v12279_v51 }
  0xbf   :  { %951 = vmatprep.subr.bf16.mxu0 %v12281_v62  ;;  %1453 = vmatprep.subr.bf16.mxu1 %v12284_v52 }
  0xc2   :  { %952 = vmatpush1.bf16.msra.mxu0 %v12287_v11  ;;  %1454 = vmatpush1.bf16.msra.mxu1 %v12291_v3 }
  0xc3   :  { %1538 = vmatprep.subr.bf16.mxu0 %v11844_v4  ;;  %1579 = vmatprep.subr.bf16.mxu1 %v11848_v8  ;;  %v1486_v4 = vld [vmem:[%s14381_s0 + $0x8] sm:$0xf] }
  0xc4   :  { %v14825_v8 = vld [vmem:[#allocation10_spill] sm:$0xff] }
  0xc5   :  { %954 = vmatmul.mubr.bf16.vlgmr.msra.gmra.mrb[4].mxu0 %v12100_v10  ;;  %1456 = vmatmul.mubr.bf16.vlgmr.msra.gmra.mrb[4].mxu1 %v12100_v10  ;;  %v61_v10 = vld [vmem:[%s14384_s3] sm:$0xff] }
  0xc6   :  { %1539 = vmatpush1.bf16.msra.mxu0 %v11846_v6  ;;  %1580 = vmatpush1.bf16.msra.mxu1 %v11850_v9  ;;  %v14824_v6 = vld [vmem:[#allocation9_spill] sm:$0xff]  ;;  %v14826_v9 = vld [vmem:[#allocation11_spill] sm:$0xff] }
  0xc7   :  { %1570 = vmatprep.mubr.bf16.mxu0 %v14823_v7  ;;  %1611 = vmatprep.mubr.bf16.mxu1 %v14823_v7 }
  0xc8   :  { %1620 = vmatprep.subr.bf16.mxu0 %v11853_v13  ;;  %1661 = vmatprep.subr.bf16.mxu1 %v11855_v14  ;;  %v14827_v13 = vld [vmem:[#allocation12_spill] sm:$0xff]  ;;  %v14828_v14 = vld [vmem:[#allocation13_spill] sm:$0xff] }
  0xcd   :  { %10150 = vmatmul.mubr.msk.bf16.vlgmr.msra.gmra.mrb[16].mxu0 %vm156_vm0, %v1486_v4  ;;  %10151 = vmatmul.mubr.msk.bf16.vlgmr.msra.gmra.mrb[16].mxu1 %vm156_vm0, %v1486_v4 }
  0xce   :  { %1621 = vmatpush1.bf16.msra.mxu0 %v11862_v16  ;;  %1662 = vmatpush1.bf16.msra.mxu1 %v11866_v17  ;;  %v14829_v16 = vld [vmem:[#allocation14_spill] sm:$0xff]  ;;  %v14830_v17 = vld [vmem:[#allocation15_spill] sm:$0xff] }
  0xcf   :  { %1652 = vmatprep.mubr.bf16.mxu0 %v14823_v7  ;;  %1693 = vmatprep.mubr.bf16.mxu1 %v14823_v7 }
  0xd0   :  { %1894 = vmatprep.subr.bf16.mxu0 %v11888_v23  ;;  %2378 = vmatprep.subr.bf16.mxu1 %v11891_v24  ;;  %v14831_v23 = vld [vmem:[#allocation16_spill] sm:$0xff]  ;;  %v14832_v24 = vld [vmem:[#allocation17_spill] sm:$0xff] }
  0xd5   :  { %10152 = vmatmul.mubr.msk.bf16.vlgmr.msra.gmra.mrb[20].mxu0 %vm156_vm0, %v1486_v4  ;;  %10153 = vmatmul.mubr.msk.bf16.vlgmr.msra.gmra.mrb[20].mxu1 %vm156_vm0, %v1486_v4 }
  0xd6   :  { %1895 = vmatpush1.bf16.msra.mxu0 %v11903_v30  ;;  %2379 = vmatpush1.bf16.msra.mxu1 %v11905_v31  ;;  %v14833_v30 = vld [vmem:[#allocation18_spill] sm:$0xff]  ;;  %v14834_v31 = vld [vmem:[#allocation19_spill] sm:$0xff] }
  0xd7   :  { %1896 = vmatprep.subr.bf16.mxu0 %v11907_v32  ;;  %2380 = vmatprep.subr.bf16.mxu1 %v11909_v33  ;;  %v14835_v32 = vld [vmem:[#allocation20_spill] sm:$0xff]  ;;  %v14836_v33 = vld [vmem:[#allocation21_spill] sm:$0xff] }
  0xda   :  { %1897 = vmatpush1.bf16.msra.mxu0 %v11916_v39  ;;  %2381 = vmatpush1.bf16.msra.mxu1 %v11920_v40  ;;  %v14837_v39 = vld [vmem:[#allocation22_spill] sm:$0xff]  ;;  %v14838_v40 = vld [vmem:[#allocation23_spill] sm:$0xff] }
  0xdb   :  { %1898 = vmatprep.subr.bf16.mxu0 %v11922_v41  ;;  %2382 = vmatprep.subr.bf16.mxu1 %v11925_v42  ;;  %v14839_v41 = vld [vmem:[#allocation24_spill] sm:$0xff]  ;;  %v14840_v42 = vld [vmem:[#allocation25_spill] sm:$0xff] }
  0xde   :  { %1899 = vmatpush1.bf16.msra.mxu0 %v11930_v47  ;;  %2383 = vmatpush1.bf16.msra.mxu1 %v11934_v48  ;;  %v14841_v47 = vld [vmem:[#allocation26_spill] sm:$0xff]  ;;  %v14842_v48 = vld [vmem:[#allocation27_spill] sm:$0xff] }
  0xdf   :  { %1900 = vmatprep.subr.bf16.mxu0 %v11936_v49  ;;  %2384 = vmatprep.subr.bf16.mxu1 %v11939_v50  ;;  %v14843_v49 = vld [vmem:[#allocation28_spill] sm:$0xff]  ;;  %v14844_v50 = vld [vmem:[#allocation29_spill] sm:$0xff] }
  0xe2   :  { %1901 = vmatpush1.bf16.msra.mxu0 %v11942_v55  ;;  %2385 = vmatpush1.bf16.msra.mxu1 %v11946_v56  ;;  %v14845_v55 = vld [vmem:[#allocation30_spill] sm:$0xff]  ;;  %v14846_v56 = vld [vmem:[#allocation31_spill] sm:$0xff] }
  0xe3   :  { %1902 = vmatprep.subr.bf16.mxu0 %v11948_v57  ;;  %2386 = vmatprep.subr.bf16.mxu1 %v11951_v58  ;;  %v14847_v57 = vld [vmem:[#allocation32_spill] sm:$0xff]  ;;  %v14848_v58 = vld [vmem:[#allocation33_spill] sm:$0xff] }
  0xe6   :  { %1903 = vmatpush1.bf16.msra.mxu0 %v11954_v63  ;;  %2387 = vmatpush1.bf16.msra.mxu1 %v11958_v1  ;;  %v14849_v63 = vld [vmem:[#allocation34_spill] sm:$0xff]  ;;  %v14850_v1 = vld [vmem:[#allocation35_spill] sm:$0xff] }
  0xe7   :  { %1904 = vmatprep.subr.bf16.mxu0 %v11960_v2  ;;  %2388 = vmatprep.subr.bf16.mxu1 %v11963_v5  ;;  %v14851_v2 = vld [vmem:[#allocation36_spill] sm:$0xff]  ;;  %v14852_v5 = vld [vmem:[#allocation37_spill] sm:$0xff] }
  0xea   :  { %1905 = vmatpush1.bf16.msra.mxu0 %v11966_v12  ;;  %2389 = vmatpush1.bf16.msra.mxu1 %v11970_v19  ;;  %v14853_v12 = vld [vmem:[#allocation38_spill] sm:$0xff]  ;;  %v14854_v19 = vld [vmem:[#allocation39_spill] sm:$0xff] }
  0xeb   :  { %1906 = vmatprep.subr.bf16.mxu0 %v11972_v20  ;;  %2390 = vmatprep.subr.bf16.mxu1 %v11975_v25 }
  0xee   :  { %1907 = vmatpush1.bf16.msra.mxu0 %v11978_v26  ;;  %2391 = vmatpush1.bf16.msra.mxu1 %v11982_v29 }
  0xef   :  { %1908 = vmatprep.subr.bf16.mxu0 %v11984_v34  ;;  %2392 = vmatprep.subr.bf16.mxu1 %v11987_v38 }
  0xf2   :  { %1909 = vmatpush1.bf16.msra.mxu0 %v11990_v43  ;;  %2393 = vmatpush1.bf16.msra.mxu1 %v11994_v44 }
  0xf3   :  { %1910 = vmatprep.subr.bf16.mxu0 %v11996_v45  ;;  %2394 = vmatprep.subr.bf16.mxu1 %v11999_v46  ;;  %v76_v45 = vlaneseq }
  0xf5   :  { %v77_v46 = vshrl.u32 %v76_v45, 7 }
  0xf6   :  { %1911 = vmatpush1.bf16.msra.mxu0 %v12002_v59  ;;  %2395 = vmatpush1.bf16.msra.mxu1 %v14824_v6 }
  0xf7   :  { %1912 = vmatprep.subr.bf16.mxu0 %v14825_v8  ;;  %2396 = vmatprep.subr.bf16.mxu1 %v14826_v9  ;;  %v78_v59 = vsub.s32 0, %v77_v46  ;;  %v86_v22 = vsub.s32 2, %v77_v46  ;;  %v82_v36 = vsub.s32 1, %v77_v46  ;;  %v90_v27 = vsub.s32 3, %v77_v46 }
  0xf9   :  { %v12386_v28 = vrot.slane %v61_v10, %v78_v59  ;;  %v12388_v35 = vrot.slane %v61_v10, %v86_v22  ;;  %v12390_v37 = vrot.slane %v61_v10, %v82_v36  ;;  %v12392_v4 = vrot.slane %v61_v10, %v90_v27  ;;  %v64_v59 = vld [vmem:[%s14388_s7] sm:$0xff]  ;;  %v65_v22 = vld [vmem:[%s14388_s7 + $0x8] sm:$0xff] }
  0xfa   :  { %1913 = vmatpush1.bf16.msra.mxu0 %v14827_v13  ;;  %2397 = vmatpush1.bf16.msra.mxu1 %v14828_v14 }
  0xfb   :  { %1914 = vmatprep.subr.bf16.mxu0 %v14829_v16  ;;  %2398 = vmatprep.subr.bf16.mxu1 %v14830_v17  ;;  %14855 = vst [vmem:[#allocation9_spill] sm:$0xff] %v12386_v28 }
  0xfe   :  { %1915 = vmatpush1.bf16.msra.mxu0 %v14831_v23  ;;  %2399 = vmatpush1.bf16.msra.mxu1 %v14832_v24 }
  0xff   :  { %1916 = vmatprep.subr.bf16.mxu0 %v14833_v30  ;;  %2400 = vmatprep.subr.bf16.mxu1 %v14834_v31  ;;  %v94_v31 = vsub.s32 4, %v77_v46 }
 0x102   :  { %1917 = vmatpush1.bf16.msra.mxu0 %v14835_v32  ;;  %2401 = vmatpush1.bf16.msra.mxu1 %v14836_v33  ;;  %v102_v33 = vsub.s32 6, %v77_v46 }
 0x103   :  { %1918 = vmatprep.subr.bf16.mxu0 %v14837_v39  ;;  %2402 = vmatprep.subr.bf16.mxu1 %v14838_v40  ;;  %v98_v39 = vsub.s32 5, %v77_v46 }
 0x106   :  { %1919 = vmatpush1.bf16.msra.mxu0 %v14839_v41  ;;  %2403 = vmatpush1.bf16.msra.mxu1 %v14840_v42  ;;  %v106_v42 = vsub.s32 7, %v77_v46 }
 0x107   :  { %1920 = vmatprep.subr.bf16.mxu0 %v14841_v47  ;;  %2404 = vmatprep.subr.bf16.mxu1 %v14842_v48 }
 0x10a   :  { %1921 = vmatpush1.bf16.msra.mxu0 %v14843_v49  ;;  %2405 = vmatpush1.bf16.msra.mxu1 %v14844_v50  ;;  %v12398_v49 = vrot.slane %v61_v10, %v94_v31 }
 0x10b   :  { %1922 = vmatprep.subr.bf16.mxu0 %v14845_v55  ;;  %2406 = vmatprep.subr.bf16.mxu1 %v14846_v56  ;;  %v12400_v55 = vrot.slane %v61_v10, %v102_v33  ;;  %v12402_v56 = vrot.slane %v61_v10, %v98_v39 }
 0x10d   :  { %14856 = vst [vmem:[#allocation10_spill] sm:$0xff] %v12402_v56 }
 0x10e   :  { %1923 = vmatpush1.bf16.msra.mxu0 %v14847_v57  ;;  %2407 = vmatpush1.bf16.msra.mxu1 %v14848_v58  ;;  %v12404_v57 = vrot.slane %v61_v10, %v106_v42 }
 0x10f   :  { %1924 = vmatprep.subr.bf16.mxu0 %v14849_v63  ;;  %2408 = vmatprep.subr.bf16.mxu1 %v14850_v1 }
 0x112   :  { %1925 = vmatpush1.bf16.msra.mxu0 %v14851_v2  ;;  %2409 = vmatpush1.bf16.msra.mxu1 %v14852_v5 }
 0x113   :  { %2129 = vmatprep.subr.bf16.mxu0 %v14853_v12  ;;  %2631 = vmatprep.subr.bf16.mxu1 %v14854_v19 }
 0x158   :  { %v720_v20 = vpop.f32.mrb[0].mxu0  ;;  %v1204_v25 = vpop.f32.mrb[0].mxu1 }
 0x159   :  { %v722_v26 = vpop.f32.mrb[1].mxu0  ;;  %v1206_v29 = vpop.f32.mrb[1].mxu1  ;;  %v11225_v6 = vadd.f32 %v720_v20, %v12386_v28  ;;  %v11227_v8 = vadd.f32 %v1204_v25, %v12388_v35 }
 0x15a   :  { %v724_v34 = vpop.f32.mrb[2].mxu0  ;;  %v1208_v38 = vpop.f32.mrb[2].mxu1  ;;  %v11226_v9 = vadd.f32 %v722_v26, %v12390_v37  ;;  %v11228_v13 = vadd.f32 %v1206_v29, %v12392_v4 }
 0x15b   :  { %v725_v43 = vpop.f32.mrb[3].mxu0  ;;  %v1209_v44 = vpop.f32.mrb[3].mxu1  ;;  %v10072_v14 = vmul.f32 -1.442695, %v11225_v6  ;;  %v10106_v16 = vmul.f32 -1.442695, %v11227_v8 }
 0x15c   :  { %v10073_v17 = vmul.f32 -1.442695, %v11226_v9  ;;  %v10107_v23 = vmul.f32 -1.442695, %v11228_v13 }
 0x15d   :  { %11438 = vpow2.f32 %v10072_v14 }
 0x15e   :  { %11440 = vpow2.f32 %v10106_v16 }
 0x15f   :  { %11442 = vpow2.f32 %v10073_v17 }
 0x160   :  { %11444 = vpow2.f32 %v10107_v23 }
 0x167   :  { %v11439_v24 = vpop.eup %11438 }
 0x168   :  { %v11441_v30 = vpop.eup %11440  ;;  %v970_v41 = vadd.f32 1.0, %v11439_v24 }
 0x169   :  { %v11443_v32 = vpop.eup %11442  ;;  %v1219_v47 = vadd.f32 1.0, %v11441_v30 }
 0x16a   :  { %v11445_v40 = vpop.eup %11444  ;;  %v971_v48 = vadd.f32 1.0, %v11443_v32  ;;  %11446 = vrcp.f32 %v970_v41 }
 0x16b   :  { %v1220_v50 = vadd.f32 1.0, %v11445_v40  ;;  %11448 = vrcp.f32 %v1219_v47 }
 0x16c   :  { %11450 = vrcp.f32 %v971_v48  ;;  %v14857_v48 = vld [vmem:[#allocation40_spill] sm:$0xff] }
 0x16d   :  { %11452 = vrcp.f32 %v1220_v50  ;;  %v14858_v50 = vld [vmem:[#allocation41_spill] sm:$0xff] }
 0x174   :  { %v11447_v44 = vpop.eup %11446 }
 0x175   :  { %v11449_v45 = vpop.eup %11448 }
 0x176   :  { %v11451_v46 = vpop.eup %11450  ;;  %v1225_v6 = vmul.f32 %v11449_v45, %v64_v59  ;;  %v14874_v45 = vld [vmem:[#allocation57_spill] sm:$0xff]  ;;  %v14876_v59 = vld [vmem:[#allocation59_spill] sm:$0xff] }
 0x177   :  { %v11453_v10 = vpop.eup %11452 }
 0x178   :  { %v1226_v9 = vmul.f32 %v11453_v10, %v65_v22  ;;  %v14877_v10 = vld [vmem:[#allocation60_spill] sm:$0xff]  ;;  %v14878_v22 = vld [vmem:[#allocation61_spill] sm:$0xff] }
 0x198   :  { %v955_v58 = vpop.f32.mrb[4].mxu0  ;;  %v1457_v1 = vpop.f32.mrb[4].mxu1 }
 0x199   :  { %v11229_v63 = vadd.f32 %v955_v58, %v12398_v49  ;;  %v957_v2 = vpop.f32.mrb[5].mxu0  ;;  %v11231_v5 = vadd.f32 %v1457_v1, %v12400_v55  ;;  %v1459_v19 = vpop.f32.mrb[5].mxu1  ;;  %v14859_v58 = vld [vmem:[#allocation42_spill] sm:$0xff]  ;;  %v14861_v1 = vld [vmem:[#allocation44_spill] sm:$0xff] }
 0x19a   :  { %v11230_v12 = vadd.f32 %v957_v2, %v12402_v56  ;;  %v959_v20 = vpop.f32.mrb[6].mxu0  ;;  %v11232_v25 = vadd.f32 %v1459_v19, %v12404_v57  ;;  %v1461_v26 = vpop.f32.mrb[6].mxu1  ;;  %v14862_v2 = vld [vmem:[#allocation45_spill] sm:$0xff]  ;;  %v14865_v19 = vld [vmem:[#allocation48_spill] sm:$0xff] }
 0x19b   :  { %11454 = vtanh.f32 %v11229_v63  ;;  %v960_v29 = vpop.f32.mrb[7].mxu0  ;;  %v10140_v34 = vmul.f32 -1.442695, %v11231_v5  ;;  %v1462_v38 = vpop.f32.mrb[7].mxu1  ;;  %v14860_v63 = vld [vmem:[#allocation43_spill] sm:$0xff]  ;;  %v14863_v5 = vld [vmem:[#allocation46_spill] sm:$0xff] }
 0x19c   :  { %11456 = vtanh.f32 %v11230_v12  ;;  %v10141_v43 = vmul.f32 -1.442695, %v11232_v25  ;;  %v14864_v12 = vld [vmem:[#allocation47_spill] sm:$0xff]  ;;  %v14866_v20 = vld [vmem:[#allocation49_spill] sm:$0xff]  ;;  %v14867_v25 = vld [vmem:[#allocation50_spill] sm:$0xff] }
 0x19d   :  { %11458 = vpow2.f32 %v10140_v34  ;;  %v14868_v26 = vld [vmem:[#allocation51_spill] sm:$0xff]  ;;  %v14869_v29 = vld [vmem:[#allocation52_spill] sm:$0xff]  ;;  %v14870_v34 = vld [vmem:[#allocation53_spill] sm:$0xff] }
 0x19e   :  { %11460 = vpow2.f32 %v10141_v43  ;;  %v14871_v38 = vld [vmem:[#allocation54_spill] sm:$0xff]  ;;  %v14872_v43 = vld [vmem:[#allocation55_spill] sm:$0xff] }
 0x1a5   :  { %v11455_v36 = vpop.eup %11454 }
 0x1a6   :  { %v11457_v27 = vpop.eup %11456  ;;  %v1227_v8 = vmul.f32 %v11455_v36, %v11447_v44  ;;  %v14873_v44 = vld [vmem:[#allocation56_spill] sm:$0xff]  ;;  %v14879_v36 = vld [vmem:[#allocation62_spill] sm:$0xff] }
 0x1a7   :  { %v1228_v13 = vmul.f32 %v11457_v27, %v11451_v46  ;;  %v11459_v14 = vpop.eup %11458  ;;  %v14875_v46 = vld [vmem:[#allocation58_spill] sm:$0xff]  ;;  %v14880_v27 = vld [vmem:[#allocation63_spill] sm:$0xff] }
 0x1a8   :  { %v12416_v16 = vadd.f32 %v1227_v8, %v1225_v6  ;;  %v11461_v17 = vpop.eup %11460  ;;  %v1472_v23 = vadd.f32 1.0, %v11459_v14  ;;  %v14881_v6 = vld [vmem:[#allocation64_spill] sm:$0xff]  ;;  %v14882_v8 = vld [vmem:[#allocation65_spill] sm:$0xff] }
 0x1a9   :  { %v12418_v24 = vadd.f32 %v1228_v13, %v1226_v9  ;;  %v1473_v30 = vadd.f32 1.0, %v11461_v17  ;;  %v14883_v9 = vld [vmem:[#allocation66_spill] sm:$0xff]  ;;  %v14884_v13 = vld [vmem:[#allocation67_spill] sm:$0xff]  ;;  %v14885_v14 = vld [vmem:[#allocation68_spill] sm:$0xff] }
 0x1aa   :  { %11462 = vtanh.f32 %v12416_v16  ;;  %v14886_v17 = vld [vmem:[#allocation69_spill] sm:$0xff] }
 0x1ab   :  { %11464 = vrcp.f32 %v1472_v23  ;;  %v14887_v23 = vld [vmem:[#allocation70_spill] sm:$0xff] }
 0x1ac   :  { %11466 = vtanh.f32 %v12418_v24 }
 0x1ad   :  { %11468 = vrcp.f32 %v1473_v30  ;;  %v14888_v30 = vld [vmem:[#allocation71_spill] sm:$0xff] }
 0x1b4   :  { %v11463_v31 = vpop.eup %11462 }
 0x1b5   :  { %v11465_v32 = vpop.eup %11464 }
 0x1b6   :  { %v11467_v33 = vpop.eup %11466  ;;  %v1480_v39 = vmul.f32 %v11465_v32, %v11463_v31  ;;  %v14889_v31 = vld [vmem:[#allocation72_spill] sm:$0xff]  ;;  %v14890_v32 = vld [vmem:[#allocation73_spill] sm:$0xff] }
 0x1b7   :  { %v11469_v40 = vpop.eup %11468 }
 0x1b8   :  { %v1481_v41 = vmul.f32 %v11469_v40, %v11467_v33  ;;  %v12422_v42 = vpack.c.bf16 %v1480_v39, %v1480_v39  ;;  %v14891_v33 = vld [vmem:[#allocation74_spill] sm:$0xff]  ;;  %v14892_v39 = vld [vmem:[#allocation75_spill] sm:$0xff]  ;;  %v14893_v40 = vld [vmem:[#allocation76_spill] sm:$0xff] }
 0x1ba   :  { %v1483_v47 = vpack.c.bf16 %v1481_v41, %v1481_v41  ;;  %1484 = vst [vmem:[#allocation2] sm:$0xf] %v12422_v42  ;;  %v14894_v41 = vld [vmem:[#allocation77_spill] sm:$0xff] }
 0x1bc   :  { %1485 = vst [vmem:[#allocation2 + $0x8] sm:$0xf] %v1483_v47  ;;  %1926 = vmatprep.mubr.bf16.mxu0 %v1483_v47  ;;  %2410 = vmatprep.mubr.bf16.mxu1 %v1483_v47 }
 0x1bd   :  { %1927 = vmatmul.mubr.bf16.vlgmr.msra.gmra.mrb[8].mxu0 %v12422_v42  ;;  %2411 = vmatmul.mubr.bf16.vlgmr.msra.gmra.mrb[8].mxu1 %v12422_v42 }
 0x1be   :  { %2130 = vmatpush1.bf16.msra.mxu0 %v14857_v48  ;;  %2632 = vmatpush1.bf16.msra.mxu1 %v14858_v50  ;;  %v14896_v48 = vld [vmem:[#allocation79_spill] sm:$0xff]  ;;  %v14897_v50 = vld [vmem:[#allocation80_spill] sm:$0xff] }
 0x1bf   :  { %2161 = vmatprep.mubr.bf16.mxu0 %v1483_v47  ;;  %2663 = vmatprep.mubr.bf16.mxu1 %v1483_v47  ;;  %v14895_v47 = vld [vmem:[#allocation78_spill] sm:$0xff] }
 0x1c0   :  { %2131 = vmatprep.subr.bf16.mxu0 %v14859_v58  ;;  %2633 = vmatprep.subr.bf16.mxu1 %v14860_v63  ;;  %v14898_v58 = vld [vmem:[#allocation81_spill] sm:$0xff]  ;;  %v14899_v63 = vld [vmem:[#allocation82_spill] sm:$0xff] }
 0x1c2   :  { %2132 = vmatpush1.bf16.msra.mxu0 %v14861_v1  ;;  %2634 = vmatpush1.bf16.msra.mxu1 %v14862_v2  ;;  %v14900_v1 = vld [vmem:[#allocation83_spill] sm:$0xff]  ;;  %v14901_v2 = vld [vmem:[#allocation84_spill] sm:$0xff] }
 0x1c3   :  { %2133 = vmatprep.subr.bf16.mxu0 %v14863_v5  ;;  %2635 = vmatprep.subr.bf16.mxu1 %v14864_v12  ;;  %v14902_v5 = vld [vmem:[#allocation85_spill] sm:$0xff]  ;;  %v14903_v12 = vld [vmem:[#allocation86_spill] sm:$0xff] }
 0x1c6   :  { %2134 = vmatpush1.bf16.msra.mxu0 %v14865_v19  ;;  %2636 = vmatpush1.bf16.msra.mxu1 %v14866_v20  ;;  %v14904_v19 = vld [vmem:[#allocation87_spill] sm:$0xff]  ;;  %v14905_v20 = vld [vmem:[#allocation88_spill] sm:$0xff] }
 0x1c7   :  { %2135 = vmatprep.subr.bf16.mxu0 %v14867_v25  ;;  %2637 = vmatprep.subr.bf16.mxu1 %v14868_v26 }
 0x1ca   :  { %2136 = vmatpush1.bf16.msra.mxu0 %v14869_v29  ;;  %2638 = vmatpush1.bf16.msra.mxu1 %v14870_v34  ;;  %v2916_v34 = vld [vmem:[#allocation5] sm:$0xff] }
 0x1cb   :  { %2137 = vmatprep.subr.bf16.mxu0 %v14871_v38  ;;  %2639 = vmatprep.subr.bf16.mxu1 %v14872_v43  ;;  %v2917_v38 = vld [vmem:[#allocation5 + $0x20] sm:$0xff]  ;;  %v3400_v43 = vld [vmem:[#allocation5 + $0x8] sm:$0xff] }
 0x1ce   :  { %2138 = vmatpush1.bf16.msra.mxu0 %v14873_v44  ;;  %2640 = vmatpush1.bf16.msra.mxu1 %v14874_v45  ;;  %v12524_v44 = vcombine.low %v2916_v34, %v2917_v38  ;;  %v12526_v45 = vcombine.high %v2916_v34, %v2917_v38  ;;  %v2928_v38 = vld [vmem:[#allocation5 + $0x180] sm:$0xff] }
 0x1cf   :  { %2139 = vmatprep.subr.bf16.mxu0 %v14875_v46  ;;  %2641 = vmatprep.subr.bf16.mxu1 %v14876_v59  ;;  %v3401_v46 = vld [vmem:[#allocation5 + $0x28] sm:$0xff]  ;;  %v2918_v59 = vld [vmem:[#allocation5 + $0x40] sm:$0xff] }
 0x1d2   :  { %2140 = vmatpush1.bf16.msra.mxu0 %v14877_v10  ;;  %2642 = vmatpush1.bf16.msra.mxu1 %v14878_v22  ;;  %v2919_v10 = vld [vmem:[#allocation5 + $0x60] sm:$0xff]  ;;  %v12528_v22 = vcombine.low %v3400_v43, %v3401_v46 }
 0x1d3   :  { %2141 = vmatprep.subr.bf16.mxu0 %v14879_v36  ;;  %2643 = vmatprep.subr.bf16.mxu1 %v14880_v27  ;;  %v12530_v36 = vcombine.high %v3400_v43, %v3401_v46  ;;  %v12532_v27 = vcombine.high %v2918_v59, %v2919_v10  ;;  %v2929_v43 = vld [vmem:[#allocation5 + $0x1a0] sm:$0xff]  ;;  %v3412_v46 = vld [vmem:[#allocation5 + $0x188] sm:$0xff] }
 0x1d6   :  { %2142 = vmatpush1.bf16.msra.mxu0 %v14881_v6  ;;  %2644 = vmatpush1.bf16.msra.mxu1 %v14882_v8  ;;  %v3402_v6 = vld [vmem:[#allocation5 + $0x48] sm:$0xff] }
 0x1d7   :  { %2143 = vmatprep.subr.bf16.mxu0 %v14883_v9  ;;  %2645 = vmatprep.subr.bf16.mxu1 %v14884_v13  ;;  %v3403_v8 = vld [vmem:[#allocation5 + $0x68] sm:$0xff]  ;;  %v2920_v13 = vld [vmem:[#allocation5 + $0x80] sm:$0xff] }
 0x1d8   :  { %v12535_v9 = vcombine.high %v3402_v6, %v3403_v8 }
 0x1da   :  { %2144 = vmatpush1.bf16.msra.mxu0 %v14885_v14  ;;  %2646 = vmatpush1.bf16.msra.mxu1 %v14886_v17  ;;  %v2921_v14 = vld [vmem:[#allocation5 + $0xa0] sm:$0xff]  ;;  %v3404_v17 = vld [vmem:[#allocation5 + $0x88] sm:$0xff] }
 0x1db   :  { %2145 = vmatprep.subr.bf16.mxu0 %v14887_v23  ;;  %2647 = vmatprep.subr.bf16.mxu1 %v14888_v30  ;;  %v3405_v23 = vld [vmem:[#allocation5 + $0xa8] sm:$0xff]  ;;  %v12541_v30 = vcombine.low %v2918_v59, %v2919_v10 }
 0x1dc   :  { %v3413_v59 = vld [vmem:[#allocation5 + $0x1a8] sm:$0xff] }
 0x1de   :  { %2146 = vmatpush1.bf16.msra.mxu0 %v14889_v31  ;;  %2648 = vmatpush1.bf16.msra.mxu1 %v14890_v32  ;;  %v12545_v31 = vcombine.low %v3402_v6, %v3403_v8  ;;  %v12547_v32 = vcombine.high %v2920_v13, %v2921_v14  ;;  %v12595_v8 = vcombine.high %v2928_v38, %v2929_v43 }
 0x1df   :  { %2147 = vmatprep.subr.bf16.mxu0 %v14891_v33  ;;  %2649 = vmatprep.subr.bf16.mxu1 %v14892_v39  ;;  %v12550_v33 = vcombine.high %v3404_v17, %v3405_v23  ;;  %v2922_v39 = vld [vmem:[#allocation5 + $0xc0] sm:$0xff] }
 0x1e2   :  { %2148 = vmatpush1.bf16.msra.mxu0 %v14893_v40  ;;  %2650 = vmatpush1.bf16.msra.mxu1 %v14894_v41  ;;  %v2923_v40 = vld [vmem:[#allocation5 + $0xe0] sm:$0xff]  ;;  %v3406_v41 = vld [vmem:[#allocation5 + $0xc8] sm:$0xff] }
 0x1e3   :  { %2149 = vmatprep.subr.bf16.mxu0 %v14895_v47  ;;  %2651 = vmatprep.subr.bf16.mxu1 %v14896_v48  ;;  %v3407_v47 = vld [vmem:[#allocation5 + $0xe8] sm:$0xff]  ;;  %v12553_v48 = vcombine.low %v2920_v13, %v2921_v14  ;;  %v12598_v13 = vcombine.high %v3412_v46, %v3413_v59  ;;  %v2930_v14 = vld [vmem:[#allocation5 + $0x1c0] sm:$0xff] }
 0x1e6   :  { %2150 = vmatpush1.bf16.msra.mxu0 %v14897_v50  ;;  %2652 = vmatpush1.bf16.msra.mxu1 %v14898_v58  ;;  %v12557_v50 = vcombine.low %v3404_v17, %v3405_v23  ;;  %v12559_v58 = vcombine.high %v2922_v39, %v2923_v40  ;;  %v2931_v17 = vld [vmem:[#allocation5 + $0x1e0] sm:$0xff]  ;;  %v3414_v23 = vld [vmem:[#allocation5 + $0x1c8] sm:$0xff] }
 0x1e7   :  { %2151 = vmatprep.subr.bf16.mxu0 %v14899_v63  ;;  %2653 = vmatprep.subr.bf16.mxu1 %v14900_v1  ;;  %v12562_v63 = vcombine.high %v3406_v41, %v3407_v47  ;;  %v2924_v1 = vld [vmem:[#allocation5 + $0x100] sm:$0xff] }
 0x1ea   :  { %2152 = vmatpush1.bf16.msra.mxu0 %v14901_v2  ;;  %2654 = vmatpush1.bf16.msra.mxu1 %v14902_v5  ;;  %v2925_v2 = vld [vmem:[#allocation5 + $0x120] sm:$0xff]  ;;  %v3408_v5 = vld [vmem:[#allocation5 + $0x108] sm:$0xff] }
 0x1eb   :  { %2153 = vmatprep.subr.bf16.mxu0 %v14903_v12  ;;  %2655 = vmatprep.subr.bf16.mxu1 %v14904_v19  ;;  %v3409_v12 = vld [vmem:[#allocation5 + $0x128] sm:$0xff]  ;;  %v12565_v19 = vcombine.low %v2922_v39, %v2923_v40  ;;  %v12601_v40 = vcombine.low %v2928_v38, %v2929_v43 }
 0x1ec   :  { %v3415_v39 = vld [vmem:[#allocation5 + $0x1e8] sm:$0xff] }
 0x1ed   :  { %14906 = vst [vmem:[#allocation11_spill] sm:$0xff] %v12601_v40 }
 0x1ee   :  { %2154 = vmatpush1.bf16.msra.mxu0 %v12251_v60  ;;  %2656 = vmatpush1.bf16.msra.mxu1 %v12255_v21  ;;  %v2701_v60 = vld [vmem:[#allocation3] sm:$0xff] }
 0x1ef   :  { %2155 = vmatprep.subr.bf16.mxu0 %v12257_v61  ;;  %2657 = vmatprep.subr.bf16.mxu1 %v14905_v20  ;;  %v2705_v21 = vld [vmem:[#allocation3 + $0x20] sm:$0xff]  ;;  %v2702_v61 = vld [vmem:[#allocation3 + $0x8] sm:$0xff]  ;;  %v12569_v20 = vcombine.low %v3406_v41, %v3407_v47  ;;  %v12605_v41 = vcombine.low %v3412_v46, %v3413_v59  ;;  %v12607_v47 = vcombine.high %v2930_v14, %v2931_v17 }
 0x1f0   :  { %v2934_v59 = vld [vmem:[#allocation5 + $0x240] sm:$0xff] }
 0x1f1   :  { %14907 = vst [vmem:[#allocation12_spill] sm:$0xff] %v12605_v41  ;;  %14908 = vst [vmem:[#allocation13_spill] sm:$0xff] %v12607_v47 }
 0x1f2   :  { %2156 = vmatpush1.bf16.msra.mxu0 %v12263_v15  ;;  %2658 = vmatpush1.bf16.msra.mxu1 %v12267_v53  ;;  %v12493_v15 = vcombine.high %v2701_v60, %v2705_v21  ;;  %v2706_v53 = vld [vmem:[#allocation3 + $0x28] sm:$0xff] }
 0x1f3   :  { %2157 = vmatprep.subr.bf16.mxu0 %v12269_v18  ;;  %2659 = vmatprep.subr.bf16.mxu1 %v12272_v54  ;;  %v12495_v18 = vcombine.low %v2701_v60, %v2705_v21  ;;  %v12497_v54 = vcombine.low %v2702_v61, %v2706_v53  ;;  %v12571_v60 = vcombine.high %v2924_v1, %v2925_v2 }
 0x1f4   :  { %v12574_v21 = vcombine.high %v3408_v5, %v3409_v12 }
 0x1f6   :  { %2158 = vmatpush1.bf16.msra.mxu0 %v12275_v0  ;;  %2660 = vmatpush1.bf16.msra.mxu1 %v12279_v51  ;;  %v2700_v0 = vld [vmem:[%s14381_s0 + $0xc] sm:$0xf]  ;;  %v2703_v51 = vld [vmem:[#allocation3 + $0x10] sm:$0xff] }
 0x1f7   :  { %2159 = vmatprep.subr.bf16.mxu0 %v12281_v62  ;;  %2661 = vmatprep.subr.bf16.mxu1 %v12284_v52  ;;  %v2707_v62 = vld [vmem:[#allocation3 + $0x30] sm:$0xff]  ;;  %v2704_v52 = vld [vmem:[#allocation3 + $0x18] sm:$0xff] }
 0x1f8   :  { %v12513_v25 = vcombine.low %v2703_v51, %v2707_v62 }
 0x1fa   :  { %2160 = vmatpush1.bf16.msra.mxu0 %v12287_v11  ;;  %2662 = vmatpush1.bf16.msra.mxu1 %v12291_v3  ;;  %v12499_v11 = vcombine.high %v2702_v61, %v2706_v53  ;;  %v12510_v3 = vcombine.high %v2703_v51, %v2707_v62  ;;  %v2926_v61 = vld [vmem:[#allocation5 + $0x140] sm:$0xff]  ;;  %v3411_v51 = vld [vmem:[#allocation5 + $0x168] sm:$0xff]  ;;  %v12577_v62 = vcombine.low %v2924_v1, %v2925_v2 }
 0x1fb   :  { %2752 = vmatprep.subr.bf16.mxu0 %v12493_v15  ;;  %v2927_v53 = vld [vmem:[#allocation5 + $0x160] sm:$0xff]  ;;  %v12610_v1 = vcombine.high %v3414_v23, %v3415_v39  ;;  %v12613_v2 = vcombine.low %v2930_v14, %v2931_v17  ;;  %v3418_v17 = vld [vmem:[#allocation5 + $0x248] sm:$0xff] }
 0x1fc   :  { %2793 = vmatprep.subr.bf16.mxu1 %v12499_v11  ;;  %v12589_v10 = vcombine.low %v2926_v61, %v2927_v53  ;;  %v2935_v14 = vld [vmem:[#allocation5 + $0x260] sm:$0xff] }
 0x1fd   :  { %2162 = vmatmul.mubr.bf16.vlgmr.msra.gmra.mrb[12].mxu0 %v12422_v42  ;;  %2664 = vmatmul.mubr.bf16.vlgmr.msra.gmra.mrb[12].mxu1 %v12422_v42  ;;  %v2708_v42 = vld [vmem:[#allocation3 + $0x38] sm:$0xff]  ;;  %14909 = vst [vmem:[#allocation14_spill] sm:$0xff] %v12610_v1  ;;  %14910 = vst [vmem:[#allocation15_spill] sm:$0xff] %v12613_v2 }
 0x1fe   :  { %2784 = vmatprep.mubr.bf16.mxu0 %v14823_v7  ;;  %2825 = vmatprep.mubr.bf16.mxu1 %v14823_v7  ;;  %v12515_v26 = vcombine.low %v2704_v52, %v2708_v42  ;;  %v12517_v29 = vcombine.high %v2704_v52, %v2708_v42  ;;  %v12581_v52 = vcombine.low %v3408_v5, %v3409_v12  ;;  %v2932_v12 = vld [vmem:[#allocation5 + $0x200] sm:$0xff] }
 0x1ff   :  { %2753 = vmatpush1.bf16.msra.mxu0 %v12495_v18  ;;  %2794 = vmatpush1.bf16.msra.mxu1 %v12497_v54  ;;  %v12583_v42 = vcombine.high %v2926_v61, %v2927_v53  ;;  %v12617_v5 = vcombine.low %v3414_v23, %v3415_v39  ;;  %v2933_v61 = vld [vmem:[#allocation5 + $0x220] sm:$0xff]  ;;  %v3416_v53 = vld [vmem:[#allocation5 + $0x208] sm:$0xff]  ;;  %v12634_v23 = vcombine.high %v2934_v59, %v2935_v14 }
 0x200   :  { %2834 = vmatprep.subr.bf16.mxu0 %v12510_v3  ;;  %2875 = vmatprep.subr.bf16.mxu1 %v12517_v29  ;;  %v12624_v38 = vcombine.low %v2932_v12, %v2933_v61  ;;  %v3419_v39 = vld [vmem:[#allocation5 + $0x268] sm:$0xff] }
 0x201   :  { %14911 = vst [vmem:[#allocation16_spill] sm:$0xff] %v12617_v5  ;;  %14916 = vst [vmem:[#allocation21_spill] sm:$0xff] %v12634_v23 }
 0x202   :  { %14913 = vst [vmem:[#allocation18_spill] sm:$0xff] %v12624_v38 }
 0x205   :  { %10296 = vmatmul.mubr.msk.bf16.vlgmr.msra.gmra.mrb[24].mxu0 %vm156_vm0, %v2700_v0  ;;  %10297 = vmatmul.mubr.msk.bf16.vlgmr.msra.gmra.mrb[24].mxu1 %vm156_vm0, %v2700_v0 }
 0x206   :  { %2866 = vmatprep.mubr.bf16.mxu0 %v14823_v7  ;;  %2907 = vmatprep.mubr.bf16.mxu1 %v14823_v7 }
 0x207   :  { %2835 = vmatpush1.bf16.msra.mxu0 %v12513_v25  ;;  %2876 = vmatpush1.bf16.msra.mxu1 %v12515_v26 }
 0x208   :  { %3108 = vmatprep.subr.bf16.mxu0 %v12526_v45  ;;  %3592 = vmatprep.subr.bf16.mxu1 %v12530_v36 }
 0x20d   :  { %10298 = vmatmul.mubr.msk.bf16.vlgmr.msra.gmra.mrb[28].mxu0 %vm156_vm0, %v2700_v0  ;;  %10299 = vmatmul.mubr.msk.bf16.vlgmr.msra.gmra.mrb[28].mxu1 %vm156_vm0, %v2700_v0  ;;  %v3410_v0 = vld [vmem:[#allocation5 + $0x148] sm:$0xff] }
 0x20e   :  { %3109 = vmatpush1.bf16.msra.mxu0 %v12524_v44  ;;  %3593 = vmatpush1.bf16.msra.mxu1 %v12528_v22  ;;  %v12586_v34 = vcombine.high %v3410_v0, %v3411_v51  ;;  %v12593_v6 = vcombine.low %v3410_v0, %v3411_v51  ;;  %v12622_v0 = vcombine.high %v2932_v12, %v2933_v61  ;;  %v3417_v51 = vld [vmem:[#allocation5 + $0x228] sm:$0xff] }
 0x20f   :  { %3110 = vmatprep.subr.bf16.mxu0 %v12532_v27  ;;  %3594 = vmatprep.subr.bf16.mxu1 %v12535_v9  ;;  %v12626_v43 = vcombine.low %v3416_v53, %v3417_v51  ;;  %v12628_v46 = vcombine.high %v3416_v53, %v3417_v51  ;;  %v12636_v12 = vcombine.low %v2934_v59, %v2935_v14  ;;  %v2936_v51 = vld [vmem:[#allocation5 + $0x280] sm:$0xff] }
 0x210   :  { %14912 = vst [vmem:[#allocation17_spill] sm:$0xff] %v12622_v0  ;;  %v12638_v61 = vcombine.low %v3418_v17, %v3419_v39  ;;  %v12640_v53 = vcombine.high %v3418_v17, %v3419_v39  ;;  %v2938_v39 = vld [vmem:[#allocation5 + $0x2c0] sm:$0xff] }
 0x211   :  { %14914 = vst [vmem:[#allocation19_spill] sm:$0xff] %v12626_v43  ;;  %14915 = vst [vmem:[#allocation20_spill] sm:$0xff] %v12628_v46 }
 0x212   :  { %3111 = vmatpush1.bf16.msra.mxu0 %v12541_v30  ;;  %3595 = vmatpush1.bf16.msra.mxu1 %v12545_v31  ;;  %14917 = vst [vmem:[#allocation22_spill] sm:$0xff] %v12636_v12  ;;  %14918 = vst [vmem:[#allocation23_spill] sm:$0xff] %v12638_v61 }
 0x213   :  { %3112 = vmatprep.subr.bf16.mxu0 %v12547_v32  ;;  %3596 = vmatprep.subr.bf16.mxu1 %v12550_v33  ;;  %14919 = vst [vmem:[#allocation24_spill] sm:$0xff] %v12640_v53 }
 0x216   :  { %3113 = vmatpush1.bf16.msra.mxu0 %v12553_v48  ;;  %3597 = vmatpush1.bf16.msra.mxu1 %v12557_v50 }
 0x217   :  { %3114 = vmatprep.subr.bf16.mxu0 %v12559_v58  ;;  %3598 = vmatprep.subr.bf16.mxu1 %v12562_v63 }
 0x21a   :  { %3115 = vmatpush1.bf16.msra.mxu0 %v12565_v19  ;;  %3599 = vmatpush1.bf16.msra.mxu1 %v12569_v20 }
 0x21b   :  { %3116 = vmatprep.subr.bf16.mxu0 %v12571_v60  ;;  %3600 = vmatprep.subr.bf16.mxu1 %v12574_v21 }
 0x21e   :  { %3117 = vmatpush1.bf16.msra.mxu0 %v12577_v62  ;;  %3601 = vmatpush1.bf16.msra.mxu1 %v12581_v52 }
 0x21f   :  { %3118 = vmatprep.subr.bf16.mxu0 %v12583_v42  ;;  %3602 = vmatprep.subr.bf16.mxu1 %v12586_v34 }
 0x222   :  { %3119 = vmatpush1.bf16.msra.mxu0 %v12589_v10  ;;  %3603 = vmatpush1.bf16.msra.mxu1 %v12593_v6 }
 0x223   :  { %3120 = vmatprep.subr.bf16.mxu0 %v12595_v8  ;;  %3604 = vmatprep.subr.bf16.mxu1 %v12598_v13 }
 0x226   :  { %3121 = vmatpush1.bf16.msra.mxu0 %v12601_v40  ;;  %3605 = vmatpush1.bf16.msra.mxu1 %v12605_v41 }
 0x227   :  { %3122 = vmatprep.subr.bf16.mxu0 %v12607_v47  ;;  %3606 = vmatprep.subr.bf16.mxu1 %v12610_v1  ;;  %v3430_v47 = vld [vmem:[#allocation5 + $0x3c8] sm:$0xff] }
 0x22a   :  { %3123 = vmatpush1.bf16.msra.mxu0 %v12613_v2  ;;  %3607 = vmatpush1.bf16.msra.mxu1 %v12617_v5  ;;  %v2945_v5 = vld [vmem:[#allocation5 + $0x3a0] sm:$0xff] }
 0x22b   :  { %3124 = vmatprep.subr.bf16.mxu0 %v12622_v0  ;;  %3608 = vmatprep.subr.bf16.mxu1 %v12628_v46  ;;  %v3420_v46 = vld [vmem:[#allocation5 + $0x288] sm:$0xff]  ;;  %v2946_v2 = vld [vmem:[#allocation5 + $0x3c0] sm:$0xff] }
 0x22c   :  { %v3421_v0 = vld [vmem:[#allocation5 + $0x2a8] sm:$0xff] }
 0x22d   :  { %v12650_v14 = vcombine.low %v3420_v46, %v3421_v0  ;;  %v12652_v17 = vcombine.high %v3420_v46, %v3421_v0  ;;  %v2940_v46 = vld [vmem:[#allocation5 + $0x300] sm:$0xff] }
 0x22e   :  { %3125 = vmatpush1.bf16.msra.mxu0 %v12624_v38  ;;  %3609 = vmatpush1.bf16.msra.mxu1 %v12626_v43  ;;  %v2937_v38 = vld [vmem:[#allocation5 + $0x2a0] sm:$0xff] }
 0x22f   :  { %3126 = vmatprep.subr.bf16.mxu0 %v12634_v23  ;;  %3610 = vmatprep.subr.bf16.mxu1 %v12640_v53  ;;  %v12646_v43 = vcombine.high %v2936_v51, %v2937_v38  ;;  %v12648_v59 = vcombine.low %v2936_v51, %v2937_v38  ;;  %14922 = vst [vmem:[#allocation27_spill] sm:$0xff] %v12650_v14  ;;  %14923 = vst [vmem:[#allocation28_spill] sm:$0xff] %v12652_v17  ;;  %v3422_v53 = vld [vmem:[#allocation5 + $0x2c8] sm:$0xff] }
 0x230   :  { %v3423_v23 = vld [vmem:[#allocation5 + $0x2e8] sm:$0xff] }
 0x231   :  { %14920 = vst [vmem:[#allocation25_spill] sm:$0xff] %v12646_v43  ;;  %14921 = vst [vmem:[#allocation26_spill] sm:$0xff] %v12648_v59  ;;  %v12662_v51 = vcombine.low %v3422_v53, %v3423_v23  ;;  %v12664_v0 = vcombine.high %v3422_v53, %v3423_v23  ;;  %v2942_v53 = vld [vmem:[#allocation5 + $0x340] sm:$0xff] }
 0x232   :  { %3127 = vmatpush1.bf16.msra.mxu0 %v12636_v12  ;;  %3611 = vmatpush1.bf16.msra.mxu1 %v12638_v61  ;;  %v2939_v12 = vld [vmem:[#allocation5 + $0x2e0] sm:$0xff] }
 0x233   :  { %3128 = vmatprep.subr.bf16.mxu0 %v12646_v43  ;;  %3612 = vmatprep.subr.bf16.mxu1 %v12652_v17  ;;  %v12658_v61 = vcombine.high %v2938_v39, %v2939_v12  ;;  %v12660_v38 = vcombine.low %v2938_v39, %v2939_v12  ;;  %14926 = vst [vmem:[#allocation31_spill] sm:$0xff] %v12662_v51  ;;  %14927 = vst [vmem:[#allocation32_spill] sm:$0xff] %v12664_v0  ;;  %v3424_v17 = vld [vmem:[#allocation5 + $0x308] sm:$0xff] }
 0x234   :  { %v3425_v43 = vld [vmem:[#allocation5 + $0x328] sm:$0xff] }
 0x235   :  { %14924 = vst [vmem:[#allocation29_spill] sm:$0xff] %v12658_v61  ;;  %14925 = vst [vmem:[#allocation30_spill] sm:$0xff] %v12660_v38  ;;  %v12674_v39 = vcombine.low %v3424_v17, %v3425_v43  ;;  %v12676_v23 = vcombine.high %v3424_v17, %v3425_v43 }
 0x236   :  { %3129 = vmatpush1.bf16.msra.mxu0 %v12648_v59  ;;  %3613 = vmatpush1.bf16.msra.mxu1 %v12650_v14  ;;  %v2941_v59 = vld [vmem:[#allocation5 + $0x320] sm:$0xff] }
 0x237   :  { %3130 = vmatprep.subr.bf16.mxu0 %v12658_v61  ;;  %3614 = vmatprep.subr.bf16.mxu1 %v12664_v0  ;;  %v12670_v14 = vcombine.high %v2940_v46, %v2941_v59  ;;  %v12672_v12 = vcombine.low %v2940_v46, %v2941_v59  ;;  %14930 = vst [vmem:[#allocation35_spill] sm:$0xff] %v12674_v39  ;;  %14931 = vst [vmem:[#allocation36_spill] sm:$0xff] %v12676_v23  ;;  %v3426_v0 = vld [vmem:[#allocation5 + $0x348] sm:$0xff]  ;;  %v2944_v46 = vld [vmem:[#allocation5 + $0x380] sm:$0xff] }
 0x238   :  { %v3427_v59 = vld [vmem:[#allocation5 + $0x368] sm:$0xff] }
 0x239   :  { %14928 = vst [vmem:[#allocation33_spill] sm:$0xff] %v12670_v14  ;;  %14929 = vst [vmem:[#allocation34_spill] sm:$0xff] %v12672_v12  ;;  %v12686_v43 = vcombine.low %v3426_v0, %v3427_v59  ;;  %v12688_v17 = vcombine.high %v3426_v0, %v3427_v59 }
 0x23a   :  { %3131 = vmatpush1.bf16.msra.mxu0 %v12660_v38  ;;  %3615 = vmatpush1.bf16.msra.mxu1 %v12662_v51  ;;  %v2943_v38 = vld [vmem:[#allocation5 + $0x360] sm:$0xff] }
 0x23b   :  { %3132 = vmatprep.subr.bf16.mxu0 %v12670_v14  ;;  %3616 = vmatprep.subr.bf16.mxu1 %v12676_v23  ;;  %v12682_v51 = vcombine.low %v2942_v53, %v2943_v38  ;;  %v12684_v61 = vcombine.high %v2942_v53, %v2943_v38  ;;  %14934 = vst [vmem:[#allocation39_spill] sm:$0xff] %v12686_v43  ;;  %14935 = vst [vmem:[#allocation40_spill] sm:$0xff] %v12688_v17  ;;  %v3428_v23 = vld [vmem:[#allocation5 + $0x388] sm:$0xff] }
 0x23c   :  { %v12690_v14 = vcombine.high %v2944_v46, %v2945_v5  ;;  %v3431_v38 = vld [vmem:[#allocation5 + $0x3e8] sm:$0xff]  ;;  %v12697_v53 = vcombine.low %v2944_v46, %v2945_v5  ;;  %v3653_v46 = vld [vmem:[#allocation5 + $0x18] sm:$0xff] }
 0x23d   :  { %14932 = vst [vmem:[#allocation37_spill] sm:$0xff] %v12682_v51  ;;  %14933 = vst [vmem:[#allocation38_spill] sm:$0xff] %v12684_v61  ;;  %v12713_v5 = vcombine.low %v3430_v47, %v3431_v38 }
 0x23e   :  { %3133 = vmatpush1.bf16.msra.mxu0 %v12672_v12  ;;  %3617 = vmatpush1.bf16.msra.mxu1 %v12674_v39  ;;  %14936 = vst [vmem:[#allocation41_spill] sm:$0xff] %v12690_v14  ;;  %v3429_v12 = vld [vmem:[#allocation5 + $0x3a8] sm:$0xff]  ;;  %v2947_v39 = vld [vmem:[#allocation5 + $0x3e0] sm:$0xff]  ;;  %14938 = vst [vmem:[#allocation43_spill] sm:$0xff] %v12697_v53 }
 0x23f   :  { %3134 = vmatprep.subr.bf16.mxu0 %v12684_v61  ;;  %v12693_v1 = vcombine.high %v3428_v23, %v3429_v12  ;;  %3618 = vmatprep.subr.bf16.mxu1 %v12688_v17  ;;  %v12701_v0 = vcombine.low %v3428_v23, %v3429_v12  ;;  %v12703_v59 = vcombine.high %v2946_v2, %v2947_v39  ;;  %v3151_v12 = vld [vmem:[#allocation5 + $0x10] sm:$0xff] }
 0x240   :  { %v12706_v61 = vcombine.high %v3430_v47, %v3431_v38  ;;  %v12709_v41 = vcombine.low %v2946_v2, %v2947_v39  ;;  %14943 = vst [vmem:[#allocation48_spill] sm:$0xff] %v12713_v5  ;;  %v3152_v23 = vld [vmem:[#allocation5 + $0x30] sm:$0xff] }
 0x241   :  { %14937 = vst [vmem:[#allocation42_spill] sm:$0xff] %v12693_v1  ;;  %14939 = vst [vmem:[#allocation44_spill] sm:$0xff] %v12701_v0  ;;  %v12720_v2 = vcombine.low %v3151_v12, %v3152_v23 }
 0x242   :  { %3135 = vmatpush1.bf16.msra.mxu0 %v12682_v51  ;;  %3619 = vmatpush1.bf16.msra.mxu1 %v12686_v43  ;;  %14940 = vst [vmem:[#allocation45_spill] sm:$0xff] %v12703_v59  ;;  %14941 = vst [vmem:[#allocation46_spill] sm:$0xff] %v12706_v61 }
 0x243   :  { %3136 = vmatprep.subr.bf16.mxu0 %v12690_v14  ;;  %3620 = vmatprep.subr.bf16.mxu1 %v12693_v1  ;;  %14942 = vst [vmem:[#allocation47_spill] sm:$0xff] %v12709_v41  ;;  %v12718_v1 = vcombine.high %v3151_v12, %v3152_v23  ;;  %14945 = vst [vmem:[#allocation50_spill] sm:$0xff] %v12720_v2 }
 0x245   :  { %14944 = vst [vmem:[#allocation49_spill] sm:$0xff] %v12718_v1 }
 0x246   :  { %3137 = vmatpush1.bf16.msra.mxu0 %v12697_v53  ;;  %3621 = vmatpush1.bf16.msra.mxu1 %v12701_v0  ;;  %v3654_v53 = vld [vmem:[#allocation5 + $0x38] sm:$0xff] }
 0x247   :  { %3138 = vmatprep.subr.bf16.mxu0 %v12703_v59  ;;  %3622 = vmatprep.subr.bf16.mxu1 %v12706_v61  ;;  %v12722_v39 = vcombine.low %v3653_v46, %v3654_v53  ;;  %v12724_v0 = vcombine.high %v3653_v46, %v3654_v53 }
 0x249   :  { %14946 = vst [vmem:[#allocation51_spill] sm:$0xff] %v12722_v39  ;;  %14947 = vst [vmem:[#allocation52_spill] sm:$0xff] %v12724_v0 }
 0x24a   :  { %3139 = vmatpush1.bf16.msra.mxu0 %v12709_v41  ;;  %3623 = vmatpush1.bf16.msra.mxu1 %v12713_v5 }
 0x24b   :  { %3343 = vmatprep.subr.bf16.mxu0 %v12718_v1  ;;  %3845 = vmatprep.subr.bf16.mxu1 %v12724_v0 }
 0x290   :  { %v1928_v47 = vpop.f32.mrb[8].mxu0  ;;  %v2412_v38 = vpop.f32.mrb[8].mxu1 }
 0x291   :  { %v1930_v41 = vpop.f32.mrb[9].mxu0  ;;  %v2414_v61 = vpop.f32.mrb[9].mxu1  ;;  %v11233_v51 = vadd.f32 %v1928_v47, %v12386_v28  ;;  %v11235_v12 = vadd.f32 %v2412_v38, %v12388_v35 }
 0x292   :  { %v1932_v59 = vpop.f32.mrb[10].mxu0  ;;  %v2416_v14 = vpop.f32.mrb[10].mxu1  ;;  %v11234_v23 = vadd.f32 %v1930_v41, %v12390_v37  ;;  %v11236_v53 = vadd.f32 %v2414_v61, %v12392_v4 }
 0x293   :  { %v1933_v5 = vpop.f32.mrb[11].mxu0  ;;  %v2417_v43 = vpop.f32.mrb[11].mxu1  ;;  %v10218_v46 = vmul.f32 -1.442695, %v11233_v51  ;;  %v10252_v1 = vmul.f32 -1.442695, %v11235_v12 }
 0x294   :  { %v10219_v17 = vmul.f32 -1.442695, %v11234_v23  ;;  %v10253_v0 = vmul.f32 -1.442695, %v11236_v53 }
 0x295   :  { %11470 = vpow2.f32 %v10218_v46 }
 0x296   :  { %11472 = vpow2.f32 %v10252_v1 }
 0x297   :  { %11474 = vpow2.f32 %v10219_v17 }
 0x298   :  { %11476 = vpow2.f32 %v10253_v0 }
 0x29f   :  { %v11471_v59 = vpop.eup %11470 }
 0x2a0   :  { %v11473_v14 = vpop.eup %11472  ;;  %v2178_v40 = vadd.f32 1.0, %v11471_v59 }
 0x2a1   :  { %v11475_v5 = vpop.eup %11474  ;;  %v2427_v47 = vadd.f32 1.0, %v11473_v14 }
 0x2a2   :  { %v11477_v43 = vpop.eup %11476  ;;  %v2179_v28 = vadd.f32 1.0, %v11475_v5  ;;  %11478 = vrcp.f32 %v2178_v40 }
 0x2a3   :  { %v2428_v38 = vadd.f32 1.0, %v11477_v43  ;;  %11480 = vrcp.f32 %v2427_v47 }
 0x2a4   :  { %11482 = vrcp.f32 %v2179_v28 }
 0x2a5   :  { %11484 = vrcp.f32 %v2428_v38 }
 0x2ac   :  { %v11479_v28 = vpop.eup %11478 }
 0x2ad   :  { %v11481_v43 = vpop.eup %11480 }
 0x2ae   :  { %v11483_v47 = vpop.eup %11482 }
 0x2d0   :  { %v2163_v41 = vpop.f32.mrb[12].mxu0  ;;  %v2665_v61 = vpop.f32.mrb[12].mxu1 }
 0x2d1   :  { %v11237_v51 = vadd.f32 %v2163_v41, %v12398_v49  ;;  %v11239_v12 = vadd.f32 %v2665_v61, %v12400_v55  ;;  %v2165_v1 = vpop.f32.mrb[13].mxu0  ;;  %v2667_v17 = vpop.f32.mrb[13].mxu1 }
 0x2d2   :  { %v11238_v0 = vadd.f32 %v2165_v1, %v12402_v56  ;;  %v11240_v23 = vadd.f32 %v2667_v17, %v12404_v57  ;;  %v2167_v53 = vpop.f32.mrb[14].mxu0  ;;  %v2669_v46 = vpop.f32.mrb[14].mxu1  ;;  %v2433_v1 = vmul.f32 %v11481_v43, %v12416_v16 }
 0x2d3   :  { %11486 = vtanh.f32 %v11237_v51  ;;  %v10286_v59 = vmul.f32 -1.442695, %v11239_v12  ;;  %v2168_v40 = vpop.f32.mrb[15].mxu0  ;;  %v2670_v14 = vpop.f32.mrb[15].mxu1 }
 0x2d4   :  { %11488 = vtanh.f32 %v11238_v0  ;;  %v10287_v5 = vmul.f32 -1.442695, %v11240_v23  ;;  %v11485_v41 = vpop.eup %11484 }
 0x2d5   :  { %11490 = vpow2.f32 %v10286_v59  ;;  %v2434_v53 = vmul.f32 %v11485_v41, %v12418_v24  ;;  %v3655_v41 = vld [vmem:[#allocation5 + $0x58] sm:$0xff] }
 0x2d6   :  { %11492 = vpow2.f32 %v10287_v5 }
 0x2dd   :  { %v11487_v61 = vpop.eup %11486 }
 0x2de   :  { %v11489_v38 = vpop.eup %11488  ;;  %v2435_v56 = vmul.f32 %v11487_v61, %v11479_v28  ;;  %v3656_v61 = vld [vmem:[#allocation5 + $0x78] sm:$0xff] }
 0x2df   :  { %v11491_v17 = vpop.eup %11490  ;;  %v2436_v51 = vmul.f32 %v11489_v38, %v11483_v47  ;;  %v3154_v47 = vld [vmem:[#allocation5 + $0x70] sm:$0xff] }
 0x2e0   :  { %v11493_v12 = vpop.eup %11492  ;;  %v12738_v46 = vadd.f32 %v2435_v56, %v2433_v1  ;;  %v2680_v0 = vadd.f32 1.0, %v11491_v17  ;;  %v3153_v56 = vld [vmem:[#allocation5 + $0x50] sm:$0xff] }
 0x2e1   :  { %v12740_v23 = vadd.f32 %v2436_v51, %v2434_v53  ;;  %v2681_v59 = vadd.f32 1.0, %v11493_v12  ;;  %v3155_v17 = vld [vmem:[#allocation5 + $0x90] sm:$0xff]  ;;  %v12747_v51 = vcombine.high %v3153_v56, %v3154_v47  ;;  %v12749_v12 = vcombine.high %v3655_v41, %v3656_v61 }
 0x2e2   :  { %11494 = vtanh.f32 %v12738_v46 }
 0x2e3   :  { %11496 = vrcp.f32 %v2680_v0  ;;  %14948 = vst [vmem:[#allocation53_spill] sm:$0xff] %v12747_v51  ;;  %14949 = vst [vmem:[#allocation54_spill] sm:$0xff] %v12749_v12  ;;  %v3156_v0 = vld [vmem:[#allocation5 + $0xb0] sm:$0xff] }
 0x2e4   :  { %11498 = vtanh.f32 %v12740_v23 }
 0x2e5   :  { %11500 = vrcp.f32 %v2681_v59  ;;  %v3657_v59 = vld [vmem:[#allocation5 + $0x98] sm:$0xff] }
 0x2ec   :  { %v11495_v40 = vpop.eup %11494 }
 0x2ed   :  { %v11497_v16 = vpop.eup %11496 }
 0x2ee   :  { %v11499_v14 = vpop.eup %11498  ;;  %v2688_v5 = vmul.f32 %v11497_v16, %v11495_v40  ;;  %v3658_v40 = vld [vmem:[#allocation5 + $0xb8] sm:$0xff]  ;;  %v12755_v16 = vcombine.low %v3153_v56, %v3154_v47  ;;  %v12767_v56 = vcombine.low %v3155_v17, %v3156_v0 }
 0x2ef   :  { %v11501_v28 = vpop.eup %11500  ;;  %v12769_v47 = vcombine.low %v3657_v59, %v3658_v40 }
 0x2f0   :  { %v2689_v24 = vmul.f32 %v11501_v28, %v11499_v14  ;;  %v12744_v43 = vpack.c.bf16 %v2688_v5, %v2688_v5  ;;  %14950 = vst [vmem:[#allocation55_spill] sm:$0xff] %v12755_v16  ;;  %v12757_v14 = vcombine.low %v3655_v41, %v3656_v61  ;;  %v12759_v5 = vcombine.high %v3155_v17, %v3156_v0 }
 0x2f1   :  { %v12761_v28 = vcombine.high %v3657_v59, %v3658_v40  ;;  %14954 = vst [vmem:[#allocation59_spill] sm:$0xff] %v12767_v56  ;;  %14955 = vst [vmem:[#allocation60_spill] sm:$0xff] %v12769_v47 }
 0x2f2   :  { %v2691_v38 = vpack.c.bf16 %v2689_v24, %v2689_v24  ;;  %v2694_v1 = vrot.slane %v12744_v43, 4  ;;  %14951 = vst [vmem:[#allocation56_spill] sm:$0xff] %v12757_v14  ;;  %14952 = vst [vmem:[#allocation57_spill] sm:$0xff] %v12759_v5  ;;  %v3157_v24 = vld [vmem:[#allocation5 + $0xd0] sm:$0xff] }
 0x2f3   :  { %14953 = vst [vmem:[#allocation58_spill] sm:$0xff] %v12761_v28 }
 0x2f4   :  { %v2695_v53 = vrot.slane %v2691_v38, 4  ;;  %3140 = vmatprep.mubr.bf16.mxu0 %v2691_v38  ;;  %3624 = vmatprep.mubr.bf16.mxu1 %v2691_v38  ;;  %2698 = vst [vmem:[#allocation2] sm:$0xf0] %v2694_v1  ;;  %v3158_v1 = vld [vmem:[#allocation5 + $0xf0] sm:$0xff] }
 0x2f5   :  { %3141 = vmatmul.mubr.bf16.vlgmr.msra.gmra.mrb[16].mxu0 %v12744_v43  ;;  %3625 = vmatmul.mubr.bf16.vlgmr.msra.gmra.mrb[16].mxu1 %v12744_v43  ;;  %v12773_v41 = vcombine.high %v3157_v24, %v3158_v1  ;;  %v12779_v17 = vcombine.low %v3157_v24, %v3158_v1 }
 0x2f6   :  { %2699 = vst [vmem:[#allocation2 + $0x8] sm:$0xf0] %v2695_v53  ;;  %3344 = vmatpush1.bf16.msra.mxu0 %v12720_v2  ;;  %3846 = vmatpush1.bf16.msra.mxu1 %v12722_v39  ;;  %v3659_v53 = vld [vmem:[#allocation5 + $0xd8] sm:$0xff] }
 0x2f7   :  { %3375 = vmatprep.mubr.bf16.mxu0 %v2691_v38  ;;  %3877 = vmatprep.mubr.bf16.mxu1 %v2691_v38  ;;  %v3660_v2 = vld [vmem:[#allocation5 + $0xf8] sm:$0xff]  ;;  %14956 = vst [vmem:[#allocation61_spill] sm:$0xff] %v12773_v41  ;;  %v3159_v38 = vld [vmem:[#allocation5 + $0x110] sm:$0xff]  ;;  %14958 = vst [vmem:[#allocation63_spill] sm:$0xff] %v12779_v17 }
 0x2f8   :  { %3345 = vmatprep.subr.bf16.mxu0 %v12747_v51  ;;  %3847 = vmatprep.subr.bf16.mxu1 %v12749_v12  ;;  %v12775_v61 = vcombine.high %v3659_v53, %v3660_v2  ;;  %v3160_v12 = vld [vmem:[#allocation5 + $0x130] sm:$0xff]  ;;  %v3661_v51 = vld [vmem:[#allocation5 + $0x118] sm:$0xff]  ;;  %v12781_v0 = vcombine.low %v3659_v53, %v3660_v2 }
 0x2f9   :  { %v3662_v39 = vld [vmem:[#allocation5 + $0x138] sm:$0xff]  ;;  %v12785_v59 = vcombine.high %v3159_v38, %v3160_v12  ;;  %v12791_v24 = vcombine.low %v3159_v38, %v3160_v12 }
 0x2fa   :  { %3346 = vmatpush1.bf16.msra.mxu0 %v12755_v16  ;;  %3848 = vmatpush1.bf16.msra.mxu1 %v12757_v14  ;;  %14957 = vst [vmem:[#allocation62_spill] sm:$0xff] %v12775_v61  ;;  %14959 = vst [vmem:[#allocation64_spill] sm:$0xff] %v12781_v0  ;;  %v12787_v40 = vcombine.high %v3661_v51, %v3662_v39  ;;  %v3663_v14 = vld [vmem:[#allocation5 + $0x158] sm:$0xff]  ;;  %v12793_v2 = vcombine.low %v3661_v51, %v3662_v39 }
 0x2fb   :  { %3347 = vmatprep.subr.bf16.mxu0 %v12759_v5  ;;  %3849 = vmatprep.subr.bf16.mxu1 %v12761_v28  ;;  %14960 = vst [vmem:[#allocation65_spill] sm:$0xff] %v12785_v59  ;;  %v3161_v28 = vld [vmem:[#allocation5 + $0x150] sm:$0xff]  ;;  %v3664_v16 = vld [vmem:[#allocation5 + $0x178] sm:$0xff]  ;;  %14962 = vst [vmem:[#allocation67_spill] sm:$0xff] %v12791_v24 }
 0x2fc   :  { %14961 = vst [vmem:[#allocation66_spill] sm:$0xff] %v12787_v40  ;;  %v3162_v5 = vld [vmem:[#allocation5 + $0x170] sm:$0xff]  ;;  %14963 = vst [vmem:[#allocation68_spill] sm:$0xff] %v12793_v2  ;;  %v12799_v53 = vcombine.high %v3663_v14, %v3664_v16  ;;  %v12805_v39 = vcombine.low %v3663_v14, %v3664_v16 }
 0x2fd   :  { %v12797_v1 = vcombine.high %v3161_v28, %v3162_v5  ;;  %v12803_v12 = vcombine.low %v3161_v28, %v3162_v5 }
 0x2fe   :  { %3348 = vmatpush1.bf16.msra.mxu0 %v12767_v56  ;;  %3850 = vmatpush1.bf16.msra.mxu1 %v12769_v47  ;;  %14965 = vst [vmem:[#allocation70_spill] sm:$0xff] %v12799_v53  ;;  %v3665_v47 = vld [vmem:[#allocation5 + $0x198] sm:$0xff]  ;;  %14967 = vst [vmem:[#allocation72_spill] sm:$0xff] %v12805_v39 }
 0x2ff   :  { %3349 = vmatprep.subr.bf16.mxu0 %v12773_v41  ;;  %3851 = vmatprep.subr.bf16.mxu1 %v12775_v61  ;;  %14964 = vst [vmem:[#allocation69_spill] sm:$0xff] %v12797_v1  ;;  %v3163_v61 = vld [vmem:[#allocation5 + $0x190] sm:$0xff]  ;;  %v3666_v56 = vld [vmem:[#allocation5 + $0x1b8] sm:$0xff]  ;;  %14966 = vst [vmem:[#allocation71_spill] sm:$0xff] %v12803_v12 }
 0x300   :  { %v3164_v41 = vld [vmem:[#allocation5 + $0x1b0] sm:$0xff]  ;;  %v12811_v38 = vcombine.high %v3665_v47, %v3666_v56  ;;  %v12817_v16 = vcombine.low %v3665_v47, %v3666_v56 }
 0x301   :  { %v12809_v51 = vcombine.high %v3163_v61, %v3164_v41  ;;  %v12815_v5 = vcombine.low %v3163_v61, %v3164_v41 }
 0x302   :  { %3350 = vmatpush1.bf16.msra.mxu0 %v12779_v17  ;;  %3852 = vmatpush1.bf16.msra.mxu1 %v12781_v0  ;;  %14969 = vst [vmem:[#allocation74_spill] sm:$0xff] %v12811_v38  ;;  %v3667_v0 = vld [vmem:[#allocation5 + $0x1d8] sm:$0xff]  ;;  %14971 = vst [vmem:[#allocation76_spill] sm:$0xff] %v12817_v16 }
 0x303   :  { %3351 = vmatprep.subr.bf16.mxu0 %v12785_v59  ;;  %3853 = vmatprep.subr.bf16.mxu1 %v12787_v40  ;;  %14968 = vst [vmem:[#allocation73_spill] sm:$0xff] %v12809_v51  ;;  %v3165_v40 = vld [vmem:[#allocation5 + $0x1d0] sm:$0xff]  ;;  %v3668_v17 = vld [vmem:[#allocation5 + $0x1f8] sm:$0xff]  ;;  %14970 = vst [vmem:[#allocation75_spill] sm:$0xff] %v12815_v5 }
 0x304   :  { %v3166_v59 = vld [vmem:[#allocation5 + $0x1f0] sm:$0xff]  ;;  %v12823_v28 = vcombine.high %v3667_v0, %v3668_v17  ;;  %v12829_v56 = vcombine.low %v3667_v0, %v3668_v17 }
 0x305   :  { %v12821_v14 = vcombine.high %v3165_v40, %v3166_v59  ;;  %v12827_v41 = vcombine.low %v3165_v40, %v3166_v59 }
 0x306   :  { %3352 = vmatpush1.bf16.msra.mxu0 %v12791_v24  ;;  %3854 = vmatpush1.bf16.msra.mxu1 %v12793_v2  ;;  %14973 = vst [vmem:[#allocation78_spill] sm:$0xff] %v12823_v28  ;;  %v3669_v2 = vld [vmem:[#allocation5 + $0x218] sm:$0xff]  ;;  %14975 = vst [vmem:[#allocation80_spill] sm:$0xff] %v12829_v56 }
 0x307   :  { %3353 = vmatprep.subr.bf16.mxu0 %v12797_v1  ;;  %3855 = vmatprep.subr.bf16.mxu1 %v12799_v53  ;;  %14972 = vst [vmem:[#allocation77_spill] sm:$0xff] %v12821_v14  ;;  %v3167_v53 = vld [vmem:[#allocation5 + $0x210] sm:$0xff]  ;;  %v3670_v24 = vld [vmem:[#allocation5 + $0x238] sm:$0xff]  ;;  %14974 = vst [vmem:[#allocation79_spill] sm:$0xff] %v12827_v41 }
 0x308   :  { %v3168_v1 = vld [vmem:[#allocation5 + $0x230] sm:$0xff]  ;;  %v12835_v61 = vcombine.high %v3669_v2, %v3670_v24  ;;  %v12841_v17 = vcombine.low %v3669_v2, %v3670_v24 }
 0x309   :  { %v12833_v47 = vcombine.high %v3167_v53, %v3168_v1  ;;  %v12839_v59 = vcombine.low %v3167_v53, %v3168_v1 }
 0x30a   :  { %3354 = vmatpush1.bf16.msra.mxu0 %v12803_v12  ;;  %3856 = vmatpush1.bf16.msra.mxu1 %v12805_v39  ;;  %14977 = vst [vmem:[#allocation82_spill] sm:$0xff] %v12835_v61  ;;  %v3671_v39 = vld [vmem:[#allocation5 + $0x258] sm:$0xff]  ;;  %14979 = vst [vmem:[#allocation84_spill] sm:$0xff] %v12841_v17 }
 0x30b   :  { %3355 = vmatprep.subr.bf16.mxu0 %v12809_v51  ;;  %3857 = vmatprep.subr.bf16.mxu1 %v12811_v38  ;;  %14976 = vst [vmem:[#allocation81_spill] sm:$0xff] %v12833_v47  ;;  %v3169_v38 = vld [vmem:[#allocation5 + $0x250] sm:$0xff]  ;;  %v3672_v12 = vld [vmem:[#allocation5 + $0x278] sm:$0xff]  ;;  %14978 = vst [vmem:[#allocation83_spill] sm:$0xff] %v12839_v59 }
 0x30c   :  { %v3170_v51 = vld [vmem:[#allocation5 + $0x270] sm:$0xff]  ;;  %v12847_v40 = vcombine.high %v3671_v39, %v3672_v12  ;;  %v12853_v24 = vcombine.low %v3671_v39, %v3672_v12 }
 0x30d   :  { %v12845_v0 = vcombine.high %v3169_v38, %v3170_v51  ;;  %v12851_v1 = vcombine.low %v3169_v38, %v3170_v51 }
 0x30e   :  { %3356 = vmatpush1.bf16.msra.mxu0 %v12815_v5  ;;  %3858 = vmatpush1.bf16.msra.mxu1 %v12817_v16  ;;  %14981 = vst [vmem:[#allocation86_spill] sm:$0xff] %v12847_v40  ;;  %v3673_v16 = vld [vmem:[#allocation5 + $0x298] sm:$0xff]  ;;  %14983 = vst [vmem:[#allocation88_spill] sm:$0xff] %v12853_v24 }
 0x30f   :  { %3357 = vmatprep.subr.bf16.mxu0 %v12821_v14  ;;  %3859 = vmatprep.subr.bf16.mxu1 %v12823_v28  ;;  %14980 = vst [vmem:[#allocation85_spill] sm:$0xff] %v12845_v0  ;;  %v3171_v28 = vld [vmem:[#allocation5 + $0x290] sm:$0xff]  ;;  %v3674_v5 = vld [vmem:[#allocation5 + $0x2b8] sm:$0xff]  ;;  %14982 = vst [vmem:[#allocation87_spill] sm:$0xff] %v12851_v1 }
 0x310   :  { %v3172_v14 = vld [vmem:[#allocation5 + $0x2b0] sm:$0xff]  ;;  %v12859_v53 = vcombine.high %v3673_v16, %v3674_v5  ;;  %v12865_v12 = vcombine.low %v3673_v16, %v3674_v5 }
 0x311   :  { %v12857_v2 = vcombine.high %v3171_v28, %v3172_v14  ;;  %v12863_v51 = vcombine.low %v3171_v28, %v3172_v14 }
 0x312   :  { %3358 = vmatpush1.bf16.msra.mxu0 %v12827_v41  ;;  %3860 = vmatpush1.bf16.msra.mxu1 %v12829_v56  ;;  %14985 = vst [vmem:[#allocation90_spill] sm:$0xff] %v12859_v53  ;;  %v3675_v56 = vld [vmem:[#allocation5 + $0x2d8] sm:$0xff]  ;;  %14987 = vst [vmem:[#allocation92_spill] sm:$0xff] %v12865_v12 }
 0x313   :  { %3359 = vmatprep.subr.bf16.mxu0 %v12833_v47  ;;  %3861 = vmatprep.subr.bf16.mxu1 %v12835_v61  ;;  %14984 = vst [vmem:[#allocation89_spill] sm:$0xff] %v12857_v2  ;;  %v3173_v61 = vld [vmem:[#allocation5 + $0x2d0] sm:$0xff]  ;;  %v3676_v41 = vld [vmem:[#allocation5 + $0x2f8] sm:$0xff]  ;;  %14986 = vst [vmem:[#allocation91_spill] sm:$0xff] %v12863_v51 }
 0x314   :  { %v3174_v47 = vld [vmem:[#allocation5 + $0x2f0] sm:$0xff]  ;;  %v12871_v38 = vcombine.high %v3675_v56, %v3676_v41  ;;  %v12877_v5 = vcombine.low %v3675_v56, %v3676_v41 }
 0x315   :  { %v12869_v39 = vcombine.high %v3173_v61, %v3174_v47  ;;  %v12875_v14 = vcombine.low %v3173_v61, %v3174_v47 }
 0x316   :  { %3360 = vmatpush1.bf16.msra.mxu0 %v12839_v59  ;;  %3862 = vmatpush1.bf16.msra.mxu1 %v12841_v17  ;;  %14989 = vst [vmem:[#allocation94_spill] sm:$0xff] %v12871_v38  ;;  %v3677_v17 = vld [vmem:[#allocation5 + $0x318] sm:$0xff]  ;;  %14991 = vst [vmem:[#allocation96_spill] sm:$0xff] %v12877_v5 }
 0x317   :  { %3361 = vmatprep.subr.bf16.mxu0 %v12845_v0  ;;  %3863 = vmatprep.subr.bf16.mxu1 %v12847_v40  ;;  %14988 = vst [vmem:[#allocation93_spill] sm:$0xff] %v12869_v39  ;;  %v3175_v40 = vld [vmem:[#allocation5 + $0x310] sm:$0xff]  ;;  %v3678_v59 = vld [vmem:[#allocation5 + $0x338] sm:$0xff]  ;;  %14990 = vst [vmem:[#allocation95_spill] sm:$0xff] %v12875_v14 }
 0x318   :  { %v3176_v0 = vld [vmem:[#allocation5 + $0x330] sm:$0xff]  ;;  %v12883_v28 = vcombine.high %v3677_v17, %v3678_v59  ;;  %v12889_v41 = vcombine.low %v3677_v17, %v3678_v59 }
 0x319   :  { %v12881_v16 = vcombine.high %v3175_v40, %v3176_v0  ;;  %v12887_v47 = vcombine.low %v3175_v40, %v3176_v0 }
 0x31a   :  { %3362 = vmatpush1.bf16.msra.mxu0 %v12851_v1  ;;  %3864 = vmatpush1.bf16.msra.mxu1 %v12853_v24  ;;  %14993 = vst [vmem:[#allocation98_spill] sm:$0xff] %v12883_v28  ;;  %v3679_v24 = vld [vmem:[#allocation5 + $0x358] sm:$0xff] }
 0x31b   :  { %3363 = vmatprep.subr.bf16.mxu0 %v12857_v2  ;;  %3865 = vmatprep.subr.bf16.mxu1 %v12859_v53  ;;  %14992 = vst [vmem:[#allocation97_spill] sm:$0xff] %v12881_v16  ;;  %v3177_v53 = vld [vmem:[#allocation5 + $0x350] sm:$0xff]  ;;  %v3680_v1 = vld [vmem:[#allocation5 + $0x378] sm:$0xff] }
 0x31c   :  { %v3178_v2 = vld [vmem:[#allocation5 + $0x370] sm:$0xff]  ;;  %v12895_v61 = vcombine.high %v3679_v24, %v3680_v1  ;;  %v12901_v59 = vcombine.low %v3679_v24, %v3680_v1 }
 0x31d   :  { %v12893_v56 = vcombine.high %v3177_v53, %v3178_v2  ;;  %v12899_v0 = vcombine.low %v3177_v53, %v3178_v2 }
 0x31e   :  { %3364 = vmatpush1.bf16.msra.mxu0 %v12863_v51  ;;  %3866 = vmatpush1.bf16.msra.mxu1 %v12865_v12  ;;  %14994 = vst [vmem:[#allocation99_spill] sm:$0xff] %v12895_v61  ;;  %v3681_v12 = vld [vmem:[#allocation5 + $0x398] sm:$0xff] }
 0x31f   :  { %3365 = vmatprep.subr.bf16.mxu0 %v12869_v39  ;;  %3867 = vmatprep.subr.bf16.mxu1 %v12871_v38  ;;  %v3179_v38 = vld [vmem:[#allocation5 + $0x390] sm:$0xff]  ;;  %v3682_v51 = vld [vmem:[#allocation5 + $0x3b8] sm:$0xff]  ;;  %14995 = vst [vmem:[#allocation100_spill] sm:$0xff] %v12899_v0 }
 0x320   :  { %v3180_v39 = vld [vmem:[#allocation5 + $0x3b0] sm:$0xff]  ;;  %v12907_v40 = vcombine.high %v3681_v12, %v3682_v51  ;;  %v12913_v1 = vcombine.low %v3681_v12, %v3682_v51  ;;  %v15030_v51 = vld [vmem:[#allocation45_spill] sm:$0xff]  ;;  %v15031_v12 = vld [vmem:[#allocation46_spill] sm:$0xff] }
 0x321   :  { %v12905_v17 = vcombine.high %v3179_v38, %v3180_v39  ;;  %v12911_v2 = vcombine.low %v3179_v38, %v3180_v39  ;;  %v15032_v39 = vld [vmem:[#allocation47_spill] sm:$0xff]  ;;  %v15033_v38 = vld [vmem:[#allocation48_spill] sm:$0xff] }
 0x322   :  { %3366 = vmatpush1.bf16.msra.mxu0 %v12875_v14  ;;  %3868 = vmatpush1.bf16.msra.mxu1 %v12877_v5  ;;  %v3683_v5 = vld [vmem:[#allocation5 + $0x3d8] sm:$0xff] }
 0x323   :  { %3367 = vmatprep.subr.bf16.mxu0 %v12881_v16  ;;  %3869 = vmatprep.subr.bf16.mxu1 %v12883_v28  ;;  %v3181_v28 = vld [vmem:[#allocation5 + $0x3d0] sm:$0xff]  ;;  %v3684_v14 = vld [vmem:[#allocation5 + $0x3f8] sm:$0xff] }
 0x324   :  { %v3182_v16 = vld [vmem:[#allocation5 + $0x3f0] sm:$0xff]  ;;  %v12919_v53 = vcombine.high %v3683_v5, %v3684_v14 }
 0x325   :  { %v12917_v24 = vcombine.high %v3181_v28, %v3182_v16 }
 0x326   :  { %3368 = vmatpush1.bf16.msra.mxu0 %v12887_v47  ;;  %3870 = vmatpush1.bf16.msra.mxu1 %v12889_v41 }
 0x327   :  { %3369 = vmatprep.subr.bf16.mxu0 %v12893_v56  ;;  %3871 = vmatprep.subr.bf16.mxu1 %v12895_v61  ;;  %v12923_v61 = vcombine.low %v3181_v28, %v3182_v16 }
 0x32a   :  { %3370 = vmatpush1.bf16.msra.mxu0 %v12899_v0  ;;  %3872 = vmatpush1.bf16.msra.mxu1 %v12901_v59  ;;  %v12925_v0 = vcombine.low %v3683_v5, %v3684_v14  ;;  %v15034_v14 = vld [vmem:[#allocation49_spill] sm:$0xff]  ;;  %v15035_v5 = vld [vmem:[#allocation52_spill] sm:$0xff] }
 0x32b   :  { %3371 = vmatprep.subr.bf16.mxu0 %v12905_v17  ;;  %3873 = vmatprep.subr.bf16.mxu1 %v12907_v40 }
 0x32e   :  { %3372 = vmatpush1.bf16.msra.mxu0 %v12911_v2  ;;  %3874 = vmatpush1.bf16.msra.mxu1 %v12913_v1 }
 0x32f   :  { %3373 = vmatprep.subr.bf16.mxu0 %v12917_v24  ;;  %3875 = vmatprep.subr.bf16.mxu1 %v12919_v53 }
 0x332   :  { %3374 = vmatpush1.bf16.msra.mxu0 %v12923_v61  ;;  %3876 = vmatpush1.bf16.msra.mxu1 %v12925_v0 }
 0x333   :  { %3960 = vmatprep.subr.bf16.mxu0 %v12493_v15  ;;  %4001 = vmatprep.subr.bf16.mxu1 %v12499_v11  ;;  %v3908_v15 = vld [vmem:[%s14381_s0 + $0x10] sm:$0xf]  ;;  %v14998_v11 = vld [vmem:[#allocation13_spill] sm:$0xff] }
 0x335   :  { %3376 = vmatmul.mubr.bf16.vlgmr.msra.gmra.mrb[20].mxu0 %v12744_v43  ;;  %3878 = vmatmul.mubr.bf16.vlgmr.msra.gmra.mrb[20].mxu1 %v12744_v43  ;;  %v15029_v43 = vld [vmem:[#allocation44_spill] sm:$0xff] }
 0x336   :  { %3961 = vmatpush1.bf16.msra.mxu0 %v12495_v18  ;;  %4002 = vmatpush1.bf16.msra.mxu1 %v12497_v54  ;;  %v14996_v18 = vld [vmem:[#allocation11_spill] sm:$0xff]  ;;  %v14997_v54 = vld [vmem:[#allocation12_spill] sm:$0xff] }
 0x337   :  { %3992 = vmatprep.mubr.bf16.mxu0 %v14823_v7  ;;  %4033 = vmatprep.mubr.bf16.mxu1 %v14823_v7 }
 0x338   :  { %4042 = vmatprep.subr.bf16.mxu0 %v12510_v3  ;;  %4083 = vmatprep.subr.bf16.mxu1 %v12517_v29  ;;  %v14999_v3 = vld [vmem:[#allocation14_spill] sm:$0xff]  ;;  %v15002_v29 = vld [vmem:[#allocation17_spill] sm:$0xff] }
 0x33d   :  { %10442 = vmatmul.mubr.msk.bf16.vlgmr.msra.gmra.mrb[32].mxu0 %vm156_vm0, %v3908_v15  ;;  %10443 = vmatmul.mubr.msk.bf16.vlgmr.msra.gmra.mrb[32].mxu1 %vm156_vm0, %v3908_v15 }
 0x33e   :  { %4043 = vmatpush1.bf16.msra.mxu0 %v12513_v25  ;;  %4084 = vmatpush1.bf16.msra.mxu1 %v12515_v26  ;;  %v15000_v25 = vld [vmem:[#allocation15_spill] sm:$0xff]  ;;  %v15001_v26 = vld [vmem:[#allocation16_spill] sm:$0xff] }
 0x33f   :  { %4074 = vmatprep.mubr.bf16.mxu0 %v14823_v7  ;;  %4115 = vmatprep.mubr.bf16.mxu1 %v14823_v7 }
 0x340   :  { %4316 = vmatprep.subr.bf16.mxu0 %v12526_v45  ;;  %4800 = vmatprep.subr.bf16.mxu1 %v12530_v36  ;;  %v15004_v45 = vld [vmem:[#allocation18_spill] sm:$0xff]  ;;  %v15006_v36 = vld [vmem:[#allocation21_spill] sm:$0xff] }
 0x345   :  { %10444 = vmatmul.mubr.msk.bf16.vlgmr.msra.gmra.mrb[36].mxu0 %vm156_vm0, %v3908_v15  ;;  %10445 = vmatmul.mubr.msk.bf16.vlgmr.msra.gmra.mrb[36].mxu1 %vm156_vm0, %v3908_v15 }
 0x346   :  { %4317 = vmatpush1.bf16.msra.mxu0 %v12524_v44  ;;  %4801 = vmatpush1.bf16.msra.mxu1 %v12528_v22  ;;  %v15003_v44 = vld [vmem:[#allocation20_spill] sm:$0xff]  ;;  %v15005_v22 = vld [vmem:[#allocation19_spill] sm:$0xff] }
 0x347   :  { %4318 = vmatprep.subr.bf16.mxu0 %v12532_v27  ;;  %4802 = vmatprep.subr.bf16.mxu1 %v12535_v9  ;;  %v15007_v27 = vld [vmem:[#allocation24_spill] sm:$0xff]  ;;  %v15008_v9 = vld [vmem:[#allocation22_spill] sm:$0xff] }
 0x34a   :  { %4319 = vmatpush1.bf16.msra.mxu0 %v12541_v30  ;;  %4803 = vmatpush1.bf16.msra.mxu1 %v12545_v31  ;;  %v15009_v30 = vld [vmem:[#allocation23_spill] sm:$0xff]  ;;  %v15010_v31 = vld [vmem:[#allocation25_spill] sm:$0xff] }
 0x34b   :  { %4320 = vmatprep.subr.bf16.mxu0 %v12547_v32  ;;  %4804 = vmatprep.subr.bf16.mxu1 %v12550_v33  ;;  %v15011_v32 = vld [vmem:[#allocation28_spill] sm:$0xff]  ;;  %v15012_v33 = vld [vmem:[#allocation26_spill] sm:$0xff] }
 0x34e   :  { %4321 = vmatpush1.bf16.msra.mxu0 %v12553_v48  ;;  %4805 = vmatpush1.bf16.msra.mxu1 %v12557_v50  ;;  %v15013_v48 = vld [vmem:[#allocation27_spill] sm:$0xff]  ;;  %v15014_v50 = vld [vmem:[#allocation29_spill] sm:$0xff] }
 0x34f   :  { %4322 = vmatprep.subr.bf16.mxu0 %v12559_v58  ;;  %4806 = vmatprep.subr.bf16.mxu1 %v12562_v63  ;;  %v15015_v58 = vld [vmem:[#allocation32_spill] sm:$0xff]  ;;  %v15016_v63 = vld [vmem:[#allocation30_spill] sm:$0xff] }
 0x352   :  { %4323 = vmatpush1.bf16.msra.mxu0 %v12565_v19  ;;  %4807 = vmatpush1.bf16.msra.mxu1 %v12569_v20  ;;  %v15017_v19 = vld [vmem:[#allocation31_spill] sm:$0xff]  ;;  %v15018_v20 = vld [vmem:[#allocation33_spill] sm:$0xff] }
 0x353   :  { %4324 = vmatprep.subr.bf16.mxu0 %v12571_v60  ;;  %4808 = vmatprep.subr.bf16.mxu1 %v12574_v21  ;;  %v15019_v60 = vld [vmem:[#allocation36_spill] sm:$0xff]  ;;  %v15020_v21 = vld [vmem:[#allocation34_spill] sm:$0xff] }
 0x356   :  { %4325 = vmatpush1.bf16.msra.mxu0 %v12577_v62  ;;  %4809 = vmatpush1.bf16.msra.mxu1 %v12581_v52  ;;  %v15021_v62 = vld [vmem:[#allocation35_spill] sm:$0xff]  ;;  %v15022_v52 = vld [vmem:[#allocation38_spill] sm:$0xff] }
 0x357   :  { %4326 = vmatprep.subr.bf16.mxu0 %v12583_v42  ;;  %4810 = vmatprep.subr.bf16.mxu1 %v12586_v34  ;;  %v15023_v42 = vld [vmem:[#allocation40_spill] sm:$0xff]  ;;  %v15024_v34 = vld [vmem:[#allocation37_spill] sm:$0xff] }
 0x35a   :  { %4327 = vmatpush1.bf16.msra.mxu0 %v12589_v10  ;;  %4811 = vmatpush1.bf16.msra.mxu1 %v12593_v6  ;;  %v15025_v10 = vld [vmem:[#allocation39_spill] sm:$0xff]  ;;  %v15026_v6 = vld [vmem:[#allocation41_spill] sm:$0xff] }
 0x35b   :  { %4328 = vmatprep.subr.bf16.mxu0 %v12595_v8  ;;  %4812 = vmatprep.subr.bf16.mxu1 %v12598_v13  ;;  %v15027_v8 = vld [vmem:[#allocation42_spill] sm:$0xff]  ;;  %v15028_v13 = vld [vmem:[#allocation43_spill] sm:$0xff] }
 0x35e   :  { %4329 = vmatpush1.bf16.msra.mxu0 %v14996_v18  ;;  %4813 = vmatpush1.bf16.msra.mxu1 %v14997_v54 }
 0x35f   :  { %4330 = vmatprep.subr.bf16.mxu0 %v14998_v11  ;;  %4814 = vmatprep.subr.bf16.mxu1 %v14999_v3 }
 0x362   :  { %4331 = vmatpush1.bf16.msra.mxu0 %v15000_v25  ;;  %4815 = vmatpush1.bf16.msra.mxu1 %v15001_v26  ;;  %v15036_v26 = vld [vmem:[#allocation9_spill] sm:$0xff] }
 0x363   :  { %4332 = vmatprep.subr.bf16.mxu0 %v15002_v29  ;;  %4816 = vmatprep.subr.bf16.mxu1 %v15003_v44 }
 0x366   :  { %4333 = vmatpush1.bf16.msra.mxu0 %v15004_v45  ;;  %4817 = vmatpush1.bf16.msra.mxu1 %v15005_v22 }
 0x367   :  { %4334 = vmatprep.subr.bf16.mxu0 %v15006_v36  ;;  %4818 = vmatprep.subr.bf16.mxu1 %v15007_v27 }
 0x36a   :  { %4335 = vmatpush1.bf16.msra.mxu0 %v15008_v9  ;;  %4819 = vmatpush1.bf16.msra.mxu1 %v15009_v30 }
 0x36b   :  { %4336 = vmatprep.subr.bf16.mxu0 %v15010_v31  ;;  %4820 = vmatprep.subr.bf16.mxu1 %v15011_v32 }
 0x36e   :  { %4337 = vmatpush1.bf16.msra.mxu0 %v15012_v33  ;;  %4821 = vmatpush1.bf16.msra.mxu1 %v15013_v48 }
 0x36f   :  { %4338 = vmatprep.subr.bf16.mxu0 %v15014_v50  ;;  %4822 = vmatprep.subr.bf16.mxu1 %v15015_v58 }
 0x372   :  { %4339 = vmatpush1.bf16.msra.mxu0 %v15016_v63  ;;  %4823 = vmatpush1.bf16.msra.mxu1 %v15017_v19 }
 0x373   :  { %4340 = vmatprep.subr.bf16.mxu0 %v15018_v20  ;;  %4824 = vmatprep.subr.bf16.mxu1 %v15019_v60 }
 0x376   :  { %4341 = vmatpush1.bf16.msra.mxu0 %v15020_v21  ;;  %4825 = vmatpush1.bf16.msra.mxu1 %v15021_v62 }
 0x377   :  { %4342 = vmatprep.subr.bf16.mxu0 %v15022_v52  ;;  %4826 = vmatprep.subr.bf16.mxu1 %v15023_v42 }
 0x37a   :  { %4343 = vmatpush1.bf16.msra.mxu0 %v15024_v34  ;;  %4827 = vmatpush1.bf16.msra.mxu1 %v15025_v10  ;;  %v15037_v34 = vld [vmem:[#allocation10_spill] sm:$0xff] }
 0x37b   :  { %4344 = vmatprep.subr.bf16.mxu0 %v15026_v6  ;;  %4828 = vmatprep.subr.bf16.mxu1 %v15027_v8 }
 0x37e   :  { %4345 = vmatpush1.bf16.msra.mxu0 %v15028_v13  ;;  %4829 = vmatpush1.bf16.msra.mxu1 %v15029_v43 }
 0x37f   :  { %4346 = vmatprep.subr.bf16.mxu0 %v15030_v51  ;;  %4830 = vmatprep.subr.bf16.mxu1 %v15031_v12 }
 0x382   :  { %4347 = vmatpush1.bf16.msra.mxu0 %v15032_v39  ;;  %4831 = vmatpush1.bf16.msra.mxu1 %v15033_v38 }
 0x383   :  { %4551 = vmatprep.subr.bf16.mxu0 %v15034_v14  ;;  %5053 = vmatprep.subr.bf16.mxu1 %v15035_v5 }
 0x3c8   :  { %v3142_v16 = vpop.f32.mrb[16].mxu0  ;;  %v3626_v28 = vpop.f32.mrb[16].mxu1 }
 0x3c9   :  { %v3144_v15 = vpop.f32.mrb[17].mxu0  ;;  %v3628_v18 = vpop.f32.mrb[17].mxu1  ;;  %v11241_v29 = vadd.f32 %v3142_v16, %v15036_v26  ;;  %v11243_v44 = vadd.f32 %v3626_v28, %v12388_v35 }
 0x3ca   :  { %v3146_v54 = vpop.f32.mrb[18].mxu0  ;;  %v3630_v11 = vpop.f32.mrb[18].mxu1  ;;  %v11242_v45 = vadd.f32 %v3144_v15, %v12390_v37  ;;  %v11244_v22 = vadd.f32 %v3628_v18, %v12392_v4 }
 0x3cb   :  { %v3147_v3 = vpop.f32.mrb[19].mxu0  ;;  %v3631_v25 = vpop.f32.mrb[19].mxu1  ;;  %v10364_v36 = vmul.f32 -1.442695, %v11241_v29  ;;  %v10398_v27 = vmul.f32 -1.442695, %v11243_v44 }
 0x3cc   :  { %v10365_v9 = vmul.f32 -1.442695, %v11242_v45  ;;  %v10399_v30 = vmul.f32 -1.442695, %v11244_v22 }
 0x3cd   :  { %11502 = vpow2.f32 %v10364_v36 }
 0x3ce   :  { %11504 = vpow2.f32 %v10398_v27 }
 0x3cf   :  { %11506 = vpow2.f32 %v10365_v9 }
 0x3d0   :  { %11508 = vpow2.f32 %v10399_v30 }
 0x3d7   :  { %v11503_v31 = vpop.eup %11502 }
 0x3d8   :  { %v11505_v32 = vpop.eup %11504  ;;  %v3392_v50 = vadd.f32 1.0, %v11503_v31 }
 0x3d9   :  { %v11507_v33 = vpop.eup %11506  ;;  %v3641_v58 = vadd.f32 1.0, %v11505_v32 }
 0x3da   :  { %v11509_v48 = vpop.eup %11508  ;;  %v3393_v63 = vadd.f32 1.0, %v11507_v33  ;;  %11510 = vrcp.f32 %v3392_v50  ;;  %v15039_v50 = vld [vmem:[#allocation51_spill] sm:$0xff] }
 0x3db   :  { %v3642_v19 = vadd.f32 1.0, %v11509_v48  ;;  %11512 = vrcp.f32 %v3641_v58  ;;  %v15038_v48 = vld [vmem:[#allocation50_spill] sm:$0xff]  ;;  %v15040_v58 = vld [vmem:[#allocation53_spill] sm:$0xff] }
 0x3dc   :  { %11514 = vrcp.f32 %v3393_v63  ;;  %v15041_v63 = vld [vmem:[#allocation54_spill] sm:$0xff] }
 0x3dd   :  { %11516 = vrcp.f32 %v3642_v19  ;;  %v15042_v19 = vld [vmem:[#allocation55_spill] sm:$0xff] }
 0x3e4   :  { %v11511_v38 = vpop.eup %11510 }
 0x3e5   :  { %v11513_v14 = vpop.eup %11512 }
 0x3e6   :  { %v11515_v5 = vpop.eup %11514  ;;  %v3647_v18 = vmul.f32 %v11513_v14, %v12738_v46  ;;  %v15058_v14 = vld [vmem:[#allocation71_spill] sm:$0xff] }
 0x3e7   :  { %v11517_v16 = vpop.eup %11516 }
 0x3e8   :  { %v3648_v3 = vmul.f32 %v11517_v16, %v12740_v23  ;;  %v15060_v16 = vld [vmem:[#allocation73_spill] sm:$0xff] }
 0x408   :  { %v3377_v20 = vpop.f32.mrb[20].mxu0  ;;  %v3879_v60 = vpop.f32.mrb[20].mxu1 }
 0x409   :  { %v11245_v21 = vadd.f32 %v3377_v20, %v12398_v49  ;;  %v11247_v62 = vadd.f32 %v3879_v60, %v12400_v55  ;;  %v3379_v52 = vpop.f32.mrb[21].mxu0  ;;  %v3881_v42 = vpop.f32.mrb[21].mxu1  ;;  %v15043_v20 = vld [vmem:[#allocation56_spill] sm:$0xff]  ;;  %v15044_v60 = vld [vmem:[#allocation57_spill] sm:$0xff] }
 0x40a   :  { %v11246_v10 = vadd.f32 %v3379_v52, %v15037_v34  ;;  %v11248_v6 = vadd.f32 %v3881_v42, %v12404_v57  ;;  %v3381_v8 = vpop.f32.mrb[22].mxu0  ;;  %v3883_v13 = vpop.f32.mrb[22].mxu1  ;;  %v15047_v52 = vld [vmem:[#allocation60_spill] sm:$0xff]  ;;  %v15048_v42 = vld [vmem:[#allocation61_spill] sm:$0xff] }
 0x40b   :  { %11518 = vtanh.f32 %v11245_v21  ;;  %v10432_v43 = vmul.f32 -1.442695, %v11247_v62  ;;  %v3382_v51 = vpop.f32.mrb[23].mxu0  ;;  %v3884_v12 = vpop.f32.mrb[23].mxu1  ;;  %v15045_v21 = vld [vmem:[#allocation58_spill] sm:$0xff]  ;;  %v15046_v62 = vld [vmem:[#allocation59_spill] sm:$0xff] }
 0x40c   :  { %11520 = vtanh.f32 %v11246_v10  ;;  %v10433_v39 = vmul.f32 -1.442695, %v11248_v6  ;;  %v15049_v10 = vld [vmem:[#allocation62_spill] sm:$0xff]  ;;  %v15050_v6 = vld [vmem:[#allocation63_spill] sm:$0xff]  ;;  %v15051_v8 = vld [vmem:[#allocation64_spill] sm:$0xff] }
 0x40d   :  { %11522 = vpow2.f32 %v10432_v43  ;;  %v15052_v13 = vld [vmem:[#allocation65_spill] sm:$0xff]  ;;  %v15053_v43 = vld [vmem:[#allocation66_spill] sm:$0xff]  ;;  %v15054_v51 = vld [vmem:[#allocation67_spill] sm:$0xff] }
 0x40e   :  { %11524 = vpow2.f32 %v10433_v39  ;;  %v15055_v12 = vld [vmem:[#allocation68_spill] sm:$0xff]  ;;  %v15056_v39 = vld [vmem:[#allocation69_spill] sm:$0xff] }
 0x415   :  { %v11519_v28 = vpop.eup %11518 }
 0x416   :  { %v11521_v15 = vpop.eup %11520  ;;  %v3649_v54 = vmul.f32 %v11519_v28, %v11511_v38  ;;  %v15057_v38 = vld [vmem:[#allocation70_spill] sm:$0xff] }
 0x417   :  { %v11523_v11 = vpop.eup %11522  ;;  %v3650_v25 = vmul.f32 %v11521_v15, %v11515_v5  ;;  %v15059_v5 = vld [vmem:[#allocation72_spill] sm:$0xff]  ;;  %v15061_v28 = vld [vmem:[#allocation74_spill] sm:$0xff]  ;;  %v15062_v15 = vld [vmem:[#allocation75_spill] sm:$0xff] }
 0x418   :  { %v11525_v29 = vpop.eup %11524  ;;  %v13028_v44 = vadd.f32 %v3649_v54, %v3647_v18  ;;  %v3894_v45 = vadd.f32 1.0, %v11523_v11  ;;  %v15063_v18 = vld [vmem:[#allocation76_spill] sm:$0xff]  ;;  %v15064_v54 = vld [vmem:[#allocation77_spill] sm:$0xff]  ;;  %v15065_v11 = vld [vmem:[#allocation78_spill] sm:$0xff] }
 0x419   :  { %v13030_v22 = vadd.f32 %v3650_v25, %v3648_v3  ;;  %v3895_v36 = vadd.f32 1.0, %v11525_v29  ;;  %v15066_v3 = vld [vmem:[#allocation79_spill] sm:$0xff]  ;;  %v15067_v25 = vld [vmem:[#allocation80_spill] sm:$0xff]  ;;  %v15068_v29 = vld [vmem:[#allocation81_spill] sm:$0xff] }
 0x41a   :  { %11526 = vtanh.f32 %v13028_v44 }
 0x41b   :  { %11528 = vrcp.f32 %v3894_v45  ;;  %v15069_v45 = vld [vmem:[#allocation82_spill] sm:$0xff] }
 0x41c   :  { %11530 = vtanh.f32 %v13030_v22 }
 0x41d   :  { %11532 = vrcp.f32 %v3895_v36  ;;  %v15070_v36 = vld [vmem:[#allocation83_spill] sm:$0xff] }
 0x424   :  { %v11527_v27 = vpop.eup %11526 }
 0x425   :  { %v11529_v46 = vpop.eup %11528 }
 0x426   :  { %v11531_v9 = vpop.eup %11530  ;;  %v3902_v30 = vmul.f32 %v11529_v46, %v11527_v27  ;;  %v15071_v27 = vld [vmem:[#allocation84_spill] sm:$0xff]  ;;  %v15072_v46 = vld [vmem:[#allocation85_spill] sm:$0xff] }
 0x427   :  { %v11533_v31 = vpop.eup %11532 }
 0x428   :  { %v3903_v23 = vmul.f32 %v11533_v31, %v11531_v9  ;;  %v13034_v32 = vpack.c.bf16 %v3902_v30, %v3902_v30  ;;  %v15073_v9 = vld [vmem:[#allocation86_spill] sm:$0xff]  ;;  %v15074_v30 = vld [vmem:[#allocation87_spill] sm:$0xff]  ;;  %v15075_v31 = vld [vmem:[#allocation88_spill] sm:$0xff] }
 0x42a   :  { %v3905_v33 = vpack.c.bf16 %v3903_v23, %v3903_v23  ;;  %3906 = vst [vmem:[#allocation2 + $0x10] sm:$0xf] %v13034_v32  ;;  %v15076_v23 = vld [vmem:[#allocation89_spill] sm:$0xff] }
 0x42c   :  { %3907 = vst [vmem:[#allocation2 + $0x18] sm:$0xf] %v3905_v33  ;;  %4348 = vmatprep.mubr.bf16.mxu0 %v3905_v33  ;;  %4832 = vmatprep.mubr.bf16.mxu1 %v3905_v33 }
 0x42d   :  { %4349 = vmatmul.mubr.bf16.vlgmr.msra.gmra.mrb[24].mxu0 %v13034_v32  ;;  %4833 = vmatmul.mubr.bf16.vlgmr.msra.gmra.mrb[24].mxu1 %v13034_v32 }
 0x42e   :  { %4552 = vmatpush1.bf16.msra.mxu0 %v15038_v48  ;;  %5054 = vmatpush1.bf16.msra.mxu1 %v15039_v50  ;;  %v15078_v48 = vld [vmem:[#allocation91_spill] sm:$0xff]  ;;  %v15079_v50 = vld [vmem:[#allocation92_spill] sm:$0xff] }
 0x42f   :  { %4583 = vmatprep.mubr.bf16.mxu0 %v3905_v33  ;;  %5085 = vmatprep.mubr.bf16.mxu1 %v3905_v33  ;;  %v15077_v33 = vld [vmem:[#allocation90_spill] sm:$0xff] }
 0x430   :  { %4553 = vmatprep.subr.bf16.mxu0 %v15040_v58  ;;  %5055 = vmatprep.subr.bf16.mxu1 %v15041_v63  ;;  %v15080_v58 = vld [vmem:[#allocation93_spill] sm:$0xff]  ;;  %v15081_v63 = vld [vmem:[#allocation94_spill] sm:$0xff] }
 0x432   :  { %4554 = vmatpush1.bf16.msra.mxu0 %v15042_v19  ;;  %5056 = vmatpush1.bf16.msra.mxu1 %v15043_v20  ;;  %v15082_v19 = vld [vmem:[#allocation95_spill] sm:$0xff]  ;;  %v15083_v20 = vld [vmem:[#allocation96_spill] sm:$0xff] }
 0x433   :  { %4555 = vmatprep.subr.bf16.mxu0 %v15044_v60  ;;  %5057 = vmatprep.subr.bf16.mxu1 %v15045_v21  ;;  %v15084_v60 = vld [vmem:[#allocation97_spill] sm:$0xff]  ;;  %v15085_v21 = vld [vmem:[#allocation98_spill] sm:$0xff] }
 0x436   :  { %4556 = vmatpush1.bf16.msra.mxu0 %v15046_v62  ;;  %5058 = vmatpush1.bf16.msra.mxu1 %v15047_v52  ;;  %v15086_v62 = vld [vmem:[#allocation99_spill] sm:$0xff]  ;;  %v15087_v52 = vld [vmem:[#allocation100_spill] sm:$0xff] }
 0x437   :  { %4557 = vmatprep.subr.bf16.mxu0 %v15048_v42  ;;  %5059 = vmatprep.subr.bf16.mxu1 %v15049_v10  ;;  %v5130_v42 = vld [vmem:[#allocation3 + $0x38] sm:$0xff] }
 0x43a   :  { %4558 = vmatpush1.bf16.msra.mxu0 %v15050_v6  ;;  %5060 = vmatpush1.bf16.msra.mxu1 %v15051_v8 }
 0x43b   :  { %4559 = vmatprep.subr.bf16.mxu0 %v15052_v13  ;;  %5061 = vmatprep.subr.bf16.mxu1 %v15053_v43  ;;  %v5338_v13 = vld [vmem:[#allocation5] sm:$0xff] }
 0x43c   :  { %v5339_v43 = vld [vmem:[#allocation5 + $0x20] sm:$0xff] }
 0x43e   :  { %4560 = vmatpush1.bf16.msra.mxu0 %v15054_v51  ;;  %5062 = vmatpush1.bf16.msra.mxu1 %v15055_v12  ;;  %v5822_v51 = vld [vmem:[#allocation5 + $0x8] sm:$0xff]  ;;  %v13136_v12 = vcombine.low %v5338_v13, %v5339_v43 }
 0x43f   :  { %4561 = vmatprep.subr.bf16.mxu0 %v15056_v39  ;;  %5063 = vmatprep.subr.bf16.mxu1 %v15057_v38  ;;  %v13138_v39 = vcombine.high %v5338_v13, %v5339_v43  ;;  %v5823_v38 = vld [vmem:[#allocation5 + $0x28] sm:$0xff]  ;;  %v5350_v43 = vld [vmem:[#allocation5 + $0x180] sm:$0xff] }
 0x442   :  { %4562 = vmatpush1.bf16.msra.mxu0 %v15058_v14  ;;  %5064 = vmatpush1.bf16.msra.mxu1 %v15059_v5  ;;  %v5340_v14 = vld [vmem:[#allocation5 + $0x40] sm:$0xff] }
 0x443   :  { %4563 = vmatprep.subr.bf16.mxu0 %v15060_v16  ;;  %5065 = vmatprep.subr.bf16.mxu1 %v15061_v28  ;;  %v5341_v5 = vld [vmem:[#allocation5 + $0x60] sm:$0xff]  ;;  %v13140_v16 = vcombine.low %v5822_v51, %v5823_v38  ;;  %v13142_v28 = vcombine.high %v5822_v51, %v5823_v38  ;;  %v5834_v38 = vld [vmem:[#allocation5 + $0x188] sm:$0xff] }
 0x444   :  { %v5351_v51 = vld [vmem:[#allocation5 + $0x1a0] sm:$0xff] }
 0x446   :  { %4564 = vmatpush1.bf16.msra.mxu0 %v15062_v15  ;;  %5066 = vmatpush1.bf16.msra.mxu1 %v15063_v18  ;;  %v13144_v15 = vcombine.high %v5340_v14, %v5341_v5  ;;  %v5824_v18 = vld [vmem:[#allocation5 + $0x48] sm:$0xff] }
 0x447   :  { %4565 = vmatprep.subr.bf16.mxu0 %v15064_v54  ;;  %5067 = vmatprep.subr.bf16.mxu1 %v15065_v11  ;;  %v5825_v54 = vld [vmem:[#allocation5 + $0x68] sm:$0xff] }
 0x448   :  { %v13147_v11 = vcombine.high %v5824_v18, %v5825_v54 }
 0x44a   :  { %4566 = vmatpush1.bf16.msra.mxu0 %v15066_v3  ;;  %5068 = vmatpush1.bf16.msra.mxu1 %v15067_v25  ;;  %v5342_v3 = vld [vmem:[#allocation5 + $0x80] sm:$0xff] }
 0x44b   :  { %4567 = vmatprep.subr.bf16.mxu0 %v15068_v29  ;;  %5069 = vmatprep.subr.bf16.mxu1 %v15069_v45  ;;  %v5343_v25 = vld [vmem:[#allocation5 + $0xa0] sm:$0xff]  ;;  %v5826_v29 = vld [vmem:[#allocation5 + $0x88] sm:$0xff] }
 0x44c   :  { %v5827_v45 = vld [vmem:[#allocation5 + $0xa8] sm:$0xff] }
 0x44e   :  { %4568 = vmatpush1.bf16.msra.mxu0 %v15070_v36  ;;  %5070 = vmatpush1.bf16.msra.mxu1 %v15071_v27  ;;  %v13153_v36 = vcombine.low %v5340_v14, %v5341_v5  ;;  %v13157_v27 = vcombine.low %v5824_v18, %v5825_v54  ;;  %v5835_v14 = vld [vmem:[#allocation5 + $0x1a8] sm:$0xff]  ;;  %v13207_v54 = vcombine.high %v5350_v43, %v5351_v51 }
 0x44f   :  { %4569 = vmatprep.subr.bf16.mxu0 %v15072_v46  ;;  %5071 = vmatprep.subr.bf16.mxu1 %v15073_v9  ;;  %v13159_v46 = vcombine.high %v5342_v3, %v5343_v25  ;;  %v13162_v9 = vcombine.high %v5826_v29, %v5827_v45 }
 0x452   :  { %4570 = vmatpush1.bf16.msra.mxu0 %v15074_v30  ;;  %5072 = vmatpush1.bf16.msra.mxu1 %v15075_v31  ;;  %v5344_v30 = vld [vmem:[#allocation5 + $0xc0] sm:$0xff] }
 0x453   :  { %4571 = vmatprep.subr.bf16.mxu0 %v15076_v23  ;;  %5073 = vmatprep.subr.bf16.mxu1 %v15077_v33  ;;  %v5345_v31 = vld [vmem:[#allocation5 + $0xe0] sm:$0xff]  ;;  %v5828_v23 = vld [vmem:[#allocation5 + $0xc8] sm:$0xff] }
 0x454   :  { %v5829_v33 = vld [vmem:[#allocation5 + $0xe8] sm:$0xff] }
 0x456   :  { %4572 = vmatpush1.bf16.msra.mxu0 %v15078_v48  ;;  %5074 = vmatpush1.bf16.msra.mxu1 %v15079_v50  ;;  %v13165_v48 = vcombine.low %v5342_v3, %v5343_v25  ;;  %v13169_v50 = vcombine.low %v5826_v29, %v5827_v45  ;;  %v13210_v3 = vcombine.high %v5834_v38, %v5835_v14  ;;  %v5352_v25 = vld [vmem:[#allocation5 + $0x1c0] sm:$0xff]  ;;  %v5836_v45 = vld [vmem:[#allocation5 + $0x1c8] sm:$0xff] }
 0x457   :  { %4573 = vmatprep.subr.bf16.mxu0 %v15080_v58  ;;  %5075 = vmatprep.subr.bf16.mxu1 %v15081_v63  ;;  %v13171_v58 = vcombine.high %v5344_v30, %v5345_v31  ;;  %v13174_v63 = vcombine.high %v5828_v23, %v5829_v33  ;;  %v5353_v29 = vld [vmem:[#allocation5 + $0x1e0] sm:$0xff] }
 0x45a   :  { %4574 = vmatpush1.bf16.msra.mxu0 %v15082_v19  ;;  %5076 = vmatpush1.bf16.msra.mxu1 %v15083_v20  ;;  %v5346_v19 = vld [vmem:[#allocation5 + $0x100] sm:$0xff] }
 0x45b   :  { %4575 = vmatprep.subr.bf16.mxu0 %v15084_v60  ;;  %5077 = vmatprep.subr.bf16.mxu1 %v15085_v21  ;;  %v5347_v20 = vld [vmem:[#allocation5 + $0x120] sm:$0xff]  ;;  %v5830_v60 = vld [vmem:[#allocation5 + $0x108] sm:$0xff] }
 0x45c   :  { %v5831_v21 = vld [vmem:[#allocation5 + $0x128] sm:$0xff] }
 0x45e   :  { %4576 = vmatpush1.bf16.msra.mxu0 %v12887_v47  ;;  %5078 = vmatpush1.bf16.msra.mxu1 %v12889_v41  ;;  %v5123_v47 = vld [vmem:[#allocation3] sm:$0xff] }
 0x45f   :  { %4577 = vmatprep.subr.bf16.mxu0 %v12893_v56  ;;  %5079 = vmatprep.subr.bf16.mxu1 %v15086_v62  ;;  %v5127_v41 = vld [vmem:[#allocation3 + $0x20] sm:$0xff]  ;;  %v5124_v56 = vld [vmem:[#allocation3 + $0x8] sm:$0xff]  ;;  %v13177_v62 = vcombine.low %v5344_v30, %v5345_v31  ;;  %v13213_v31 = vcombine.low %v5350_v43, %v5351_v51 }
 0x460   :  { %v5837_v30 = vld [vmem:[#allocation5 + $0x1e8] sm:$0xff] }
 0x461   :  { %15088 = vst [vmem:[#allocation11_spill] sm:$0xff] %v13213_v31 }
 0x462   :  { %4578 = vmatpush1.bf16.msra.mxu0 %v15087_v52  ;;  %5080 = vmatpush1.bf16.msra.mxu1 %v12901_v59  ;;  %v13105_v59 = vcombine.high %v5123_v47, %v5127_v41  ;;  %v13181_v52 = vcombine.low %v5828_v23, %v5829_v33  ;;  %v13217_v23 = vcombine.low %v5834_v38, %v5835_v14  ;;  %v5356_v14 = vld [vmem:[#allocation5 + $0x240] sm:$0xff] }
 0x463   :  { %4579 = vmatprep.subr.bf16.mxu0 %v12905_v17  ;;  %5081 = vmatprep.subr.bf16.mxu1 %v12907_v40  ;;  %v5128_v17 = vld [vmem:[#allocation3 + $0x28] sm:$0xff]  ;;  %v13107_v40 = vcombine.low %v5123_v47, %v5127_v41  ;;  %v13183_v47 = vcombine.high %v5346_v19, %v5347_v20  ;;  %v13186_v41 = vcombine.high %v5830_v60, %v5831_v21 }
 0x464   :  { %15089 = vst [vmem:[#allocation12_spill] sm:$0xff] %v13217_v23  ;;  %v13219_v33 = vcombine.high %v5352_v25, %v5353_v29 }
 0x466   :  { %4580 = vmatpush1.bf16.msra.mxu0 %v12911_v2  ;;  %5082 = vmatpush1.bf16.msra.mxu1 %v12913_v1  ;;  %v13109_v2 = vcombine.low %v5124_v56, %v5128_v17  ;;  %v5125_v1 = vld [vmem:[#allocation3 + $0x10] sm:$0xff]  ;;  %15090 = vst [vmem:[#allocation13_spill] sm:$0xff] %v13219_v33 }
 0x467   :  { %4581 = vmatprep.subr.bf16.mxu0 %v12917_v24  ;;  %5083 = vmatprep.subr.bf16.mxu1 %v12919_v53  ;;  %v5129_v24 = vld [vmem:[#allocation3 + $0x30] sm:$0xff]  ;;  %v5126_v53 = vld [vmem:[#allocation3 + $0x18] sm:$0xff] }
 0x468   :  { %v13125_v10 = vcombine.low %v5125_v1, %v5129_v24  ;;  %v13127_v6 = vcombine.low %v5126_v53, %v5130_v42  ;;  %v13129_v8 = vcombine.high %v5126_v53, %v5130_v42  ;;  %v13193_v53 = vcombine.low %v5830_v60, %v5831_v21  ;;  %v5354_v21 = vld [vmem:[#allocation5 + $0x200] sm:$0xff] }
 0x469   :  { %v13229_v60 = vcombine.low %v5836_v45, %v5837_v30 }
 0x46a   :  { %4582 = vmatpush1.bf16.msra.mxu0 %v12923_v61  ;;  %5084 = vmatpush1.bf16.msra.mxu1 %v12925_v0  ;;  %v13111_v61 = vcombine.high %v5124_v56, %v5128_v17  ;;  %v5122_v0 = vld [vmem:[%s14381_s0 + $0x14] sm:$0xf]  ;;  %v5348_v56 = vld [vmem:[#allocation5 + $0x140] sm:$0xff] }
 0x46b   :  { %5174 = vmatprep.subr.bf16.mxu0 %v13105_v59  ;;  %v5349_v17 = vld [vmem:[#allocation5 + $0x160] sm:$0xff]  ;;  %15093 = vst [vmem:[#allocation16_spill] sm:$0xff] %v13229_v60 }
 0x46c   :  { %5215 = vmatprep.subr.bf16.mxu1 %v13111_v61  ;;  %v13195_v42 = vcombine.high %v5348_v56, %v5349_v17  ;;  %v13201_v5 = vcombine.low %v5348_v56, %v5349_v17  ;;  %v5355_v56 = vld [vmem:[#allocation5 + $0x220] sm:$0xff]  ;;  %v5838_v17 = vld [vmem:[#allocation5 + $0x208] sm:$0xff] }
 0x46d   :  { %4584 = vmatmul.mubr.bf16.vlgmr.msra.gmra.mrb[28].mxu0 %v13034_v32  ;;  %5086 = vmatmul.mubr.bf16.vlgmr.msra.gmra.mrb[28].mxu1 %v13034_v32  ;;  %v13122_v32 = vcombine.high %v5125_v1, %v5129_v24  ;;  %v5833_v1 = vld [vmem:[#allocation5 + $0x168] sm:$0xff]  ;;  %v13189_v24 = vcombine.low %v5346_v19, %v5347_v20  ;;  %v13222_v19 = vcombine.high %v5836_v45, %v5837_v30 }
 0x46e   :  { %5206 = vmatprep.mubr.bf16.mxu0 %v14823_v7  ;;  %5247 = vmatprep.mubr.bf16.mxu1 %v14823_v7  ;;  %v13225_v20 = vcombine.low %v5352_v25, %v5353_v29  ;;  %v13236_v43 = vcombine.low %v5354_v21, %v5355_v56  ;;  %v5357_v25 = vld [vmem:[#allocation5 + $0x260] sm:$0xff]  ;;  %v5840_v29 = vld [vmem:[#allocation5 + $0x248] sm:$0xff] }
 0x46f   :  { %5175 = vmatpush1.bf16.msra.mxu0 %v13107_v40  ;;  %5216 = vmatpush1.bf16.msra.mxu1 %v13109_v2  ;;  %15091 = vst [vmem:[#allocation14_spill] sm:$0xff] %v13222_v19  ;;  %v13246_v45 = vcombine.high %v5356_v14, %v5357_v25  ;;  %v5841_v30 = vld [vmem:[#allocation5 + $0x268] sm:$0xff] }
 0x470   :  { %5256 = vmatprep.subr.bf16.mxu0 %v13122_v32  ;;  %5297 = vmatprep.subr.bf16.mxu1 %v13129_v8  ;;  %15092 = vst [vmem:[#allocation15_spill] sm:$0xff] %v13225_v20  ;;  %15095 = vst [vmem:[#allocation20_spill] sm:$0xff] %v13236_v43 }
 0x471   :  { %15098 = vst [vmem:[#allocation21_spill] sm:$0xff] %v13246_v45 }
 0x475   :  { %10588 = vmatmul.mubr.msk.bf16.vlgmr.msra.gmra.mrb[40].mxu0 %vm156_vm0, %v5122_v0  ;;  %10589 = vmatmul.mubr.msk.bf16.vlgmr.msra.gmra.mrb[40].mxu1 %vm156_vm0, %v5122_v0 }
 0x476   :  { %5288 = vmatprep.mubr.bf16.mxu0 %v14823_v7  ;;  %5329 = vmatprep.mubr.bf16.mxu1 %v14823_v7 }
 0x477   :  { %5257 = vmatpush1.bf16.msra.mxu0 %v13125_v10  ;;  %5298 = vmatpush1.bf16.msra.mxu1 %v13127_v6 }
 0x478   :  { %5530 = vmatprep.subr.bf16.mxu0 %v13138_v39  ;;  %6014 = vmatprep.subr.bf16.mxu1 %v13142_v28 }
 0x47d   :  { %10590 = vmatmul.mubr.msk.bf16.vlgmr.msra.gmra.mrb[44].mxu0 %vm156_vm0, %v5122_v0  ;;  %10591 = vmatmul.mubr.msk.bf16.vlgmr.msra.gmra.mrb[44].mxu1 %vm156_vm0, %v5122_v0  ;;  %v5832_v0 = vld [vmem:[#allocation5 + $0x148] sm:$0xff] }
 0x47e   :  { %5531 = vmatpush1.bf16.msra.mxu0 %v13136_v12  ;;  %6015 = vmatpush1.bf16.msra.mxu1 %v13140_v16  ;;  %v13198_v13 = vcombine.high %v5832_v0, %v5833_v1  ;;  %v13205_v18 = vcombine.low %v5832_v0, %v5833_v1  ;;  %v13234_v0 = vcombine.high %v5354_v21, %v5355_v56  ;;  %v5839_v1 = vld [vmem:[#allocation5 + $0x228] sm:$0xff] }
 0x47f   :  { %5532 = vmatprep.subr.bf16.mxu0 %v13144_v15  ;;  %6016 = vmatprep.subr.bf16.mxu1 %v13147_v11  ;;  %v13238_v51 = vcombine.low %v5838_v17, %v5839_v1  ;;  %v13240_v38 = vcombine.high %v5838_v17, %v5839_v1  ;;  %v13248_v21 = vcombine.low %v5356_v14, %v5357_v25  ;;  %v5358_v1 = vld [vmem:[#allocation5 + $0x280] sm:$0xff] }
 0x480   :  { %15094 = vst [vmem:[#allocation17_spill] sm:$0xff] %v13234_v0  ;;  %v13250_v56 = vcombine.low %v5840_v29, %v5841_v30  ;;  %v13252_v17 = vcombine.high %v5840_v29, %v5841_v30  ;;  %v5360_v30 = vld [vmem:[#allocation5 + $0x2c0] sm:$0xff] }
 0x481   :  { %15096 = vst [vmem:[#allocation18_spill] sm:$0xff] %v13238_v51  ;;  %15097 = vst [vmem:[#allocation19_spill] sm:$0xff] %v13240_v38 }
 0x482   :  { %5533 = vmatpush1.bf16.msra.mxu0 %v13153_v36  ;;  %6017 = vmatpush1.bf16.msra.mxu1 %v13157_v27  ;;  %15099 = vst [vmem:[#allocation24_spill] sm:$0xff] %v13248_v21  ;;  %15100 = vst [vmem:[#allocation22_spill] sm:$0xff] %v13250_v56 }
 0x483   :  { %5534 = vmatprep.subr.bf16.mxu0 %v13159_v46  ;;  %6018 = vmatprep.subr.bf16.mxu1 %v13162_v9  ;;  %15101 = vst [vmem:[#allocation23_spill] sm:$0xff] %v13252_v17 }
 0x486   :  { %5535 = vmatpush1.bf16.msra.mxu0 %v13165_v48  ;;  %6019 = vmatpush1.bf16.msra.mxu1 %v13169_v50 }
 0x487   :  { %5536 = vmatprep.subr.bf16.mxu0 %v13171_v58  ;;  %6020 = vmatprep.subr.bf16.mxu1 %v13174_v63 }
 0x48a   :  { %5537 = vmatpush1.bf16.msra.mxu0 %v13177_v62  ;;  %6021 = vmatpush1.bf16.msra.mxu1 %v13181_v52 }
 0x48b   :  { %5538 = vmatprep.subr.bf16.mxu0 %v13183_v47  ;;  %6022 = vmatprep.subr.bf16.mxu1 %v13186_v41 }
 0x48e   :  { %5539 = vmatpush1.bf16.msra.mxu0 %v13189_v24  ;;  %6023 = vmatpush1.bf16.msra.mxu1 %v13193_v53 }
 0x48f   :  { %5540 = vmatprep.subr.bf16.mxu0 %v13195_v42  ;;  %6024 = vmatprep.subr.bf16.mxu1 %v13198_v13 }
 0x492   :  { %5541 = vmatpush1.bf16.msra.mxu0 %v13201_v5  ;;  %6025 = vmatpush1.bf16.msra.mxu1 %v13205_v18 }
 0x493   :  { %5542 = vmatprep.subr.bf16.mxu0 %v13207_v54  ;;  %6026 = vmatprep.subr.bf16.mxu1 %v13210_v3 }
 0x496   :  { %5543 = vmatpush1.bf16.msra.mxu0 %v13213_v31  ;;  %6027 = vmatpush1.bf16.msra.mxu1 %v13217_v23 }
 0x497   :  { %5544 = vmatprep.subr.bf16.mxu0 %v13219_v33  ;;  %6028 = vmatprep.subr.bf16.mxu1 %v13222_v19  ;;  %v5852_v33 = vld [vmem:[#allocation5 + $0x3c8] sm:$0xff] }
 0x49a   :  { %5545 = vmatpush1.bf16.msra.mxu0 %v13225_v20  ;;  %6029 = vmatpush1.bf16.msra.mxu1 %v13229_v60  ;;  %v5367_v60 = vld [vmem:[#allocation5 + $0x3a0] sm:$0xff] }
 0x49b   :  { %5546 = vmatprep.subr.bf16.mxu0 %v13234_v0  ;;  %6030 = vmatprep.subr.bf16.mxu1 %v13240_v38  ;;  %v5842_v38 = vld [vmem:[#allocation5 + $0x288] sm:$0xff]  ;;  %v5368_v20 = vld [vmem:[#allocation5 + $0x3c0] sm:$0xff] }
 0x49c   :  { %v5843_v0 = vld [vmem:[#allocation5 + $0x2a8] sm:$0xff] }
 0x49d   :  { %v13262_v25 = vcombine.low %v5842_v38, %v5843_v0  ;;  %v13264_v29 = vcombine.high %v5842_v38, %v5843_v0  ;;  %v5362_v38 = vld [vmem:[#allocation5 + $0x300] sm:$0xff] }
 0x49e   :  { %5547 = vmatpush1.bf16.msra.mxu0 %v13236_v43  ;;  %6031 = vmatpush1.bf16.msra.mxu1 %v13238_v51  ;;  %v5359_v43 = vld [vmem:[#allocation5 + $0x2a0] sm:$0xff] }
 0x49f   :  { %5548 = vmatprep.subr.bf16.mxu0 %v13246_v45  ;;  %6032 = vmatprep.subr.bf16.mxu1 %v13252_v17  ;;  %v13258_v51 = vcombine.high %v5358_v1, %v5359_v43  ;;  %v13260_v14 = vcombine.low %v5358_v1, %v5359_v43  ;;  %15104 = vst [vmem:[#allocation26_spill] sm:$0xff] %v13262_v25  ;;  %15105 = vst [vmem:[#allocation27_spill] sm:$0xff] %v13264_v29  ;;  %v5844_v17 = vld [vmem:[#allocation5 + $0x2c8] sm:$0xff] }
 0x4a0   :  { %v5845_v45 = vld [vmem:[#allocation5 + $0x2e8] sm:$0xff] }
 0x4a1   :  { %15102 = vst [vmem:[#allocation25_spill] sm:$0xff] %v13258_v51  ;;  %15103 = vst [vmem:[#allocation28_spill] sm:$0xff] %v13260_v14  ;;  %v13274_v1 = vcombine.low %v5844_v17, %v5845_v45  ;;  %v13276_v0 = vcombine.high %v5844_v17, %v5845_v45  ;;  %v5364_v17 = vld [vmem:[#allocation5 + $0x340] sm:$0xff] }
 0x4a2   :  { %5549 = vmatpush1.bf16.msra.mxu0 %v13248_v21  ;;  %6033 = vmatpush1.bf16.msra.mxu1 %v13250_v56  ;;  %v5361_v21 = vld [vmem:[#allocation5 + $0x2e0] sm:$0xff] }
 0x4a3   :  { %5550 = vmatprep.subr.bf16.mxu0 %v13258_v51  ;;  %6034 = vmatprep.subr.bf16.mxu1 %v13264_v29  ;;  %v13270_v56 = vcombine.high %v5360_v30, %v5361_v21  ;;  %v13272_v43 = vcombine.low %v5360_v30, %v5361_v21  ;;  %15108 = vst [vmem:[#allocation30_spill] sm:$0xff] %v13274_v1  ;;  %15109 = vst [vmem:[#allocation31_spill] sm:$0xff] %v13276_v0  ;;  %v5846_v29 = vld [vmem:[#allocation5 + $0x308] sm:$0xff] }
 0x4a4   :  { %v5847_v51 = vld [vmem:[#allocation5 + $0x328] sm:$0xff] }
 0x4a5   :  { %15106 = vst [vmem:[#allocation29_spill] sm:$0xff] %v13270_v56  ;;  %15107 = vst [vmem:[#allocation32_spill] sm:$0xff] %v13272_v43  ;;  %v13286_v30 = vcombine.low %v5846_v29, %v5847_v51  ;;  %v13288_v45 = vcombine.high %v5846_v29, %v5847_v51 }
 0x4a6   :  { %5551 = vmatpush1.bf16.msra.mxu0 %v13260_v14  ;;  %6035 = vmatpush1.bf16.msra.mxu1 %v13262_v25  ;;  %v5363_v14 = vld [vmem:[#allocation5 + $0x320] sm:$0xff] }
 0x4a7   :  { %5552 = vmatprep.subr.bf16.mxu0 %v13270_v56  ;;  %6036 = vmatprep.subr.bf16.mxu1 %v13276_v0  ;;  %v13282_v25 = vcombine.high %v5362_v38, %v5363_v14  ;;  %v13284_v21 = vcombine.low %v5362_v38, %v5363_v14  ;;  %15112 = vst [vmem:[#allocation34_spill] sm:$0xff] %v13286_v30  ;;  %15113 = vst [vmem:[#allocation35_spill] sm:$0xff] %v13288_v45  ;;  %v5848_v0 = vld [vmem:[#allocation5 + $0x348] sm:$0xff]  ;;  %v5366_v38 = vld [vmem:[#allocation5 + $0x380] sm:$0xff] }
 0x4a8   :  { %v5849_v14 = vld [vmem:[#allocation5 + $0x368] sm:$0xff] }
 0x4a9   :  { %15110 = vst [vmem:[#allocation33_spill] sm:$0xff] %v13282_v25  ;;  %15111 = vst [vmem:[#allocation36_spill] sm:$0xff] %v13284_v21  ;;  %v13298_v51 = vcombine.low %v5848_v0, %v5849_v14  ;;  %v13300_v29 = vcombine.high %v5848_v0, %v5849_v14 }
 0x4aa   :  { %5553 = vmatpush1.bf16.msra.mxu0 %v13272_v43  ;;  %6037 = vmatpush1.bf16.msra.mxu1 %v13274_v1  ;;  %v5365_v43 = vld [vmem:[#allocation5 + $0x360] sm:$0xff] }
 0x4ab   :  { %5554 = vmatprep.subr.bf16.mxu0 %v13282_v25  ;;  %6038 = vmatprep.subr.bf16.mxu1 %v13288_v45  ;;  %v13294_v1 = vcombine.low %v5364_v17, %v5365_v43  ;;  %v13296_v56 = vcombine.high %v5364_v17, %v5365_v43  ;;  %15116 = vst [vmem:[#allocation37_spill] sm:$0xff] %v13298_v51  ;;  %15117 = vst [vmem:[#allocation39_spill] sm:$0xff] %v13300_v29  ;;  %v5850_v45 = vld [vmem:[#allocation5 + $0x388] sm:$0xff] }
 0x4ac   :  { %v13302_v25 = vcombine.high %v5366_v38, %v5367_v60  ;;  %v5853_v43 = vld [vmem:[#allocation5 + $0x3e8] sm:$0xff]  ;;  %v13309_v17 = vcombine.low %v5366_v38, %v5367_v60  ;;  %v6075_v38 = vld [vmem:[#allocation5 + $0x18] sm:$0xff] }
 0x4ad   :  { %15114 = vst [vmem:[#allocation38_spill] sm:$0xff] %v13294_v1  ;;  %15115 = vst [vmem:[#allocation40_spill] sm:$0xff] %v13296_v56  ;;  %v13325_v60 = vcombine.low %v5852_v33, %v5853_v43 }
 0x4ae   :  { %5555 = vmatpush1.bf16.msra.mxu0 %v13284_v21  ;;  %6039 = vmatpush1.bf16.msra.mxu1 %v13286_v30  ;;  %15118 = vst [vmem:[#allocation41_spill] sm:$0xff] %v13302_v25  ;;  %v5851_v21 = vld [vmem:[#allocation5 + $0x3a8] sm:$0xff]  ;;  %v5369_v30 = vld [vmem:[#allocation5 + $0x3e0] sm:$0xff]  ;;  %15120 = vst [vmem:[#allocation43_spill] sm:$0xff] %v13309_v17 }
 0x4af   :  { %5556 = vmatprep.subr.bf16.mxu0 %v13296_v56  ;;  %v13305_v19 = vcombine.high %v5850_v45, %v5851_v21  ;;  %6040 = vmatprep.subr.bf16.mxu1 %v13300_v29  ;;  %v13313_v0 = vcombine.low %v5850_v45, %v5851_v21  ;;  %v13315_v14 = vcombine.high %v5368_v20, %v5369_v30  ;;  %v5573_v21 = vld [vmem:[#allocation5 + $0x10] sm:$0xff] }
 0x4b0   :  { %v13318_v56 = vcombine.high %v5852_v33, %v5853_v43  ;;  %v13321_v23 = vcombine.low %v5368_v20, %v5369_v30  ;;  %15125 = vst [vmem:[#allocation48_spill] sm:$0xff] %v13325_v60  ;;  %v5574_v45 = vld [vmem:[#allocation5 + $0x30] sm:$0xff] }
 0x4b1   :  { %15119 = vst [vmem:[#allocation42_spill] sm:$0xff] %v13305_v19  ;;  %15121 = vst [vmem:[#allocation44_spill] sm:$0xff] %v13313_v0  ;;  %v13332_v20 = vcombine.low %v5573_v21, %v5574_v45 }
 0x4b2   :  { %5557 = vmatpush1.bf16.msra.mxu0 %v13294_v1  ;;  %6041 = vmatpush1.bf16.msra.mxu1 %v13298_v51  ;;  %15122 = vst [vmem:[#allocation45_spill] sm:$0xff] %v13315_v14  ;;  %15123 = vst [vmem:[#allocation46_spill] sm:$0xff] %v13318_v56 }
 0x4b3   :  { %5558 = vmatprep.subr.bf16.mxu0 %v13302_v25  ;;  %6042 = vmatprep.subr.bf16.mxu1 %v13305_v19  ;;  %15124 = vst [vmem:[#allocation47_spill] sm:$0xff] %v13321_v23  ;;  %v13330_v19 = vcombine.high %v5573_v21, %v5574_v45  ;;  %15127 = vst [vmem:[#allocation52_spill] sm:$0xff] %v13332_v20 }
 0x4b5   :  { %15126 = vst [vmem:[#allocation49_spill] sm:$0xff] %v13330_v19 }
 0x4b6   :  { %5559 = vmatpush1.bf16.msra.mxu0 %v13309_v17  ;;  %6043 = vmatpush1.bf16.msra.mxu1 %v13313_v0  ;;  %v6076_v17 = vld [vmem:[#allocation5 + $0x38] sm:$0xff] }
 0x4b7   :  { %5560 = vmatprep.subr.bf16.mxu0 %v13315_v14  ;;  %6044 = vmatprep.subr.bf16.mxu1 %v13318_v56  ;;  %v13334_v30 = vcombine.low %v6075_v38, %v6076_v17  ;;  %v13336_v0 = vcombine.high %v6075_v38, %v6076_v17 }
 0x4b9   :  { %15128 = vst [vmem:[#allocation50_spill] sm:$0xff] %v13334_v30  ;;  %15129 = vst [vmem:[#allocation51_spill] sm:$0xff] %v13336_v0 }
 0x4ba   :  { %5561 = vmatpush1.bf16.msra.mxu0 %v13321_v23  ;;  %6045 = vmatpush1.bf16.msra.mxu1 %v13325_v60 }
 0x4bb   :  { %5765 = vmatprep.subr.bf16.mxu0 %v13330_v19  ;;  %6267 = vmatprep.subr.bf16.mxu1 %v13336_v0 }
 0x500   :  { %v4350_v33 = vpop.f32.mrb[24].mxu0  ;;  %v4834_v43 = vpop.f32.mrb[24].mxu1 }
 0x501   :  { %v4352_v23 = vpop.f32.mrb[25].mxu0  ;;  %v4836_v56 = vpop.f32.mrb[25].mxu1  ;;  %v11249_v1 = vadd.f32 %v4350_v33, %v15036_v26  ;;  %v11251_v21 = vadd.f32 %v4834_v43, %v12388_v35 }
 0x502   :  { %v4354_v14 = vpop.f32.mrb[26].mxu0  ;;  %v4838_v25 = vpop.f32.mrb[26].mxu1  ;;  %v11250_v45 = vadd.f32 %v4352_v23, %v12390_v37  ;;  %v11252_v17 = vadd.f32 %v4836_v56, %v12392_v4 }
 0x503   :  { %v4355_v60 = vpop.f32.mrb[27].mxu0  ;;  %v4839_v51 = vpop.f32.mrb[27].mxu1  ;;  %v10510_v38 = vmul.f32 -1.442695, %v11249_v1  ;;  %v10544_v19 = vmul.f32 -1.442695, %v11251_v21 }
 0x504   :  { %v10511_v29 = vmul.f32 -1.442695, %v11250_v45  ;;  %v10545_v0 = vmul.f32 -1.442695, %v11252_v17 }
 0x505   :  { %11534 = vpow2.f32 %v10510_v38 }
 0x506   :  { %11536 = vpow2.f32 %v10544_v19 }
 0x507   :  { %11538 = vpow2.f32 %v10511_v29 }
 0x508   :  { %11540 = vpow2.f32 %v10545_v0 }
 0x50f   :  { %v11535_v14 = vpop.eup %11534 }
 0x510   :  { %v11537_v25 = vpop.eup %11536  ;;  %v4600_v31 = vadd.f32 1.0, %v11535_v14 }
 0x511   :  { %v11539_v60 = vpop.eup %11538  ;;  %v4849_v33 = vadd.f32 1.0, %v11537_v25 }
 0x512   :  { %v11541_v51 = vpop.eup %11540  ;;  %v4601_v26 = vadd.f32 1.0, %v11539_v60  ;;  %11542 = vrcp.f32 %v4600_v31 }
 0x513   :  { %v4850_v43 = vadd.f32 1.0, %v11541_v51  ;;  %11544 = vrcp.f32 %v4849_v33 }
 0x514   :  { %11546 = vrcp.f32 %v4601_v26 }
 0x515   :  { %11548 = vrcp.f32 %v4850_v43 }
 0x51c   :  { %v11543_v26 = vpop.eup %11542 }
 0x51d   :  { %v11545_v51 = vpop.eup %11544 }
 0x51e   :  { %v11547_v33 = vpop.eup %11546 }
 0x540   :  { %v4585_v23 = vpop.f32.mrb[28].mxu0  ;;  %v5087_v56 = vpop.f32.mrb[28].mxu1 }
 0x541   :  { %v11253_v1 = vadd.f32 %v4585_v23, %v12398_v49  ;;  %v11255_v21 = vadd.f32 %v5087_v56, %v12400_v55  ;;  %v4587_v19 = vpop.f32.mrb[29].mxu0  ;;  %v5089_v29 = vpop.f32.mrb[29].mxu1 }
 0x542   :  { %v11254_v0 = vadd.f32 %v4587_v19, %v15037_v34  ;;  %v11256_v45 = vadd.f32 %v5089_v29, %v12404_v57  ;;  %v4589_v17 = vpop.f32.mrb[30].mxu0  ;;  %v5091_v38 = vpop.f32.mrb[30].mxu1  ;;  %v4855_v19 = vmul.f32 %v11545_v51, %v13028_v44 }
 0x543   :  { %11550 = vtanh.f32 %v11253_v1  ;;  %v10578_v14 = vmul.f32 -1.442695, %v11255_v21  ;;  %v4590_v31 = vpop.f32.mrb[31].mxu0  ;;  %v5092_v25 = vpop.f32.mrb[31].mxu1 }
 0x544   :  { %11552 = vtanh.f32 %v11254_v0  ;;  %v10579_v60 = vmul.f32 -1.442695, %v11256_v45  ;;  %v11549_v23 = vpop.eup %11548 }
 0x545   :  { %11554 = vpow2.f32 %v10578_v14  ;;  %v4856_v17 = vmul.f32 %v11549_v23, %v13030_v22  ;;  %v6077_v23 = vld [vmem:[#allocation5 + $0x58] sm:$0xff] }
 0x546   :  { %11556 = vpow2.f32 %v10579_v60 }
 0x54d   :  { %v11551_v56 = vpop.eup %11550 }
 0x54e   :  { %v11553_v43 = vpop.eup %11552  ;;  %v4857_v34 = vmul.f32 %v11551_v56, %v11543_v26  ;;  %v6078_v56 = vld [vmem:[#allocation5 + $0x78] sm:$0xff] }
 0x54f   :  { %v11555_v29 = vpop.eup %11554  ;;  %v4858_v1 = vmul.f32 %v11553_v43, %v11547_v33  ;;  %v5576_v33 = vld [vmem:[#allocation5 + $0x70] sm:$0xff] }
 0x550   :  { %v11557_v21 = vpop.eup %11556  ;;  %v13350_v38 = vadd.f32 %v4857_v34, %v4855_v19  ;;  %v5102_v0 = vadd.f32 1.0, %v11555_v29  ;;  %v5575_v34 = vld [vmem:[#allocation5 + $0x50] sm:$0xff] }
 0x551   :  { %v13352_v45 = vadd.f32 %v4858_v1, %v4856_v17  ;;  %v5103_v14 = vadd.f32 1.0, %v11557_v21  ;;  %v5577_v29 = vld [vmem:[#allocation5 + $0x90] sm:$0xff]  ;;  %v13359_v1 = vcombine.high %v5575_v34, %v5576_v33  ;;  %v13361_v21 = vcombine.high %v6077_v23, %v6078_v56 }
 0x552   :  { %11558 = vtanh.f32 %v13350_v38 }
 0x553   :  { %11560 = vrcp.f32 %v5102_v0  ;;  %15130 = vst [vmem:[#allocation53_spill] sm:$0xff] %v13359_v1  ;;  %15131 = vst [vmem:[#allocation54_spill] sm:$0xff] %v13361_v21  ;;  %v5578_v0 = vld [vmem:[#allocation5 + $0xb0] sm:$0xff] }
 0x554   :  { %11562 = vtanh.f32 %v13352_v45 }
 0x555   :  { %11564 = vrcp.f32 %v5103_v14  ;;  %v6079_v14 = vld [vmem:[#allocation5 + $0x98] sm:$0xff] }
 0x55c   :  { %v11559_v31 = vpop.eup %11558 }
 0x55d   :  { %v11561_v44 = vpop.eup %11560 }
 0x55e   :  { %v11563_v25 = vpop.eup %11562  ;;  %v5110_v60 = vmul.f32 %v11561_v44, %v11559_v31  ;;  %v6080_v31 = vld [vmem:[#allocation5 + $0xb8] sm:$0xff]  ;;  %v13367_v44 = vcombine.low %v5575_v34, %v5576_v33  ;;  %v13379_v34 = vcombine.low %v5577_v29, %v5578_v0 }
 0x55f   :  { %v11565_v26 = vpop.eup %11564  ;;  %v13381_v33 = vcombine.low %v6079_v14, %v6080_v31 }
 0x560   :  { %v5111_v22 = vmul.f32 %v11565_v26, %v11563_v25  ;;  %v13356_v51 = vpack.c.bf16 %v5110_v60, %v5110_v60  ;;  %15132 = vst [vmem:[#allocation55_spill] sm:$0xff] %v13367_v44  ;;  %v13369_v25 = vcombine.low %v6077_v23, %v6078_v56  ;;  %v13371_v60 = vcombine.high %v5577_v29, %v5578_v0 }
 0x561   :  { %v13373_v26 = vcombine.high %v6079_v14, %v6080_v31  ;;  %15136 = vst [vmem:[#allocation59_spill] sm:$0xff] %v13379_v34  ;;  %15137 = vst [vmem:[#allocation60_spill] sm:$0xff] %v13381_v33 }
 0x562   :  { %v5113_v43 = vpack.c.bf16 %v5111_v22, %v5111_v22  ;;  %v5116_v19 = vrot.slane %v13356_v51, 4  ;;  %15133 = vst [vmem:[#allocation56_spill] sm:$0xff] %v13369_v25  ;;  %15134 = vst [vmem:[#allocation57_spill] sm:$0xff] %v13371_v60  ;;  %v5579_v22 = vld [vmem:[#allocation5 + $0xd0] sm:$0xff] }
 0x563   :  { %15135 = vst [vmem:[#allocation58_spill] sm:$0xff] %v13373_v26 }
 0x564   :  { %v5117_v17 = vrot.slane %v5113_v43, 4  ;;  %5562 = vmatprep.mubr.bf16.mxu0 %v5113_v43  ;;  %6046 = vmatprep.mubr.bf16.mxu1 %v5113_v43  ;;  %5120 = vst [vmem:[#allocation2 + $0x10] sm:$0xf0] %v5116_v19  ;;  %v5580_v19 = vld [vmem:[#allocation5 + $0xf0] sm:$0xff] }
 0x565   :  { %5563 = vmatmul.mubr.bf16.vlgmr.msra.gmra.mrb[32].mxu0 %v13356_v51  ;;  %6047 = vmatmul.mubr.bf16.vlgmr.msra.gmra.mrb[32].mxu1 %v13356_v51  ;;  %v13385_v23 = vcombine.high %v5579_v22, %v5580_v19  ;;  %v13391_v29 = vcombine.low %v5579_v22, %v5580_v19 }
 0x566   :  { %5121 = vst [vmem:[#allocation2 + $0x18] sm:$0xf0] %v5117_v17  ;;  %5766 = vmatpush1.bf16.msra.mxu0 %v13332_v20  ;;  %6268 = vmatpush1.bf16.msra.mxu1 %v13334_v30  ;;  %v6081_v17 = vld [vmem:[#allocation5 + $0xd8] sm:$0xff] }
 0x567   :  { %5797 = vmatprep.mubr.bf16.mxu0 %v5113_v43  ;;  %6299 = vmatprep.mubr.bf16.mxu1 %v5113_v43  ;;  %v6082_v20 = vld [vmem:[#allocation5 + $0xf8] sm:$0xff]  ;;  %15138 = vst [vmem:[#allocation61_spill] sm:$0xff] %v13385_v23  ;;  %v5581_v43 = vld [vmem:[#allocation5 + $0x110] sm:$0xff]  ;;  %15140 = vst [vmem:[#allocation63_spill] sm:$0xff] %v13391_v29 }
 0x568   :  { %5767 = vmatprep.subr.bf16.mxu0 %v13359_v1  ;;  %6269 = vmatprep.subr.bf16.mxu1 %v13361_v21  ;;  %v13387_v56 = vcombine.high %v6081_v17, %v6082_v20  ;;  %v5582_v21 = vld [vmem:[#allocation5 + $0x130] sm:$0xff]  ;;  %v6083_v1 = vld [vmem:[#allocation5 + $0x118] sm:$0xff]  ;;  %v13393_v0 = vcombine.low %v6081_v17, %v6082_v20 }
 0x569   :  { %v6084_v30 = vld [vmem:[#allocation5 + $0x138] sm:$0xff]  ;;  %v13397_v14 = vcombine.high %v5581_v43, %v5582_v21  ;;  %v13403_v22 = vcombine.low %v5581_v43, %v5582_v21 }
 0x56a   :  { %5768 = vmatpush1.bf16.msra.mxu0 %v13367_v44  ;;  %6270 = vmatpush1.bf16.msra.mxu1 %v13369_v25  ;;  %15139 = vst [vmem:[#allocation62_spill] sm:$0xff] %v13387_v56  ;;  %15141 = vst [vmem:[#allocation64_spill] sm:$0xff] %v13393_v0  ;;  %v13399_v31 = vcombine.high %v6083_v1, %v6084_v30  ;;  %v6085_v25 = vld [vmem:[#allocation5 + $0x158] sm:$0xff]  ;;  %v13405_v20 = vcombine.low %v6083_v1, %v6084_v30 }
 0x56b   :  { %5769 = vmatprep.subr.bf16.mxu0 %v13371_v60  ;;  %6271 = vmatprep.subr.bf16.mxu1 %v13373_v26  ;;  %15142 = vst [vmem:[#allocation65_spill] sm:$0xff] %v13397_v14  ;;  %v5583_v26 = vld [vmem:[#allocation5 + $0x150] sm:$0xff]  ;;  %v6086_v44 = vld [vmem:[#allocation5 + $0x178] sm:$0xff]  ;;  %15144 = vst [vmem:[#allocation67_spill] sm:$0xff] %v13403_v22 }
 0x56c   :  { %15143 = vst [vmem:[#allocation66_spill] sm:$0xff] %v13399_v31  ;;  %v5584_v60 = vld [vmem:[#allocation5 + $0x170] sm:$0xff]  ;;  %15145 = vst [vmem:[#allocation68_spill] sm:$0xff] %v13405_v20  ;;  %v13411_v17 = vcombine.high %v6085_v25, %v6086_v44  ;;  %v13417_v30 = vcombine.low %v6085_v25, %v6086_v44 }
 0x56d   :  { %v13409_v19 = vcombine.high %v5583_v26, %v5584_v60  ;;  %v13415_v21 = vcombine.low %v5583_v26, %v5584_v60 }
 0x56e   :  { %5770 = vmatpush1.bf16.msra.mxu0 %v13379_v34  ;;  %6272 = vmatpush1.bf16.msra.mxu1 %v13381_v33  ;;  %15147 = vst [vmem:[#allocation70_spill] sm:$0xff] %v13411_v17  ;;  %v6087_v33 = vld [vmem:[#allocation5 + $0x198] sm:$0xff]  ;;  %15149 = vst [vmem:[#allocation72_spill] sm:$0xff] %v13417_v30 }
 0x56f   :  { %5771 = vmatprep.subr.bf16.mxu0 %v13385_v23  ;;  %6273 = vmatprep.subr.bf16.mxu1 %v13387_v56  ;;  %15146 = vst [vmem:[#allocation69_spill] sm:$0xff] %v13409_v19  ;;  %v5585_v56 = vld [vmem:[#allocation5 + $0x190] sm:$0xff]  ;;  %v6088_v34 = vld [vmem:[#allocation5 + $0x1b8] sm:$0xff]  ;;  %15148 = vst [vmem:[#allocation71_spill] sm:$0xff] %v13415_v21 }
 0x570   :  { %v5586_v23 = vld [vmem:[#allocation5 + $0x1b0] sm:$0xff]  ;;  %v13423_v43 = vcombine.high %v6087_v33, %v6088_v34  ;;  %v13429_v44 = vcombine.low %v6087_v33, %v6088_v34 }
 0x571   :  { %v13421_v1 = vcombine.high %v5585_v56, %v5586_v23  ;;  %v13427_v60 = vcombine.low %v5585_v56, %v5586_v23 }
 0x572   :  { %5772 = vmatpush1.bf16.msra.mxu0 %v13391_v29  ;;  %6274 = vmatpush1.bf16.msra.mxu1 %v13393_v0  ;;  %15151 = vst [vmem:[#allocation74_spill] sm:$0xff] %v13423_v43  ;;  %v6089_v0 = vld [vmem:[#allocation5 + $0x1d8] sm:$0xff]  ;;  %15153 = vst [vmem:[#allocation76_spill] sm:$0xff] %v13429_v44 }
 0x573   :  { %5773 = vmatprep.subr.bf16.mxu0 %v13397_v14  ;;  %6275 = vmatprep.subr.bf16.mxu1 %v13399_v31  ;;  %15150 = vst [vmem:[#allocation73_spill] sm:$0xff] %v13421_v1  ;;  %v5587_v31 = vld [vmem:[#allocation5 + $0x1d0] sm:$0xff]  ;;  %v6090_v29 = vld [vmem:[#allocation5 + $0x1f8] sm:$0xff]  ;;  %15152 = vst [vmem:[#allocation75_spill] sm:$0xff] %v13427_v60 }
 0x574   :  { %v5588_v14 = vld [vmem:[#allocation5 + $0x1f0] sm:$0xff]  ;;  %v13435_v26 = vcombine.high %v6089_v0, %v6090_v29  ;;  %v13441_v34 = vcombine.low %v6089_v0, %v6090_v29 }
 0x575   :  { %v13433_v25 = vcombine.high %v5587_v31, %v5588_v14  ;;  %v13439_v23 = vcombine.low %v5587_v31, %v5588_v14 }
 0x576   :  { %5774 = vmatpush1.bf16.msra.mxu0 %v13403_v22  ;;  %6276 = vmatpush1.bf16.msra.mxu1 %v13405_v20  ;;  %15155 = vst [vmem:[#allocation78_spill] sm:$0xff] %v13435_v26  ;;  %v6091_v20 = vld [vmem:[#allocation5 + $0x218] sm:$0xff]  ;;  %15157 = vst [vmem:[#allocation80_spill] sm:$0xff] %v13441_v34 }
 0x577   :  { %5775 = vmatprep.subr.bf16.mxu0 %v13409_v19  ;;  %6277 = vmatprep.subr.bf16.mxu1 %v13411_v17  ;;  %15154 = vst [vmem:[#allocation77_spill] sm:$0xff] %v13433_v25  ;;  %v5589_v17 = vld [vmem:[#allocation5 + $0x210] sm:$0xff]  ;;  %v6092_v22 = vld [vmem:[#allocation5 + $0x238] sm:$0xff]  ;;  %15156 = vst [vmem:[#allocation79_spill] sm:$0xff] %v13439_v23 }
 0x578   :  { %v5590_v19 = vld [vmem:[#allocation5 + $0x230] sm:$0xff]  ;;  %v13447_v56 = vcombine.high %v6091_v20, %v6092_v22  ;;  %v13453_v29 = vcombine.low %v6091_v20, %v6092_v22 }
 0x579   :  { %v13445_v33 = vcombine.high %v5589_v17, %v5590_v19  ;;  %v13451_v14 = vcombine.low %v5589_v17, %v5590_v19 }
 0x57a   :  { %5776 = vmatpush1.bf16.msra.mxu0 %v13415_v21  ;;  %6278 = vmatpush1.bf16.msra.mxu1 %v13417_v30  ;;  %15159 = vst [vmem:[#allocation82_spill] sm:$0xff] %v13447_v56  ;;  %v6093_v30 = vld [vmem:[#allocation5 + $0x258] sm:$0xff]  ;;  %15161 = vst [vmem:[#allocation84_spill] sm:$0xff] %v13453_v29 }
 0x57b   :  { %5777 = vmatprep.subr.bf16.mxu0 %v13421_v1  ;;  %6279 = vmatprep.subr.bf16.mxu1 %v13423_v43  ;;  %15158 = vst [vmem:[#allocation81_spill] sm:$0xff] %v13445_v33  ;;  %v5591_v43 = vld [vmem:[#allocation5 + $0x250] sm:$0xff]  ;;  %v6094_v21 = vld [vmem:[#allocation5 + $0x278] sm:$0xff]  ;;  %15160 = vst [vmem:[#allocation83_spill] sm:$0xff] %v13451_v14 }
 0x57c   :  { %v5592_v1 = vld [vmem:[#allocation5 + $0x270] sm:$0xff]  ;;  %v13459_v31 = vcombine.high %v6093_v30, %v6094_v21  ;;  %v13465_v22 = vcombine.low %v6093_v30, %v6094_v21 }
 0x57d   :  { %v13457_v0 = vcombine.high %v5591_v43, %v5592_v1  ;;  %v13463_v19 = vcombine.low %v5591_v43, %v5592_v1 }
 0x57e   :  { %5778 = vmatpush1.bf16.msra.mxu0 %v13427_v60  ;;  %6280 = vmatpush1.bf16.msra.mxu1 %v13429_v44  ;;  %15163 = vst [vmem:[#allocation86_spill] sm:$0xff] %v13459_v31  ;;  %v6095_v44 = vld [vmem:[#allocation5 + $0x298] sm:$0xff]  ;;  %15165 = vst [vmem:[#allocation88_spill] sm:$0xff] %v13465_v22 }
 0x57f   :  { %5779 = vmatprep.subr.bf16.mxu0 %v13433_v25  ;;  %6281 = vmatprep.subr.bf16.mxu1 %v13435_v26  ;;  %15162 = vst [vmem:[#allocation85_spill] sm:$0xff] %v13457_v0  ;;  %v5593_v26 = vld [vmem:[#allocation5 + $0x290] sm:$0xff]  ;;  %v6096_v60 = vld [vmem:[#allocation5 + $0x2b8] sm:$0xff]  ;;  %15164 = vst [vmem:[#allocation87_spill] sm:$0xff] %v13463_v19 }
 0x580   :  { %v5594_v25 = vld [vmem:[#allocation5 + $0x2b0] sm:$0xff]  ;;  %v13471_v17 = vcombine.high %v6095_v44, %v6096_v60  ;;  %v13477_v21 = vcombine.low %v6095_v44, %v6096_v60 }
 0x581   :  { %v13469_v20 = vcombine.high %v5593_v26, %v5594_v25  ;;  %v13475_v1 = vcombine.low %v5593_v26, %v5594_v25 }
 0x582   :  { %5780 = vmatpush1.bf16.msra.mxu0 %v13439_v23  ;;  %6282 = vmatpush1.bf16.msra.mxu1 %v13441_v34  ;;  %15167 = vst [vmem:[#allocation90_spill] sm:$0xff] %v13471_v17  ;;  %v6097_v34 = vld [vmem:[#allocation5 + $0x2d8] sm:$0xff]  ;;  %15169 = vst [vmem:[#allocation92_spill] sm:$0xff] %v13477_v21 }
 0x583   :  { %5781 = vmatprep.subr.bf16.mxu0 %v13445_v33  ;;  %6283 = vmatprep.subr.bf16.mxu1 %v13447_v56  ;;  %15166 = vst [vmem:[#allocation89_spill] sm:$0xff] %v13469_v20  ;;  %v5595_v56 = vld [vmem:[#allocation5 + $0x2d0] sm:$0xff]  ;;  %v6098_v23 = vld [vmem:[#allocation5 + $0x2f8] sm:$0xff]  ;;  %15168 = vst [vmem:[#allocation91_spill] sm:$0xff] %v13475_v1 }
 0x584   :  { %v5596_v33 = vld [vmem:[#allocation5 + $0x2f0] sm:$0xff]  ;;  %v13483_v43 = vcombine.high %v6097_v34, %v6098_v23  ;;  %v13489_v60 = vcombine.low %v6097_v34, %v6098_v23 }
 0x585   :  { %v13481_v30 = vcombine.high %v5595_v56, %v5596_v33  ;;  %v13487_v25 = vcombine.low %v5595_v56, %v5596_v33 }
 0x586   :  { %5782 = vmatpush1.bf16.msra.mxu0 %v13451_v14  ;;  %6284 = vmatpush1.bf16.msra.mxu1 %v13453_v29  ;;  %15171 = vst [vmem:[#allocation94_spill] sm:$0xff] %v13483_v43  ;;  %v6099_v29 = vld [vmem:[#allocation5 + $0x318] sm:$0xff]  ;;  %15173 = vst [vmem:[#allocation96_spill] sm:$0xff] %v13489_v60 }
 0x587   :  { %5783 = vmatprep.subr.bf16.mxu0 %v13457_v0  ;;  %6285 = vmatprep.subr.bf16.mxu1 %v13459_v31  ;;  %15170 = vst [vmem:[#allocation93_spill] sm:$0xff] %v13481_v30  ;;  %v5597_v31 = vld [vmem:[#allocation5 + $0x310] sm:$0xff]  ;;  %v6100_v14 = vld [vmem:[#allocation5 + $0x338] sm:$0xff]  ;;  %15172 = vst [vmem:[#allocation95_spill] sm:$0xff] %v13487_v25 }
 0x588   :  { %v5598_v0 = vld [vmem:[#allocation5 + $0x330] sm:$0xff]  ;;  %v13495_v26 = vcombine.high %v6099_v29, %v6100_v14  ;;  %v13501_v23 = vcombine.low %v6099_v29, %v6100_v14 }
 0x589   :  { %v13493_v44 = vcombine.high %v5597_v31, %v5598_v0  ;;  %v13499_v33 = vcombine.low %v5597_v31, %v5598_v0 }
 0x58a   :  { %5784 = vmatpush1.bf16.msra.mxu0 %v13463_v19  ;;  %6286 = vmatpush1.bf16.msra.mxu1 %v13465_v22  ;;  %15175 = vst [vmem:[#allocation98_spill] sm:$0xff] %v13495_v26  ;;  %v6101_v22 = vld [vmem:[#allocation5 + $0x358] sm:$0xff] }
 0x58b   :  { %5785 = vmatprep.subr.bf16.mxu0 %v13469_v20  ;;  %6287 = vmatprep.subr.bf16.mxu1 %v13471_v17  ;;  %15174 = vst [vmem:[#allocation97_spill] sm:$0xff] %v13493_v44  ;;  %v5599_v17 = vld [vmem:[#allocation5 + $0x350] sm:$0xff]  ;;  %v6102_v19 = vld [vmem:[#allocation5 + $0x378] sm:$0xff] }
 0x58c   :  { %v5600_v20 = vld [vmem:[#allocation5 + $0x370] sm:$0xff]  ;;  %v13507_v56 = vcombine.high %v6101_v22, %v6102_v19  ;;  %v13513_v14 = vcombine.low %v6101_v22, %v6102_v19 }
 0x58d   :  { %v13505_v34 = vcombine.high %v5599_v17, %v5600_v20  ;;  %v13511_v0 = vcombine.low %v5599_v17, %v5600_v20 }
 0x58e   :  { %5786 = vmatpush1.bf16.msra.mxu0 %v13475_v1  ;;  %6288 = vmatpush1.bf16.msra.mxu1 %v13477_v21  ;;  %15176 = vst [vmem:[#allocation99_spill] sm:$0xff] %v13507_v56  ;;  %v6103_v21 = vld [vmem:[#allocation5 + $0x398] sm:$0xff] }
 0x58f   :  { %5787 = vmatprep.subr.bf16.mxu0 %v13481_v30  ;;  %6289 = vmatprep.subr.bf16.mxu1 %v13483_v43  ;;  %v5601_v43 = vld [vmem:[#allocation5 + $0x390] sm:$0xff]  ;;  %v6104_v1 = vld [vmem:[#allocation5 + $0x3b8] sm:$0xff]  ;;  %15177 = vst [vmem:[#allocation100_spill] sm:$0xff] %v13511_v0 }
 0x590   :  { %v5602_v30 = vld [vmem:[#allocation5 + $0x3b0] sm:$0xff]  ;;  %v13519_v31 = vcombine.high %v6103_v21, %v6104_v1  ;;  %v13525_v19 = vcombine.low %v6103_v21, %v6104_v1  ;;  %v15212_v1 = vld [vmem:[#allocation45_spill] sm:$0xff]  ;;  %v15213_v21 = vld [vmem:[#allocation46_spill] sm:$0xff] }
 0x591   :  { %v13517_v29 = vcombine.high %v5601_v43, %v5602_v30  ;;  %v13523_v20 = vcombine.low %v5601_v43, %v5602_v30  ;;  %v15214_v30 = vld [vmem:[#allocation47_spill] sm:$0xff]  ;;  %v15215_v43 = vld [vmem:[#allocation48_spill] sm:$0xff] }
 0x592   :  { %5788 = vmatpush1.bf16.msra.mxu0 %v13487_v25  ;;  %6290 = vmatpush1.bf16.msra.mxu1 %v13489_v60  ;;  %v6105_v60 = vld [vmem:[#allocation5 + $0x3d8] sm:$0xff] }
 0x593   :  { %5789 = vmatprep.subr.bf16.mxu0 %v13493_v44  ;;  %6291 = vmatprep.subr.bf16.mxu1 %v13495_v26  ;;  %v5603_v26 = vld [vmem:[#allocation5 + $0x3d0] sm:$0xff]  ;;  %v6106_v25 = vld [vmem:[#allocation5 + $0x3f8] sm:$0xff] }
 0x594   :  { %v5604_v44 = vld [vmem:[#allocation5 + $0x3f0] sm:$0xff]  ;;  %v13531_v17 = vcombine.high %v6105_v60, %v6106_v25 }
 0x595   :  { %v13529_v22 = vcombine.high %v5603_v26, %v5604_v44 }
 0x596   :  { %5790 = vmatpush1.bf16.msra.mxu0 %v13499_v33  ;;  %6292 = vmatpush1.bf16.msra.mxu1 %v13501_v23 }
 0x597   :  { %5791 = vmatprep.subr.bf16.mxu0 %v13505_v34  ;;  %6293 = vmatprep.subr.bf16.mxu1 %v13507_v56  ;;  %v13535_v56 = vcombine.low %v5603_v26, %v5604_v44 }
 0x59a   :  { %5792 = vmatpush1.bf16.msra.mxu0 %v13511_v0  ;;  %6294 = vmatpush1.bf16.msra.mxu1 %v13513_v14  ;;  %v13537_v0 = vcombine.low %v6105_v60, %v6106_v25  ;;  %v15216_v25 = vld [vmem:[#allocation49_spill] sm:$0xff]  ;;  %v15217_v60 = vld [vmem:[#allocation51_spill] sm:$0xff] }
 0x59b   :  { %5793 = vmatprep.subr.bf16.mxu0 %v13517_v29  ;;  %6295 = vmatprep.subr.bf16.mxu1 %v13519_v31 }
 0x59e   :  { %5794 = vmatpush1.bf16.msra.mxu0 %v13523_v20  ;;  %6296 = vmatpush1.bf16.msra.mxu1 %v13525_v19 }
 0x59f   :  { %5795 = vmatprep.subr.bf16.mxu0 %v13529_v22  ;;  %6297 = vmatprep.subr.bf16.mxu1 %v13531_v17 }
 0x5a2   :  { %5796 = vmatpush1.bf16.msra.mxu0 %v13535_v56  ;;  %6298 = vmatpush1.bf16.msra.mxu1 %v13537_v0 }
 0x5a3   :  { %6382 = vmatprep.subr.bf16.mxu0 %v13105_v59  ;;  %6423 = vmatprep.subr.bf16.mxu1 %v13111_v61  ;;  %v6330_v59 = vld [vmem:[%s14381_s0 + $0x18] sm:$0xf]  ;;  %v15180_v61 = vld [vmem:[#allocation13_spill] sm:$0xff] }
 0x5a5   :  { %5798 = vmatmul.mubr.bf16.vlgmr.msra.gmra.mrb[36].mxu0 %v13356_v51  ;;  %6300 = vmatmul.mubr.bf16.vlgmr.msra.gmra.mrb[36].mxu1 %v13356_v51  ;;  %v15211_v51 = vld [vmem:[#allocation44_spill] sm:$0xff] }
 0x5a6   :  { %6383 = vmatpush1.bf16.msra.mxu0 %v13107_v40  ;;  %6424 = vmatpush1.bf16.msra.mxu1 %v13109_v2  ;;  %v15178_v40 = vld [vmem:[#allocation11_spill] sm:$0xff]  ;;  %v15179_v2 = vld [vmem:[#allocation12_spill] sm:$0xff] }
 0x5a7   :  { %6414 = vmatprep.mubr.bf16.mxu0 %v14823_v7  ;;  %6455 = vmatprep.mubr.bf16.mxu1 %v14823_v7 }
 0x5a8   :  { %6464 = vmatprep.subr.bf16.mxu0 %v13122_v32  ;;  %6505 = vmatprep.subr.bf16.mxu1 %v13129_v8  ;;  %v15181_v32 = vld [vmem:[#allocation14_spill] sm:$0xff]  ;;  %v15184_v8 = vld [vmem:[#allocation17_spill] sm:$0xff] }
 0x5ad   :  { %10734 = vmatmul.mubr.msk.bf16.vlgmr.msra.gmra.mrb[48].mxu0 %vm156_vm0, %v6330_v59  ;;  %10735 = vmatmul.mubr.msk.bf16.vlgmr.msra.gmra.mrb[48].mxu1 %vm156_vm0, %v6330_v59 }
 0x5ae   :  { %6465 = vmatpush1.bf16.msra.mxu0 %v13125_v10  ;;  %6506 = vmatpush1.bf16.msra.mxu1 %v13127_v6  ;;  %v15182_v10 = vld [vmem:[#allocation15_spill] sm:$0xff]  ;;  %v15183_v6 = vld [vmem:[#allocation16_spill] sm:$0xff] }
 0x5af   :  { %6496 = vmatprep.mubr.bf16.mxu0 %v14823_v7  ;;  %6537 = vmatprep.mubr.bf16.mxu1 %v14823_v7 }
 0x5b0   :  { %6738 = vmatprep.subr.bf16.mxu0 %v13138_v39  ;;  %7222 = vmatprep.subr.bf16.mxu1 %v13142_v28  ;;  %v15186_v39 = vld [vmem:[#allocation20_spill] sm:$0xff]  ;;  %v15188_v28 = vld [vmem:[#allocation21_spill] sm:$0xff] }
 0x5b5   :  { %10736 = vmatmul.mubr.msk.bf16.vlgmr.msra.gmra.mrb[52].mxu0 %vm156_vm0, %v6330_v59  ;;  %10737 = vmatmul.mubr.msk.bf16.vlgmr.msra.gmra.mrb[52].mxu1 %vm156_vm0, %v6330_v59 }
 0x5b6   :  { %6739 = vmatpush1.bf16.msra.mxu0 %v13136_v12  ;;  %7223 = vmatpush1.bf16.msra.mxu1 %v13140_v16  ;;  %v15185_v12 = vld [vmem:[#allocation19_spill] sm:$0xff]  ;;  %v15187_v16 = vld [vmem:[#allocation18_spill] sm:$0xff] }
 0x5b7   :  { %6740 = vmatprep.subr.bf16.mxu0 %v13144_v15  ;;  %7224 = vmatprep.subr.bf16.mxu1 %v13147_v11  ;;  %v15189_v15 = vld [vmem:[#allocation23_spill] sm:$0xff]  ;;  %v15190_v11 = vld [vmem:[#allocation24_spill] sm:$0xff] }
 0x5ba   :  { %6741 = vmatpush1.bf16.msra.mxu0 %v13153_v36  ;;  %7225 = vmatpush1.bf16.msra.mxu1 %v13157_v27  ;;  %v15191_v36 = vld [vmem:[#allocation22_spill] sm:$0xff]  ;;  %v15192_v27 = vld [vmem:[#allocation25_spill] sm:$0xff] }
 0x5bb   :  { %6742 = vmatprep.subr.bf16.mxu0 %v13159_v46  ;;  %7226 = vmatprep.subr.bf16.mxu1 %v13162_v9  ;;  %v15193_v46 = vld [vmem:[#allocation27_spill] sm:$0xff]  ;;  %v15194_v9 = vld [vmem:[#allocation28_spill] sm:$0xff] }
 0x5be   :  { %6743 = vmatpush1.bf16.msra.mxu0 %v13165_v48  ;;  %7227 = vmatpush1.bf16.msra.mxu1 %v13169_v50  ;;  %v15195_v48 = vld [vmem:[#allocation26_spill] sm:$0xff]  ;;  %v15196_v50 = vld [vmem:[#allocation29_spill] sm:$0xff] }
 0x5bf   :  { %6744 = vmatprep.subr.bf16.mxu0 %v13171_v58  ;;  %7228 = vmatprep.subr.bf16.mxu1 %v13174_v63  ;;  %v15197_v58 = vld [vmem:[#allocation31_spill] sm:$0xff]  ;;  %v15198_v63 = vld [vmem:[#allocation32_spill] sm:$0xff] }
 0x5c2   :  { %6745 = vmatpush1.bf16.msra.mxu0 %v13177_v62  ;;  %7229 = vmatpush1.bf16.msra.mxu1 %v13181_v52  ;;  %v15199_v62 = vld [vmem:[#allocation30_spill] sm:$0xff]  ;;  %v15200_v52 = vld [vmem:[#allocation33_spill] sm:$0xff] }
 0x5c3   :  { %6746 = vmatprep.subr.bf16.mxu0 %v13183_v47  ;;  %7230 = vmatprep.subr.bf16.mxu1 %v13186_v41  ;;  %v15201_v47 = vld [vmem:[#allocation35_spill] sm:$0xff]  ;;  %v15202_v41 = vld [vmem:[#allocation36_spill] sm:$0xff] }
 0x5c6   :  { %6747 = vmatpush1.bf16.msra.mxu0 %v13189_v24  ;;  %7231 = vmatpush1.bf16.msra.mxu1 %v13193_v53  ;;  %v15203_v24 = vld [vmem:[#allocation34_spill] sm:$0xff]  ;;  %v15204_v53 = vld [vmem:[#allocation40_spill] sm:$0xff] }
 0x5c7   :  { %6748 = vmatprep.subr.bf16.mxu0 %v13195_v42  ;;  %7232 = vmatprep.subr.bf16.mxu1 %v13198_v13  ;;  %v15205_v42 = vld [vmem:[#allocation39_spill] sm:$0xff]  ;;  %v15206_v13 = vld [vmem:[#allocation38_spill] sm:$0xff] }
 0x5ca   :  { %6749 = vmatpush1.bf16.msra.mxu0 %v13201_v5  ;;  %7233 = vmatpush1.bf16.msra.mxu1 %v13205_v18  ;;  %v15207_v5 = vld [vmem:[#allocation37_spill] sm:$0xff] }
 0x5cb   :  { %6750 = vmatprep.subr.bf16.mxu0 %v13207_v54  ;;  %7234 = vmatprep.subr.bf16.mxu1 %v13210_v3  ;;  %v15208_v18 = vld [vmem:[#allocation41_spill] sm:$0xff]  ;;  %v15209_v54 = vld [vmem:[#allocation42_spill] sm:$0xff]  ;;  %v15210_v3 = vld [vmem:[#allocation43_spill] sm:$0xff] }
 0x5ce   :  { %6751 = vmatpush1.bf16.msra.mxu0 %v15178_v40  ;;  %7235 = vmatpush1.bf16.msra.mxu1 %v15179_v2 }
 0x5cf   :  { %6752 = vmatprep.subr.bf16.mxu0 %v15180_v61  ;;  %7236 = vmatprep.subr.bf16.mxu1 %v15181_v32 }
 0x5d2   :  { %6753 = vmatpush1.bf16.msra.mxu0 %v15182_v10  ;;  %7237 = vmatpush1.bf16.msra.mxu1 %v15183_v6  ;;  %v15218_v6 = vld [vmem:[#allocation9_spill] sm:$0xff] }
 0x5d3   :  { %6754 = vmatprep.subr.bf16.mxu0 %v15184_v8  ;;  %7238 = vmatprep.subr.bf16.mxu1 %v15185_v12 }
 0x5d6   :  { %6755 = vmatpush1.bf16.msra.mxu0 %v15186_v39  ;;  %7239 = vmatpush1.bf16.msra.mxu1 %v15187_v16 }
 0x5d7   :  { %6756 = vmatprep.subr.bf16.mxu0 %v15188_v28  ;;  %7240 = vmatprep.subr.bf16.mxu1 %v15189_v15 }
 0x5da   :  { %6757 = vmatpush1.bf16.msra.mxu0 %v15190_v11  ;;  %7241 = vmatpush1.bf16.msra.mxu1 %v15191_v36 }
 0x5db   :  { %6758 = vmatprep.subr.bf16.mxu0 %v15192_v27  ;;  %7242 = vmatprep.subr.bf16.mxu1 %v15193_v46 }
 0x5de   :  { %6759 = vmatpush1.bf16.msra.mxu0 %v15194_v9  ;;  %7243 = vmatpush1.bf16.msra.mxu1 %v15195_v48 }
 0x5df   :  { %6760 = vmatprep.subr.bf16.mxu0 %v15196_v50  ;;  %7244 = vmatprep.subr.bf16.mxu1 %v15197_v58 }
 0x5e2   :  { %6761 = vmatpush1.bf16.msra.mxu0 %v15198_v63  ;;  %7245 = vmatpush1.bf16.msra.mxu1 %v15199_v62 }
 0x5e3   :  { %6762 = vmatprep.subr.bf16.mxu0 %v15200_v52  ;;  %7246 = vmatprep.subr.bf16.mxu1 %v15201_v47 }
 0x5e6   :  { %6763 = vmatpush1.bf16.msra.mxu0 %v15202_v41  ;;  %7247 = vmatpush1.bf16.msra.mxu1 %v15203_v24 }
 0x5e7   :  { %6764 = vmatprep.subr.bf16.mxu0 %v15204_v53  ;;  %7248 = vmatprep.subr.bf16.mxu1 %v15205_v42 }
 0x5ea   :  { %6765 = vmatpush1.bf16.msra.mxu0 %v15206_v13  ;;  %7249 = vmatpush1.bf16.msra.mxu1 %v15207_v5  ;;  %v15219_v13 = vld [vmem:[#allocation10_spill] sm:$0xff] }
 0x5eb   :  { %6766 = vmatprep.subr.bf16.mxu0 %v15208_v18  ;;  %7250 = vmatprep.subr.bf16.mxu1 %v15209_v54 }
 0x5ee   :  { %6767 = vmatpush1.bf16.msra.mxu0 %v15210_v3  ;;  %7251 = vmatpush1.bf16.msra.mxu1 %v15211_v51 }
 0x5ef   :  { %6768 = vmatprep.subr.bf16.mxu0 %v15212_v1  ;;  %7252 = vmatprep.subr.bf16.mxu1 %v15213_v21 }
 0x5f2   :  { %6769 = vmatpush1.bf16.msra.mxu0 %v15214_v30  ;;  %7253 = vmatpush1.bf16.msra.mxu1 %v15215_v43 }
 0x5f3   :  { %6973 = vmatprep.subr.bf16.mxu0 %v15216_v25  ;;  %7475 = vmatprep.subr.bf16.mxu1 %v15217_v60 }
 0x638   :  { %v5564_v44 = vpop.f32.mrb[32].mxu0  ;;  %v6048_v26 = vpop.f32.mrb[32].mxu1 }
 0x639   :  { %v5566_v59 = vpop.f32.mrb[33].mxu0  ;;  %v6050_v40 = vpop.f32.mrb[33].mxu1  ;;  %v11257_v8 = vadd.f32 %v5564_v44, %v15218_v6  ;;  %v11259_v12 = vadd.f32 %v6048_v26, %v12388_v35 }
 0x63a   :  { %v5568_v2 = vpop.f32.mrb[34].mxu0  ;;  %v6052_v61 = vpop.f32.mrb[34].mxu1  ;;  %v11258_v39 = vadd.f32 %v5566_v59, %v12390_v37  ;;  %v11260_v16 = vadd.f32 %v6050_v40, %v12392_v4 }
 0x63b   :  { %v5569_v32 = vpop.f32.mrb[35].mxu0  ;;  %v6053_v10 = vpop.f32.mrb[35].mxu1  ;;  %v10656_v28 = vmul.f32 -1.442695, %v11257_v8  ;;  %v10690_v15 = vmul.f32 -1.442695, %v11259_v12 }
 0x63c   :  { %v10657_v11 = vmul.f32 -1.442695, %v11258_v39  ;;  %v10691_v36 = vmul.f32 -1.442695, %v11260_v16 }
 0x63d   :  { %11566 = vpow2.f32 %v10656_v28 }
 0x63e   :  { %11568 = vpow2.f32 %v10690_v15 }
 0x63f   :  { %11570 = vpow2.f32 %v10657_v11 }
 0x640   :  { %11572 = vpow2.f32 %v10691_v36 }
 0x647   :  { %v11567_v27 = vpop.eup %11566 }
 0x648   :  { %v11569_v46 = vpop.eup %11568  ;;  %v5814_v50 = vadd.f32 1.0, %v11567_v27 }
 0x649   :  { %v11571_v9 = vpop.eup %11570  ;;  %v6063_v58 = vadd.f32 1.0, %v11569_v46 }
 0x64a   :  { %v11573_v48 = vpop.eup %11572  ;;  %v5815_v63 = vadd.f32 1.0, %v11571_v9  ;;  %11574 = vrcp.f32 %v5814_v50  ;;  %v15221_v50 = vld [vmem:[#allocation50_spill] sm:$0xff] }
 0x64b   :  { %v6064_v62 = vadd.f32 1.0, %v11573_v48  ;;  %11576 = vrcp.f32 %v6063_v58  ;;  %v15220_v48 = vld [vmem:[#allocation52_spill] sm:$0xff]  ;;  %v15222_v58 = vld [vmem:[#allocation53_spill] sm:$0xff] }
 0x64c   :  { %11578 = vrcp.f32 %v5815_v63  ;;  %v15223_v63 = vld [vmem:[#allocation54_spill] sm:$0xff] }
 0x64d   :  { %11580 = vrcp.f32 %v6064_v62  ;;  %v15224_v62 = vld [vmem:[#allocation55_spill] sm:$0xff] }
 0x654   :  { %v11575_v43 = vpop.eup %11574 }
 0x655   :  { %v11577_v25 = vpop.eup %11576 }
 0x656   :  { %v11579_v60 = vpop.eup %11578  ;;  %v6069_v40 = vmul.f32 %v11577_v25, %v13350_v38  ;;  %v15240_v25 = vld [vmem:[#allocation71_spill] sm:$0xff] }
 0x657   :  { %v11581_v44 = vpop.eup %11580 }
 0x658   :  { %v6070_v32 = vmul.f32 %v11581_v44, %v13352_v45  ;;  %v15242_v44 = vld [vmem:[#allocation73_spill] sm:$0xff] }
 0x678   :  { %v5799_v52 = vpop.f32.mrb[36].mxu0  ;;  %v6301_v47 = vpop.f32.mrb[36].mxu1 }
 0x679   :  { %v11261_v41 = vadd.f32 %v5799_v52, %v12398_v49  ;;  %v11263_v24 = vadd.f32 %v6301_v47, %v12400_v55  ;;  %v5801_v53 = vpop.f32.mrb[37].mxu0  ;;  %v6303_v42 = vpop.f32.mrb[37].mxu1  ;;  %v15225_v52 = vld [vmem:[#allocation56_spill] sm:$0xff]  ;;  %v15226_v47 = vld [vmem:[#allocation57_spill] sm:$0xff] }
 0x67a   :  { %v11262_v5 = vadd.f32 %v5801_v53, %v15219_v13  ;;  %v11264_v18 = vadd.f32 %v6303_v42, %v12404_v57  ;;  %v5803_v54 = vpop.f32.mrb[38].mxu0  ;;  %v6305_v3 = vpop.f32.mrb[38].mxu1  ;;  %v15229_v53 = vld [vmem:[#allocation60_spill] sm:$0xff]  ;;  %v15230_v42 = vld [vmem:[#allocation61_spill] sm:$0xff] }
 0x67b   :  { %11582 = vtanh.f32 %v11261_v41  ;;  %v10724_v51 = vmul.f32 -1.442695, %v11263_v24  ;;  %v5804_v1 = vpop.f32.mrb[39].mxu0  ;;  %v6306_v21 = vpop.f32.mrb[39].mxu1  ;;  %v15227_v41 = vld [vmem:[#allocation58_spill] sm:$0xff]  ;;  %v15228_v24 = vld [vmem:[#allocation59_spill] sm:$0xff] }
 0x67c   :  { %11584 = vtanh.f32 %v11262_v5  ;;  %v10725_v30 = vmul.f32 -1.442695, %v11264_v18  ;;  %v15231_v5 = vld [vmem:[#allocation62_spill] sm:$0xff]  ;;  %v15232_v18 = vld [vmem:[#allocation63_spill] sm:$0xff]  ;;  %v15233_v54 = vld [vmem:[#allocation64_spill] sm:$0xff] }
 0x67d   :  { %11586 = vpow2.f32 %v10724_v51  ;;  %v15234_v3 = vld [vmem:[#allocation65_spill] sm:$0xff]  ;;  %v15235_v51 = vld [vmem:[#allocation66_spill] sm:$0xff]  ;;  %v15236_v1 = vld [vmem:[#allocation67_spill] sm:$0xff] }
 0x67e   :  { %11588 = vpow2.f32 %v10725_v30  ;;  %v15237_v21 = vld [vmem:[#allocation68_spill] sm:$0xff]  ;;  %v15238_v30 = vld [vmem:[#allocation69_spill] sm:$0xff] }
 0x685   :  { %v11583_v26 = vpop.eup %11582 }
 0x686   :  { %v11585_v59 = vpop.eup %11584  ;;  %v6071_v2 = vmul.f32 %v11583_v26, %v11575_v43  ;;  %v15239_v43 = vld [vmem:[#allocation70_spill] sm:$0xff] }
 0x687   :  { %v11587_v61 = vpop.eup %11586  ;;  %v6072_v10 = vmul.f32 %v11585_v59, %v11579_v60  ;;  %v15241_v60 = vld [vmem:[#allocation72_spill] sm:$0xff]  ;;  %v15243_v26 = vld [vmem:[#allocation74_spill] sm:$0xff]  ;;  %v15244_v59 = vld [vmem:[#allocation75_spill] sm:$0xff] }
 0x688   :  { %v11589_v8 = vpop.eup %11588  ;;  %v13640_v12 = vadd.f32 %v6071_v2, %v6069_v40  ;;  %v6316_v39 = vadd.f32 1.0, %v11587_v61  ;;  %v15245_v40 = vld [vmem:[#allocation76_spill] sm:$0xff]  ;;  %v15246_v2 = vld [vmem:[#allocation77_spill] sm:$0xff]  ;;  %v15247_v61 = vld [vmem:[#allocation78_spill] sm:$0xff] }
 0x689   :  { %v13642_v16 = vadd.f32 %v6072_v10, %v6070_v32  ;;  %v6317_v28 = vadd.f32 1.0, %v11589_v8  ;;  %v15248_v32 = vld [vmem:[#allocation79_spill] sm:$0xff]  ;;  %v15249_v10 = vld [vmem:[#allocation80_spill] sm:$0xff]  ;;  %v15250_v8 = vld [vmem:[#allocation81_spill] sm:$0xff] }
 0x68a   :  { %11590 = vtanh.f32 %v13640_v12 }
 0x68b   :  { %11592 = vrcp.f32 %v6316_v39  ;;  %v15251_v39 = vld [vmem:[#allocation82_spill] sm:$0xff] }
 0x68c   :  { %11594 = vtanh.f32 %v13642_v16 }
 0x68d   :  { %11596 = vrcp.f32 %v6317_v28  ;;  %v15252_v28 = vld [vmem:[#allocation83_spill] sm:$0xff] }
 0x694   :  { %v11591_v15 = vpop.eup %11590 }
 0x695   :  { %v11593_v38 = vpop.eup %11592 }
 0x696   :  { %v11595_v11 = vpop.eup %11594  ;;  %v6324_v36 = vmul.f32 %v11593_v38, %v11591_v15  ;;  %v15253_v15 = vld [vmem:[#allocation84_spill] sm:$0xff]  ;;  %v15254_v38 = vld [vmem:[#allocation85_spill] sm:$0xff] }
 0x697   :  { %v11597_v27 = vpop.eup %11596 }
 0x698   :  { %v6325_v45 = vmul.f32 %v11597_v27, %v11595_v11  ;;  %v13646_v46 = vpack.c.bf16 %v6324_v36, %v6324_v36  ;;  %v15255_v11 = vld [vmem:[#allocation86_spill] sm:$0xff]  ;;  %v15256_v36 = vld [vmem:[#allocation87_spill] sm:$0xff]  ;;  %v15257_v27 = vld [vmem:[#allocation88_spill] sm:$0xff] }
 0x69a   :  { %v6327_v9 = vpack.c.bf16 %v6325_v45, %v6325_v45  ;;  %6328 = vst [vmem:[#allocation2 + $0x20] sm:$0xf] %v13646_v46  ;;  %v15258_v45 = vld [vmem:[#allocation89_spill] sm:$0xff] }
 0x69c   :  { %6329 = vst [vmem:[#allocation2 + $0x28] sm:$0xf] %v6327_v9  ;;  %6770 = vmatprep.mubr.bf16.mxu0 %v6327_v9  ;;  %7254 = vmatprep.mubr.bf16.mxu1 %v6327_v9 }
 0x69d   :  { %6771 = vmatmul.mubr.bf16.vlgmr.msra.gmra.mrb[40].mxu0 %v13646_v46  ;;  %7255 = vmatmul.mubr.bf16.vlgmr.msra.gmra.mrb[40].mxu1 %v13646_v46 }
 0x69e   :  { %6974 = vmatpush1.bf16.msra.mxu0 %v15220_v48  ;;  %7476 = vmatpush1.bf16.msra.mxu1 %v15221_v50  ;;  %v15260_v48 = vld [vmem:[#allocation91_spill] sm:$0xff]  ;;  %v15261_v50 = vld [vmem:[#allocation92_spill] sm:$0xff] }
 0x69f   :  { %7005 = vmatprep.mubr.bf16.mxu0 %v6327_v9  ;;  %7507 = vmatprep.mubr.bf16.mxu1 %v6327_v9  ;;  %v15259_v9 = vld [vmem:[#allocation90_spill] sm:$0xff] }
 0x6a0   :  { %6975 = vmatprep.subr.bf16.mxu0 %v15222_v58  ;;  %7477 = vmatprep.subr.bf16.mxu1 %v15223_v63  ;;  %v15262_v58 = vld [vmem:[#allocation93_spill] sm:$0xff]  ;;  %v15263_v63 = vld [vmem:[#allocation94_spill] sm:$0xff] }
 0x6a2   :  { %6976 = vmatpush1.bf16.msra.mxu0 %v15224_v62  ;;  %7478 = vmatpush1.bf16.msra.mxu1 %v15225_v52  ;;  %v15264_v62 = vld [vmem:[#allocation95_spill] sm:$0xff]  ;;  %v15265_v52 = vld [vmem:[#allocation96_spill] sm:$0xff] }
 0x6a3   :  { %6977 = vmatprep.subr.bf16.mxu0 %v15226_v47  ;;  %7479 = vmatprep.subr.bf16.mxu1 %v15227_v41  ;;  %v15266_v47 = vld [vmem:[#allocation97_spill] sm:$0xff]  ;;  %v15267_v41 = vld [vmem:[#allocation98_spill] sm:$0xff] }
 0x6a6   :  { %6978 = vmatpush1.bf16.msra.mxu0 %v15228_v24  ;;  %7480 = vmatpush1.bf16.msra.mxu1 %v15229_v53  ;;  %v15268_v24 = vld [vmem:[#allocation99_spill] sm:$0xff]  ;;  %v15269_v53 = vld [vmem:[#allocation100_spill] sm:$0xff] }
 0x6a7   :  { %6979 = vmatprep.subr.bf16.mxu0 %v15230_v42  ;;  %7481 = vmatprep.subr.bf16.mxu1 %v15231_v5  ;;  %v7552_v42 = vld [vmem:[#allocation3 + $0x38] sm:$0xff] }
 0x6aa   :  { %6980 = vmatpush1.bf16.msra.mxu0 %v15232_v18  ;;  %7482 = vmatpush1.bf16.msra.mxu1 %v15233_v54 }
 0x6ab   :  { %6981 = vmatprep.subr.bf16.mxu0 %v15234_v3  ;;  %7483 = vmatprep.subr.bf16.mxu1 %v15235_v51  ;;  %v7760_v3 = vld [vmem:[#allocation5] sm:$0xff] }
 0x6ac   :  { %v7761_v51 = vld [vmem:[#allocation5 + $0x20] sm:$0xff] }
 0x6ae   :  { %6982 = vmatpush1.bf16.msra.mxu0 %v15236_v1  ;;  %7484 = vmatpush1.bf16.msra.mxu1 %v15237_v21  ;;  %v8244_v1 = vld [vmem:[#allocation5 + $0x8] sm:$0xff]  ;;  %v13724_v21 = vcombine.low %v7760_v3, %v7761_v51 }
 0x6af   :  { %6983 = vmatprep.subr.bf16.mxu0 %v15238_v30  ;;  %7485 = vmatprep.subr.bf16.mxu1 %v15239_v43  ;;  %v13726_v30 = vcombine.high %v7760_v3, %v7761_v51  ;;  %v8245_v43 = vld [vmem:[#allocation5 + $0x28] sm:$0xff]  ;;  %v7774_v3 = vld [vmem:[#allocation5 + $0x1c0] sm:$0xff] }
 0x6b0   :  { %v7775_v51 = vld [vmem:[#allocation5 + $0x1e0] sm:$0xff] }
 0x6b2   :  { %6984 = vmatpush1.bf16.msra.mxu0 %v15240_v25  ;;  %7486 = vmatpush1.bf16.msra.mxu1 %v15241_v60  ;;  %v7762_v25 = vld [vmem:[#allocation5 + $0x40] sm:$0xff] }
 0x6b3   :  { %6985 = vmatprep.subr.bf16.mxu0 %v15242_v44  ;;  %7487 = vmatprep.subr.bf16.mxu1 %v15243_v26  ;;  %v7763_v60 = vld [vmem:[#allocation5 + $0x60] sm:$0xff]  ;;  %v13728_v44 = vcombine.low %v8244_v1, %v8245_v43  ;;  %v13730_v26 = vcombine.high %v8244_v1, %v8245_v43  ;;  %v8258_v1 = vld [vmem:[#allocation5 + $0x1c8] sm:$0xff] }
 0x6b4   :  { %v8259_v43 = vld [vmem:[#allocation5 + $0x1e8] sm:$0xff] }
 0x6b6   :  { %6986 = vmatpush1.bf16.msra.mxu0 %v15244_v59  ;;  %7488 = vmatpush1.bf16.msra.mxu1 %v15245_v40  ;;  %v13732_v59 = vcombine.high %v7762_v25, %v7763_v60  ;;  %v8247_v40 = vld [vmem:[#allocation5 + $0x68] sm:$0xff] }
 0x6b7   :  { %6987 = vmatprep.subr.bf16.mxu0 %v15246_v2  ;;  %7489 = vmatprep.subr.bf16.mxu1 %v15247_v61  ;;  %v7764_v61 = vld [vmem:[#allocation5 + $0x80] sm:$0xff] }
 0x6ba   :  { %6988 = vmatpush1.bf16.msra.mxu0 %v15248_v32  ;;  %7490 = vmatpush1.bf16.msra.mxu1 %v15249_v10  ;;  %v7765_v32 = vld [vmem:[#allocation5 + $0xa0] sm:$0xff]  ;;  %v8248_v10 = vld [vmem:[#allocation5 + $0x88] sm:$0xff] }
 0x6bb   :  { %6989 = vmatprep.subr.bf16.mxu0 %v15250_v8  ;;  %7491 = vmatprep.subr.bf16.mxu1 %v15251_v39  ;;  %v8249_v8 = vld [vmem:[#allocation5 + $0xa8] sm:$0xff]  ;;  %v13741_v39 = vcombine.low %v7762_v25, %v7763_v60 }
 0x6be   :  { %6990 = vmatpush1.bf16.msra.mxu0 %v15252_v28  ;;  %7492 = vmatpush1.bf16.msra.mxu1 %v15253_v15  ;;  %v13747_v15 = vcombine.high %v7764_v61, %v7765_v32 }
 0x6bf   :  { %6991 = vmatprep.subr.bf16.mxu0 %v15254_v38  ;;  %7493 = vmatprep.subr.bf16.mxu1 %v15255_v11  ;;  %v13750_v38 = vcombine.high %v8248_v10, %v8249_v8  ;;  %v7766_v11 = vld [vmem:[#allocation5 + $0xc0] sm:$0xff] }
 0x6c2   :  { %6992 = vmatpush1.bf16.msra.mxu0 %v15256_v36  ;;  %7494 = vmatpush1.bf16.msra.mxu1 %v15257_v27  ;;  %v7767_v36 = vld [vmem:[#allocation5 + $0xe0] sm:$0xff]  ;;  %v8250_v27 = vld [vmem:[#allocation5 + $0xc8] sm:$0xff] }
 0x6c3   :  { %6993 = vmatprep.subr.bf16.mxu0 %v15258_v45  ;;  %7495 = vmatprep.subr.bf16.mxu1 %v15259_v9  ;;  %v8251_v45 = vld [vmem:[#allocation5 + $0xe8] sm:$0xff]  ;;  %v13753_v9 = vcombine.low %v7764_v61, %v7765_v32  ;;  %v13813_v61 = vcombine.low %v7774_v3, %v7775_v51  ;;  %v13817_v32 = vcombine.low %v8258_v1, %v8259_v43 }
 0x6c6   :  { %6994 = vmatpush1.bf16.msra.mxu0 %v15260_v48  ;;  %7496 = vmatpush1.bf16.msra.mxu1 %v15261_v50  ;;  %v13757_v48 = vcombine.low %v8248_v10, %v8249_v8  ;;  %v13759_v50 = vcombine.high %v7766_v11, %v7767_v36  ;;  %v7776_v10 = vld [vmem:[#allocation5 + $0x200] sm:$0xff] }
 0x6c7   :  { %6995 = vmatprep.subr.bf16.mxu0 %v15262_v58  ;;  %7497 = vmatprep.subr.bf16.mxu1 %v15263_v63  ;;  %v13762_v58 = vcombine.high %v8250_v27, %v8251_v45  ;;  %v7768_v63 = vld [vmem:[#allocation5 + $0x100] sm:$0xff] }
 0x6c8   :  { %v7777_v8 = vld [vmem:[#allocation5 + $0x220] sm:$0xff] }
 0x6ca   :  { %6996 = vmatpush1.bf16.msra.mxu0 %v15264_v62  ;;  %7498 = vmatpush1.bf16.msra.mxu1 %v15265_v52  ;;  %v7769_v62 = vld [vmem:[#allocation5 + $0x120] sm:$0xff]  ;;  %v8252_v52 = vld [vmem:[#allocation5 + $0x108] sm:$0xff] }
 0x6cb   :  { %6997 = vmatprep.subr.bf16.mxu0 %v15266_v47  ;;  %7499 = vmatprep.subr.bf16.mxu1 %v15267_v41  ;;  %v8253_v47 = vld [vmem:[#allocation5 + $0x128] sm:$0xff]  ;;  %v13765_v41 = vcombine.low %v7766_v11, %v7767_v36  ;;  %v13822_v36 = vcombine.high %v7776_v10, %v7777_v8 }
 0x6cc   :  { %v8260_v11 = vld [vmem:[#allocation5 + $0x208] sm:$0xff] }
 0x6ce   :  { %6998 = vmatpush1.bf16.msra.mxu0 %v13499_v33  ;;  %7500 = vmatpush1.bf16.msra.mxu1 %v13501_v23  ;;  %v7545_v33 = vld [vmem:[#allocation3] sm:$0xff] }
 0x6cf   :  { %6999 = vmatprep.subr.bf16.mxu0 %v13505_v34  ;;  %7501 = vmatprep.subr.bf16.mxu1 %v15268_v24  ;;  %v7549_v23 = vld [vmem:[#allocation3 + $0x20] sm:$0xff]  ;;  %v7546_v34 = vld [vmem:[#allocation3 + $0x8] sm:$0xff]  ;;  %v13769_v24 = vcombine.low %v8250_v27, %v8251_v45  ;;  %v13824_v45 = vcombine.low %v7776_v10, %v7777_v8 }
 0x6d0   :  { %v8261_v27 = vld [vmem:[#allocation5 + $0x228] sm:$0xff] }
 0x6d2   :  { %7000 = vmatpush1.bf16.msra.mxu0 %v15269_v53  ;;  %7502 = vmatpush1.bf16.msra.mxu1 %v13513_v14  ;;  %v10873_v14 = vcombine.high %v7545_v33, %v7549_v23  ;;  %v13771_v53 = vcombine.high %v7768_v63, %v7769_v62 }
 0x6d3   :  { %7001 = vmatprep.subr.bf16.mxu0 %v13517_v29  ;;  %7503 = vmatprep.subr.bf16.mxu1 %v13519_v31  ;;  %v7550_v29 = vld [vmem:[#allocation3 + $0x28] sm:$0xff]  ;;  %v10872_v31 = vcombine.low %v7545_v33, %v7549_v23  ;;  %v13774_v33 = vcombine.high %v8252_v52, %v8253_v47  ;;  %v7770_v23 = vld [vmem:[#allocation5 + $0x140] sm:$0xff] }
 0x6d6   :  { %7002 = vmatpush1.bf16.msra.mxu0 %v13523_v20  ;;  %7504 = vmatpush1.bf16.msra.mxu1 %v13525_v19  ;;  %v10874_v20 = vcombine.low %v7546_v34, %v7550_v29  ;;  %v10875_v19 = vcombine.high %v7546_v34, %v7550_v29  ;;  %v7771_v34 = vld [vmem:[#allocation5 + $0x160] sm:$0xff]  ;;  %v8255_v29 = vld [vmem:[#allocation5 + $0x168] sm:$0xff] }
 0x6d7   :  { %7003 = vmatprep.subr.bf16.mxu0 %v13529_v22  ;;  %7505 = vmatprep.subr.bf16.mxu1 %v13531_v17  ;;  %v7551_v22 = vld [vmem:[#allocation3 + $0x30] sm:$0xff]  ;;  %v7548_v17 = vld [vmem:[#allocation3 + $0x18] sm:$0xff] }
 0x6d8   :  { %v10878_v18 = vcombine.low %v7548_v17, %v7552_v42  ;;  %v10879_v54 = vcombine.high %v7548_v17, %v7552_v42  ;;  %v8256_v17 = vld [vmem:[#allocation5 + $0x188] sm:$0xff]  ;;  %v13789_v42 = vcombine.low %v7770_v23, %v7771_v34 }
 0x6da   :  { %7004 = vmatpush1.bf16.msra.mxu0 %v13535_v56  ;;  %7506 = vmatpush1.bf16.msra.mxu1 %v13537_v0  ;;  %v7544_v56 = vld [vmem:[%s14381_s0 + $0x1c] sm:$0xf]  ;;  %v7547_v0 = vld [vmem:[#allocation3 + $0x10] sm:$0xff] }
 0x6db   :  { %7596 = vmatprep.subr.bf16.mxu0 %v10873_v14  ;;  %7637 = vmatprep.subr.bf16.mxu1 %v10875_v19  ;;  %v10876_v5 = vcombine.low %v7547_v0, %v7551_v22  ;;  %v8254_v14 = vld [vmem:[#allocation5 + $0x148] sm:$0xff]  ;;  %v13783_v19 = vcombine.high %v7770_v23, %v7771_v34 }
 0x6dc   :  { %v8262_v23 = vld [vmem:[#allocation5 + $0x248] sm:$0xff] }
 0x6dd   :  { %7006 = vmatmul.mubr.bf16.vlgmr.msra.gmra.mrb[44].mxu0 %v13646_v46  ;;  %7508 = vmatmul.mubr.bf16.vlgmr.msra.gmra.mrb[44].mxu1 %v13646_v46  ;;  %v10877_v46 = vcombine.high %v7547_v0, %v7551_v22  ;;  %v7772_v0 = vld [vmem:[#allocation5 + $0x180] sm:$0xff] }
 0x6de   :  { %7628 = vmatprep.mubr.bf16.mxu0 %v14823_v7  ;;  %7669 = vmatprep.mubr.bf16.mxu1 %v14823_v7  ;;  %v7773_v22 = vld [vmem:[#allocation5 + $0x1a0] sm:$0xff] }
 0x6df   :  { %7597 = vmatpush1.bf16.msra.mxu0 %v10872_v31  ;;  %7638 = vmatpush1.bf16.msra.mxu1 %v10874_v20  ;;  %v13777_v31 = vcombine.low %v7768_v63, %v7769_v62  ;;  %v13781_v20 = vcombine.low %v8252_v52, %v8253_v47  ;;  %v13801_v25 = vcombine.low %v7772_v0, %v7773_v22  ;;  %v7778_v52 = vld [vmem:[#allocation5 + $0x240] sm:$0xff] }
 0x6e0   :  { %7678 = vmatprep.subr.bf16.mxu0 %v10877_v46  ;;  %7719 = vmatprep.subr.bf16.mxu1 %v10879_v54  ;;  %v8257_v46 = vld [vmem:[#allocation5 + $0x1a8] sm:$0xff]  ;;  %v13826_v63 = vcombine.low %v8260_v11, %v8261_v27  ;;  %v13828_v62 = vcombine.high %v8260_v11, %v8261_v27  ;;  %v7779_v47 = vld [vmem:[#allocation5 + $0x260] sm:$0xff] }
 0x6e1   :  { %v13798_v54 = vcombine.high %v8256_v17, %v8257_v46  ;;  %v13805_v60 = vcombine.low %v8256_v17, %v8257_v46  ;;  %v13834_v34 = vcombine.high %v7778_v52, %v7779_v47  ;;  %v7780_v17 = vld [vmem:[#allocation5 + $0x280] sm:$0xff] }
 0x6e2   :  { %15270 = vst [vmem:[#allocation11_spill] sm:$0xff] %v13826_v63  ;;  %v7781_v46 = vld [vmem:[#allocation5 + $0x2a0] sm:$0xff] }
 0x6e3   :  { %15271 = vst [vmem:[#allocation12_spill] sm:$0xff] %v13834_v34  ;;  %v7782_v11 = vld [vmem:[#allocation5 + $0x2c0] sm:$0xff] }
 0x6e4   :  { %v7783_v27 = vld [vmem:[#allocation5 + $0x2e0] sm:$0xff] }
 0x6e5   :  { %10880 = vmatmul.mubr.msk.bf16.vlgmr.msra.gmra.mrb[56].mxu0 %vm156_vm0, %v7544_v56  ;;  %10881 = vmatmul.mubr.msk.bf16.vlgmr.msra.gmra.mrb[56].mxu1 %vm156_vm0, %v7544_v56 }
 0x6e6   :  { %7710 = vmatprep.mubr.bf16.mxu0 %v14823_v7  ;;  %7751 = vmatprep.mubr.bf16.mxu1 %v14823_v7  ;;  %v8246_v7 = vld [vmem:[#allocation5 + $0x48] sm:$0xff] }
 0x6e7   :  { %7679 = vmatpush1.bf16.msra.mxu0 %v10876_v5  ;;  %7720 = vmatpush1.bf16.msra.mxu1 %v10878_v18  ;;  %v13735_v2 = vcombine.high %v8246_v7, %v8247_v40  ;;  %v13745_v28 = vcombine.low %v8246_v7, %v8247_v40  ;;  %v13793_v5 = vcombine.low %v8254_v14, %v8255_v29 }
 0x6e8   :  { %7952 = vmatprep.subr.bf16.mxu0 %v13726_v30  ;;  %8436 = vmatprep.subr.bf16.mxu1 %v13730_v26  ;;  %v13795_v18 = vcombine.high %v7772_v0, %v7773_v22  ;;  %v13807_v7 = vcombine.high %v7774_v3, %v7775_v51  ;;  %v13810_v40 = vcombine.high %v8258_v1, %v8259_v43  ;;  %v8264_v3 = vld [vmem:[#allocation5 + $0x288] sm:$0xff] }
 0x6e9   :  { %v13846_v51 = vcombine.high %v7780_v17, %v7781_v46  ;;  %v8265_v1 = vld [vmem:[#allocation5 + $0x2a8] sm:$0xff]  ;;  %v13848_v43 = vcombine.low %v7780_v17, %v7781_v46 }
 0x6ea   :  { %v13850_v10 = vcombine.low %v8264_v3, %v8265_v1  ;;  %v13852_v8 = vcombine.high %v8264_v3, %v8265_v1  ;;  %v7784_v3 = vld [vmem:[#allocation5 + $0x300] sm:$0xff] }
 0x6eb   :  { %15275 = vst [vmem:[#allocation16_spill] sm:$0xff] %v13846_v51  ;;  %15276 = vst [vmem:[#allocation17_spill] sm:$0xff] %v13848_v43  ;;  %v7785_v1 = vld [vmem:[#allocation5 + $0x320] sm:$0xff] }
 0x6ec   :  { %15277 = vst [vmem:[#allocation19_spill] sm:$0xff] %v13850_v10  ;;  %15278 = vst [vmem:[#allocation20_spill] sm:$0xff] %v13852_v8 }
 0x6ed   :  { %10882 = vmatmul.mubr.msk.bf16.vlgmr.msra.gmra.mrb[60].mxu0 %vm156_vm0, %v7544_v56  ;;  %10883 = vmatmul.mubr.msk.bf16.vlgmr.msra.gmra.mrb[60].mxu1 %vm156_vm0, %v7544_v56  ;;  %v13786_v56 = vcombine.high %v8254_v14, %v8255_v29  ;;  %v8263_v14 = vld [vmem:[#allocation5 + $0x268] sm:$0xff]  ;;  %v13836_v29 = vcombine.low %v7778_v52, %v7779_v47  ;;  %v13858_v47 = vcombine.high %v7782_v11, %v7783_v27 }
 0x6ee   :  { %7953 = vmatpush1.bf16.msra.mxu0 %v13724_v21  ;;  %8437 = vmatpush1.bf16.msra.mxu1 %v13728_v44  ;;  %v13838_v0 = vcombine.low %v8262_v23, %v8263_v14  ;;  %v13840_v22 = vcombine.high %v8262_v23, %v8263_v14  ;;  %v8266_v52 = vld [vmem:[#allocation5 + $0x2c8] sm:$0xff]  ;;  %v13860_v14 = vcombine.low %v7782_v11, %v7783_v27 }
 0x6ef   :  { %7954 = vmatprep.subr.bf16.mxu0 %v13732_v59  ;;  %8438 = vmatprep.subr.bf16.mxu1 %v13735_v2  ;;  %15272 = vst [vmem:[#allocation13_spill] sm:$0xff] %v13836_v29  ;;  %15279 = vst [vmem:[#allocation18_spill] sm:$0xff] %v13858_v47  ;;  %v8267_v23 = vld [vmem:[#allocation5 + $0x2e8] sm:$0xff]  ;;  %v13872_v11 = vcombine.low %v7784_v3, %v7785_v1 }
 0x6f0   :  { %15273 = vst [vmem:[#allocation14_spill] sm:$0xff] %v13838_v0  ;;  %15274 = vst [vmem:[#allocation15_spill] sm:$0xff] %v13840_v22  ;;  %v13862_v17 = vcombine.low %v8266_v52, %v8267_v23  ;;  %v13864_v46 = vcombine.high %v8266_v52, %v8267_v23  ;;  %v7786_v23 = vld [vmem:[#allocation5 + $0x340] sm:$0xff] }
 0x6f1   :  { %15280 = vst [vmem:[#allocation21_spill] sm:$0xff] %v13860_v14  ;;  %15284 = vst [vmem:[#allocation25_spill] sm:$0xff] %v13872_v11 }
 0x6f2   :  { %7955 = vmatpush1.bf16.msra.mxu0 %v13741_v39  ;;  %8439 = vmatpush1.bf16.msra.mxu1 %v13745_v28  ;;  %15281 = vst [vmem:[#allocation23_spill] sm:$0xff] %v13862_v17  ;;  %15282 = vst [vmem:[#allocation24_spill] sm:$0xff] %v13864_v46 }
 0x6f3   :  { %7956 = vmatprep.subr.bf16.mxu0 %v13747_v15  ;;  %8440 = vmatprep.subr.bf16.mxu1 %v13750_v38 }
 0x6f6   :  { %7957 = vmatpush1.bf16.msra.mxu0 %v13753_v9  ;;  %8441 = vmatpush1.bf16.msra.mxu1 %v13757_v48 }
 0x6f7   :  { %7958 = vmatprep.subr.bf16.mxu0 %v13759_v50  ;;  %8442 = vmatprep.subr.bf16.mxu1 %v13762_v58 }
 0x6fa   :  { %7959 = vmatpush1.bf16.msra.mxu0 %v13765_v41  ;;  %8443 = vmatpush1.bf16.msra.mxu1 %v13769_v24 }
 0x6fb   :  { %7960 = vmatprep.subr.bf16.mxu0 %v13771_v53  ;;  %8444 = vmatprep.subr.bf16.mxu1 %v13774_v33 }
 0x6fe   :  { %7961 = vmatpush1.bf16.msra.mxu0 %v13777_v31  ;;  %8445 = vmatpush1.bf16.msra.mxu1 %v13781_v20 }
 0x6ff   :  { %7962 = vmatprep.subr.bf16.mxu0 %v13783_v19  ;;  %8446 = vmatprep.subr.bf16.mxu1 %v13786_v56 }
 0x702   :  { %7963 = vmatpush1.bf16.msra.mxu0 %v13789_v42  ;;  %8447 = vmatpush1.bf16.msra.mxu1 %v13793_v5 }
 0x703   :  { %7964 = vmatprep.subr.bf16.mxu0 %v13795_v18  ;;  %8448 = vmatprep.subr.bf16.mxu1 %v13798_v54 }
 0x706   :  { %7965 = vmatpush1.bf16.msra.mxu0 %v13801_v25  ;;  %8449 = vmatpush1.bf16.msra.mxu1 %v13805_v60 }
 0x707   :  { %7966 = vmatprep.subr.bf16.mxu0 %v13807_v7  ;;  %8450 = vmatprep.subr.bf16.mxu1 %v13810_v40 }
 0x70a   :  { %7967 = vmatpush1.bf16.msra.mxu0 %v13813_v61  ;;  %8451 = vmatpush1.bf16.msra.mxu1 %v13817_v32 }
 0x70b   :  { %7968 = vmatprep.subr.bf16.mxu0 %v13822_v36  ;;  %8452 = vmatprep.subr.bf16.mxu1 %v13828_v62 }
 0x70e   :  { %7969 = vmatpush1.bf16.msra.mxu0 %v13824_v45  ;;  %8453 = vmatpush1.bf16.msra.mxu1 %v13826_v63 }
 0x70f   :  { %7970 = vmatprep.subr.bf16.mxu0 %v13834_v34  ;;  %8454 = vmatprep.subr.bf16.mxu1 %v13840_v22  ;;  %v8274_v22 = vld [vmem:[#allocation5 + $0x3c8] sm:$0xff] }
 0x712   :  { %7971 = vmatpush1.bf16.msra.mxu0 %v13836_v29  ;;  %8455 = vmatpush1.bf16.msra.mxu1 %v13838_v0  ;;  %v7790_v0 = vld [vmem:[#allocation5 + $0x3c0] sm:$0xff] }
 0x713   :  { %7972 = vmatprep.subr.bf16.mxu0 %v13846_v51  ;;  %8456 = vmatprep.subr.bf16.mxu1 %v13852_v8  ;;  %v8269_v8 = vld [vmem:[#allocation5 + $0x328] sm:$0xff]  ;;  %v7789_v51 = vld [vmem:[#allocation5 + $0x3a0] sm:$0xff] }
 0x716   :  { %7973 = vmatpush1.bf16.msra.mxu0 %v13848_v43  ;;  %8457 = vmatpush1.bf16.msra.mxu1 %v13850_v10  ;;  %v8268_v43 = vld [vmem:[#allocation5 + $0x308] sm:$0xff]  ;;  %v13870_v10 = vcombine.high %v7784_v3, %v7785_v1  ;;  %v7788_v1 = vld [vmem:[#allocation5 + $0x380] sm:$0xff] }
 0x717   :  { %7974 = vmatprep.subr.bf16.mxu0 %v13858_v47  ;;  %8458 = vmatprep.subr.bf16.mxu1 %v13864_v46  ;;  %v13874_v27 = vcombine.low %v8268_v43, %v8269_v8  ;;  %v13876_v52 = vcombine.high %v8268_v43, %v8269_v8  ;;  %v8270_v46 = vld [vmem:[#allocation5 + $0x348] sm:$0xff] }
 0x718   :  { %15283 = vst [vmem:[#allocation22_spill] sm:$0xff] %v13870_v10  ;;  %v8271_v3 = vld [vmem:[#allocation5 + $0x368] sm:$0xff] }
 0x719   :  { %15285 = vst [vmem:[#allocation27_spill] sm:$0xff] %v13874_v27  ;;  %15286 = vst [vmem:[#allocation28_spill] sm:$0xff] %v13876_v52  ;;  %v13886_v43 = vcombine.low %v8270_v46, %v8271_v3  ;;  %v13888_v8 = vcombine.high %v8270_v46, %v8271_v3 }
 0x71a   :  { %7975 = vmatpush1.bf16.msra.mxu0 %v13860_v14  ;;  %8459 = vmatpush1.bf16.msra.mxu1 %v13862_v17  ;;  %v7787_v14 = vld [vmem:[#allocation5 + $0x360] sm:$0xff] }
 0x71b   :  { %7976 = vmatprep.subr.bf16.mxu0 %v13870_v10  ;;  %8460 = vmatprep.subr.bf16.mxu1 %v13876_v52  ;;  %v13882_v17 = vcombine.low %v7786_v23, %v7787_v14  ;;  %v13884_v47 = vcombine.high %v7786_v23, %v7787_v14  ;;  %15289 = vst [vmem:[#allocation31_spill] sm:$0xff] %v13886_v43  ;;  %15290 = vst [vmem:[#allocation32_spill] sm:$0xff] %v13888_v8  ;;  %v8272_v52 = vld [vmem:[#allocation5 + $0x388] sm:$0xff] }
 0x71c   :  { %v13890_v10 = vcombine.high %v7788_v1, %v7789_v51  ;;  %v8275_v14 = vld [vmem:[#allocation5 + $0x3e8] sm:$0xff]  ;;  %v13897_v23 = vcombine.low %v7788_v1, %v7789_v51  ;;  %v8497_v1 = vld [vmem:[#allocation5 + $0x18] sm:$0xff] }
 0x71d   :  { %15287 = vst [vmem:[#allocation26_spill] sm:$0xff] %v13882_v17  ;;  %15288 = vst [vmem:[#allocation29_spill] sm:$0xff] %v13884_v47  ;;  %v13913_v51 = vcombine.low %v8274_v22, %v8275_v14 }
 0x71e   :  { %7977 = vmatpush1.bf16.msra.mxu0 %v13872_v11  ;;  %8461 = vmatpush1.bf16.msra.mxu1 %v13874_v27  ;;  %15291 = vst [vmem:[#allocation30_spill] sm:$0xff] %v13890_v10  ;;  %v8273_v11 = vld [vmem:[#allocation5 + $0x3a8] sm:$0xff]  ;;  %v7791_v27 = vld [vmem:[#allocation5 + $0x3e0] sm:$0xff]  ;;  %15293 = vst [vmem:[#allocation35_spill] sm:$0xff] %v13897_v23 }
 0x71f   :  { %7978 = vmatprep.subr.bf16.mxu0 %v13884_v47  ;;  %v13893_v29 = vcombine.high %v8272_v52, %v8273_v11  ;;  %8462 = vmatprep.subr.bf16.mxu1 %v13888_v8  ;;  %v13901_v46 = vcombine.low %v8272_v52, %v8273_v11  ;;  %v13903_v3 = vcombine.high %v7790_v0, %v7791_v27  ;;  %v7995_v11 = vld [vmem:[#allocation5 + $0x10] sm:$0xff] }
 0x720   :  { %v13906_v47 = vcombine.high %v8274_v22, %v8275_v14  ;;  %v13909_v34 = vcombine.low %v7790_v0, %v7791_v27  ;;  %15298 = vst [vmem:[#allocation38_spill] sm:$0xff] %v13913_v51  ;;  %v7996_v52 = vld [vmem:[#allocation5 + $0x30] sm:$0xff] }
 0x721   :  { %15292 = vst [vmem:[#allocation33_spill] sm:$0xff] %v13893_v29  ;;  %15294 = vst [vmem:[#allocation36_spill] sm:$0xff] %v13901_v46  ;;  %v13920_v0 = vcombine.low %v7995_v11, %v7996_v52 }
 0x722   :  { %7979 = vmatpush1.bf16.msra.mxu0 %v13882_v17  ;;  %8463 = vmatpush1.bf16.msra.mxu1 %v13886_v43  ;;  %15295 = vst [vmem:[#allocation34_spill] sm:$0xff] %v13903_v3  ;;  %15296 = vst [vmem:[#allocation40_spill] sm:$0xff] %v13906_v47 }
 0x723   :  { %7980 = vmatprep.subr.bf16.mxu0 %v13890_v10  ;;  %8464 = vmatprep.subr.bf16.mxu1 %v13893_v29  ;;  %15297 = vst [vmem:[#allocation39_spill] sm:$0xff] %v13909_v34  ;;  %v13918_v29 = vcombine.high %v7995_v11, %v7996_v52  ;;  %15300 = vst [vmem:[#allocation41_spill] sm:$0xff] %v13920_v0 }
 0x725   :  { %15299 = vst [vmem:[#allocation37_spill] sm:$0xff] %v13918_v29 }
 0x726   :  { %7981 = vmatpush1.bf16.msra.mxu0 %v13897_v23  ;;  %8465 = vmatpush1.bf16.msra.mxu1 %v13901_v46  ;;  %v8498_v23 = vld [vmem:[#allocation5 + $0x38] sm:$0xff] }
 0x727   :  { %7982 = vmatprep.subr.bf16.mxu0 %v13903_v3  ;;  %8466 = vmatprep.subr.bf16.mxu1 %v13906_v47  ;;  %v13922_v27 = vcombine.low %v8497_v1, %v8498_v23  ;;  %v13924_v46 = vcombine.high %v8497_v1, %v8498_v23 }
 0x729   :  { %15301 = vst [vmem:[#allocation42_spill] sm:$0xff] %v13922_v27  ;;  %15302 = vst [vmem:[#allocation43_spill] sm:$0xff] %v13924_v46 }
 0x72a   :  { %7983 = vmatpush1.bf16.msra.mxu0 %v13909_v34  ;;  %8467 = vmatpush1.bf16.msra.mxu1 %v13913_v51 }
 0x72b   :  { %8187 = vmatprep.subr.bf16.mxu0 %v13918_v29  ;;  %8689 = vmatprep.subr.bf16.mxu1 %v13924_v46 }
 0x770   :  { %v6772_v22 = vpop.f32.mrb[40].mxu0  ;;  %v7256_v14 = vpop.f32.mrb[40].mxu1 }
 0x771   :  { %v6774_v34 = vpop.f32.mrb[41].mxu0  ;;  %v7258_v47 = vpop.f32.mrb[41].mxu1  ;;  %v11265_v17 = vadd.f32 %v6772_v22, %v15218_v6  ;;  %v11267_v11 = vadd.f32 %v7256_v14, %v12388_v35 }
 0x772   :  { %v6776_v3 = vpop.f32.mrb[42].mxu0  ;;  %v7260_v10 = vpop.f32.mrb[42].mxu1  ;;  %v11266_v52 = vadd.f32 %v6774_v34, %v12390_v37  ;;  %v11268_v23 = vadd.f32 %v7258_v47, %v12392_v4 }
 0x773   :  { %v6777_v51 = vpop.f32.mrb[43].mxu0  ;;  %v7261_v43 = vpop.f32.mrb[43].mxu1  ;;  %v10802_v1 = vmul.f32 -1.442695, %v11265_v17  ;;  %v10836_v29 = vmul.f32 -1.442695, %v11267_v11 }
 0x774   :  { %v10803_v8 = vmul.f32 -1.442695, %v11266_v52  ;;  %v10837_v46 = vmul.f32 -1.442695, %v11268_v23 }
 0x775   :  { %11598 = vpow2.f32 %v10802_v1 }
 0x776   :  { %11600 = vpow2.f32 %v10836_v29 }
 0x777   :  { %11602 = vpow2.f32 %v10803_v8 }
 0x778   :  { %11604 = vpow2.f32 %v10837_v46 }
 0x77f   :  { %v11599_v3 = vpop.eup %11598 }
 0x780   :  { %v11601_v10 = vpop.eup %11600  ;;  %v7022_v63 = vadd.f32 1.0, %v11599_v3 }
 0x781   :  { %v11603_v51 = vpop.eup %11602  ;;  %v7271_v22 = vadd.f32 1.0, %v11601_v10 }
 0x782   :  { %v11605_v43 = vpop.eup %11604  ;;  %v7023_v6 = vadd.f32 1.0, %v11603_v51  ;;  %11606 = vrcp.f32 %v7022_v63 }
 0x783   :  { %v7272_v14 = vadd.f32 1.0, %v11605_v43  ;;  %11608 = vrcp.f32 %v7271_v22 }
 0x784   :  { %11610 = vrcp.f32 %v7023_v6 }
 0x785   :  { %11612 = vrcp.f32 %v7272_v14 }
 0x78c   :  { %v11607_v6 = vpop.eup %11606 }
 0x78d   :  { %v11609_v43 = vpop.eup %11608 }
 0x78e   :  { %v11611_v22 = vpop.eup %11610 }
 0x7b0   :  { %v7007_v34 = vpop.f32.mrb[44].mxu0  ;;  %v7509_v47 = vpop.f32.mrb[44].mxu1 }
 0x7b1   :  { %v11269_v17 = vadd.f32 %v7007_v34, %v12398_v49  ;;  %v11271_v11 = vadd.f32 %v7509_v47, %v12400_v55  ;;  %v7009_v29 = vpop.f32.mrb[45].mxu0  ;;  %v7511_v8 = vpop.f32.mrb[45].mxu1 }
 0x7b2   :  { %v11270_v46 = vadd.f32 %v7009_v29, %v15219_v13  ;;  %v11272_v52 = vadd.f32 %v7511_v8, %v12404_v57  ;;  %v7011_v23 = vpop.f32.mrb[46].mxu0  ;;  %v7513_v1 = vpop.f32.mrb[46].mxu1  ;;  %v7277_v29 = vmul.f32 %v11609_v43, %v13640_v12 }
 0x7b3   :  { %11614 = vtanh.f32 %v11269_v17  ;;  %v10870_v3 = vmul.f32 -1.442695, %v11271_v11  ;;  %v7012_v63 = vpop.f32.mrb[47].mxu0  ;;  %v7514_v10 = vpop.f32.mrb[47].mxu1 }
 0x7b4   :  { %11616 = vtanh.f32 %v11270_v46  ;;  %v10871_v51 = vmul.f32 -1.442695, %v11272_v52  ;;  %v11613_v34 = vpop.eup %11612 }
 0x7b5   :  { %11618 = vpow2.f32 %v10870_v3  ;;  %v7278_v23 = vmul.f32 %v11613_v34, %v13642_v16  ;;  %v8499_v34 = vld [vmem:[#allocation5 + $0x58] sm:$0xff] }
 0x7b6   :  { %11620 = vpow2.f32 %v10871_v51 }
 0x7bd   :  { %v11615_v47 = vpop.eup %11614 }
 0x7be   :  { %v11617_v14 = vpop.eup %11616  ;;  %v7279_v13 = vmul.f32 %v11615_v47, %v11607_v6  ;;  %v8500_v47 = vld [vmem:[#allocation5 + $0x78] sm:$0xff] }
 0x7bf   :  { %v11619_v8 = vpop.eup %11618  ;;  %v7280_v17 = vmul.f32 %v11617_v14, %v11611_v22  ;;  %v7998_v22 = vld [vmem:[#allocation5 + $0x70] sm:$0xff] }
 0x7c0   :  { %v11621_v11 = vpop.eup %11620  ;;  %v13938_v1 = vadd.f32 %v7279_v13, %v7277_v29  ;;  %v7524_v46 = vadd.f32 1.0, %v11619_v8  ;;  %v7997_v13 = vld [vmem:[#allocation5 + $0x50] sm:$0xff] }
 0x7c1   :  { %v13940_v52 = vadd.f32 %v7280_v17, %v7278_v23  ;;  %v7525_v3 = vadd.f32 1.0, %v11621_v11  ;;  %v7999_v8 = vld [vmem:[#allocation5 + $0x90] sm:$0xff]  ;;  %v13947_v17 = vcombine.high %v7997_v13, %v7998_v22  ;;  %v13949_v11 = vcombine.high %v8499_v34, %v8500_v47 }
 0x7c2   :  { %11622 = vtanh.f32 %v13938_v1 }
 0x7c3   :  { %11624 = vrcp.f32 %v7524_v46  ;;  %15303 = vst [vmem:[#allocation44_spill] sm:$0xff] %v13947_v17  ;;  %15304 = vst [vmem:[#allocation45_spill] sm:$0xff] %v13949_v11  ;;  %v8000_v46 = vld [vmem:[#allocation5 + $0xb0] sm:$0xff] }
 0x7c4   :  { %11626 = vtanh.f32 %v13940_v52 }
 0x7c5   :  { %11628 = vrcp.f32 %v7525_v3  ;;  %v8501_v3 = vld [vmem:[#allocation5 + $0x98] sm:$0xff] }
 0x7cc   :  { %v11623_v63 = vpop.eup %11622 }
 0x7cd   :  { %v11625_v12 = vpop.eup %11624 }
 0x7ce   :  { %v11627_v10 = vpop.eup %11626  ;;  %v7532_v51 = vmul.f32 %v11625_v12, %v11623_v63  ;;  %v8502_v63 = vld [vmem:[#allocation5 + $0xb8] sm:$0xff]  ;;  %v13955_v12 = vcombine.low %v7997_v13, %v7998_v22  ;;  %v13967_v13 = vcombine.low %v7999_v8, %v8000_v46 }
 0x7cf   :  { %v11629_v6 = vpop.eup %11628  ;;  %v13969_v22 = vcombine.low %v8501_v3, %v8502_v63 }
 0x7d0   :  { %v7533_v16 = vmul.f32 %v11629_v6, %v11627_v10  ;;  %v13944_v43 = vpack.c.bf16 %v7532_v51, %v7532_v51  ;;  %15305 = vst [vmem:[#allocation46_spill] sm:$0xff] %v13955_v12  ;;  %v13957_v10 = vcombine.low %v8499_v34, %v8500_v47  ;;  %v13959_v51 = vcombine.high %v7999_v8, %v8000_v46 }
 0x7d1   :  { %v13961_v6 = vcombine.high %v8501_v3, %v8502_v63  ;;  %15309 = vst [vmem:[#allocation51_spill] sm:$0xff] %v13967_v13  ;;  %15310 = vst [vmem:[#allocation52_spill] sm:$0xff] %v13969_v22 }
 0x7d2   :  { %v7535_v14 = vpack.c.bf16 %v7533_v16, %v7533_v16  ;;  %v7538_v29 = vrot.slane %v13944_v43, 4  ;;  %15306 = vst [vmem:[#allocation47_spill] sm:$0xff] %v13957_v10  ;;  %15307 = vst [vmem:[#allocation48_spill] sm:$0xff] %v13959_v51  ;;  %v8001_v16 = vld [vmem:[#allocation5 + $0xd0] sm:$0xff] }
 0x7d3   :  { %15308 = vst [vmem:[#allocation49_spill] sm:$0xff] %v13961_v6 }
 0x7d4   :  { %v7539_v23 = vrot.slane %v7535_v14, 4  ;;  %7984 = vmatprep.mubr.bf16.mxu0 %v7535_v14  ;;  %8468 = vmatprep.mubr.bf16.mxu1 %v7535_v14  ;;  %7542 = vst [vmem:[#allocation2 + $0x20] sm:$0xf0] %v7538_v29  ;;  %v8002_v29 = vld [vmem:[#allocation5 + $0xf0] sm:$0xff] }
 0x7d5   :  { %7985 = vmatmul.mubr.bf16.vlgmr.msra.gmra.mrb[48].mxu0 %v13944_v43  ;;  %8469 = vmatmul.mubr.bf16.vlgmr.msra.gmra.mrb[48].mxu1 %v13944_v43  ;;  %v13973_v34 = vcombine.high %v8001_v16, %v8002_v29  ;;  %v13979_v8 = vcombine.low %v8001_v16, %v8002_v29 }
 0x7d6   :  { %7543 = vst [vmem:[#allocation2 + $0x28] sm:$0xf0] %v7539_v23  ;;  %8188 = vmatpush1.bf16.msra.mxu0 %v13920_v0  ;;  %8690 = vmatpush1.bf16.msra.mxu1 %v13922_v27  ;;  %v8503_v23 = vld [vmem:[#allocation5 + $0xd8] sm:$0xff] }
 0x7d7   :  { %8219 = vmatprep.mubr.bf16.mxu0 %v7535_v14  ;;  %8721 = vmatprep.mubr.bf16.mxu1 %v7535_v14  ;;  %v8504_v0 = vld [vmem:[#allocation5 + $0xf8] sm:$0xff]  ;;  %15311 = vst [vmem:[#allocation50_spill] sm:$0xff] %v13973_v34  ;;  %v8003_v14 = vld [vmem:[#allocation5 + $0x110] sm:$0xff]  ;;  %15313 = vst [vmem:[#allocation54_spill] sm:$0xff] %v13979_v8 }
 0x7d8   :  { %8189 = vmatprep.subr.bf16.mxu0 %v13947_v17  ;;  %8691 = vmatprep.subr.bf16.mxu1 %v13949_v11  ;;  %v13975_v47 = vcombine.high %v8503_v23, %v8504_v0  ;;  %v8004_v11 = vld [vmem:[#allocation5 + $0x130] sm:$0xff]  ;;  %v8505_v17 = vld [vmem:[#allocation5 + $0x118] sm:$0xff]  ;;  %v13981_v46 = vcombine.low %v8503_v23, %v8504_v0 }
 0x7d9   :  { %v8506_v27 = vld [vmem:[#allocation5 + $0x138] sm:$0xff]  ;;  %v13985_v3 = vcombine.high %v8003_v14, %v8004_v11  ;;  %v13991_v16 = vcombine.low %v8003_v14, %v8004_v11 }
 0x7da   :  { %8190 = vmatpush1.bf16.msra.mxu0 %v13955_v12  ;;  %8692 = vmatpush1.bf16.msra.mxu1 %v13957_v10  ;;  %15312 = vst [vmem:[#allocation53_spill] sm:$0xff] %v13975_v47  ;;  %15314 = vst [vmem:[#allocation55_spill] sm:$0xff] %v13981_v46  ;;  %v13987_v63 = vcombine.high %v8505_v17, %v8506_v27  ;;  %v8507_v10 = vld [vmem:[#allocation5 + $0x158] sm:$0xff]  ;;  %v13993_v0 = vcombine.low %v8505_v17, %v8506_v27 }
 0x7db   :  { %8191 = vmatprep.subr.bf16.mxu0 %v13959_v51  ;;  %8693 = vmatprep.subr.bf16.mxu1 %v13961_v6  ;;  %15315 = vst [vmem:[#allocation56_spill] sm:$0xff] %v13985_v3  ;;  %v8005_v6 = vld [vmem:[#allocation5 + $0x150] sm:$0xff]  ;;  %v8508_v12 = vld [vmem:[#allocation5 + $0x178] sm:$0xff]  ;;  %15317 = vst [vmem:[#allocation58_spill] sm:$0xff] %v13991_v16 }
 0x7dc   :  { %15316 = vst [vmem:[#allocation57_spill] sm:$0xff] %v13987_v63  ;;  %v8006_v51 = vld [vmem:[#allocation5 + $0x170] sm:$0xff]  ;;  %15318 = vst [vmem:[#allocation59_spill] sm:$0xff] %v13993_v0  ;;  %v13999_v23 = vcombine.high %v8507_v10, %v8508_v12  ;;  %v14005_v27 = vcombine.low %v8507_v10, %v8508_v12 }
 0x7dd   :  { %v13997_v29 = vcombine.high %v8005_v6, %v8006_v51  ;;  %v14003_v11 = vcombine.low %v8005_v6, %v8006_v51 }
 0x7de   :  { %8192 = vmatpush1.bf16.msra.mxu0 %v13967_v13  ;;  %8694 = vmatpush1.bf16.msra.mxu1 %v13969_v22  ;;  %15320 = vst [vmem:[#allocation61_spill] sm:$0xff] %v13999_v23  ;;  %v8509_v22 = vld [vmem:[#allocation5 + $0x198] sm:$0xff]  ;;  %15322 = vst [vmem:[#allocation63_spill] sm:$0xff] %v14005_v27 }
 0x7df   :  { %8193 = vmatprep.subr.bf16.mxu0 %v13973_v34  ;;  %8695 = vmatprep.subr.bf16.mxu1 %v13975_v47  ;;  %15319 = vst [vmem:[#allocation60_spill] sm:$0xff] %v13997_v29  ;;  %v8007_v47 = vld [vmem:[#allocation5 + $0x190] sm:$0xff]  ;;  %v8510_v13 = vld [vmem:[#allocation5 + $0x1b8] sm:$0xff]  ;;  %15321 = vst [vmem:[#allocation62_spill] sm:$0xff] %v14003_v11 }
 0x7e0   :  { %v8008_v34 = vld [vmem:[#allocation5 + $0x1b0] sm:$0xff]  ;;  %v14011_v14 = vcombine.high %v8509_v22, %v8510_v13  ;;  %v14017_v12 = vcombine.low %v8509_v22, %v8510_v13 }
 0x7e1   :  { %v14009_v17 = vcombine.high %v8007_v47, %v8008_v34  ;;  %v14015_v51 = vcombine.low %v8007_v47, %v8008_v34 }
 0x7e2   :  { %8194 = vmatpush1.bf16.msra.mxu0 %v13979_v8  ;;  %8696 = vmatpush1.bf16.msra.mxu1 %v13981_v46  ;;  %15324 = vst [vmem:[#allocation65_spill] sm:$0xff] %v14011_v14  ;;  %v8511_v46 = vld [vmem:[#allocation5 + $0x1d8] sm:$0xff]  ;;  %15326 = vst [vmem:[#allocation67_spill] sm:$0xff] %v14017_v12 }
 0x7e3   :  { %8195 = vmatprep.subr.bf16.mxu0 %v13985_v3  ;;  %8697 = vmatprep.subr.bf16.mxu1 %v13987_v63  ;;  %15323 = vst [vmem:[#allocation64_spill] sm:$0xff] %v14009_v17  ;;  %v8009_v63 = vld [vmem:[#allocation5 + $0x1d0] sm:$0xff]  ;;  %v8512_v8 = vld [vmem:[#allocation5 + $0x1f8] sm:$0xff]  ;;  %15325 = vst [vmem:[#allocation66_spill] sm:$0xff] %v14015_v51 }
 0x7e4   :  { %v8010_v3 = vld [vmem:[#allocation5 + $0x1f0] sm:$0xff]  ;;  %v14023_v6 = vcombine.high %v8511_v46, %v8512_v8  ;;  %v14029_v13 = vcombine.low %v8511_v46, %v8512_v8 }
 0x7e5   :  { %v14021_v10 = vcombine.high %v8009_v63, %v8010_v3  ;;  %v14027_v34 = vcombine.low %v8009_v63, %v8010_v3 }
 0x7e6   :  { %8196 = vmatpush1.bf16.msra.mxu0 %v13991_v16  ;;  %8698 = vmatpush1.bf16.msra.mxu1 %v13993_v0  ;;  %15328 = vst [vmem:[#allocation69_spill] sm:$0xff] %v14023_v6  ;;  %v8513_v0 = vld [vmem:[#allocation5 + $0x218] sm:$0xff]  ;;  %15330 = vst [vmem:[#allocation71_spill] sm:$0xff] %v14029_v13 }
 0x7e7   :  { %8197 = vmatprep.subr.bf16.mxu0 %v13997_v29  ;;  %8699 = vmatprep.subr.bf16.mxu1 %v13999_v23  ;;  %15327 = vst [vmem:[#allocation68_spill] sm:$0xff] %v14021_v10  ;;  %v8011_v23 = vld [vmem:[#allocation5 + $0x210] sm:$0xff]  ;;  %v8514_v16 = vld [vmem:[#allocation5 + $0x238] sm:$0xff]  ;;  %15329 = vst [vmem:[#allocation70_spill] sm:$0xff] %v14027_v34 }
 0x7e8   :  { %v8012_v29 = vld [vmem:[#allocation5 + $0x230] sm:$0xff]  ;;  %v14035_v47 = vcombine.high %v8513_v0, %v8514_v16  ;;  %v14041_v8 = vcombine.low %v8513_v0, %v8514_v16 }
 0x7e9   :  { %v14033_v22 = vcombine.high %v8011_v23, %v8012_v29  ;;  %v14039_v3 = vcombine.low %v8011_v23, %v8012_v29 }
 0x7ea   :  { %8198 = vmatpush1.bf16.msra.mxu0 %v14003_v11  ;;  %8700 = vmatpush1.bf16.msra.mxu1 %v14005_v27  ;;  %15332 = vst [vmem:[#allocation73_spill] sm:$0xff] %v14035_v47  ;;  %v8515_v27 = vld [vmem:[#allocation5 + $0x258] sm:$0xff]  ;;  %15334 = vst [vmem:[#allocation75_spill] sm:$0xff] %v14041_v8 }
 0x7eb   :  { %8199 = vmatprep.subr.bf16.mxu0 %v14009_v17  ;;  %8701 = vmatprep.subr.bf16.mxu1 %v14011_v14  ;;  %15331 = vst [vmem:[#allocation72_spill] sm:$0xff] %v14033_v22  ;;  %v8013_v14 = vld [vmem:[#allocation5 + $0x250] sm:$0xff]  ;;  %v8516_v11 = vld [vmem:[#allocation5 + $0x278] sm:$0xff]  ;;  %15333 = vst [vmem:[#allocation74_spill] sm:$0xff] %v14039_v3 }
 0x7ec   :  { %v8014_v17 = vld [vmem:[#allocation5 + $0x270] sm:$0xff]  ;;  %v14047_v63 = vcombine.high %v8515_v27, %v8516_v11  ;;  %v14053_v16 = vcombine.low %v8515_v27, %v8516_v11 }
 0x7ed   :  { %v14045_v46 = vcombine.high %v8013_v14, %v8014_v17  ;;  %v14051_v29 = vcombine.low %v8013_v14, %v8014_v17 }
 0x7ee   :  { %8200 = vmatpush1.bf16.msra.mxu0 %v14015_v51  ;;  %8702 = vmatpush1.bf16.msra.mxu1 %v14017_v12  ;;  %15336 = vst [vmem:[#allocation77_spill] sm:$0xff] %v14047_v63  ;;  %v8517_v12 = vld [vmem:[#allocation5 + $0x298] sm:$0xff]  ;;  %15338 = vst [vmem:[#allocation79_spill] sm:$0xff] %v14053_v16 }
 0x7ef   :  { %8201 = vmatprep.subr.bf16.mxu0 %v14021_v10  ;;  %8703 = vmatprep.subr.bf16.mxu1 %v14023_v6  ;;  %15335 = vst [vmem:[#allocation76_spill] sm:$0xff] %v14045_v46  ;;  %v8015_v6 = vld [vmem:[#allocation5 + $0x290] sm:$0xff]  ;;  %v8518_v51 = vld [vmem:[#allocation5 + $0x2b8] sm:$0xff]  ;;  %15337 = vst [vmem:[#allocation78_spill] sm:$0xff] %v14051_v29 }
 0x7f0   :  { %v8016_v10 = vld [vmem:[#allocation5 + $0x2b0] sm:$0xff]  ;;  %v14059_v23 = vcombine.high %v8517_v12, %v8518_v51  ;;  %v14065_v11 = vcombine.low %v8517_v12, %v8518_v51 }
 0x7f1   :  { %v14057_v0 = vcombine.high %v8015_v6, %v8016_v10  ;;  %v14063_v17 = vcombine.low %v8015_v6, %v8016_v10 }
 0x7f2   :  { %8202 = vmatpush1.bf16.msra.mxu0 %v14027_v34  ;;  %8704 = vmatpush1.bf16.msra.mxu1 %v14029_v13  ;;  %15340 = vst [vmem:[#allocation81_spill] sm:$0xff] %v14059_v23  ;;  %v8519_v13 = vld [vmem:[#allocation5 + $0x2d8] sm:$0xff]  ;;  %15342 = vst [vmem:[#allocation83_spill] sm:$0xff] %v14065_v11 }
 0x7f3   :  { %8203 = vmatprep.subr.bf16.mxu0 %v14033_v22  ;;  %8705 = vmatprep.subr.bf16.mxu1 %v14035_v47  ;;  %15339 = vst [vmem:[#allocation80_spill] sm:$0xff] %v14057_v0  ;;  %v8017_v47 = vld [vmem:[#allocation5 + $0x2d0] sm:$0xff]  ;;  %v8520_v34 = vld [vmem:[#allocation5 + $0x2f8] sm:$0xff]  ;;  %15341 = vst [vmem:[#allocation82_spill] sm:$0xff] %v14063_v17 }
 0x7f4   :  { %v8018_v22 = vld [vmem:[#allocation5 + $0x2f0] sm:$0xff]  ;;  %v14071_v14 = vcombine.high %v8519_v13, %v8520_v34  ;;  %v14077_v51 = vcombine.low %v8519_v13, %v8520_v34 }
 0x7f5   :  { %v14069_v27 = vcombine.high %v8017_v47, %v8018_v22  ;;  %v14075_v10 = vcombine.low %v8017_v47, %v8018_v22 }
 0x7f6   :  { %8204 = vmatpush1.bf16.msra.mxu0 %v14039_v3  ;;  %8706 = vmatpush1.bf16.msra.mxu1 %v14041_v8  ;;  %15344 = vst [vmem:[#allocation85_spill] sm:$0xff] %v14071_v14  ;;  %v8521_v8 = vld [vmem:[#allocation5 + $0x318] sm:$0xff]  ;;  %15346 = vst [vmem:[#allocation87_spill] sm:$0xff] %v14077_v51 }
 0x7f7   :  { %8205 = vmatprep.subr.bf16.mxu0 %v14045_v46  ;;  %8707 = vmatprep.subr.bf16.mxu1 %v14047_v63  ;;  %15343 = vst [vmem:[#allocation84_spill] sm:$0xff] %v14069_v27  ;;  %v8019_v63 = vld [vmem:[#allocation5 + $0x310] sm:$0xff]  ;;  %v8522_v3 = vld [vmem:[#allocation5 + $0x338] sm:$0xff]  ;;  %15345 = vst [vmem:[#allocation86_spill] sm:$0xff] %v14075_v10 }
 0x7f8   :  { %v8020_v46 = vld [vmem:[#allocation5 + $0x330] sm:$0xff]  ;;  %v14083_v6 = vcombine.high %v8521_v8, %v8522_v3  ;;  %v14089_v34 = vcombine.low %v8521_v8, %v8522_v3 }
 0x7f9   :  { %v14081_v12 = vcombine.high %v8019_v63, %v8020_v46  ;;  %v14087_v22 = vcombine.low %v8019_v63, %v8020_v46 }
 0x7fa   :  { %8206 = vmatpush1.bf16.msra.mxu0 %v14051_v29  ;;  %8708 = vmatpush1.bf16.msra.mxu1 %v14053_v16  ;;  %15348 = vst [vmem:[#allocation89_spill] sm:$0xff] %v14083_v6  ;;  %v8523_v16 = vld [vmem:[#allocation5 + $0x358] sm:$0xff] }
 0x7fb   :  { %8207 = vmatprep.subr.bf16.mxu0 %v14057_v0  ;;  %8709 = vmatprep.subr.bf16.mxu1 %v14059_v23  ;;  %15347 = vst [vmem:[#allocation88_spill] sm:$0xff] %v14081_v12  ;;  %v8021_v23 = vld [vmem:[#allocation5 + $0x350] sm:$0xff]  ;;  %v8524_v29 = vld [vmem:[#allocation5 + $0x378] sm:$0xff] }
 0x7fc   :  { %v8022_v0 = vld [vmem:[#allocation5 + $0x370] sm:$0xff]  ;;  %v14095_v47 = vcombine.high %v8523_v16, %v8524_v29  ;;  %v14101_v3 = vcombine.low %v8523_v16, %v8524_v29 }
 0x7fd   :  { %v14093_v13 = vcombine.high %v8021_v23, %v8022_v0  ;;  %v14099_v46 = vcombine.low %v8021_v23, %v8022_v0 }
 0x7fe   :  { %8208 = vmatpush1.bf16.msra.mxu0 %v14063_v17  ;;  %8710 = vmatpush1.bf16.msra.mxu1 %v14065_v11  ;;  %15349 = vst [vmem:[#allocation90_spill] sm:$0xff] %v14095_v47  ;;  %v8525_v11 = vld [vmem:[#allocation5 + $0x398] sm:$0xff] }
 0x7ff   :  { %8209 = vmatprep.subr.bf16.mxu0 %v14069_v27  ;;  %8711 = vmatprep.subr.bf16.mxu1 %v14071_v14  ;;  %v8023_v14 = vld [vmem:[#allocation5 + $0x390] sm:$0xff]  ;;  %v8526_v17 = vld [vmem:[#allocation5 + $0x3b8] sm:$0xff]  ;;  %15350 = vst [vmem:[#allocation91_spill] sm:$0xff] %v14099_v46 }
 0x800   :  { %v8024_v27 = vld [vmem:[#allocation5 + $0x3b0] sm:$0xff]  ;;  %v14107_v63 = vcombine.high %v8525_v11, %v8526_v17  ;;  %v14113_v29 = vcombine.low %v8525_v11, %v8526_v17 }
 0x801   :  { %v14105_v8 = vcombine.high %v8023_v14, %v8024_v27  ;;  %v14111_v0 = vcombine.low %v8023_v14, %v8024_v27  ;;  %v15382_v14 = vld [vmem:[#allocation9_spill] sm:$0xff] }
 0x802   :  { %8210 = vmatpush1.bf16.msra.mxu0 %v14075_v10  ;;  %8712 = vmatpush1.bf16.msra.mxu1 %v14077_v51  ;;  %v8527_v51 = vld [vmem:[#allocation5 + $0x3d8] sm:$0xff] }
 0x803   :  { %8211 = vmatprep.subr.bf16.mxu0 %v14081_v12  ;;  %8713 = vmatprep.subr.bf16.mxu1 %v14083_v6  ;;  %v8025_v6 = vld [vmem:[#allocation5 + $0x3d0] sm:$0xff]  ;;  %v8528_v10 = vld [vmem:[#allocation5 + $0x3f8] sm:$0xff] }
 0x804   :  { %v8026_v12 = vld [vmem:[#allocation5 + $0x3f0] sm:$0xff]  ;;  %v14119_v23 = vcombine.high %v8527_v51, %v8528_v10 }
 0x805   :  { %v14117_v16 = vcombine.high %v8025_v6, %v8026_v12 }
 0x806   :  { %8212 = vmatpush1.bf16.msra.mxu0 %v14087_v22  ;;  %8714 = vmatpush1.bf16.msra.mxu1 %v14089_v34 }
 0x807   :  { %8213 = vmatprep.subr.bf16.mxu0 %v14093_v13  ;;  %8715 = vmatprep.subr.bf16.mxu1 %v14095_v47  ;;  %v14123_v47 = vcombine.low %v8025_v6, %v8026_v12 }
 0x80a   :  { %8214 = vmatpush1.bf16.msra.mxu0 %v14099_v46  ;;  %8716 = vmatpush1.bf16.msra.mxu1 %v14101_v3  ;;  %v14125_v46 = vcombine.low %v8527_v51, %v8528_v10 }
 0x80b   :  { %8215 = vmatprep.subr.bf16.mxu0 %v14105_v8  ;;  %8717 = vmatprep.subr.bf16.mxu1 %v14107_v63 }
 0x80e   :  { %8216 = vmatpush1.bf16.msra.mxu0 %v14111_v0  ;;  %8718 = vmatpush1.bf16.msra.mxu1 %v14113_v29 }
 0x80f   :  { %8217 = vmatprep.subr.bf16.mxu0 %v14117_v16  ;;  %8719 = vmatprep.subr.bf16.mxu1 %v14119_v23 }
 0x812   :  { %8218 = vmatpush1.bf16.msra.mxu0 %v14123_v47  ;;  %8720 = vmatpush1.bf16.msra.mxu1 %v14125_v46 }
 0x813   :  { %8944 = vmatprep.subr.bf16.mxu0 %v13726_v30  ;;  %9428 = vmatprep.subr.bf16.mxu1 %v13730_v26  ;;  %v15352_v30 = vld [vmem:[#allocation12_spill] sm:$0xff]  ;;  %v15354_v26 = vld [vmem:[#allocation13_spill] sm:$0xff] }
 0x815   :  { %8220 = vmatmul.mubr.bf16.vlgmr.msra.gmra.mrb[52].mxu0 %v13944_v43  ;;  %8722 = vmatmul.mubr.bf16.vlgmr.msra.gmra.mrb[52].mxu1 %v13944_v43 }
 0x816   :  { %8945 = vmatpush1.bf16.msra.mxu0 %v13724_v21  ;;  %9429 = vmatpush1.bf16.msra.mxu1 %v13728_v44  ;;  %v15351_v21 = vld [vmem:[#allocation11_spill] sm:$0xff] }
 0x817   :  { %8946 = vmatprep.subr.bf16.mxu0 %v13732_v59  ;;  %9430 = vmatprep.subr.bf16.mxu1 %v13735_v2  ;;  %v15353_v44 = vld [vmem:[#allocation15_spill] sm:$0xff]  ;;  %v15355_v59 = vld [vmem:[#allocation14_spill] sm:$0xff]  ;;  %v15356_v2 = vld [vmem:[#allocation16_spill] sm:$0xff] }
 0x81a   :  { %8947 = vmatpush1.bf16.msra.mxu0 %v13741_v39  ;;  %9431 = vmatpush1.bf16.msra.mxu1 %v13745_v28  ;;  %v15357_v39 = vld [vmem:[#allocation20_spill] sm:$0xff]  ;;  %v15358_v28 = vld [vmem:[#allocation17_spill] sm:$0xff] }
 0x81b   :  { %8948 = vmatprep.subr.bf16.mxu0 %v13747_v15  ;;  %9432 = vmatprep.subr.bf16.mxu1 %v13750_v38  ;;  %v15359_v15 = vld [vmem:[#allocation19_spill] sm:$0xff]  ;;  %v15360_v38 = vld [vmem:[#allocation18_spill] sm:$0xff] }
 0x81e   :  { %8949 = vmatpush1.bf16.msra.mxu0 %v13753_v9  ;;  %9433 = vmatpush1.bf16.msra.mxu1 %v13757_v48  ;;  %v15361_v9 = vld [vmem:[#allocation24_spill] sm:$0xff]  ;;  %v15362_v48 = vld [vmem:[#allocation21_spill] sm:$0xff] }
 0x81f   :  { %8950 = vmatprep.subr.bf16.mxu0 %v13759_v50  ;;  %9434 = vmatprep.subr.bf16.mxu1 %v13762_v58  ;;  %v15363_v50 = vld [vmem:[#allocation23_spill] sm:$0xff]  ;;  %v15364_v58 = vld [vmem:[#allocation22_spill] sm:$0xff] }
 0x822   :  { %8951 = vmatpush1.bf16.msra.mxu0 %v13765_v41  ;;  %9435 = vmatpush1.bf16.msra.mxu1 %v13769_v24  ;;  %v15365_v41 = vld [vmem:[#allocation28_spill] sm:$0xff]  ;;  %v15366_v24 = vld [vmem:[#allocation25_spill] sm:$0xff] }
 0x823   :  { %8952 = vmatprep.subr.bf16.mxu0 %v13771_v53  ;;  %9436 = vmatprep.subr.bf16.mxu1 %v13774_v33  ;;  %v15367_v53 = vld [vmem:[#allocation27_spill] sm:$0xff]  ;;  %v15368_v33 = vld [vmem:[#allocation29_spill] sm:$0xff] }
 0x826   :  { %8953 = vmatpush1.bf16.msra.mxu0 %v13777_v31  ;;  %9437 = vmatpush1.bf16.msra.mxu1 %v13781_v20  ;;  %v15369_v31 = vld [vmem:[#allocation32_spill] sm:$0xff]  ;;  %v15370_v20 = vld [vmem:[#allocation26_spill] sm:$0xff] }
 0x827   :  { %8954 = vmatprep.subr.bf16.mxu0 %v13783_v19  ;;  %9438 = vmatprep.subr.bf16.mxu1 %v13786_v56  ;;  %v15371_v19 = vld [vmem:[#allocation31_spill] sm:$0xff]  ;;  %v15372_v56 = vld [vmem:[#allocation30_spill] sm:$0xff] }
 0x82a   :  { %8955 = vmatpush1.bf16.msra.mxu0 %v13789_v42  ;;  %9439 = vmatpush1.bf16.msra.mxu1 %v13793_v5  ;;  %v15373_v42 = vld [vmem:[#allocation33_spill] sm:$0xff]  ;;  %v15374_v5 = vld [vmem:[#allocation35_spill] sm:$0xff] }
 0x82b   :  { %8956 = vmatprep.subr.bf16.mxu0 %v13795_v18  ;;  %9440 = vmatprep.subr.bf16.mxu1 %v13798_v54  ;;  %v15375_v18 = vld [vmem:[#allocation36_spill] sm:$0xff]  ;;  %v15376_v54 = vld [vmem:[#allocation34_spill] sm:$0xff] }
 0x82e   :  { %8957 = vmatpush1.bf16.msra.mxu0 %v13801_v25  ;;  %9441 = vmatpush1.bf16.msra.mxu1 %v13805_v60  ;;  %v15377_v25 = vld [vmem:[#allocation40_spill] sm:$0xff]  ;;  %v15378_v60 = vld [vmem:[#allocation39_spill] sm:$0xff] }
 0x82f   :  { %8958 = vmatprep.subr.bf16.mxu0 %v13807_v7  ;;  %9442 = vmatprep.subr.bf16.mxu1 %v13810_v40  ;;  %v15379_v7 = vld [vmem:[#allocation38_spill] sm:$0xff]  ;;  %v15380_v40 = vld [vmem:[#allocation37_spill] sm:$0xff] }
 0x832   :  { %8959 = vmatpush1.bf16.msra.mxu0 %v13813_v61  ;;  %9443 = vmatpush1.bf16.msra.mxu1 %v13817_v32  ;;  %v15381_v61 = vld [vmem:[#allocation43_spill] sm:$0xff] }
 0x833   :  { %8960 = vmatprep.subr.bf16.mxu0 %v13822_v36  ;;  %9444 = vmatprep.subr.bf16.mxu1 %v13828_v62 }
 0x836   :  { %8961 = vmatpush1.bf16.msra.mxu0 %v13824_v45  ;;  %9445 = vmatpush1.bf16.msra.mxu1 %v15351_v21 }
 0x837   :  { %8962 = vmatprep.subr.bf16.mxu0 %v15352_v30  ;;  %9446 = vmatprep.subr.bf16.mxu1 %v15353_v44 }
 0x83a   :  { %8963 = vmatpush1.bf16.msra.mxu0 %v15354_v26  ;;  %9447 = vmatpush1.bf16.msra.mxu1 %v15355_v59 }
 0x83b   :  { %8964 = vmatprep.subr.bf16.mxu0 %v15356_v2  ;;  %9448 = vmatprep.subr.bf16.mxu1 %v15357_v39 }
 0x83e   :  { %8965 = vmatpush1.bf16.msra.mxu0 %v15358_v28  ;;  %9449 = vmatpush1.bf16.msra.mxu1 %v15359_v15 }
 0x83f   :  { %8966 = vmatprep.subr.bf16.mxu0 %v15360_v38  ;;  %9450 = vmatprep.subr.bf16.mxu1 %v15361_v9 }
 0x842   :  { %8967 = vmatpush1.bf16.msra.mxu0 %v15362_v48  ;;  %9451 = vmatpush1.bf16.msra.mxu1 %v15363_v50 }
 0x843   :  { %8968 = vmatprep.subr.bf16.mxu0 %v15364_v58  ;;  %9452 = vmatprep.subr.bf16.mxu1 %v15365_v41 }
 0x846   :  { %8969 = vmatpush1.bf16.msra.mxu0 %v15366_v24  ;;  %9453 = vmatpush1.bf16.msra.mxu1 %v15367_v53 }
 0x847   :  { %8970 = vmatprep.subr.bf16.mxu0 %v15368_v33  ;;  %9454 = vmatprep.subr.bf16.mxu1 %v15369_v31  ;;  %v15383_v31 = vld [vmem:[#allocation10_spill] sm:$0xff] }
 0x84a   :  { %8971 = vmatpush1.bf16.msra.mxu0 %v15370_v20  ;;  %9455 = vmatpush1.bf16.msra.mxu1 %v15371_v19 }
 0x84b   :  { %8972 = vmatprep.subr.bf16.mxu0 %v15372_v56  ;;  %9456 = vmatprep.subr.bf16.mxu1 %v15373_v42 }
 0x84e   :  { %8973 = vmatpush1.bf16.msra.mxu0 %v15374_v5  ;;  %9457 = vmatpush1.bf16.msra.mxu1 %v15375_v18 }
 0x84f   :  { %8974 = vmatprep.subr.bf16.mxu0 %v15376_v54  ;;  %9458 = vmatprep.subr.bf16.mxu1 %v15377_v25 }
 0x852   :  { %8975 = vmatpush1.bf16.msra.mxu0 %v15378_v60  ;;  %9459 = vmatpush1.bf16.msra.mxu1 %v15379_v7 }
 0x853   :  { %9179 = vmatprep.subr.bf16.mxu0 %v15380_v40  ;;  %9681 = vmatprep.subr.bf16.mxu1 %v15381_v61 }
 0x8a8   :  { %v7986_v32 = vpop.f32.mrb[48].mxu0  ;;  %v8470_v36 = vpop.f32.mrb[48].mxu1 }
 0x8a9   :  { %v7988_v45 = vpop.f32.mrb[49].mxu0  ;;  %v8472_v62 = vpop.f32.mrb[49].mxu1  ;;  %v11273_v10 = vadd.f32 %v7986_v32, %v15382_v14  ;;  %v11275_v51 = vadd.f32 %v8470_v36, %v12388_v35 }
 0x8aa   :  { %v7990_v43 = vpop.f32.mrb[50].mxu0  ;;  %v8474_v17 = vpop.f32.mrb[50].mxu1  ;;  %v11274_v12 = vadd.f32 %v7988_v45, %v12390_v37  ;;  %v11276_v6 = vadd.f32 %v8472_v62, %v12392_v4 }
 0x8ab   :  { %v7991_v11 = vpop.f32.mrb[51].mxu0  ;;  %v8475_v27 = vpop.f32.mrb[51].mxu1  ;;  %v10948_v21 = vmul.f32 -1.442695, %v11273_v10  ;;  %v10982_v30 = vmul.f32 -1.442695, %v11275_v51 }
 0x8ac   :  { %v10949_v44 = vmul.f32 -1.442695, %v11274_v12  ;;  %v10983_v26 = vmul.f32 -1.442695, %v11276_v6 }
 0x8ad   :  { %11630 = vpow2.f32 %v10948_v21 }
 0x8ae   :  { %11632 = vpow2.f32 %v10982_v30 }
 0x8af   :  { %11634 = vpow2.f32 %v10949_v44 }
 0x8b0   :  { %11636 = vpow2.f32 %v10983_v26 }
 0x8b7   :  { %v11631_v59 = vpop.eup %11630 }
 0x8b8   :  { %v11633_v2 = vpop.eup %11632  ;;  %v8236_v15 = vadd.f32 1.0, %v11631_v59 }
 0x8b9   :  { %v11635_v39 = vpop.eup %11634  ;;  %v8485_v38 = vadd.f32 1.0, %v11633_v2 }
 0x8ba   :  { %v11637_v28 = vpop.eup %11636  ;;  %v8237_v9 = vadd.f32 1.0, %v11635_v39  ;;  %11638 = vrcp.f32 %v8236_v15  ;;  %v15384_v39 = vld [vmem:[#allocation41_spill] sm:$0xff]  ;;  %v15386_v15 = vld [vmem:[#allocation44_spill] sm:$0xff] }
 0x8bb   :  { %v8486_v48 = vadd.f32 1.0, %v11637_v28  ;;  %11640 = vrcp.f32 %v8485_v38  ;;  %v15385_v28 = vld [vmem:[#allocation42_spill] sm:$0xff]  ;;  %v15387_v38 = vld [vmem:[#allocation45_spill] sm:$0xff] }
 0x8bc   :  { %11642 = vrcp.f32 %v8237_v9  ;;  %v15388_v9 = vld [vmem:[#allocation46_spill] sm:$0xff] }
 0x8bd   :  { %11644 = vrcp.f32 %v8486_v48  ;;  %v15389_v48 = vld [vmem:[#allocation47_spill] sm:$0xff] }
 0x8c4   :  { %v11639_v60 = vpop.eup %11638 }
 0x8c5   :  { %v11641_v7 = vpop.eup %11640 }
 0x8c6   :  { %v11643_v40 = vpop.eup %11642  ;;  %v8491_v45 = vmul.f32 %v11641_v7, %v13938_v1  ;;  %v15405_v7 = vld [vmem:[#allocation63_spill] sm:$0xff] }
 0x8c7   :  { %v11645_v61 = vpop.eup %11644 }
 0x8c8   :  { %v8492_v17 = vmul.f32 %v11645_v61, %v13940_v52  ;;  %v15407_v61 = vld [vmem:[#allocation65_spill] sm:$0xff] }
 0x8e8   :  { %v8221_v50 = vpop.f32.mrb[52].mxu0  ;;  %v8723_v58 = vpop.f32.mrb[52].mxu1 }
 0x8e9   :  { %v11277_v41 = vadd.f32 %v8221_v50, %v12398_v49  ;;  %v11279_v24 = vadd.f32 %v8723_v58, %v12400_v55  ;;  %v8223_v53 = vpop.f32.mrb[53].mxu0  ;;  %v8725_v33 = vpop.f32.mrb[53].mxu1  ;;  %v15390_v50 = vld [vmem:[#allocation48_spill] sm:$0xff]  ;;  %v15391_v58 = vld [vmem:[#allocation49_spill] sm:$0xff] }
 0x8ea   :  { %v11278_v20 = vadd.f32 %v8223_v53, %v15383_v31  ;;  %v11280_v19 = vadd.f32 %v8725_v33, %v12404_v57  ;;  %v8225_v56 = vpop.f32.mrb[54].mxu0  ;;  %v8727_v42 = vpop.f32.mrb[54].mxu1  ;;  %v15394_v53 = vld [vmem:[#allocation50_spill] sm:$0xff]  ;;  %v15395_v33 = vld [vmem:[#allocation53_spill] sm:$0xff] }
 0x8eb   :  { %11646 = vtanh.f32 %v11277_v41  ;;  %v11016_v5 = vmul.f32 -1.442695, %v11279_v24  ;;  %v8226_v18 = vpop.f32.mrb[55].mxu0  ;;  %v8728_v54 = vpop.f32.mrb[55].mxu1  ;;  %v15392_v41 = vld [vmem:[#allocation51_spill] sm:$0xff]  ;;  %v15393_v24 = vld [vmem:[#allocation52_spill] sm:$0xff] }
 0x8ec   :  { %11648 = vtanh.f32 %v11278_v20  ;;  %v11017_v25 = vmul.f32 -1.442695, %v11280_v19  ;;  %v15396_v20 = vld [vmem:[#allocation54_spill] sm:$0xff]  ;;  %v15397_v19 = vld [vmem:[#allocation55_spill] sm:$0xff]  ;;  %v15398_v56 = vld [vmem:[#allocation56_spill] sm:$0xff] }
 0x8ed   :  { %11650 = vpow2.f32 %v11016_v5  ;;  %v15399_v42 = vld [vmem:[#allocation57_spill] sm:$0xff]  ;;  %v15400_v5 = vld [vmem:[#allocation58_spill] sm:$0xff]  ;;  %v15401_v18 = vld [vmem:[#allocation59_spill] sm:$0xff] }
 0x8ee   :  { %11652 = vpow2.f32 %v11017_v25  ;;  %v15402_v54 = vld [vmem:[#allocation60_spill] sm:$0xff]  ;;  %v15403_v25 = vld [vmem:[#allocation61_spill] sm:$0xff] }
 0x8f5   :  { %v11647_v32 = vpop.eup %11646 }
 0x8f6   :  { %v11649_v36 = vpop.eup %11648  ;;  %v8493_v62 = vmul.f32 %v11647_v32, %v11639_v60  ;;  %v15404_v60 = vld [vmem:[#allocation62_spill] sm:$0xff] }
 0x8f7   :  { %v11651_v43 = vpop.eup %11650  ;;  %v8494_v11 = vmul.f32 %v11649_v36, %v11643_v40  ;;  %v15406_v40 = vld [vmem:[#allocation64_spill] sm:$0xff]  ;;  %v15408_v32 = vld [vmem:[#allocation66_spill] sm:$0xff]  ;;  %v15409_v36 = vld [vmem:[#allocation67_spill] sm:$0xff] }
 0x8f8   :  { %v11653_v27 = vpop.eup %11652  ;;  %v14209_v10 = vadd.f32 %v8493_v62, %v8491_v45  ;;  %v8738_v51 = vadd.f32 1.0, %v11651_v43  ;;  %v15410_v45 = vld [vmem:[#allocation68_spill] sm:$0xff]  ;;  %v15411_v62 = vld [vmem:[#allocation69_spill] sm:$0xff]  ;;  %v15412_v43 = vld [vmem:[#allocation70_spill] sm:$0xff] }
 0x8f9   :  { %v14211_v12 = vadd.f32 %v8494_v11, %v8492_v17  ;;  %v8739_v6 = vadd.f32 1.0, %v11653_v27  ;;  %v15413_v17 = vld [vmem:[#allocation71_spill] sm:$0xff]  ;;  %v15414_v11 = vld [vmem:[#allocation72_spill] sm:$0xff]  ;;  %v15415_v27 = vld [vmem:[#allocation73_spill] sm:$0xff] }
 0x8fa   :  { %11654 = vtanh.f32 %v14209_v10 }
 0x8fb   :  { %11656 = vrcp.f32 %v8738_v51  ;;  %v15416_v51 = vld [vmem:[#allocation74_spill] sm:$0xff] }
 0x8fc   :  { %11658 = vtanh.f32 %v14211_v12 }
 0x8fd   :  { %11660 = vrcp.f32 %v8739_v6  ;;  %v15417_v6 = vld [vmem:[#allocation75_spill] sm:$0xff] }
 0x904   :  { %v11655_v21 = vpop.eup %11654 }
 0x905   :  { %v11657_v1 = vpop.eup %11656 }
 0x906   :  { %v11659_v30 = vpop.eup %11658  ;;  %v8746_v44 = vmul.f32 %v11657_v1, %v11655_v21  ;;  %v15418_v21 = vld [vmem:[#allocation76_spill] sm:$0xff]  ;;  %v15419_v1 = vld [vmem:[#allocation77_spill] sm:$0xff] }
 0x907   :  { %v11661_v26 = vpop.eup %11660 }
 0x908   :  { %v8747_v52 = vmul.f32 %v11661_v26, %v11659_v30  ;;  %v14215_v59 = vpack.c.bf16 %v8746_v44, %v8746_v44  ;;  %v15420_v30 = vld [vmem:[#allocation78_spill] sm:$0xff]  ;;  %v15421_v44 = vld [vmem:[#allocation79_spill] sm:$0xff]  ;;  %v15422_v26 = vld [vmem:[#allocation80_spill] sm:$0xff] }
 0x90a   :  { %v8749_v2 = vpack.c.bf16 %v8747_v52, %v8747_v52  ;;  %8750 = vst [vmem:[#allocation2 + $0x30] sm:$0xf] %v14215_v59  ;;  %v15423_v52 = vld [vmem:[#allocation81_spill] sm:$0xff] }
 0x90c   :  { %8751 = vst [vmem:[#allocation2 + $0x38] sm:$0xf] %v8749_v2  ;;  %8976 = vmatprep.mubr.bf16.mxu0 %v8749_v2  ;;  %9460 = vmatprep.mubr.bf16.mxu1 %v8749_v2 }
 0x90d   :  { %8977 = vmatmul.mubr.bf16.vlgmr.msra.gmra.mrb[56].mxu0 %v14215_v59  ;;  %9461 = vmatmul.mubr.bf16.vlgmr.msra.gmra.mrb[56].mxu1 %v14215_v59 }
 0x90e   :  { %9180 = vmatpush1.bf16.msra.mxu0 %v15384_v39  ;;  %9682 = vmatpush1.bf16.msra.mxu1 %v15385_v28  ;;  %v15425_v39 = vld [vmem:[#allocation83_spill] sm:$0xff]  ;;  %v15426_v28 = vld [vmem:[#allocation84_spill] sm:$0xff] }
 0x90f   :  { %9211 = vmatprep.mubr.bf16.mxu0 %v8749_v2  ;;  %9713 = vmatprep.mubr.bf16.mxu1 %v8749_v2  ;;  %v15424_v2 = vld [vmem:[#allocation82_spill] sm:$0xff] }
 0x910   :  { %9181 = vmatprep.subr.bf16.mxu0 %v15386_v15  ;;  %9683 = vmatprep.subr.bf16.mxu1 %v15387_v38  ;;  %v15427_v15 = vld [vmem:[#allocation85_spill] sm:$0xff]  ;;  %v15428_v38 = vld [vmem:[#allocation86_spill] sm:$0xff] }
 0x912   :  { %9182 = vmatpush1.bf16.msra.mxu0 %v15388_v9  ;;  %9684 = vmatpush1.bf16.msra.mxu1 %v15389_v48  ;;  %v15429_v9 = vld [vmem:[#allocation87_spill] sm:$0xff]  ;;  %v15430_v48 = vld [vmem:[#allocation88_spill] sm:$0xff] }
 0x913   :  { %9183 = vmatprep.subr.bf16.mxu0 %v15390_v50  ;;  %9685 = vmatprep.subr.bf16.mxu1 %v15391_v58  ;;  %v15431_v50 = vld [vmem:[#allocation89_spill] sm:$0xff]  ;;  %v15432_v58 = vld [vmem:[#allocation90_spill] sm:$0xff] }
 0x916   :  { %9184 = vmatpush1.bf16.msra.mxu0 %v15392_v41  ;;  %9686 = vmatpush1.bf16.msra.mxu1 %v15393_v24  ;;  %v15433_v41 = vld [vmem:[#allocation91_spill] sm:$0xff]  ;;  %v11433_v24 = vld [vmem:[%s14385_s4 + $0x28] sm:$0xff]  }
 0x917   :  { %9185 = vmatprep.subr.bf16.mxu0 %v15394_v53  ;;  %9687 = vmatprep.subr.bf16.mxu1 %v15395_v33  ;;  %v11434_v53 = vld [vmem:[%s14385_s4 + $0x70] sm:$0xff]  }
 0x918   :  { %v11435_v33 = vld [vmem:[%s14385_s4 + $0x30] sm:$0xff]  }
 0x91a   :  { %9186 = vmatpush1.bf16.msra.mxu0 %v15396_v20  ;;  %9688 = vmatpush1.bf16.msra.mxu1 %v15397_v19  ;;  %v11436_v20 = vld [vmem:[%s14385_s4 + $0x78] sm:$0xff]  }
 0x91b   :  { %9187 = vmatprep.subr.bf16.mxu0 %v15398_v56  ;;  %9689 = vmatprep.subr.bf16.mxu1 %v15399_v42  ;;  %v11437_v19 = vld [vmem:[%s14385_s4 + $0x38] sm:$0xff]   ;;  %v9754_v56 = vld [vmem:[#allocation2] sm:$0xff] }
 0x91c   :  { %v9758_v42 = vld [vmem:[#allocation2 + $0x20] sm:$0xff] }
 0x91e   :  { %9188 = vmatpush1.bf16.msra.mxu0 %v15400_v5  ;;  %9690 = vmatpush1.bf16.msra.mxu1 %v15401_v18  ;;  %v9757_v5 = vld [vmem:[#allocation2 + $0x18] sm:$0xff]  ;;  %v9756_v18 = vld [vmem:[#allocation2 + $0x10] sm:$0xff] }
 0x91f   :  { %9189 = vmatprep.subr.bf16.mxu0 %v15402_v54  ;;  %9691 = vmatprep.subr.bf16.mxu1 %v15403_v25 }
 0x922   :  { %9190 = vmatpush1.bf16.msra.mxu0 %v15404_v60  ;;  %9692 = vmatpush1.bf16.msra.mxu1 %v15405_v7 }
 0x923   :  { %9191 = vmatprep.subr.bf16.mxu0 %v15406_v40  ;;  %9693 = vmatprep.subr.bf16.mxu1 %v15407_v61 }
 0x926   :  { %9192 = vmatpush1.bf16.msra.mxu0 %v15408_v32  ;;  %9694 = vmatpush1.bf16.msra.mxu1 %v15409_v36 }
 0x927   :  { %9193 = vmatprep.subr.bf16.mxu0 %v15410_v45  ;;  %9695 = vmatprep.subr.bf16.mxu1 %v15411_v62 }
 0x92a   :  { %9194 = vmatpush1.bf16.msra.mxu0 %v15412_v43  ;;  %9696 = vmatpush1.bf16.msra.mxu1 %v15413_v17 }
 0x92b   :  { %9195 = vmatprep.subr.bf16.mxu0 %v15414_v11  ;;  %9697 = vmatprep.subr.bf16.mxu1 %v15415_v27 }
 0x92e   :  { %9196 = vmatpush1.bf16.msra.mxu0 %v15416_v51  ;;  %9698 = vmatpush1.bf16.msra.mxu1 %v15417_v6 }
 0x92f   :  { %9197 = vmatprep.subr.bf16.mxu0 %v15418_v21  ;;  %9699 = vmatprep.subr.bf16.mxu1 %v15419_v1 }
 0x932   :  { %9198 = vmatpush1.bf16.msra.mxu0 %v15420_v30  ;;  %9700 = vmatpush1.bf16.msra.mxu1 %v15421_v44 }
 0x933   :  { %9199 = vmatprep.subr.bf16.mxu0 %v15422_v26  ;;  %9701 = vmatprep.subr.bf16.mxu1 %v15423_v52 }
 0x936   :  { %9200 = vmatpush1.bf16.msra.mxu0 %v15424_v2  ;;  %9702 = vmatpush1.bf16.msra.mxu1 %v15425_v39 }
 0x937   :  { %9201 = vmatprep.subr.bf16.mxu0 %v15426_v28  ;;  %9703 = vmatprep.subr.bf16.mxu1 %v15427_v15 }
 0x93a   :  { %9202 = vmatpush1.bf16.msra.mxu0 %v15428_v38  ;;  %9704 = vmatpush1.bf16.msra.mxu1 %v15429_v9 }
 0x93b   :  { %9203 = vmatprep.subr.bf16.mxu0 %v15430_v48  ;;  %9705 = vmatprep.subr.bf16.mxu1 %v15431_v50 }
 0x93e   :  { %9204 = vmatpush1.bf16.msra.mxu0 %v14087_v22  ;;  %9706 = vmatpush1.bf16.msra.mxu1 %v14089_v34  ;;  %v11422_v22 = vld [vmem:[%s14385_s4 + $0x40] sm:$0xff]  }
 0x93f   :  { %9205 = vmatprep.subr.bf16.mxu0 %v14093_v13  ;;  %9707 = vmatprep.subr.bf16.mxu1 %v15432_v58  ;;  %v11423_v34 = vld [vmem:[%s14385_s4] sm:$0xff]   ;;  %v11424_v13 = vld [vmem:[%s14385_s4 + $0x48] sm:$0xff]  }
 0x942   :  { %9206 = vmatpush1.bf16.msra.mxu0 %v15433_v41  ;;  %9708 = vmatpush1.bf16.msra.mxu1 %v14101_v3  ;;  %v9755_v3 = vld [vmem:[#allocation2 + $0x8] sm:$0xff] }
 0x943   :  { %9207 = vmatprep.subr.bf16.mxu0 %v14105_v8  ;;  %9709 = vmatprep.subr.bf16.mxu1 %v14107_v63  ;;  %v11426_v8 = vld [vmem:[%s14385_s4 + $0x50] sm:$0xff]  }
 0x944   :  { %v11427_v63 = vld [vmem:[%s14385_s4 + $0x10] sm:$0xff]  }
 0x946   :  { %9208 = vmatpush1.bf16.msra.mxu0 %v14111_v0  ;;  %9710 = vmatpush1.bf16.msra.mxu1 %v14113_v29  ;;  %v11428_v0 = vld [vmem:[%s14385_s4 + $0x58] sm:$0xff]  }
 0x947   :  { %9209 = vmatprep.subr.bf16.mxu0 %v14117_v16  ;;  %9711 = vmatprep.subr.bf16.mxu1 %v14119_v23  ;;  %v11429_v29 = vld [vmem:[%s14385_s4 + $0x18] sm:$0xff]   ;;  %v11430_v16 = vld [vmem:[%s14385_s4 + $0x60] sm:$0xff]  }
 0x948   :  { %v11431_v23 = vld [vmem:[%s14385_s4 + $0x20] sm:$0xff]  }
 0x94a   :  { %9210 = vmatpush1.bf16.msra.mxu0 %v14123_v47  ;;  %9712 = vmatpush1.bf16.msra.mxu1 %v14125_v46  ;;  %v9759_v47 = vld [vmem:[#allocation2 + $0x28] sm:$0xff] }
 0x94b   :  { %11169 = vmatprep.subr.bf16.mxu0 %v11422_v22  ;;  %11209 = vmatprep.subr.bf16.mxu1 %v11422_v22  ;;  %v11425_v46 = vld [vmem:[%s14385_s4 + $0x8] sm:$0xff]  }
 0x94d   :  { %9212 = vmatmul.mubr.bf16.vlgmr.msra.gmra.mrb[60].mxu0 %v14215_v59  ;;  %9714 = vmatmul.mubr.bf16.vlgmr.msra.gmra.mrb[60].mxu1 %v14215_v59  ;;  %v11432_v59 = vld [vmem:[%s14385_s4 + $0x68] sm:$0xff]  }
 0x94e   :  { %11170 = vmatpush3.bf16.msra.mxu0 %v11423_v34  ;;  %11217 = vmatpush3.bf16.msra.mxu1 %v11423_v34 }
 0x94f   :  { %9929 = vmatprep.mubr.bf16.mxu0 %v9755_v3  ;;  %9945 = vmatprep.mubr.bf16.mxu1 %v9759_v47 }
 0x950   :  { %11171 = vmatprep.subr.bf16.mxu0 %v11424_v13  ;;  %11210 = vmatprep.subr.bf16.mxu1 %v11424_v13 }
 0x952   :  { %11172 = vmatpush3.bf16.msra.mxu0 %v11425_v46  ;;  %11218 = vmatpush3.bf16.msra.mxu1 %v11425_v46 }
 0x953   :  { %11173 = vmatprep.subr.bf16.mxu0 %v11426_v8  ;;  %11211 = vmatprep.subr.bf16.mxu1 %v11426_v8 }
 0x956   :  { %11174 = vmatpush3.bf16.msra.mxu0 %v11427_v63  ;;  %11219 = vmatpush3.bf16.msra.mxu1 %v11427_v63 }
 0x957   :  { %11175 = vmatprep.subr.bf16.mxu0 %v11428_v0  ;;  %11212 = vmatprep.subr.bf16.mxu1 %v11428_v0 }
 0x95a   :  { %11176 = vmatpush3.bf16.msra.mxu0 %v11429_v29  ;;  %11220 = vmatpush3.bf16.msra.mxu1 %v11429_v29 }
 0x95b   :  { %11177 = vmatprep.subr.bf16.mxu0 %v11430_v16  ;;  %11213 = vmatprep.subr.bf16.mxu1 %v11430_v16 }
 0x95e   :  { %11178 = vmatpush3.bf16.msra.mxu0 %v11431_v23  ;;  %11221 = vmatpush3.bf16.msra.mxu1 %v11431_v23 }
 0x95f   :  { %11179 = vmatprep.subr.bf16.mxu0 %v11432_v59  ;;  %11214 = vmatprep.subr.bf16.mxu1 %v11432_v59 }
 0x962   :  { %11180 = vmatpush3.bf16.msra.mxu0 %v11433_v24  ;;  %11222 = vmatpush3.bf16.msra.mxu1 %v11433_v24 }
 0x963   :  { %11181 = vmatprep.subr.bf16.mxu0 %v11434_v53  ;;  %11215 = vmatprep.subr.bf16.mxu1 %v11434_v53 }
 0x966   :  { %11182 = vmatpush3.bf16.msra.mxu0 %v11435_v33  ;;  %11223 = vmatpush3.bf16.msra.mxu1 %v11435_v33 }
 0x967   :  { %11183 = vmatprep.subr.bf16.mxu0 %v11436_v20  ;;  %11216 = vmatprep.subr.bf16.mxu1 %v11436_v20 }
 0x96a   :  { %11184 = vmatpush3.bf16.msra.mxu0 %v11437_v19  ;;  %11224 = vmatpush3.bf16.msra.mxu1 %v11437_v19 }
 0x96d   :  { %9930 = vmatmul.mubr.bf16.vlgmr.msra.gmra.mrb[64].mxu0 %v9754_v56  ;;  %9946 = vmatmul.mubr.bf16.vlgmr.msra.gmra.mrb[64].mxu1 %v9758_v42 }
 0x96e   :  { %9937 = vmatprep.mubr.bf16.mxu0 %v9757_v5 }
 0x975   :  { %9938 = vmatmul.mubr.bf16.gmra.mrb[68].mxu0 %v9756_v18  ;;  %v11152_v18 = vld [vmem:[%s14386_s5] ss:$0 sm:$0xff] }
 0x9e0   :  { %v8978_v54 = vpop.f32.mrb[56].mxu0  ;;  %v9462_v25 = vpop.f32.mrb[56].mxu1 }
 0x9e1   :  { %v8980_v60 = vpop.f32.mrb[57].mxu0  ;;  %v9464_v7 = vpop.f32.mrb[57].mxu1  ;;  %v11281_v45 = vadd.f32 %v8978_v54, %v15382_v14  ;;  %v11283_v62 = vadd.f32 %v9462_v25, %v12388_v35 }
 0x9e2   :  { %v8982_v40 = vpop.f32.mrb[58].mxu0  ;;  %v9466_v61 = vpop.f32.mrb[58].mxu1  ;;  %v11282_v43 = vadd.f32 %v8980_v60, %v12390_v37  ;;  %v11284_v17 = vadd.f32 %v9464_v7, %v12392_v4 }
 0x9e3   :  { %v8983_v32 = vpop.f32.mrb[59].mxu0  ;;  %v9467_v36 = vpop.f32.mrb[59].mxu1  ;;  %v11082_v11 = vmul.f32 -1.442695, %v11281_v45  ;;  %v11116_v27 = vmul.f32 -1.442695, %v11283_v62 }
 0x9e4   :  { %v11083_v51 = vmul.f32 -1.442695, %v11282_v43  ;;  %v11117_v6 = vmul.f32 -1.442695, %v11284_v17 }
 0x9e5   :  { %11662 = vpow2.f32 %v11082_v11 }
 0x9e6   :  { %11664 = vpow2.f32 %v11116_v27 }
 0x9e7   :  { %11666 = vpow2.f32 %v11083_v51 }
 0x9e8   :  { %11668 = vpow2.f32 %v11117_v6 }
 0x9ef   :  { %v11663_v21 = vpop.eup %11662 }
 0x9f0   :  { %v11665_v1 = vpop.eup %11664  ;;  %v9228_v26 = vadd.f32 1.0, %v11663_v21 }
 0x9f1   :  { %v11667_v30 = vpop.eup %11666  ;;  %v9477_v14 = vadd.f32 1.0, %v11665_v1 }
 0x9f2   :  { %v11669_v44 = vpop.eup %11668  ;;  %v9229_v52 = vadd.f32 1.0, %v11667_v30  ;;  %11670 = vrcp.f32 %v9228_v26 }
 0x9f3   :  { %v9478_v35 = vadd.f32 1.0, %v11669_v44  ;;  %11672 = vrcp.f32 %v9477_v14 }
 0x9f4   :  { %11674 = vrcp.f32 %v9229_v52 }
 0x9f5   :  { %11676 = vrcp.f32 %v9478_v35 }
 0xa20   :  { %v9213_v37 = vpop.f32.mrb[60].mxu0  ;;  %v9715_v4 = vpop.f32.mrb[60].mxu1 }
 0xa21   :  { %v11285_v2 = vadd.f32 %v9213_v37, %v12398_v49  ;;  %v11287_v39 = vadd.f32 %v9715_v4, %v12400_v55  ;;  %v9215_v28 = vpop.f32.mrb[61].mxu0  ;;  %v9717_v15 = vpop.f32.mrb[61].mxu1 }
 0xa22   :  { %v11286_v38 = vadd.f32 %v9215_v28, %v15383_v31  ;;  %v11288_v9 = vadd.f32 %v9717_v15, %v12404_v57  ;;  %v9217_v48 = vpop.f32.mrb[62].mxu0  ;;  %v9719_v50 = vpop.f32.mrb[62].mxu1 }
 0xa23   :  { %11678 = vtanh.f32 %v11285_v2  ;;  %v11150_v58 = vmul.f32 -1.442695, %v11287_v39  ;;  %v9218_v41 = vpop.f32.mrb[63].mxu0  ;;  %v9720_v22 = vpop.f32.mrb[63].mxu1 }
 0xa24   :  { %11680 = vtanh.f32 %v11286_v38  ;;  %v11151_v34 = vmul.f32 -1.442695, %v11288_v9  ;;  %v11671_v49 = vpop.eup %11670 }
 0xa25   :  { %11682 = vpow2.f32 %v11150_v58  ;;  %v11673_v13 = vpop.eup %11672 }
 0xa26   :  { %11684 = vpow2.f32 %v11151_v34  ;;  %v11675_v55 = vpop.eup %11674  ;;  %v9483_v31 = vmul.f32 %v11673_v13, %v14209_v10 }
 0xa27   :  { %v11677_v3 = vpop.eup %11676 }
 0xa28   :  { %v9484_v63 = vmul.f32 %v11677_v3, %v14211_v12 }
 0xa2d   :  { %v11679_v47 = vpop.eup %11678 }
 0xa2e   :  { %v11681_v46 = vpop.eup %11680  ;;  %v9485_v8 = vmul.f32 %v11679_v47, %v11671_v49 }
 0xa2f   :  { %v11683_v57 = vpop.eup %11682  ;;  %v9486_v0 = vmul.f32 %v11681_v46, %v11675_v55 }
 0xa30   :  { %v11685_v29 = vpop.eup %11684  ;;  %v9487_v16 = vadd.f32 %v9485_v8, %v9483_v31  ;;  %v9730_v23 = vadd.f32 1.0, %v11683_v57 }
 0xa31   :  { %v9488_v59 = vadd.f32 %v9486_v0, %v9484_v63  ;;  %v9731_v24 = vadd.f32 1.0, %v11685_v29 }
 0xa32   :  { %11686 = vtanh.f32 %v9487_v16  ;;  %9752 = vst [vmem:[%s14391_s10] sm:$0xff] %v9487_v16 }
 0xa33   :  { %11688 = vrcp.f32 %v9730_v23  ;;  %9753 = vst [vmem:[%s14391_s10 + $0x8] sm:$0xff] %v9488_v59 }
 0xa34   :  { %11690 = vtanh.f32 %v9488_v59 }
 0xa35   :  { %11692 = vrcp.f32 %v9731_v24 }
 0xa3c   :  { %v11687_v10 = vpop.eup %11686 }
 0xa3d   :  { %v11689_v12 = vpop.eup %11688 }
 0xa3e   :  { %v11691_v53 = vpop.eup %11690  ;;  %v9738_v33 = vmul.f32 %v11689_v12, %v11687_v10 }
 0xa3f   :  { %v11693_v20 = vpop.eup %11692 }
 0xa40   :  { %v9740_v19 = vpack.c.bf16 %v9738_v33, %v9738_v33  ;;  %9750 = vst [vmem:[%s14390_s9] sm:$0xff] %v9738_v33  ;;  %v9739_v56 = vmul.f32 %v11693_v20, %v11691_v53  ;;  %v11185_v42 = vpop.f32.mrb[64].mxu0  ;;  %v11197_v5 = vpop.f32.mrb[64].mxu1 }
 0xa41   :  { %v11186_v54 = vpop.f32.mrb[65].mxu0  ;;  %v11198_v25 = vpop.f32.mrb[65].mxu1 }
 0xa42   :  { %v9744_v60 = vrot.slane %v9740_v19, 4  ;;  %v9741_v7 = vpack.c.bf16 %v9739_v56, %v9739_v56  ;;  %9751 = vst [vmem:[%s14390_s9 + $0x8] sm:$0xff] %v9739_v56  ;;  %v11187_v40 = vadd.f32 %v11186_v54, %v11185_v42  ;;  %v11199_v61 = vadd.f32 %v11198_v25, %v11197_v5  ;;  %v11188_v32 = vpop.f32.mrb[66].mxu0  ;;  %v11200_v36 = vpop.f32.mrb[66].mxu1 }
 0xa43   :  { %v11189_v45 = vpop.f32.mrb[67].mxu0  ;;  %v11201_v62 = vpop.f32.mrb[67].mxu1 }
 0xa44   :  { %9748 = vst [vmem:[#allocation2 + $0x30] sm:$0xf0] %v9744_v60  ;;  %v9745_v43 = vrot.slane %v9741_v7, 4  ;;  %v9932_v17 = vadd.f32 %v11187_v40, %v11152_v18  ;;  %v9948_v11 = vadd.f32 %v11199_v61, %v11152_v18  ;;  %v11190_v27 = vadd.f32 %v11189_v45, %v11188_v32 }
 0xa45   :  { %v11202_v51 = vadd.f32 %v11201_v62, %v11200_v36 }
 0xa46   :  { %9749 = vst [vmem:[#allocation2 + $0x38] sm:$0xf0] %v9745_v43  ;;  %11694 = vtanh.f32 %v9932_v17  ;;  %v9935_v6 = vadd.f32 %v11190_v27, %v11152_v18 }
 0xa47   :  { %11696 = vtanh.f32 %v9948_v11  ;;  %v9951_v21 = vadd.f32 %v11202_v51, %v11152_v18 }
 0xa48   :  { %11698 = vtanh.f32 %v9935_v6  ;;  %v11191_v1 = vpop.f32.mrb[68].mxu0 }
 0xa49   :  { %11700 = vtanh.f32 %v9951_v21  ;;  %v11192_v30 = vpop.f32.mrb[69].mxu0 }
 0xa4a   :  { %v11193_v44 = vadd.f32 %v11192_v30, %v11191_v1  ;;  %v11194_v26 = vpop.f32.mrb[70].mxu0 }
 0xa4b   :  { %v11195_v14 = vpop.f32.mrb[71].mxu0  ;;  %v9760_v2 = vld [vmem:[#allocation2 + $0x30] sm:$0xff] }
 0xa4c   :  { %v9940_v52 = vadd.f32 %v11193_v44, %v11152_v18  ;;  %v11196_v35 = vadd.f32 %v11195_v14, %v11194_v26 }
 0xa4d   :  { %v9761_v37 = vld [vmem:[#allocation2 + $0x38] sm:$0xff] }
 0xa4e   :  { %11702 = vtanh.f32 %v9940_v52  ;;  %v9943_v4 = vadd.f32 %v11196_v35, %v11152_v18  ;;  %9953 = vmatprep.mubr.bf16.mxu1 %v9761_v37 }
 0xa4f   :  { %9954 = vmatmul.mubr.bf16.gmra.mrb[68].mxu1 %v9760_v2 }
 0xa50   :  { %v11695_v39 = vpop.eup %11694  ;;  %11704 = vtanh.f32 %v9943_v4 }
 0xa51   :  { %v11697_v28 = vpop.eup %11696  ;;  %9970 = vst [vmem:[%s14389_s8] sm:$0xff] %v11695_v39 }
 0xa52   :  { %v11699_v15 = vpop.eup %11698  ;;  %9974 = vst [vmem:[%s14389_s8 + $0x20] sm:$0xff] %v11697_v28 }
 0xa53   :  { %v11701_v38 = vpop.eup %11700  ;;  %9971 = vst [vmem:[%s14389_s8 + $0x8] sm:$0xff] %v11699_v15 }
 0xa54   :  { %9975 = vst [vmem:[%s14389_s8 + $0x28] sm:$0xff] %v11701_v38 }
 0xa58   :  { %v11703_v9 = vpop.eup %11702 }
 0xa59   :  { %9972 = vst [vmem:[%s14389_s8 + $0x10] sm:$0xff] %v11703_v9 }
 0xa5a   :  { %v11705_v48 = vpop.eup %11704 }
 0xa5b   :  { %9973 = vst [vmem:[%s14389_s8 + $0x18] sm:$0xff] %v11705_v48 }
 0xb22   :  { %v11203_v50 = vpop.f32.mrb[68].mxu1 }
 0xb23   :  { %v11204_v58 = vpop.f32.mrb[69].mxu1 }
 0xb24   :  { %v11205_v41 = vadd.f32 %v11204_v58, %v11203_v50  ;;  %v11206_v22 = vpop.f32.mrb[70].mxu1 }
 0xb25   :  { %v11207_v34 = vpop.f32.mrb[71].mxu1 }
 0xb26   :  { %v9956_v49 = vadd.f32 %v11205_v41, %v11152_v18  ;;  %v11208_v13 = vadd.f32 %v11207_v34, %v11206_v22 }
 0xb28   :  { %11706 = vtanh.f32 %v9956_v49  ;;  %v9959_v55 = vadd.f32 %v11208_v13, %v11152_v18 }
 0xb2a   :  { %11708 = vtanh.f32 %v9959_v55 }
 0xb32   :  { %v11707_v3 = vpop.eup %11706 }
 0xb33   :  { %9976 = vst [vmem:[%s14389_s8 + $0x30] sm:$0xff] %v11707_v3 }
 0xb34   :  { %v11709_v47 = vpop.eup %11708 }
 0xb35   :  { %9977 = vst [vmem:[%s14389_s8 + $0x38] sm:$0xff] %v11709_v47 }
 0xb36   :  { %9990 = vsyncpa [#allocation4], 1 }
 0xb37   :  { %9991 = vsyncpa [#allocation6], 1 }

</bundles_post_ra>
